<compile_context>
chip_gen: v7x
topology: tpu7x:2x2x1
jax: 0.10.0
libtpu: 0.0.40
codegen_flags: <defaults>
</compile_context>

<pallas_src>
import jax
import jax.numpy as jnp
from jax.experimental import pallas as pl
from jax.experimental.pallas import tpu as pltpu


def _round_up(n, m):
    return ((n + m - 1) // m) * m


# ---------------------------------------------------------------------------
# Kernel 1: conv1 (KxK, stride 1, same pad) + folded-BN bias + SiLU
# grid = (Cout_tiles, B)  -- weight tile constant across the inner batch axis.
# ---------------------------------------------------------------------------
def _conv1_kernel(x_ref, w_ref, b_ref, o_ref, xpad_ref, acc_ref):
    # x_ref   : (1, H, W, Cin)      bf16
    # w_ref   : (K, K, Cin, Ct)     bf16 (BN scale folded in)
    # b_ref   : (1, Ct)             f32  (folded BN bias)
    # o_ref   : (1, H, W, Ct)       bf16
    # xpad_ref: (H+2p, W+2p, Cin)   bf16 VMEM scratch (in-kernel zero padding)
    # acc_ref : (H*W, Ct)           f32  VMEM accumulator
    _, H, W, Cin = x_ref.shape
    K = w_ref.shape[0]
    Ct = w_ref.shape[3]
    p = K // 2
    Hp = H + 2 * p
    Wp = W + 2 * p

    # Zero only the halo border (interior is fully overwritten below).
    zrow = jnp.zeros((p, Wp, Cin), xpad_ref.dtype)
    xpad_ref[0:p, :, :] = zrow
    xpad_ref[Hp - p:Hp, :, :] = zrow
    zcol = jnp.zeros((Hp, p, Cin), xpad_ref.dtype)
    xpad_ref[:, 0:p, :] = zcol
    xpad_ref[:, Wp - p:Wp, :] = zcol
    xpad_ref[p:p + H, p:p + W, :] = x_ref[0]

    acc_ref[...] = jnp.zeros_like(acc_ref)
    # One W-shifted band per kx (reused across all ky) instead of K*K slabs.
    # TODO(synk): if the sublane-offset band slice materializes a relayout
    # copy (check bundle dump), switch to pltpu.roll on the W axis (XLU slot).
    for kx in range(K):
        band = xpad_ref[:, kx:kx + W, :]              # (Hp, W, Cin)
        for ky in range(K):                           # leading-dim slice: free
            slab = band[ky:ky + H].reshape(H * W, Cin)
            acc_ref[...] += jnp.dot(slab, w_ref[ky, kx],
                                    preferred_element_type=jnp.float32)

    y = acc_ref[...] + b_ref[...]        # folded BN bias
    y = y * jax.nn.sigmoid(y)            # SiLU
    o_ref[...] = y.reshape(1, H, W, Ct).astype(o_ref.dtype)


def conv1_bn_silu(x_nhwc, w, bias):
    """x_nhwc: (B,H,W,Cin) bf16; w: (K,K,Cin,Cout) bf16 (scale folded); bias: (1,Cout) f32."""
    B, H, W, Cin = x_nhwc.shape
    K, _, _, Cout = w.shape
    p = K // 2

    # Cout tile: 256 fills the 256-wide MXU on v6e/v7x; 128 otherwise (v5e MXU
    # width / non-divisible Cout); fall back to full Cout for tiny channels.
    if Cout % 256 == 0:
        ct = 256
    elif Cout % 128 == 0:
        ct = 128
    else:
        ct = Cout
    jc = Cout // ct

    # Explicit VMEM budget (double-buffered ins/outs + scratch); only raise the
    # scoped limit when we would exceed the 32 MiB default (v7x: 64 MiB phys).
    est = (2 * H * W * Cin * 2            # x blocks (x2 pipeline buffers)
           + 2 * K * K * Cin * ct * 2     # weight blocks
           + 2 * H * W * ct * 2           # out blocks
           + (H + 2 * p) * (W + 2 * p) * Cin * 2   # pad scratch
           + H * W * ct * 4               # f32 accumulator scratch
           + 4 * ct * 4)                  # bias blocks (generous)
    vmem_limit = None
    if est > 30 * 1024 * 1024:
        cap = 128 * 1024 * 1024
        try:
            cap = pltpu.get_tpu_info().vmem_capacity_bytes
        except Exception:
            pass
        vmem_limit = min(int(est * 1.25), cap)

    return pl.pallas_call(
        _conv1_kernel,
        out_shape=jax.ShapeDtypeStruct((B, H, W, Cout), jnp.bfloat16),
        # Cout-tile axis OUTER, batch INNER: the weight block index is constant
        # across consecutive inner steps, so Pallas does not re-DMA it.
        grid=(jc, B),
        in_specs=[
            pl.BlockSpec((1, H, W, Cin), lambda j, b: (b, 0, 0, 0)),
            pl.BlockSpec((K, K, Cin, ct), lambda j, b: (0, 0, 0, j)),
            pl.BlockSpec((1, ct), lambda j, b: (0, j)),
        ],
        out_specs=pl.BlockSpec((1, H, W, ct), lambda j, b: (b, 0, 0, j)),
        scratch_shapes=[
            pltpu.VMEM((H + 2 * p, W + 2 * p, Cin), jnp.bfloat16),
            pltpu.VMEM((H * W, ct), jnp.float32),
        ],
        compiler_params=pltpu.CompilerParams(
            dimension_semantics=("parallel", "parallel"),
            vmem_limit_bytes=vmem_limit),
    )(x_nhwc, w, bias)


# ---------------------------------------------------------------------------
# Kernel 2 (fused): conv2 (3x3, Cout=1) + folded-BN bias + SiLU + softmax(W)
# + threshold masks.  The channel reduction runs on the MXU: the 9 taps are
# stacked as output columns of ONE matmul over the padded plane; the per-tap
# spatial shifts are combined with one-hot lane masks + one lane reduce.
# ---------------------------------------------------------------------------
def _conv2_softmax_mask_kernel(x_ref, w_ref, b_ref, m_ref, xpad_ref):
    # x_ref   : (1, H, W, C1)       bf16
    # w_ref   : (C1, 128)           bf16; column ky*3+kx holds w2[ky,kx,:]*scale2
    # b_ref   : (1, 1)              f32  (folded BN bias)
    # m_ref   : (1, 3, H, W)        f32  [pos, uncertain, neg]
    # xpad_ref: (H+2p, Wp_aligned, C1) bf16 VMEM scratch
    _, H, W, C1 = x_ref.shape
    Hp, Wp, _ = xpad_ref.shape
    p = (Hp - H) // 2
    K2 = 2 * p + 1

    # Border (halo + lane-alignment padding columns) zero; interior overwrite.
    zrow = jnp.zeros((p, Wp, C1), xpad_ref.dtype)
    xpad_ref[0:p, :, :] = zrow
    xpad_ref[Hp - p:Hp, :, :] = zrow
    xpad_ref[:, 0:p, :] = jnp.zeros((Hp, p, C1), xpad_ref.dtype)
    xpad_ref[:, p + W:Wp, :] = jnp.zeros((Hp, Wp - W - p, C1), xpad_ref.dtype)
    xpad_ref[p:p + H, p:p + W, :] = x_ref[0]

    # One MXU matmul: (Hp*Wp, C1) @ (C1, 128) -> per-tap response planes.
    xflat = xpad_ref[...].reshape(Hp * Wp, C1)
    taps = jnp.dot(xflat, w_ref[...], preferred_element_type=jnp.float32)
    taps = taps.reshape(Hp, Wp, 128)

    lane = jax.lax.broadcasted_iota(jnp.int32, (1, 1, 128), 2)
    acc = jnp.zeros((H, W, 128), jnp.float32)
    for kx in range(K2):
        band = taps[:, kx:kx + W, :]                   # (Hp, W, 128)
        for ky in range(K2):
            t = ky * K2 + kx
            onehot = (lane == t).astype(jnp.float32)   # (1, 1, 128)
            acc = acc + band[ky:ky + H] * onehot       # pick tap t's lane
    s = jnp.sum(acc, axis=-1) + b_ref[...]             # (H, W) + (1, 1)
    s = s * jax.nn.sigmoid(s)                          # SiLU

    # softmax over the last (W) axis, divide on the EUP
    m = jnp.max(s, axis=-1, keepdims=True)
    e = jnp.exp(s - m)
    prob = e * pl.reciprocal(jnp.sum(e, axis=-1, keepdims=True), approx=True)

    pos = (prob < 0.33).astype(jnp.float32)
    neg = (prob >= 0.66).astype(jnp.float32)
    m_ref[0, 0] = pos
    m_ref[0, 1] = 1.0 - pos - neg                      # uncertain (no extra cmp)
    m_ref[0, 2] = neg


def conv2_softmax_masks(h_nhwc, w2_taps, b2):
    """h_nhwc: (B,H,W,C1) bf16; w2_taps: (C1,128) bf16 (taps stacked, lane-padded);
    b2: (1,1) f32."""
    B, H, W, C1 = h_nhwc.shape
    p = 1
    Hp = H + 2 * p
    Wp = _round_up(W + 2 * p, 8)   # sublane-aligned padded width (free reshapes)
    return pl.pallas_call(
        _conv2_softmax_mask_kernel,
        out_shape=jax.ShapeDtypeStruct((B, 3, H, W), jnp.float32),
        grid=(B,),
        in_specs=[
            pl.BlockSpec((1, H, W, C1), lambda b: (b, 0, 0, 0)),
            pl.BlockSpec((C1, 128), lambda b: (0, 0)),
            pl.BlockSpec((1, 1), lambda b: (0, 0)),
        ],
        out_specs=pl.BlockSpec((1, 3, H, W), lambda b: (b, 0, 0, 0)),
        scratch_shapes=[pltpu.VMEM((Hp, Wp, C1), jnp.bfloat16)],
        compiler_params=pltpu.CompilerParams(dimension_semantics=("parallel",)),
    )(h_nhwc, w2_taps, b2)


# ---------------------------------------------------------------------------
# Module-equivalent wrapper (NCHW in / three NCHW masks out)
# ---------------------------------------------------------------------------
def score_layer_use_conv(x, params, channels_last=False):
    if channels_last:
        xh = x.astype(jnp.bfloat16)                               # already NHWC
    else:
        xh = jnp.transpose(x, (0, 2, 3, 1)).astype(jnp.bfloat16)  # NHWC bf16

    # conv1: fold BN scale into the weights (host-side, one-time).
    # NOTE: if BN scales are far from 1, fold into the f32 bias path instead.
    w1 = (params["w1"] * params["scale1"][None, None, None, :]).astype(jnp.bfloat16)
    b1 = params["bias1"][None, :].astype(jnp.float32)             # (1, C1)
    h = conv1_bn_silu(xh, w1, b1)                                 # (B,H,W,C1)

    # conv2 taps stacked as MXU output columns (lane-padded to 128)
    C1 = params["w2"].shape[2]
    K2 = params["w2"].shape[0]
    w2f = params["w2"][..., 0] * params["scale2"][0]              # (K2,K2,C1)
    w2_taps = jnp.transpose(w2f.reshape(K2 * K2, C1), (1, 0))     # (C1, 9)
    w2_taps = jnp.pad(w2_taps, ((0, 0), (0, 128 - K2 * K2))).astype(jnp.bfloat16)
    b2 = params["bias2"].reshape(1, 1).astype(jnp.float32)

    masks = conv2_softmax_masks(h, w2_taps, b2)                   # (B,3,H,W)
    return masks[:, 0:1], masks[:, 1:2], masks[:, 2:3]            # (B,1,H,W) x3


# ---------------------------------------------------------------------------
# Deterministic parameter init (synthetic — no checkpoint load)
# ---------------------------------------------------------------------------
def init_params(key, embed_dim):
    c1 = embed_dim // 2
    kw1, kw2 = jax.random.split(key, 2)
    w1 = 0.05 * jax.random.normal(kw1, (5, 5, embed_dim, c1), jnp.float32)
    w2 = 0.05 * jax.random.normal(kw2, (3, 3, c1, 1), jnp.float32)

    eps = 1e-5

    def bn_fold(cout):  # fresh BatchNorm2d in eval mode
        gamma = jnp.ones((cout,), jnp.float32)
        beta = jnp.zeros((cout,), jnp.float32)
        mean = jnp.zeros((cout,), jnp.float32)
        var = jnp.ones((cout,), jnp.float32)
        scale = gamma / jnp.sqrt(var + eps)
        bias = beta - mean * scale
        return scale, bias

    s1, b1 = bn_fold(c1)
    s2, b2 = bn_fold(1)
    return dict(w1=w1, scale1=s1, bias1=b1, w2=w2, scale2=s2, bias2=b2)


# ---------------------------------------------------------------------------
# Pure-JAX f32 reference (returns softmax probs + masks for a robust check)
# ---------------------------------------------------------------------------
def _ref_forward(x_nchw, params):
    def conv(x, w, scale, bias):
        y = jax.lax.conv_general_dilated(
            x, w, window_strides=(1, 1), padding="SAME",
            dimension_numbers=("NCHW", "HWIO", "NCHW"))
        y = y * scale[None, :, None, None] + bias[None, :, None, None]
        return y * jax.nn.sigmoid(y)

    h = conv(x_nchw, params["w1"], params["scale1"], params["bias1"])
    h = conv(h, params["w2"], params["scale2"], params["bias2"])
    prob = jax.nn.softmax(h, axis=-1)
    masks = ((prob < 0.33).astype(jnp.float32),
             ((prob >= 0.33) & (prob < 0.66)).astype(jnp.float32),
             (prob >= 0.66).astype(jnp.float32))
    return prob, masks


if __name__ == "__main__":
    B, H, W = 2, 16, 16
    embed_dim = 32                       # small stand-in for the default 768

    key = jax.random.PRNGKey(0)
    kx, kp = jax.random.split(key)
    x = jax.random.normal(kx, (B, embed_dim, H, W), jnp.float32)
    params = init_params(kp, embed_dim)

    outs = score_layer_use_conv(x, params)
    outs = jax.block_until_ready(outs)

    ref_prob, ref_masks = _ref_forward(x, params)
    # bf16 compute / approx reciprocal can legitimately flip masks only when
    # the reference probability sits right at a threshold; exempt that band.
    tol = 2e-2
    near_thr = (jnp.abs(ref_prob - 0.33) < tol) | (jnp.abs(ref_prob - 0.66) < tol)
    for got, want in zip(outs, ref_masks):
        assert got.shape == want.shape == (B, 1, H, W), (got.shape, want.shape)
        mismatch = (got != want) & (~near_thr)
        assert not bool(jnp.any(mismatch)), "mask mismatch vs JAX reference"

    print("KERNEL_OK")
</pallas_src>

<mosaic_0001>
module attributes {stable_mosaic.version = 11 : i64} {
  func.func @_conv1_kernel(%arg0: i32, %arg1: i32, %arg2: memref<1x16x16x32xbf16, #tpu.memory_space<vmem>>, %arg3: memref<5x5x32x16xbf16, #tpu.memory_space<vmem>>, %arg4: memref<1x16xf32, #tpu.memory_space<vmem>>, %arg5: memref<1x16x16x16xbf16, #tpu.memory_space<vmem>>, %arg6: memref<20x20x32xbf16, #tpu.memory_space<vmem>>, %arg7: memref<256x16xf32, #tpu.memory_space<vmem>>) attributes {dimension_semantics = [#tpu.dimension_semantics<parallel>, #tpu.dimension_semantics<parallel>], iteration_bounds = array<i64: 1, 2>, scalar_prefetch = 0 : i64, scratch_operands = 2 : i64, tpu.core_type = #tpu.core_type<tc>, window_params = [{transform_indices = @transform_0, window_bounds = array<i64: 1, 16, 16, 32>}, {transform_indices = @transform_1, window_bounds = array<i64: 5, 5, 32, 16>}, {transform_indices = @transform_2, window_bounds = array<i64: 1, 16>}, {transform_indices = @transform_3, window_bounds = array<i64: 1, 16, 16, 16>}]} {
    %cst = arith.constant 0.000000e+00 : bf16
    %0 = vector.broadcast %cst : bf16 to vector<2x20x32xbf16>
    %c0 = arith.constant 0 : index
    %c0_0 = arith.constant 0 : index
    %c0_1 = arith.constant 0 : index
    %1 = vector.load %arg6[%c0, %c0_0, %c0_1] : memref<20x20x32xbf16, #tpu.memory_space<vmem>>, vector<2x20x32xbf16>
    tpu.vector_store %arg6[%c0, %c0_0, %c0_1], %0 {strides = array<i32>} : memref<20x20x32xbf16, #tpu.memory_space<vmem>>, vector<2x20x32xbf16>,
    %c18 = arith.constant 18 : index
    %c0_2 = arith.constant 0 : index
    %c0_3 = arith.constant 0 : index
    %2 = vector.load %arg6[%c18, %c0_2, %c0_3] : memref<20x20x32xbf16, #tpu.memory_space<vmem>>, vector<2x20x32xbf16>
    tpu.vector_store %arg6[%c18, %c0_2, %c0_3], %0 {strides = array<i32>} : memref<20x20x32xbf16, #tpu.memory_space<vmem>>, vector<2x20x32xbf16>,
    %cst_4 = arith.constant 0.000000e+00 : bf16
    %3 = vector.broadcast %cst_4 : bf16 to vector<20x2x32xbf16>
    %c0_5 = arith.constant 0 : index
    %c0_6 = arith.constant 0 : index
    %c0_7 = arith.constant 0 : index
    %4 = vector.load %arg6[%c0_5, %c0_6, %c0_7] : memref<20x20x32xbf16, #tpu.memory_space<vmem>>, vector<20x2x32xbf16>
    tpu.vector_store %arg6[%c0_5, %c0_6, %c0_7], %3 {strides = array<i32>} : memref<20x20x32xbf16, #tpu.memory_space<vmem>>, vector<20x2x32xbf16>,
    %c0_8 = arith.constant 0 : index
    %c18_9 = arith.constant 18 : index
    %c0_10 = arith.constant 0 : index
    %5 = vector.load %arg6[%c0_8, %c18_9, %c0_10] : memref<20x20x32xbf16, #tpu.memory_space<vmem>>, vector<20x2x32xbf16>
    tpu.vector_store %arg6[%c0_8, %c18_9, %c0_10], %3 {strides = array<i32>} : memref<20x20x32xbf16, #tpu.memory_space<vmem>>, vector<20x2x32xbf16>,
    %c0_11 = arith.constant 0 : index
    %c0_12 = arith.constant 0 : index
    %c0_13 = arith.constant 0 : index
    %c0_14 = arith.constant 0 : index
    %6 = vector.load %arg2[%c0_11, %c0_12, %c0_13, %c0_14] : memref<1x16x16x32xbf16, #tpu.memory_space<vmem>>, vector<1x16x16x32xbf16>
    %7 = vector.shape_cast %6 : vector<1x16x16x32xbf16> to vector<16x16x32xbf16>
    %c2 = arith.constant 2 : index
    %c2_15 = arith.constant 2 : index
    %c0_16 = arith.constant 0 : index
    %8 = vector.load %arg6[%c2, %c2_15, %c0_16] : memref<20x20x32xbf16, #tpu.memory_space<vmem>>, vector<16x16x32xbf16>
    tpu.vector_store %arg6[%c2, %c2_15, %c0_16], %7 {strides = array<i32>} : memref<20x20x32xbf16, #tpu.memory_space<vmem>>, vector<16x16x32xbf16>,
    %cst_17 = arith.constant 0.000000e+00 : f32
    %9 = vector.broadcast %cst_17 : f32 to vector<256x16xf32>
    %c0_18 = arith.constant 0 : index
    %c0_19 = arith.constant 0 : index
    %10 = vector.load %arg7[%c0_18, %c0_19] : memref<256x16xf32, #tpu.memory_space<vmem>>, vector<256x16xf32>
    tpu.vector_store %arg7[%c0_18, %c0_19], %9 {strides = array<i32>} : memref<256x16xf32, #tpu.memory_space<vmem>>, vector<256x16xf32>,
    %c0_20 = arith.constant 0 : index
    %c0_21 = arith.constant 0 : index
    %c0_22 = arith.constant 0 : index
    %11 = vector.load %arg6[%c0_20, %c0_21, %c0_22] : memref<20x20x32xbf16, #tpu.memory_space<vmem>>, vector<20x16x32xbf16>
    %12 = vector.extract_strided_slice %11 {offsets = [0, 0, 0], sizes = [16, 16, 32], strides = [1, 1, 1]} : vector<20x16x32xbf16> to vector<16x16x32xbf16>
    %13 = vector.shape_cast %12 : vector<16x16x32xbf16> to vector<256x32xbf16>
    %c0_23 = arith.constant 0 : index
    %c0_24 = arith.constant 0 : index
    %14 = vector.load %arg7[%c0_23, %c0_24] : memref<256x16xf32, #tpu.memory_space<vmem>>, vector<256x16xf32>
    %c0_25 = arith.constant 0 : index
    %c0_26 = arith.constant 0 : index
    %c0_27 = arith.constant 0 : index
    %c0_28 = arith.constant 0 : index
    %15 = vector.load %arg3[%c0_25, %c0_26, %c0_27, %c0_28] : memref<5x5x32x16xbf16, #tpu.memory_space<vmem>>, vector<1x1x32x16xbf16>
    %16 = vector.shape_cast %15 : vector<1x1x32x16xbf16> to vector<32x16xbf16>
    %cst_29 = arith.constant dense<0.000000e+00> : vector<256x16xf32>
    %17 = tpu.matmul %13, %16, %cst_29 {dimension_numbers = #tpu.dot_dimension_numbers<[1], [0], [0], [1], [0, 0, 1, 1], [], []>} : vector<256x32xbf16>, vector<32x16xbf16>, vector<256x16xf32> -> vector<256x16xf32>
    %18 = arith.addf %14, %17 : vector<256x16xf32>
    %c0_30 = arith.constant 0 : index
    %c0_31 = arith.constant 0 : index
    %19 = vector.load %arg7[%c0_30, %c0_31] : memref<256x16xf32, #tpu.memory_space<vmem>>, vector<256x16xf32>
    tpu.vector_store %arg7[%c0_30, %c0_31], %18 {strides = array<i32>} : memref<256x16xf32, #tpu.memory_space<vmem>>, vector<256x16xf32>,
    %20 = vector.extract_strided_slice %11 {offsets = [1, 0, 0], sizes = [16, 16, 32], strides = [1, 1, 1]} : vector<20x16x32xbf16> to vector<16x16x32xbf16>
    %21 = vector.shape_cast %20 : vector<16x16x32xbf16> to vector<256x32xbf16>
    %c0_32 = arith.constant 0 : index
    %c0_33 = arith.constant 0 : index
    %22 = vector.load %arg7[%c0_32, %c0_33] : memref<256x16xf32, #tpu.memory_space<vmem>>, vector<256x16xf32>
    %c1 = arith.constant 1 : index
    %c0_34 = arith.constant 0 : index
    %c0_35 = arith.constant 0 : index
    %c0_36 = arith.constant 0 : index
    %23 = vector.load %arg3[%c1, %c0_34, %c0_35, %c0_36] : memref<5x5x32x16xbf16, #tpu.memory_space<vmem>>, vector<1x1x32x16xbf16>
    %24 = vector.shape_cast %23 : vector<1x1x32x16xbf16> to vector<32x16xbf16>
    %cst_37 = arith.constant dense<0.000000e+00> : vector<256x16xf32>
    %25 = tpu.matmul %21, %24, %cst_37 {dimension_numbers = #tpu.dot_dimension_numbers<[1], [0], [0], [1], [0, 0, 1, 1], [], []>} : vector<256x32xbf16>, vector<32x16xbf16>, vector<256x16xf32> -> vector<256x16xf32>
    %26 = arith.addf %22, %25 : vector<256x16xf32>
    %c0_38 = arith.constant 0 : index
    %c0_39 = arith.constant 0 : index
    %27 = vector.load %arg7[%c0_38, %c0_39] : memref<256x16xf32, #tpu.memory_space<vmem>>, vector<256x16xf32>
    tpu.vector_store %arg7[%c0_38, %c0_39], %26 {strides = array<i32>} : memref<256x16xf32, #tpu.memory_space<vmem>>, vector<256x16xf32>,
    %28 = vector.extract_strided_slice %11 {offsets = [2, 0, 0], sizes = [16, 16, 32], strides = [1, 1, 1]} : vector<20x16x32xbf16> to vector<16x16x32xbf16>
    %29 = vector.shape_cast %28 : vector<16x16x32xbf16> to vector<256x32xbf16>
    %c0_40 = arith.constant 0 : index
    %c0_41 = arith.constant 0 : index
    %30 = vector.load %arg7[%c0_40, %c0_41] : memref<256x16xf32, #tpu.memory_space<vmem>>, vector<256x16xf32>
    %c2_42 = arith.constant 2 : index
    %c0_43 = arith.constant 0 : index
    %c0_44 = arith.constant 0 : index
    %c0_45 = arith.constant 0 : index
    %31 = vector.load %arg3[%c2_42, %c0_43, %c0_44, %c0_45] : memref<5x5x32x16xbf16, #tpu.memory_space<vmem>>, vector<1x1x32x16xbf16>
    %32 = vector.shape_cast %31 : vector<1x1x32x16xbf16> to vector<32x16xbf16>
    %cst_46 = arith.constant dense<0.000000e+00> : vector<256x16xf32>
    %33 = tpu.matmul %29, %32, %cst_46 {dimension_numbers = #tpu.dot_dimension_numbers<[1], [0], [0], [1], [0, 0, 1, 1], [], []>} : vector<256x32xbf16>, vector<32x16xbf16>, vector<256x16xf32> -> vector<256x16xf32>
    %34 = arith.addf %30, %33 : vector<256x16xf32>
    %c0_47 = arith.constant 0 : index
    %c0_48 = arith.constant 0 : index
    %35 = vector.load %arg7[%c0_47, %c0_48] : memref<256x16xf32, #tpu.memory_space<vmem>>, vector<256x16xf32>
    tpu.vector_store %arg7[%c0_47, %c0_48], %34 {strides = array<i32>} : memref<256x16xf32, #tpu.memory_space<vmem>>, vector<256x16xf32>,
    %36 = vector.extract_strided_slice %11 {offsets = [3, 0, 0], sizes = [16, 16, 32], strides = [1, 1, 1]} : vector<20x16x32xbf16> to vector<16x16x32xbf16>
    %37 = vector.shape_cast %36 : vector<16x16x32xbf16> to vector<256x32xbf16>
    %c0_49 = arith.constant 0 : index
    %c0_50 = arith.constant 0 : index
    %38 = vector.load %arg7[%c0_49, %c0_50] : memref<256x16xf32, #tpu.memory_space<vmem>>, vector<256x16xf32>
    %c3 = arith.constant 3 : index
    %c0_51 = arith.constant 0 : index
    %c0_52 = arith.constant 0 : index
    %c0_53 = arith.constant 0 : index
    %39 = vector.load %arg3[%c3, %c0_51, %c0_52, %c0_53] : memref<5x5x32x16xbf16, #tpu.memory_space<vmem>>, vector<1x1x32x16xbf16>
    %40 = vector.shape_cast %39 : vector<1x1x32x16xbf16> to vector<32x16xbf16>
    %cst_54 = arith.constant dense<0.000000e+00> : vector<256x16xf32>
    %41 = tpu.matmul %37, %40, %cst_54 {dimension_numbers = #tpu.dot_dimension_numbers<[1], [0], [0], [1], [0, 0, 1, 1], [], []>} : vector<256x32xbf16>, vector<32x16xbf16>, vector<256x16xf32> -> vector<256x16xf32>
    %42 = arith.addf %38, %41 : vector<256x16xf32>
    %c0_55 = arith.constant 0 : index
    %c0_56 = arith.constant 0 : index
    %43 = vector.load %arg7[%c0_55, %c0_56] : memref<256x16xf32, #tpu.memory_space<vmem>>, vector<256x16xf32>
    tpu.vector_store %arg7[%c0_55, %c0_56], %42 {strides = array<i32>} : memref<256x16xf32, #tpu.memory_space<vmem>>, vector<256x16xf32>,
    %44 = vector.extract_strided_slice %11 {offsets = [4, 0, 0], sizes = [16, 16, 32], strides = [1, 1, 1]} : vector<20x16x32xbf16> to vector<16x16x32xbf16>
    %45 = vector.shape_cast %44 : vector<16x16x32xbf16> to vector<256x32xbf16>
    %c0_57 = arith.constant 0 : index
    %c0_58 = arith.constant 0 : index
    %46 = vector.load %arg7[%c0_57, %c0_58] : memref<256x16xf32, #tpu.memory_space<vmem>>, vector<256x16xf32>
    %c4 = arith.constant 4 : index
    %c0_59 = arith.constant 0 : index
    %c0_60 = arith.constant 0 : index
    %c0_61 = arith.constant 0 : index
    %47 = vector.load %arg3[%c4, %c0_59, %c0_60, %c0_61] : memref<5x5x32x16xbf16, #tpu.memory_space<vmem>>, vector<1x1x32x16xbf16>
    %48 = vector.shape_cast %47 : vector<1x1x32x16xbf16> to vector<32x16xbf16>
    %cst_62 = arith.constant dense<0.000000e+00> : vector<256x16xf32>
    %49 = tpu.matmul %45, %48, %cst_62 {dimension_numbers = #tpu.dot_dimension_numbers<[1], [0], [0], [1], [0, 0, 1, 1], [], []>} : vector<256x32xbf16>, vector<32x16xbf16>, vector<256x16xf32> -> vector<256x16xf32>
    %50 = arith.addf %46, %49 : vector<256x16xf32>
    %c0_63 = arith.constant 0 : index
    %c0_64 = arith.constant 0 : index
    %51 = vector.load %arg7[%c0_63, %c0_64] : memref<256x16xf32, #tpu.memory_space<vmem>>, vector<256x16xf32>
    tpu.vector_store %arg7[%c0_63, %c0_64], %50 {strides = array<i32>} : memref<256x16xf32, #tpu.memory_space<vmem>>, vector<256x16xf32>,
    %c0_65 = arith.constant 0 : index
    %c1_66 = arith.constant 1 : index
    %c0_67 = arith.constant 0 : index
    %52 = vector.load %arg6[%c0_65, %c1_66, %c0_67] : memref<20x20x32xbf16, #tpu.memory_space<vmem>>, vector<20x16x32xbf16>
    %53 = vector.extract_strided_slice %52 {offsets = [0, 0, 0], sizes = [16, 16, 32], strides = [1, 1, 1]} : vector<20x16x32xbf16> to vector<16x16x32xbf16>
    %54 = vector.shape_cast %53 : vector<16x16x32xbf16> to vector<256x32xbf16>
    %c0_68 = arith.constant 0 : index
    %c0_69 = arith.constant 0 : index
    %55 = vector.load %arg7[%c0_68, %c0_69] : memref<256x16xf32, #tpu.memory_space<vmem>>, vector<256x16xf32>
    %c0_70 = arith.constant 0 : index
    %c1_71 = arith.constant 1 : index
    %c0_72 = arith.constant 0 : index
    %c0_73 = arith.constant 0 : index
    %56 = vector.load %arg3[%c0_70, %c1_71, %c0_72, %c0_73] : memref<5x5x32x16xbf16, #tpu.memory_space<vmem>>, vector<1x1x32x16xbf16>
    %57 = vector.shape_cast %56 : vector<1x1x32x16xbf16> to vector<32x16xbf16>
    %cst_74 = arith.constant dense<0.000000e+00> : vector<256x16xf32>
    %58 = tpu.matmul %54, %57, %cst_74 {dimension_numbers = #tpu.dot_dimension_numbers<[1], [0], [0], [1], [0, 0, 1, 1], [], []>} : vector<256x32xbf16>, vector<32x16xbf16>, vector<256x16xf32> -> vector<256x16xf32>
    %59 = arith.addf %55, %58 : vector<256x16xf32>
    %c0_75 = arith.constant 0 : index
    %c0_76 = arith.constant 0 : index
    %60 = vector.load %arg7[%c0_75, %c0_76] : memref<256x16xf32, #tpu.memory_space<vmem>>, vector<256x16xf32>
    tpu.vector_store %arg7[%c0_75, %c0_76], %59 {strides = array<i32>} : memref<256x16xf32, #tpu.memory_space<vmem>>, vector<256x16xf32>,
    %61 = vector.extract_strided_slice %52 {offsets = [1, 0, 0], sizes = [16, 16, 32], strides = [1, 1, 1]} : vector<20x16x32xbf16> to vector<16x16x32xbf16>
    %62 = vector.shape_cast %61 : vector<16x16x32xbf16> to vector<256x32xbf16>
    %c0_77 = arith.constant 0 : index
    %c0_78 = arith.constant 0 : index
    %63 = vector.load %arg7[%c0_77, %c0_78] : memref<256x16xf32, #tpu.memory_space<vmem>>, vector<256x16xf32>
    %c1_79 = arith.constant 1 : index
    %c1_80 = arith.constant 1 : index
    %c0_81 = arith.constant 0 : index
    %c0_82 = arith.constant 0 : index
    %64 = vector.load %arg3[%c1_79, %c1_80, %c0_81, %c0_82] : memref<5x5x32x16xbf16, #tpu.memory_space<vmem>>, vector<1x1x32x16xbf16>
    %65 = vector.shape_cast %64 : vector<1x1x32x16xbf16> to vector<32x16xbf16>
    %cst_83 = arith.constant dense<0.000000e+00> : vector<256x16xf32>
    %66 = tpu.matmul %62, %65, %cst_83 {dimension_numbers = #tpu.dot_dimension_numbers<[1], [0], [0], [1], [0, 0, 1, 1], [], []>} : vector<256x32xbf16>, vector<32x16xbf16>, vector<256x16xf32> -> vector<256x16xf32>
    %67 = arith.addf %63, %66 : vector<256x16xf32>
    %c0_84 = arith.constant 0 : index
    %c0_85 = arith.constant 0 : index
    %68 = vector.load %arg7[%c0_84, %c0_85] : memref<256x16xf32, #tpu.memory_space<vmem>>, vector<256x16xf32>
    tpu.vector_store %arg7[%c0_84, %c0_85], %67 {strides = array<i32>} : memref<256x16xf32, #tpu.memory_space<vmem>>, vector<256x16xf32>,
    %69 = vector.extract_strided_slice %52 {offsets = [2, 0, 0], sizes = [16, 16, 32], strides = [1, 1, 1]} : vector<20x16x32xbf16> to vector<16x16x32xbf16>
    %70 = vector.shape_cast %69 : vector<16x16x32xbf16> to vector<256x32xbf16>
    %c0_86 = arith.constant 0 : index
    %c0_87 = arith.constant 0 : index
    %71 = vector.load %arg7[%c0_86, %c0_87] : memref<256x16xf32, #tpu.memory_space<vmem>>, vector<256x16xf32>
    %c2_88 = arith.constant 2 : index
    %c1_89 = arith.constant 1 : index
    %c0_90 = arith.constant 0 : index
    %c0_91 = arith.constant 0 : index
    %72 = vector.load %arg3[%c2_88, %c1_89, %c0_90, %c0_91] : memref<5x5x32x16xbf16, #tpu.memory_space<vmem>>, vector<1x1x32x16xbf16>
    %73 = vector.shape_cast %72 : vector<1x1x32x16xbf16> to vector<32x16xbf16>
    %cst_92 = arith.constant dense<0.000000e+00> : vector<256x16xf32>
    %74 = tpu.matmul %70, %73, %cst_92 {dimension_numbers = #tpu.dot_dimension_numbers<[1], [0], [0], [1], [0, 0, 1, 1], [], []>} : vector<256x32xbf16>, vector<32x16xbf16>, vector<256x16xf32> -> vector<256x16xf32>
    %75 = arith.addf %71, %74 : vector<256x16xf32>
    %c0_93 = arith.constant 0 : index
    %c0_94 = arith.constant 0 : index
    %76 = vector.load %arg7[%c0_93, %c0_94] : memref<256x16xf32, #tpu.memory_space<vmem>>, vector<256x16xf32>
    tpu.vector_store %arg7[%c0_93, %c0_94], %75 {strides = array<i32>} : memref<256x16xf32, #tpu.memory_space<vmem>>, vector<256x16xf32>,
    %77 = vector.extract_strided_slice %52 {offsets = [3, 0, 0], sizes = [16, 16, 32], strides = [1, 1, 1]} : vector<20x16x32xbf16> to vector<16x16x32xbf16>
    %78 = vector.shape_cast %77 : vector<16x16x32xbf16> to vector<256x32xbf16>
    %c0_95 = arith.constant 0 : index
    %c0_96 = arith.constant 0 : index
    %79 = vector.load %arg7[%c0_95, %c0_96] : memref<256x16xf32, #tpu.memory_space<vmem>>, vector<256x16xf32>
    %c3_97 = arith.constant 3 : index
    %c1_98 = arith.constant 1 : index
    %c0_99 = arith.constant 0 : index
    %c0_100 = arith.constant 0 : index
    %80 = vector.load %arg3[%c3_97, %c1_98, %c0_99, %c0_100] : memref<5x5x32x16xbf16, #tpu.memory_space<vmem>>, vector<1x1x32x16xbf16>
    %81 = vector.shape_cast %80 : vector<1x1x32x16xbf16> to vector<32x16xbf16>
    %cst_101 = arith.constant dense<0.000000e+00> : vector<256x16xf32>
    %82 = tpu.matmul %78, %81, %cst_101 {dimension_numbers = #tpu.dot_dimension_numbers<[1], [0], [0], [1], [0, 0, 1, 1], [], []>} : vector<256x32xbf16>, vector<32x16xbf16>, vector<256x16xf32> -> vector<256x16xf32>
    %83 = arith.addf %79, %82 : vector<256x16xf32>
    %c0_102 = arith.constant 0 : index
    %c0_103 = arith.constant 0 : index
    %84 = vector.load %arg7[%c0_102, %c0_103] : memref<256x16xf32, #tpu.memory_space<vmem>>, vector<256x16xf32>
    tpu.vector_store %arg7[%c0_102, %c0_103], %83 {strides = array<i32>} : memref<256x16xf32, #tpu.memory_space<vmem>>, vector<256x16xf32>,
    %85 = vector.extract_strided_slice %52 {offsets = [4, 0, 0], sizes = [16, 16, 32], strides = [1, 1, 1]} : vector<20x16x32xbf16> to vector<16x16x32xbf16>
    %86 = vector.shape_cast %85 : vector<16x16x32xbf16> to vector<256x32xbf16>
    %c0_104 = arith.constant 0 : index
    %c0_105 = arith.constant 0 : index
    %87 = vector.load %arg7[%c0_104, %c0_105] : memref<256x16xf32, #tpu.memory_space<vmem>>, vector<256x16xf32>
    %c4_106 = arith.constant 4 : index
    %c1_107 = arith.constant 1 : index
    %c0_108 = arith.constant 0 : index
    %c0_109 = arith.constant 0 : index
    %88 = vector.load %arg3[%c4_106, %c1_107, %c0_108, %c0_109] : memref<5x5x32x16xbf16, #tpu.memory_space<vmem>>, vector<1x1x32x16xbf16>
    %89 = vector.shape_cast %88 : vector<1x1x32x16xbf16> to vector<32x16xbf16>
    %cst_110 = arith.constant dense<0.000000e+00> : vector<256x16xf32>
    %90 = tpu.matmul %86, %89, %cst_110 {dimension_numbers = #tpu.dot_dimension_numbers<[1], [0], [0], [1], [0, 0, 1, 1], [], []>} : vector<256x32xbf16>, vector<32x16xbf16>, vector<256x16xf32> -> vector<256x16xf32>
    %91 = arith.addf %87, %90 : vector<256x16xf32>
    %c0_111 = arith.constant 0 : index
    %c0_112 = arith.constant 0 : index
    %92 = vector.load %arg7[%c0_111, %c0_112] : memref<256x16xf32, #tpu.memory_space<vmem>>, vector<256x16xf32>
    tpu.vector_store %arg7[%c0_111, %c0_112], %91 {strides = array<i32>} : memref<256x16xf32, #tpu.memory_space<vmem>>, vector<256x16xf32>,
    %c0_113 = arith.constant 0 : index
    %c2_114 = arith.constant 2 : index
    %c0_115 = arith.constant 0 : index
    %93 = vector.load %arg6[%c0_113, %c2_114, %c0_115] : memref<20x20x32xbf16, #tpu.memory_space<vmem>>, vector<20x16x32xbf16>
    %94 = vector.extract_strided_slice %93 {offsets = [0, 0, 0], sizes = [16, 16, 32], strides = [1, 1, 1]} : vector<20x16x32xbf16> to vector<16x16x32xbf16>
    %95 = vector.shape_cast %94 : vector<16x16x32xbf16> to vector<256x32xbf16>
    %c0_116 = arith.constant 0 : index
    %c0_117 = arith.constant 0 : index
    %96 = vector.load %arg7[%c0_116, %c0_117] : memref<256x16xf32, #tpu.memory_space<vmem>>, vector<256x16xf32>
    %c0_118 = arith.constant 0 : index
    %c2_119 = arith.constant 2 : index
    %c0_120 = arith.constant 0 : index
    %c0_121 = arith.constant 0 : index
    %97 = vector.load %arg3[%c0_118, %c2_119, %c0_120, %c0_121] : memref<5x5x32x16xbf16, #tpu.memory_space<vmem>>, vector<1x1x32x16xbf16>
    %98 = vector.shape_cast %97 : vector<1x1x32x16xbf16> to vector<32x16xbf16>
    %cst_122 = arith.constant dense<0.000000e+00> : vector<256x16xf32>
    %99 = tpu.matmul %95, %98, %cst_122 {dimension_numbers = #tpu.dot_dimension_numbers<[1], [0], [0], [1], [0, 0, 1, 1], [], []>} : vector<256x32xbf16>, vector<32x16xbf16>, vector<256x16xf32> -> vector<256x16xf32>
    %100 = arith.addf %96, %99 : vector<256x16xf32>
    %c0_123 = arith.constant 0 : index
    %c0_124 = arith.constant 0 : index
    %101 = vector.load %arg7[%c0_123, %c0_124] : memref<256x16xf32, #tpu.memory_space<vmem>>, vector<256x16xf32>
    tpu.vector_store %arg7[%c0_123, %c0_124], %100 {strides = array<i32>} : memref<256x16xf32, #tpu.memory_space<vmem>>, vector<256x16xf32>,
    %102 = vector.extract_strided_slice %93 {offsets = [1, 0, 0], sizes = [16, 16, 32], strides = [1, 1, 1]} : vector<20x16x32xbf16> to vector<16x16x32xbf16>
    %103 = vector.shape_cast %102 : vector<16x16x32xbf16> to vector<256x32xbf16>
    %c0_125 = arith.constant 0 : index
    %c0_126 = arith.constant 0 : index
    %104 = vector.load %arg7[%c0_125, %c0_126] : memref<256x16xf32, #tpu.memory_space<vmem>>, vector<256x16xf32>
    %c1_127 = arith.constant 1 : index
    %c2_128 = arith.constant 2 : index
    %c0_129 = arith.constant 0 : index
    %c0_130 = arith.constant 0 : index
    %105 = vector.load %arg3[%c1_127, %c2_128, %c0_129, %c0_130] : memref<5x5x32x16xbf16, #tpu.memory_space<vmem>>, vector<1x1x32x16xbf16>
    %106 = vector.shape_cast %105 : vector<1x1x32x16xbf16> to vector<32x16xbf16>
    %cst_131 = arith.constant dense<0.000000e+00> : vector<256x16xf32>
    %107 = tpu.matmul %103, %106, %cst_131 {dimension_numbers = #tpu.dot_dimension_numbers<[1], [0], [0], [1], [0, 0, 1, 1], [], []>} : vector<256x32xbf16>, vector<32x16xbf16>, vector<256x16xf32> -> vector<256x16xf32>
    %108 = arith.addf %104, %107 : vector<256x16xf32>
    %c0_132 = arith.constant 0 : index
    %c0_133 = arith.constant 0 : index
    %109 = vector.load %arg7[%c0_132, %c0_133] : memref<256x16xf32, #tpu.memory_space<vmem>>, vector<256x16xf32>
    tpu.vector_store %arg7[%c0_132, %c0_133], %108 {strides = array<i32>} : memref<256x16xf32, #tpu.memory_space<vmem>>, vector<256x16xf32>,
    %110 = vector.extract_strided_slice %93 {offsets = [2, 0, 0], sizes = [16, 16, 32], strides = [1, 1, 1]} : vector<20x16x32xbf16> to vector<16x16x32xbf16>
    %111 = vector.shape_cast %110 : vector<16x16x32xbf16> to vector<256x32xbf16>
    %c0_134 = arith.constant 0 : index
    %c0_135 = arith.constant 0 : index
    %112 = vector.load %arg7[%c0_134, %c0_135] : memref<256x16xf32, #tpu.memory_space<vmem>>, vector<256x16xf32>
    %c2_136 = arith.constant 2 : index
    %c2_137 = arith.constant 2 : index
    %c0_138 = arith.constant 0 : index
    %c0_139 = arith.constant 0 : index
    %113 = vector.load %arg3[%c2_136, %c2_137, %c0_138, %c0_139] : memref<5x5x32x16xbf16, #tpu.memory_space<vmem>>, vector<1x1x32x16xbf16>
    %114 = vector.shape_cast %113 : vector<1x1x32x16xbf16> to vector<32x16xbf16>
    %cst_140 = arith.constant dense<0.000000e+00> : vector<256x16xf32>
    %115 = tpu.matmul %111, %114, %cst_140 {dimension_numbers = #tpu.dot_dimension_numbers<[1], [0], [0], [1], [0, 0, 1, 1], [], []>} : vector<256x32xbf16>, vector<32x16xbf16>, vector<256x16xf32> -> vector<256x16xf32>
    %116 = arith.addf %112, %115 : vector<256x16xf32>
    %c0_141 = arith.constant 0 : index
    %c0_142 = arith.constant 0 : index
    %117 = vector.load %arg7[%c0_141, %c0_142] : memref<256x16xf32, #tpu.memory_space<vmem>>, vector<256x16xf32>
    tpu.vector_store %arg7[%c0_141, %c0_142], %116 {strides = array<i32>} : memref<256x16xf32, #tpu.memory_space<vmem>>, vector<256x16xf32>,
    %118 = vector.extract_strided_slice %93 {offsets = [3, 0, 0], sizes = [16, 16, 32], strides = [1, 1, 1]} : vector<20x16x32xbf16> to vector<16x16x32xbf16>
    %119 = vector.shape_cast %118 : vector<16x16x32xbf16> to vector<256x32xbf16>
    %c0_143 = arith.constant 0 : index
    %c0_144 = arith.constant 0 : index
    %120 = vector.load %arg7[%c0_143, %c0_144] : memref<256x16xf32, #tpu.memory_space<vmem>>, vector<256x16xf32>
    %c3_145 = arith.constant 3 : index
    %c2_146 = arith.constant 2 : index
    %c0_147 = arith.constant 0 : index
    %c0_148 = arith.constant 0 : index
    %121 = vector.load %arg3[%c3_145, %c2_146, %c0_147, %c0_148] : memref<5x5x32x16xbf16, #tpu.memory_space<vmem>>, vector<1x1x32x16xbf16>
    %122 = vector.shape_cast %121 : vector<1x1x32x16xbf16> to vector<32x16xbf16>
    %cst_149 = arith.constant dense<0.000000e+00> : vector<256x16xf32>
    %123 = tpu.matmul %119, %122, %cst_149 {dimension_numbers = #tpu.dot_dimension_numbers<[1], [0], [0], [1], [0, 0, 1, 1], [], []>} : vector<256x32xbf16>, vector<32x16xbf16>, vector<256x16xf32> -> vector<256x16xf32>
    %124 = arith.addf %120, %123 : vector<256x16xf32>
    %c0_150 = arith.constant 0 : index
    %c0_151 = arith.constant 0 : index
    %125 = vector.load %arg7[%c0_150, %c0_151] : memref<256x16xf32, #tpu.memory_space<vmem>>, vector<256x16xf32>
    tpu.vector_store %arg7[%c0_150, %c0_151], %124 {strides = array<i32>} : memref<256x16xf32, #tpu.memory_space<vmem>>, vector<256x16xf32>,
    %126 = vector.extract_strided_slice %93 {offsets = [4, 0, 0], sizes = [16, 16, 32], strides = [1, 1, 1]} : vector<20x16x32xbf16> to vector<16x16x32xbf16>
    %127 = vector.shape_cast %126 : vector<16x16x32xbf16> to vector<256x32xbf16>
    %c0_152 = arith.constant 0 : index
    %c0_153 = arith.constant 0 : index
    %128 = vector.load %arg7[%c0_152, %c0_153] : memref<256x16xf32, #tpu.memory_space<vmem>>, vector<256x16xf32>
    %c4_154 = arith.constant 4 : index
    %c2_155 = arith.constant 2 : index
    %c0_156 = arith.constant 0 : index
    %c0_157 = arith.constant 0 : index
    %129 = vector.load %arg3[%c4_154, %c2_155, %c0_156, %c0_157] : memref<5x5x32x16xbf16, #tpu.memory_space<vmem>>, vector<1x1x32x16xbf16>
    %130 = vector.shape_cast %129 : vector<1x1x32x16xbf16> to vector<32x16xbf16>
    %cst_158 = arith.constant dense<0.000000e+00> : vector<256x16xf32>
    %131 = tpu.matmul %127, %130, %cst_158 {dimension_numbers = #tpu.dot_dimension_numbers<[1], [0], [0], [1], [0, 0, 1, 1], [], []>} : vector<256x32xbf16>, vector<32x16xbf16>, vector<256x16xf32> -> vector<256x16xf32>
    %132 = arith.addf %128, %131 : vector<256x16xf32>
    %c0_159 = arith.constant 0 : index
    %c0_160 = arith.constant 0 : index
    %133 = vector.load %arg7[%c0_159, %c0_160] : memref<256x16xf32, #tpu.memory_space<vmem>>, vector<256x16xf32>
    tpu.vector_store %arg7[%c0_159, %c0_160], %132 {strides = array<i32>} : memref<256x16xf32, #tpu.memory_space<vmem>>, vector<256x16xf32>,
    %c0_161 = arith.constant 0 : index
    %c3_162 = arith.constant 3 : index
    %c0_163 = arith.constant 0 : index
    %134 = vector.load %arg6[%c0_161, %c3_162, %c0_163] : memref<20x20x32xbf16, #tpu.memory_space<vmem>>, vector<20x16x32xbf16>
    %135 = vector.extract_strided_slice %134 {offsets = [0, 0, 0], sizes = [16, 16, 32], strides = [1, 1, 1]} : vector<20x16x32xbf16> to vector<16x16x32xbf16>
    %136 = vector.shape_cast %135 : vector<16x16x32xbf16> to vector<256x32xbf16>
    %c0_164 = arith.constant 0 : index
    %c0_165 = arith.constant 0 : index
    %137 = vector.load %arg7[%c0_164, %c0_165] : memref<256x16xf32, #tpu.memory_space<vmem>>, vector<256x16xf32>
    %c0_166 = arith.constant 0 : index
    %c3_167 = arith.constant 3 : index
    %c0_168 = arith.constant 0 : index
    %c0_169 = arith.constant 0 : index
    %138 = vector.load %arg3[%c0_166, %c3_167, %c0_168, %c0_169] : memref<5x5x32x16xbf16, #tpu.memory_space<vmem>>, vector<1x1x32x16xbf16>
    %139 = vector.shape_cast %138 : vector<1x1x32x16xbf16> to vector<32x16xbf16>
    %cst_170 = arith.constant dense<0.000000e+00> : vector<256x16xf32>
    %140 = tpu.matmul %136, %139, %cst_170 {dimension_numbers = #tpu.dot_dimension_numbers<[1], [0], [0], [1], [0, 0, 1, 1], [], []>} : vector<256x32xbf16>, vector<32x16xbf16>, vector<256x16xf32> -> vector<256x16xf32>
    %141 = arith.addf %137, %140 : vector<256x16xf32>
    %c0_171 = arith.constant 0 : index
    %c0_172 = arith.constant 0 : index
    %142 = vector.load %arg7[%c0_171, %c0_172] : memref<256x16xf32, #tpu.memory_space<vmem>>, vector<256x16xf32>
    tpu.vector_store %arg7[%c0_171, %c0_172], %141 {strides = array<i32>} : memref<256x16xf32, #tpu.memory_space<vmem>>, vector<256x16xf32>,
    %143 = vector.extract_strided_slice %134 {offsets = [1, 0, 0], sizes = [16, 16, 32], strides = [1, 1, 1]} : vector<20x16x32xbf16> to vector<16x16x32xbf16>
    %144 = vector.shape_cast %143 : vector<16x16x32xbf16> to vector<256x32xbf16>
    %c0_173 = arith.constant 0 : index
    %c0_174 = arith.constant 0 : index
    %145 = vector.load %arg7[%c0_173, %c0_174] : memref<256x16xf32, #tpu.memory_space<vmem>>, vector<256x16xf32>
    %c1_175 = arith.constant 1 : index
    %c3_176 = arith.constant 3 : index
    %c0_177 = arith.constant 0 : index
    %c0_178 = arith.constant 0 : index
    %146 = vector.load %arg3[%c1_175, %c3_176, %c0_177, %c0_178] : memref<5x5x32x16xbf16, #tpu.memory_space<vmem>>, vector<1x1x32x16xbf16>
    %147 = vector.shape_cast %146 : vector<1x1x32x16xbf16> to vector<32x16xbf16>
    %cst_179 = arith.constant dense<0.000000e+00> : vector<256x16xf32>
    %148 = tpu.matmul %144, %147, %cst_179 {dimension_numbers = #tpu.dot_dimension_numbers<[1], [0], [0], [1], [0, 0, 1, 1], [], []>} : vector<256x32xbf16>, vector<32x16xbf16>, vector<256x16xf32> -> vector<256x16xf32>
    %149 = arith.addf %145, %148 : vector<256x16xf32>
    %c0_180 = arith.constant 0 : index
    %c0_181 = arith.constant 0 : index
    %150 = vector.load %arg7[%c0_180, %c0_181] : memref<256x16xf32, #tpu.memory_space<vmem>>, vector<256x16xf32>
    tpu.vector_store %arg7[%c0_180, %c0_181], %149 {strides = array<i32>} : memref<256x16xf32, #tpu.memory_space<vmem>>, vector<256x16xf32>,
    %151 = vector.extract_strided_slice %134 {offsets = [2, 0, 0], sizes = [16, 16, 32], strides = [1, 1, 1]} : vector<20x16x32xbf16> to vector<16x16x32xbf16>
    %152 = vector.shape_cast %151 : vector<16x16x32xbf16> to vector<256x32xbf16>
    %c0_182 = arith.constant 0 : index
    %c0_183 = arith.constant 0 : index
    %153 = vector.load %arg7[%c0_182, %c0_183] : memref<256x16xf32, #tpu.memory_space<vmem>>, vector<256x16xf32>
    %c2_184 = arith.constant 2 : index
    %c3_185 = arith.constant 3 : index
    %c0_186 = arith.constant 0 : index
    %c0_187 = arith.constant 0 : index
    %154 = vector.load %arg3[%c2_184, %c3_185, %c0_186, %c0_187] : memref<5x5x32x16xbf16, #tpu.memory_space<vmem>>, vector<1x1x32x16xbf16>
    %155 = vector.shape_cast %154 : vector<1x1x32x16xbf16> to vector<32x16xbf16>
    %cst_188 = arith.constant dense<0.000000e+00> : vector<256x16xf32>
    %156 = tpu.matmul %152, %155, %cst_188 {dimension_numbers = #tpu.dot_dimension_numbers<[1], [0], [0], [1], [0, 0, 1, 1], [], []>} : vector<256x32xbf16>, vector<32x16xbf16>, vector<256x16xf32> -> vector<256x16xf32>
    %157 = arith.addf %153, %156 : vector<256x16xf32>
    %c0_189 = arith.constant 0 : index
    %c0_190 = arith.constant 0 : index
    %158 = vector.load %arg7[%c0_189, %c0_190] : memref<256x16xf32, #tpu.memory_space<vmem>>, vector<256x16xf32>
    tpu.vector_store %arg7[%c0_189, %c0_190], %157 {strides = array<i32>} : memref<256x16xf32, #tpu.memory_space<vmem>>, vector<256x16xf32>,
    %159 = vector.extract_strided_slice %134 {offsets = [3, 0, 0], sizes = [16, 16, 32], strides = [1, 1, 1]} : vector<20x16x32xbf16> to vector<16x16x32xbf16>
    %160 = vector.shape_cast %159 : vector<16x16x32xbf16> to vector<256x32xbf16>
    %c0_191 = arith.constant 0 : index
    %c0_192 = arith.constant 0 : index
    %161 = vector.load %arg7[%c0_191, %c0_192] : memref<256x16xf32, #tpu.memory_space<vmem>>, vector<256x16xf32>
    %c3_193 = arith.constant 3 : index
    %c3_194 = arith.constant 3 : index
    %c0_195 = arith.constant 0 : index
    %c0_196 = arith.constant 0 : index
    %162 = vector.load %arg3[%c3_193, %c3_194, %c0_195, %c0_196] : memref<5x5x32x16xbf16, #tpu.memory_space<vmem>>, vector<1x1x32x16xbf16>
    %163 = vector.shape_cast %162 : vector<1x1x32x16xbf16> to vector<32x16xbf16>
    %cst_197 = arith.constant dense<0.000000e+00> : vector<256x16xf32>
    %164 = tpu.matmul %160, %163, %cst_197 {dimension_numbers = #tpu.dot_dimension_numbers<[1], [0], [0], [1], [0, 0, 1, 1], [], []>} : vector<256x32xbf16>, vector<32x16xbf16>, vector<256x16xf32> -> vector<256x16xf32>
    %165 = arith.addf %161, %164 : vector<256x16xf32>
    %c0_198 = arith.constant 0 : index
    %c0_199 = arith.constant 0 : index
    %166 = vector.load %arg7[%c0_198, %c0_199] : memref<256x16xf32, #tpu.memory_space<vmem>>, vector<256x16xf32>
    tpu.vector_store %arg7[%c0_198, %c0_199], %165 {strides = array<i32>} : memref<256x16xf32, #tpu.memory_space<vmem>>, vector<256x16xf32>,
    %167 = vector.extract_strided_slice %134 {offsets = [4, 0, 0], sizes = [16, 16, 32], strides = [1, 1, 1]} : vector<20x16x32xbf16> to vector<16x16x32xbf16>
    %168 = vector.shape_cast %167 : vector<16x16x32xbf16> to vector<256x32xbf16>
    %c0_200 = arith.constant 0 : index
    %c0_201 = arith.constant 0 : index
    %169 = vector.load %arg7[%c0_200, %c0_201] : memref<256x16xf32, #tpu.memory_space<vmem>>, vector<256x16xf32>
    %c4_202 = arith.constant 4 : index
    %c3_203 = arith.constant 3 : index
    %c0_204 = arith.constant 0 : index
    %c0_205 = arith.constant 0 : index
    %170 = vector.load %arg3[%c4_202, %c3_203, %c0_204, %c0_205] : memref<5x5x32x16xbf16, #tpu.memory_space<vmem>>, vector<1x1x32x16xbf16>
    %171 = vector.shape_cast %170 : vector<1x1x32x16xbf16> to vector<32x16xbf16>
    %cst_206 = arith.constant dense<0.000000e+00> : vector<256x16xf32>
    %172 = tpu.matmul %168, %171, %cst_206 {dimension_numbers = #tpu.dot_dimension_numbers<[1], [0], [0], [1], [0, 0, 1, 1], [], []>} : vector<256x32xbf16>, vector<32x16xbf16>, vector<256x16xf32> -> vector<256x16xf32>
    %173 = arith.addf %169, %172 : vector<256x16xf32>
    %c0_207 = arith.constant 0 : index
    %c0_208 = arith.constant 0 : index
    %174 = vector.load %arg7[%c0_207, %c0_208] : memref<256x16xf32, #tpu.memory_space<vmem>>, vector<256x16xf32>
    tpu.vector_store %arg7[%c0_207, %c0_208], %173 {strides = array<i32>} : memref<256x16xf32, #tpu.memory_space<vmem>>, vector<256x16xf32>,
    %c0_209 = arith.constant 0 : index
    %c4_210 = arith.constant 4 : index
    %c0_211 = arith.constant 0 : index
    %175 = vector.load %arg6[%c0_209, %c4_210, %c0_211] : memref<20x20x32xbf16, #tpu.memory_space<vmem>>, vector<20x16x32xbf16>
    %176 = vector.extract_strided_slice %175 {offsets = [0, 0, 0], sizes = [16, 16, 32], strides = [1, 1, 1]} : vector<20x16x32xbf16> to vector<16x16x32xbf16>
    %177 = vector.shape_cast %176 : vector<16x16x32xbf16> to vector<256x32xbf16>
    %c0_212 = arith.constant 0 : index
    %c0_213 = arith.constant 0 : index
    %178 = vector.load %arg7[%c0_212, %c0_213] : memref<256x16xf32, #tpu.memory_space<vmem>>, vector<256x16xf32>
    %c0_214 = arith.constant 0 : index
    %c4_215 = arith.constant 4 : index
    %c0_216 = arith.constant 0 : index
    %c0_217 = arith.constant 0 : index
    %179 = vector.load %arg3[%c0_214, %c4_215, %c0_216, %c0_217] : memref<5x5x32x16xbf16, #tpu.memory_space<vmem>>, vector<1x1x32x16xbf16>
    %180 = vector.shape_cast %179 : vector<1x1x32x16xbf16> to vector<32x16xbf16>
    %cst_218 = arith.constant dense<0.000000e+00> : vector<256x16xf32>
    %181 = tpu.matmul %177, %180, %cst_218 {dimension_numbers = #tpu.dot_dimension_numbers<[1], [0], [0], [1], [0, 0, 1, 1], [], []>} : vector<256x32xbf16>, vector<32x16xbf16>, vector<256x16xf32> -> vector<256x16xf32>
    %182 = arith.addf %178, %181 : vector<256x16xf32>
    %c0_219 = arith.constant 0 : index
    %c0_220 = arith.constant 0 : index
    %183 = vector.load %arg7[%c0_219, %c0_220] : memref<256x16xf32, #tpu.memory_space<vmem>>, vector<256x16xf32>
    tpu.vector_store %arg7[%c0_219, %c0_220], %182 {strides = array<i32>} : memref<256x16xf32, #tpu.memory_space<vmem>>, vector<256x16xf32>,
    %184 = vector.extract_strided_slice %175 {offsets = [1, 0, 0], sizes = [16, 16, 32], strides = [1, 1, 1]} : vector<20x16x32xbf16> to vector<16x16x32xbf16>
    %185 = vector.shape_cast %184 : vector<16x16x32xbf16> to vector<256x32xbf16>
    %c0_221 = arith.constant 0 : index
    %c0_222 = arith.constant 0 : index
    %186 = vector.load %arg7[%c0_221, %c0_222] : memref<256x16xf32, #tpu.memory_space<vmem>>, vector<256x16xf32>
    %c1_223 = arith.constant 1 : index
    %c4_224 = arith.constant 4 : index
    %c0_225 = arith.constant 0 : index
    %c0_226 = arith.constant 0 : index
    %187 = vector.load %arg3[%c1_223, %c4_224, %c0_225, %c0_226] : memref<5x5x32x16xbf16, #tpu.memory_space<vmem>>, vector<1x1x32x16xbf16>
    %188 = vector.shape_cast %187 : vector<1x1x32x16xbf16> to vector<32x16xbf16>
    %cst_227 = arith.constant dense<0.000000e+00> : vector<256x16xf32>
    %189 = tpu.matmul %185, %188, %cst_227 {dimension_numbers = #tpu.dot_dimension_numbers<[1], [0], [0], [1], [0, 0, 1, 1], [], []>} : vector<256x32xbf16>, vector<32x16xbf16>, vector<256x16xf32> -> vector<256x16xf32>
    %190 = arith.addf %186, %189 : vector<256x16xf32>
    %c0_228 = arith.constant 0 : index
    %c0_229 = arith.constant 0 : index
    %191 = vector.load %arg7[%c0_228, %c0_229] : memref<256x16xf32, #tpu.memory_space<vmem>>, vector<256x16xf32>
    tpu.vector_store %arg7[%c0_228, %c0_229], %190 {strides = array<i32>} : memref<256x16xf32, #tpu.memory_space<vmem>>, vector<256x16xf32>,
    %192 = vector.extract_strided_slice %175 {offsets = [2, 0, 0], sizes = [16, 16, 32], strides = [1, 1, 1]} : vector<20x16x32xbf16> to vector<16x16x32xbf16>
    %193 = vector.shape_cast %192 : vector<16x16x32xbf16> to vector<256x32xbf16>
    %c0_230 = arith.constant 0 : index
    %c0_231 = arith.constant 0 : index
    %194 = vector.load %arg7[%c0_230, %c0_231] : memref<256x16xf32, #tpu.memory_space<vmem>>, vector<256x16xf32>
    %c2_232 = arith.constant 2 : index
    %c4_233 = arith.constant 4 : index
    %c0_234 = arith.constant 0 : index
    %c0_235 = arith.constant 0 : index
    %195 = vector.load %arg3[%c2_232, %c4_233, %c0_234, %c0_235] : memref<5x5x32x16xbf16, #tpu.memory_space<vmem>>, vector<1x1x32x16xbf16>
    %196 = vector.shape_cast %195 : vector<1x1x32x16xbf16> to vector<32x16xbf16>
    %cst_236 = arith.constant dense<0.000000e+00> : vector<256x16xf32>
    %197 = tpu.matmul %193, %196, %cst_236 {dimension_numbers = #tpu.dot_dimension_numbers<[1], [0], [0], [1], [0, 0, 1, 1], [], []>} : vector<256x32xbf16>, vector<32x16xbf16>, vector<256x16xf32> -> vector<256x16xf32>
    %198 = arith.addf %194, %197 : vector<256x16xf32>
    %c0_237 = arith.constant 0 : index
    %c0_238 = arith.constant 0 : index
    %199 = vector.load %arg7[%c0_237, %c0_238] : memref<256x16xf32, #tpu.memory_space<vmem>>, vector<256x16xf32>
    tpu.vector_store %arg7[%c0_237, %c0_238], %198 {strides = array<i32>} : memref<256x16xf32, #tpu.memory_space<vmem>>, vector<256x16xf32>,
    %200 = vector.extract_strided_slice %175 {offsets = [3, 0, 0], sizes = [16, 16, 32], strides = [1, 1, 1]} : vector<20x16x32xbf16> to vector<16x16x32xbf16>
    %201 = vector.shape_cast %200 : vector<16x16x32xbf16> to vector<256x32xbf16>
    %c0_239 = arith.constant 0 : index
    %c0_240 = arith.constant 0 : index
    %202 = vector.load %arg7[%c0_239, %c0_240] : memref<256x16xf32, #tpu.memory_space<vmem>>, vector<256x16xf32>
    %c3_241 = arith.constant 3 : index
    %c4_242 = arith.constant 4 : index
    %c0_243 = arith.constant 0 : index
    %c0_244 = arith.constant 0 : index
    %203 = vector.load %arg3[%c3_241, %c4_242, %c0_243, %c0_244] : memref<5x5x32x16xbf16, #tpu.memory_space<vmem>>, vector<1x1x32x16xbf16>
    %204 = vector.shape_cast %203 : vector<1x1x32x16xbf16> to vector<32x16xbf16>
    %cst_245 = arith.constant dense<0.000000e+00> : vector<256x16xf32>
    %205 = tpu.matmul %201, %204, %cst_245 {dimension_numbers = #tpu.dot_dimension_numbers<[1], [0], [0], [1], [0, 0, 1, 1], [], []>} : vector<256x32xbf16>, vector<32x16xbf16>, vector<256x16xf32> -> vector<256x16xf32>
    %206 = arith.addf %202, %205 : vector<256x16xf32>
    %c0_246 = arith.constant 0 : index
    %c0_247 = arith.constant 0 : index
    %207 = vector.load %arg7[%c0_246, %c0_247] : memref<256x16xf32, #tpu.memory_space<vmem>>, vector<256x16xf32>
    tpu.vector_store %arg7[%c0_246, %c0_247], %206 {strides = array<i32>} : memref<256x16xf32, #tpu.memory_space<vmem>>, vector<256x16xf32>,
    %208 = vector.extract_strided_slice %175 {offsets = [4, 0, 0], sizes = [16, 16, 32], strides = [1, 1, 1]} : vector<20x16x32xbf16> to vector<16x16x32xbf16>
    %209 = vector.shape_cast %208 : vector<16x16x32xbf16> to vector<256x32xbf16>
    %c0_248 = arith.constant 0 : index
    %c0_249 = arith.constant 0 : index
    %210 = vector.load %arg7[%c0_248, %c0_249] : memref<256x16xf32, #tpu.memory_space<vmem>>, vector<256x16xf32>
    %c4_250 = arith.constant 4 : index
    %c4_251 = arith.constant 4 : index
    %c0_252 = arith.constant 0 : index
    %c0_253 = arith.constant 0 : index
    %211 = vector.load %arg3[%c4_250, %c4_251, %c0_252, %c0_253] : memref<5x5x32x16xbf16, #tpu.memory_space<vmem>>, vector<1x1x32x16xbf16>
    %212 = vector.shape_cast %211 : vector<1x1x32x16xbf16> to vector<32x16xbf16>
    %cst_254 = arith.constant dense<0.000000e+00> : vector<256x16xf32>
    %213 = tpu.matmul %209, %212, %cst_254 {dimension_numbers = #tpu.dot_dimension_numbers<[1], [0], [0], [1], [0, 0, 1, 1], [], []>} : vector<256x32xbf16>, vector<32x16xbf16>, vector<256x16xf32> -> vector<256x16xf32>
    %214 = arith.addf %210, %213 : vector<256x16xf32>
    %c0_255 = arith.constant 0 : index
    %c0_256 = arith.constant 0 : index
    %215 = vector.load %arg7[%c0_255, %c0_256] : memref<256x16xf32, #tpu.memory_space<vmem>>, vector<256x16xf32>
    tpu.vector_store %arg7[%c0_255, %c0_256], %214 {strides = array<i32>} : memref<256x16xf32, #tpu.memory_space<vmem>>, vector<256x16xf32>,
    %c0_257 = arith.constant 0 : index
    %c0_258 = arith.constant 0 : index
    %216 = vector.load %arg7[%c0_257, %c0_258] : memref<256x16xf32, #tpu.memory_space<vmem>>, vector<256x16xf32>
    %c0_259 = arith.constant 0 : index
    %c0_260 = arith.constant 0 : index
    %217 = vector.load %arg4[%c0_259, %c0_260] : memref<1x16xf32, #tpu.memory_space<vmem>>, vector<1x16xf32>
    %218 = vector.broadcast %217 : vector<1x16xf32> to vector<256x16xf32>
    %219 = arith.addf %216, %218 : vector<256x16xf32>
    %220 = arith.negf %219 : vector<256x16xf32>
    %221 = math.exp %220 : vector<256x16xf32>
    %cst_261 = arith.constant 1.000000e+00 : f32
    %222 = vector.broadcast %cst_261 : f32 to vector<256x16xf32>
    %223 = arith.addf %222, %221 : vector<256x16xf32>
    %224 = arith.divf %222, %223 : vector<256x16xf32>
    %225 = arith.mulf %219, %224 : vector<256x16xf32>
    %226 = vector.shape_cast %225 : vector<256x16xf32> to vector<1x16x16x16xf32>
    %227 = arith.truncf %226 : vector<1x16x16x16xf32> to vector<1x16x16x16xbf16>
    %c0_262 = arith.constant 0 : index
    %c0_263 = arith.constant 0 : index
    %c0_264 = arith.constant 0 : index
    %c0_265 = arith.constant 0 : index
    %228 = vector.load %arg5[%c0_262, %c0_263, %c0_264, %c0_265] : memref<1x16x16x16xbf16, #tpu.memory_space<vmem>>, vector<1x16x16x16xbf16>
    tpu.vector_store %arg5[%c0_262, %c0_263, %c0_264, %c0_265], %227 {strides = array<i32>} : memref<1x16x16x16xbf16, #tpu.memory_space<vmem>>, vector<1x16x16x16xbf16>,
    return
  }
  func.func @transform_0(%arg0: i32, %arg1: i32) -> (i32, i32, i32, i32) {
    %c0_i32 = arith.constant 0 : i32
    %c0_i32_0 = arith.constant 0 : i32
    %c0_i32_1 = arith.constant 0 : i32
    %c0_i32_2 = arith.constant 0 : i32
    return %arg1, %c0_i32, %c0_i32_0, %c0_i32_1 : i32, i32, i32, i32
  }
  func.func @transform_1(%arg0: i32, %arg1: i32) -> (i32, i32, i32, i32) {
    %c0_i32 = arith.constant 0 : i32
    %c0_i32_0 = arith.constant 0 : i32
    %c0_i32_1 = arith.constant 0 : i32
    %c0_i32_2 = arith.constant 0 : i32
    return %c0_i32, %c0_i32_0, %c0_i32_1, %arg0 : i32, i32, i32, i32
  }
  func.func @transform_2(%arg0: i32, %arg1: i32) -> (i32, i32) {
    %c0_i32 = arith.constant 0 : i32
    %c0_i32_0 = arith.constant 0 : i32
    return %c0_i32, %arg0 : i32, i32
  }
  func.func @transform_3(%arg0: i32, %arg1: i32) -> (i32, i32, i32, i32) {
    %c0_i32 = arith.constant 0 : i32
    %c0_i32_0 = arith.constant 0 : i32
    %c0_i32_1 = arith.constant 0 : i32
    return %arg1, %c0_i32, %c0_i32_0, %arg0 : i32, i32, i32, i32
  }
}

</mosaic_0001>

<bundles_post_ra>
// kernel: tpu_custom_call.1
= control target key start
LH: loop header
LB: loop body
LE: loop exit
PB: predicated region body
PF: predicated region fallthrough
CT: control target
= control target key end

     0   :  { %8 = vsyncpa [#allocation5], 0  ;;  %s17218_s0 = inlined_call_operand.vmem [shape: bf16[2,16,16,32], index: 0, kind: input, shape index: {}]   ;;  %s17219_s1 = inlined_call_operand.vmem [shape: bf16[5,5,32,16], index: 1, kind: input, shape index: {}]   ;;  %s17220_s2 = inlined_call_operand.vmem [shape: f32[1,16], index: 2, kind: input, shape index: {}]   ;;  %s17221_s3 = inlined_call_operand.hbm [shape: bf16[2,16,16,16], index: 3, kind: output, shape index: {}]  }
   0x1   :  { %10 = vsyncpa [#allocation5 + $0x1], 0  ;;  %s12859_s12 = smov 0   ;;  %s12861_s13 = smov 0  }
   0x2   :  { %s12863_s14 = smov 0   ;;  %s12865_s15 = smov 0  }
   0x3   :  { %s12867_s16 = smov 0   ;;  %s12869_s17 = smov 0  }
   0x4 LB: > { %s10342_s18 = sadd.s32 4294967295, %s12832_s17   ;;  %s10343_s19 = sadd.s32 4294967294, %s12832_s17   ;;  %s12832_s17 = sphi %s12869_s17, %s16_s17   ;;  %s12828_s16 = sphi %s12867_s16, %s17241_s16   ;;  %s12824_s15 = sphi %s12865_s15, %s17240_s15   ;;  %s12820_s14 = sphi %s12863_s14, %s17239_s14   ;;  %s12816_s13 = sphi %s12861_s13, %s17238_s13   ;;  %s12812_s12 = sphi %s12859_s12, %s17237_s12  }
   0x5   : > { %s25_s20 = sadd.s32 1, %s12828_s16  ;;  %s115_s21 = sadd.s32 1, %s12820_s14 }
   0x6   : > { %p26_p0 = scmp.ge.s32.totalorder %s25_s20, 2  ;;  %p125_p1 = scmp.ne.s32.totalorder %s12820_s14, %s12816_s13 }
   0x7   : > { %p126_p2 = scmp.eq.s32.totalorder %s10342_s18, 1  ;;  %p131_p3 = scmp.ne.s32.totalorder %s12816_s13, %s12812_s12 }
   0x8   : > { %s17243_s20 = smov (%p26_p0, %s25_s20), 0  ;;  %p132_p5 = scmp.eq.s32.totalorder %s10343_s19, 1 }
   0x9   : > { %p12899_p4 = por %p126_p2, %p125_p1  ;;  %s110_s23 = ssub.s32 %s12828_s16, %s17243_s20 }
   0xa   : > { %p10348_p6 = scmp.ge.s32.totalorder %s12832_s17, 1  ;;  %p113_p7 = scmp.eq.s32.totalorder %s110_s23, 0 }
   0xb   : > { %p12906_p8 = por %p132_p5, %p131_p3  ;;  %p171_p9 = scmp.lt.s32.totalorder %s12832_s17, 3 }
   0xc   : > { %s12912_s25 = scalar_select %p113_p7, %s12820_s14, %s115_s21  }
   0xd   : > { %p172_p10 = pnand %p10348_p6, %p171_p9 }
   0xe   : > { %v12555_v0 = vld [vmem:[%s17219_s1] sm:$0xff] (!%p172_p10)   ;;  %p202_p11 = scmp.lt.s32.totalorder (!%p172_p10), %s12824_s15, 1  ;;  %v12556_v1 = vld [vmem:[%s17219_s1 + $0x8] sm:$0xff] (!%p172_p10)   ;;  %vm215_vm0 = vcmask (!%p172_p10), 257024   ;;  %vm230_vm1 = vcmask (!%p172_p10), 253952   ;;  %v12834_v2 = vmov (!%p172_p10), 0  }
   0xf   : > { %175 = sbr.rel (%p172_p10) target bundleno = 1128 (0x468), region = 32  ;;  %12492 = vmatprep.subr.bf16.mxu1 (!%p172_p10), %v12555_v0  ;;  %11592 = vmatprep.subr.bf16.mxu0 (!%p172_p10), %v12555_v0  ;;  %239 = vst.msk [vmem:[#allocation2 + $0x60] sm:$0x1] (!%p172_p10), %vm230_vm1, %v12834_v2  ;;  %vm336_vm2 = vcmask (!%p172_p10), 1040384   ;;  %233 = vst.msk [vmem:[#allocation2 + $0x18] sm:$0x1] (!%p172_p10), %vm230_vm1, %v12834_v2 }
  0x10   : > { %12494 = vmatpush3.bf16.msra.mxu1 (!%p172_p10), %v12555_v0  ;;  %216 = vst.msk [vmem:[#allocation2] sm:$0xf] (!%p172_p10), %vm215_vm0, %v12834_v2  ;;  %217 = vst.msk [vmem:[#allocation2 + $0x4] sm:$0xf] (!%p172_p10), %vm215_vm0, %v12834_v2  ;;  %v12975_v3 = vld [vmem:[%s17219_s1 + $0x50] sm:$0xff] (!%p172_p10)   ;;  %11593 = vmatpush3.bf16.msra.mxu0 (!%p172_p10), %v12555_v0  ;;  %v12564_v4 = vld [vmem:[%s17219_s1 + $0xa0] sm:$0xff] (!%p172_p10)  }
  0x11   : > { %220 = vst.msk [vmem:[#allocation2 + $0xc] sm:$0xf] (!%p172_p10), %vm215_vm0, %v12834_v2  ;;  %221 = vst.msk [vmem:[#allocation2 + $0x10] sm:$0xf] (!%p172_p10), %vm215_vm0, %v12834_v2  ;;  %12493 = vmatprep.subr.bf16.mxu1 (!%p172_p10), %v12556_v1  ;;  %11594 = vmatprep.subr.bf16.mxu0 (!%p172_p10), %v12556_v1  ;;  %vm337_vm3 = vcmask (!%p172_p10), 1044484   ;;  %vm468_vm4 = vcmask (!%p172_p10), 257025  }
  0x12   : > { %224 = vst.msk [vmem:[#allocation2 + $0xd8] sm:$0xf] (!%p172_p10), %vm215_vm0, %v12834_v2  ;;  %225 = vst.msk [vmem:[#allocation2 + $0xdc] sm:$0xf] (!%p172_p10), %vm215_vm0, %v12834_v2  ;;  %vm718_vm6 = vcmask (!%p172_p10), 261120   ;;  %v12574_v30 = vld [vmem:[%s17219_s1 + $0xa8] sm:$0xff] (!%p172_p10)  }
  0x13   : > { %227 = vst.msk [vmem:[#allocation2 + $0xe4] sm:$0xf] (!%p172_p10), %vm215_vm0, %v12834_v2  ;;  %228 = vst.msk [vmem:[#allocation2 + $0xe8] sm:$0xf] (!%p172_p10), %vm215_vm0, %v12834_v2  ;;  %v13059_v39 = vld [vmem:[%s17219_s1 + $0x140] sm:$0xff] (!%p172_p10)   ;;  %v12568_v53 = vld [vmem:[%s17219_s1 + $0x58] sm:$0xff] (!%p172_p10)  }
  0x14   : > { %234 = vst.msk [vmem:[#allocation2 + $0x24] sm:$0x1] (!%p172_p10), %vm230_vm1, %v12834_v2  ;;  %235 = vst.msk [vmem:[#allocation2 + $0x30] sm:$0x1] (!%p172_p10), %vm230_vm1, %v12834_v2  ;;  %12495 = vmatpush3.bf16.msra.mxu1 (!%p172_p10), %v12556_v1  ;;  %11595 = vmatpush3.bf16.msra.mxu0 (!%p172_p10), %v12556_v1  ;;  %vm218_vm7 = vcmask (!%p172_p10), 254976   ;;  %v12579_v12 = vld [vmem:[%s17219_s1 + $0xf8] sm:$0xff] (!%p172_p10)  }
  0x15   : > { %236 = vst.msk [vmem:[#allocation2 + $0x3c] sm:$0x1] (!%p172_p10), %vm230_vm1, %v12834_v2  ;;  %237 = vst.msk [vmem:[#allocation2 + $0x48] sm:$0x1] (!%p172_p10), %vm230_vm1, %v12834_v2  ;;  %11628 = vmatprep.subr.bf16.mxu1 (!%p172_p10), %v12975_v3  ;;  %11664 = vmatprep.subr.bf16.mxu0 (!%p172_p10), %v12564_v4  ;;  %vm517_vm8 = vcmask (!%p172_p10), 130048   ;;  %vm251_vm12 = vcmask (!%p172_p10), 254977  }
  0x16   : > { %s12922_s30 = scalar_select %p202_p11, %s12824_s15, 1  ;;  %238 = vst.msk [vmem:[#allocation2 + $0x54] sm:$0x1] %vm230_vm1, %v12834_v2  ;;  %240 = vst.msk [vmem:[#allocation2 + $0x6c] sm:$0x1] %vm230_vm1, %v12834_v2  ;;  %vm4261_vm13 = vcmask 1042432  }
  0x17   : > { %241 = vst.msk [vmem:[#allocation2 + $0x78] sm:$0x1] %vm230_vm1, %v12834_v2  ;;  %242 = vst.msk [vmem:[#allocation2 + $0x84] sm:$0x1] %vm230_vm1, %v12834_v2  ;;  %vm2180_vm9 = vsmask.f32 3328 }
  0x18   : > { %243 = vst.msk [vmem:[#allocation2 + $0x90] sm:$0x1] %vm230_vm1, %v12834_v2  ;;  %244 = vst.msk [vmem:[#allocation2 + $0x9c] sm:$0x1] %vm230_vm1, %v12834_v2  ;;  %s11108_s6 = sshll.u32 %s12922_s30, 7  ;;  %vm4262_vm14 = vcmask 1046532  }
  0x19   : > { %245 = vst.msk [vmem:[#allocation2 + $0xa8] sm:$0x1] %vm230_vm1, %v12834_v2  ;;  %246 = vst.msk [vmem:[#allocation2 + $0xb4] sm:$0x1] %vm230_vm1, %v12834_v2  ;;  %s12992_s11 = scalar_lea.vmem %s17218_s0, %s11108_s6  ;;  %vm2181_vm10 = vsmask.f32 7440 }
  0x1a   : > { %247 = vst.msk [vmem:[#allocation2 + $0xc0] sm:$0x1] %vm230_vm1, %v12834_v2  ;;  %248 = vst.msk [vmem:[#allocation2 + $0xcc] sm:$0x1] %vm230_vm1, %v12834_v2  ;;  %v284_v5 = vld [vmem:[%s12992_s11 + $0x30] sm:$0xf] }
  0x1b   : > { %231 = vst.msk [vmem:[#allocation2] sm:$0x1] %vm230_vm1, %v12834_v2  ;;  %232 = vst.msk [vmem:[#allocation2 + $0xc] sm:$0x1] %vm230_vm1, %v12834_v2  ;;  %v12996_v6 = vld [vmem:[%s12992_s11 + $0x34] sm:$0xf] }
  0x1c   : > { %249 = vst.msk [vmem:[#allocation2 + $0xd8] sm:$0x1] %vm230_vm1, %v12834_v2  ;;  %250 = vst.msk [vmem:[#allocation2 + $0xe4] sm:$0x1] %vm230_vm1, %v12834_v2  ;;  %v286_v7 = vld [vmem:[%s12992_s11 + $0x38] sm:$0xf] }
  0x1d   : > { %v369_v8 = vrot.slane %v284_v5, 7  ;;  %v371_v9 = vrot.slane %v12996_v6, 7  ;;  %v13001_v10 = vld [vmem:[%s12992_s11 + $0x3c] sm:$0xf]  ;;  %v374_v11 = vrot.slane %v286_v7, 7  ;;  %vm13004_vm5 = vmor %vm336_vm2, %vm337_vm3  ;;  %v13123_v5 = vld [vmem:[%s17219_s1 + $0xf0] sm:$0xff]  }
  0x1e   : > { %v376_v13 = vrot.slane %v13001_v10, 7  ;;  %v288_v14 = vld [vmem:[%s12992_s11 + $0x40] sm:$0xf]  ;;  %v13012_v15 = vld [vmem:[%s12992_s11 + $0x44] sm:$0xf]  ;;  %vm13496_vm11 = vmor %vm2180_vm9, %vm2181_vm10  ;;  %vm8127_vm3 = vcmask 1041408  }
  0x1f   : > { %v370_v16 = vrot.slane %v369_v8, 4  ;;  %487 = vst.msk [vmem:[#allocation2 + $0x60] sm:$0xe] %vm468_vm4, %v369_v8  ;;  %v375_v17 = vrot.slane %v374_v11, 4  ;;  %490 = vst.msk [vmem:[#allocation2 + $0x6c] sm:$0xe] %vm468_vm4, %v374_v11 }
  0x20   : > { %v379_v18 = vrot.slane %v288_v14, 7  ;;  %v381_v19 = vrot.slane %v13012_v15, 7  ;;  %v290_v20 = vld [vmem:[%s12992_s11 + $0x48] sm:$0xf]  ;;  %v13019_v21 = vld [vmem:[%s12992_s11 + $0x4c] sm:$0xf]  ;;  %vm14013_vm15 = vmor %vm4261_vm13, %vm4262_vm14 }
  0x21   : > { %v372_v22 = vsel %vm13004_vm5, %v370_v16, %v371_v9  ;;  %v377_v23 = vsel %vm13004_vm5, %v375_v17, %v376_v13  ;;  %v384_v27 = vrot.slane %v290_v20, 7  ;;  %v386_v28 = vrot.slane %v13019_v21, 7  ;;  %v272_v29 = vld [vmem:[%s12992_s11] sm:$0xf]  ;;  %v13045_v32 = vld [vmem:[%s12992_s11 + $0x4] sm:$0xf] }
  0x22   : > { %v12560_v24 = vld [vmem:[#allocation2] sm:$0xff]   ;;  %v380_v25 = vrot.slane %v379_v18, 4  ;;  %493 = vst.msk [vmem:[#allocation2 + $0x78] sm:$0xe] %vm468_vm4, %v379_v18  ;;  %v13032_v26 = vld [vmem:[#allocation2 + $0xc] sm:$0xff]   ;;  %v339_v33 = vrot.slane %v272_v29, 7 }
  0x23   : > { %488 = vst.msk [vmem:[#allocation2 + $0x64] sm:$0xf] %vm215_vm0, %v372_v22  ;;  %491 = vst.msk [vmem:[#allocation2 + $0x70] sm:$0xf] %vm215_vm0, %v377_v23  ;;  %11596 = vmatprep.mubr.msk.bf16.mxu0 %vm718_vm6, %v12560_v24  ;;  %v274_v34 = vld [vmem:[%s12992_s11 + $0x8] sm:$0xf] }
  0x24   : > { %v382_v31 = vsel %vm13004_vm5, %v380_v25, %v381_v19  ;;  %11597 = vmatmul.mubr.msk.bf16.vlgmr.msra.gmra.mrb[0].mxu0 %vm718_vm6, %v13032_v26  ;;  %v385_v35 = vrot.slane %v384_v27, 4  ;;  %496 = vst.msk [vmem:[#allocation2 + $0x84] sm:$0xe] %vm468_vm4, %v384_v27  ;;  %v341_v36 = vrot.slane %v13045_v32, 7  ;;  %v13054_v37 = vld [vmem:[%s12992_s11 + $0xc] sm:$0xf] }
  0x25   : > { %494 = vst.msk [vmem:[#allocation2 + $0x7c] sm:$0xf] %vm215_vm0, %v382_v31  ;;  %v344_v38 = vrot.slane %v274_v34, 7  ;;  %11665 = vmatpush3.bf16.msra.mxu0 %v12564_v4  ;;  %v340_v40 = vrot.slane %v339_v33, 4  ;;  %v346_v41 = vrot.slane %v13054_v37, 7  ;;  %v12580_v32 = vld [vmem:[%s17219_s1 + $0x148] sm:$0xff]  }
  0x26   : > { %469 = vst.msk [vmem:[#allocation2 + $0x18] sm:$0xe] %vm468_vm4, %v339_v33  ;;  %v292_v42 = vld [vmem:[%s12992_s11 + $0x50] sm:$0xf]  ;;  %v13065_v43 = vld [vmem:[%s12992_s11 + $0x54] sm:$0xf]  ;;  %v387_v44 = vsel %vm13004_vm5, %v385_v35, %v386_v28  ;;  %11666 = vmatprep.subr.bf16.mxu0 %v12574_v30 }
  0x27   : > { %v345_v45 = vrot.slane %v344_v38, 4  ;;  %472 = vst.msk [vmem:[#allocation2 + $0x24] sm:$0xe] %vm468_vm4, %v344_v38  ;;  %v389_v46 = vrot.slane %v292_v42, 7  ;;  %v342_v47 = vsel %vm13004_vm5, %v340_v40, %v341_v36  ;;  %v391_v48 = vrot.slane %v13065_v43, 7  ;;  %s199_s6 = sand.u32 1, %s12816_s13  }
  0x28   : > { %497 = vst.msk [vmem:[#allocation2 + $0x88] sm:$0xf] %vm215_vm0, %v387_v44  ;;  %v294_v49 = vld [vmem:[%s12992_s11 + $0x58] sm:$0xf]  ;;  %v13080_v50 = vld [vmem:[%s12992_s11 + $0x5c] sm:$0xf] }
  0x29   : > { %470 = vst.msk [vmem:[#allocation2 + $0x1c] sm:$0xf] %vm215_vm0, %v342_v47  ;;  %v347_v51 = vsel %vm13004_vm5, %v345_v45, %v346_v41  ;;  %v390_v52 = vrot.slane %v389_v46, 4  ;;  %v394_v54 = vrot.slane %v294_v49, 7  ;;  %v396_v55 = vrot.slane %v13080_v50, 7  ;;  %11667 = vmatpush3.bf16.msra.mxu0 %v12574_v30  ;;  %v12586_v50 = vld [vmem:[%s17219_s1 + $0x68] sm:$0xff]  }
  0x2a   : > { %499 = vst.msk [vmem:[#allocation2 + $0x90] sm:$0xe] %vm468_vm4, %v389_v46  ;;  %v13092_v56 = vld [vmem:[#allocation2 + $0x60] sm:$0xff]   ;;  %v13095_v57 = vld [vmem:[#allocation2 + $0x6c] sm:$0xff]   ;;  %v13104_v61 = vld [vmem:[%s12992_s11 + $0x14] sm:$0xf]  ;;  %11736 = vmatprep.subr.bf16.mxu0 %v13059_v39 }
  0x2b   : > { %473 = vst.msk [vmem:[#allocation2 + $0x28] sm:$0xf] %vm215_vm0, %v347_v51  ;;  %v392_v58 = vsel %vm13004_vm5, %v390_v52, %v391_v48  ;;  %v395_v59 = vrot.slane %v394_v54, 4  ;;  %v276_v60 = vld [vmem:[%s12992_s11 + $0x10] sm:$0xf]  ;;  %11612 = vmatprep.mubr.msk.bf16.mxu1 %vm718_vm6, %v13092_v56  ;;  %v351_v1 = vrot.slane %v13104_v61, 7 }
  0x2c   : > { %502 = vst.msk [vmem:[#allocation2 + $0x9c] sm:$0xe] %vm468_vm4, %v394_v54  ;;  %v13109_v62 = vld [vmem:[#allocation2 + $0x78] sm:$0xff]   ;;  %v349_v63 = vrot.slane %v276_v60, 7  ;;  %11613 = vmatmul.mubr.msk.bf16.vlgmr.msra.gmra.mrb[0].mxu1 %vm718_vm6, %v13095_v57  ;;  %v296_v17 = vld [vmem:[%s12992_s11 + $0x60] sm:$0xf] }
  0x2d   : > { %500 = vst.msk [vmem:[#allocation2 + $0x94] sm:$0xf] %vm215_vm0, %v392_v58  ;;  %v397_v0 = vsel %vm13004_vm5, %v395_v59, %v396_v55  ;;  %v278_v4 = vld [vmem:[%s12992_s11 + $0x18] sm:$0xf]  ;;  %11629 = vmatpush3.bf16.msra.mxu1 %v12975_v3  ;;  %11616 = vmatprep.mubr.msk.bf16.mxu1 %vm718_vm6, %v13109_v62  ;;  %v13131_v8 = vld [vmem:[%s12992_s11 + $0x1c] sm:$0xf] }
  0x2e   : > { %503 = vst.msk [vmem:[#allocation2 + $0xa0] sm:$0xf] %vm215_vm0, %v397_v0  ;;  %v350_v7 = vrot.slane %v349_v63, 4  ;;  %v354_v11 = vrot.slane %v278_v4, 7  ;;  %11630 = vmatprep.subr.bf16.mxu1 %v12568_v53  ;;  %v356_v16 = vrot.slane %v13131_v8, 7  ;;  %v399_v24 = vrot.slane %v296_v17, 7 }
  0x2f   : > { %475 = vst.msk [vmem:[#allocation2 + $0x30] sm:$0xe] %vm468_vm4, %v349_v63  ;;  %v13133_v14 = vld [vmem:[#allocation2 + $0x84] sm:$0xff]   ;;  %v13165_v33 = vld [vmem:[%s12992_s11 + $0x6c] sm:$0xf]  ;;  %v353_v37 = vrot.slane %v351_v1, 4 }
  0x30   : > { %v13137_v3 = vld [vmem:[#allocation2 + $0x18] sm:$0xff]   ;;  %v352_v18 = vsel %vm13004_vm5, %v350_v7, %v351_v1  ;;  %v355_v20 = vrot.slane %v354_v11, 4  ;;  %478 = vst.msk [vmem:[#allocation2 + $0x3c] sm:$0xe] %vm468_vm4, %v354_v11  ;;  %v13148_v23 = vld [vmem:[%s12992_s11 + $0x64] sm:$0xf] }
  0x31   : > { %476 = vst.msk [vmem:[#allocation2 + $0x34] sm:$0xf] %vm215_vm0, %v352_v18  ;;  %11600 = vmatprep.mubr.msk.bf16.mxu0 %vm718_vm6, %v13137_v3  ;;  %11631 = vmatpush3.bf16.msra.mxu1 %v12568_v53  ;;  %v401_v27 = vrot.slane %v13148_v23, 7  ;;  %v298_v29 = vld [vmem:[%s12992_s11 + $0x68] sm:$0xf]  ;;  %v400_v31 = vrot.slane %v399_v24, 4 }
  0x32   : > { %v13144_v22 = vld [vmem:[#allocation2 + $0x24] sm:$0xff]   ;;  %v357_v25 = vsel %vm13004_vm5, %v355_v20, %v356_v16  ;;  %505 = vst.msk [vmem:[#allocation2 + $0xa8] sm:$0xe] %vm468_vm4, %v399_v24  ;;  %11700 = vmatprep.subr.bf16.mxu1 %v13123_v5  ;;  %v404_v34 = vrot.slane %v298_v29, 7  ;;  %v406_v35 = vrot.slane %v13165_v33, 7  ;;  %v373_v1 = vrot.slane %v371_v9, 4 }
  0x33   : > { %11601 = vmatmul.mubr.msk.bf16.gmra.mrb[4].mxu0 %vm718_vm6, %v13144_v22  ;;  %479 = vst.msk [vmem:[#allocation2 + $0x40] sm:$0xf] %vm215_vm0, %v357_v25  ;;  %v402_v38 = vsel %vm13004_vm5, %v400_v31, %v401_v27  ;;  %v280_v42 = vld [vmem:[%s12992_s11 + $0x20] sm:$0xf]  ;;  %v13181_v44 = vld [vmem:[%s12992_s11 + $0x24] sm:$0xf] }
  0x34   : > { %v13160_v30 = vld [vmem:[#allocation2 + $0x90] sm:$0xff]   ;;  %11617 = vmatmul.mubr.msk.bf16.gmra.mrb[4].mxu1 %vm718_vm6, %v13133_v14  ;;  %506 = vst.msk [vmem:[#allocation2 + $0xac] sm:$0xf] %vm215_vm0, %v402_v38  ;;  %v405_v40 = vrot.slane %v404_v34, 4  ;;  %v359_v46 = vrot.slane %v280_v42, 7  ;;  %v361_v47 = vrot.slane %v13181_v44, 7 }
  0x35   : > { %11620 = vmatprep.mubr.msk.bf16.mxu1 %vm718_vm6, %v13160_v30  ;;  %508 = vst.msk [vmem:[#allocation2 + $0xb4] sm:$0xe] %vm468_vm4, %v404_v34  ;;  %v13183_v45 = vld [vmem:[#allocation2 + $0x9c] sm:$0xff]   ;;  %v282_v49 = vld [vmem:[%s12992_s11 + $0x28] sm:$0xf]  ;;  %v383_v6 = vrot.slane %v381_v19, 4 }
  0x36   : > { %v407_v52 = vsel %vm13004_vm5, %v405_v40, %v406_v35  ;;  %v13194_v53 = vld [vmem:[%s12992_s11 + $0x2c] sm:$0xf]  ;;  %v364_v54 = vrot.slane %v282_v49, 7  ;;  %v360_v58 = vrot.slane %v359_v46, 4  ;;  %481 = vst.msk [vmem:[#allocation2 + $0x48] sm:$0xe] %vm468_vm4, %v359_v46 }
  0x37   : > { %509 = vst.msk [vmem:[#allocation2 + $0xb8] sm:$0xf] %vm215_vm0, %v407_v52  ;;  %v366_v59 = vrot.slane %v13194_v53, 7  ;;  %v300_v11 = vld [vmem:[%s12992_s11 + $0x70] sm:$0xf]  ;;  %v343_v52 = vrot.slane %v341_v36, 4 }
  0x38   : > { %v13187_v51 = vld [vmem:[#allocation2 + $0x30] sm:$0xff]   ;;  %v365_v63 = vrot.slane %v364_v54, 4  ;;  %484 = vst.msk [vmem:[#allocation2 + $0x54] sm:$0xe] %vm468_vm4, %v364_v54  ;;  %v362_v0 = vsel %vm13004_vm5, %v360_v58, %v361_v47  ;;  %v302_v18 = vld [vmem:[%s12992_s11 + $0x78] sm:$0xf] }
  0x39   : > { %11604 = vmatprep.mubr.msk.bf16.mxu0 %vm718_vm6, %v13187_v51  ;;  %482 = vst.msk [vmem:[#allocation2 + $0x4c] sm:$0xf] %vm215_vm0, %v362_v0  ;;  %v13222_v17 = vld [vmem:[%s12992_s11 + $0x74] sm:$0xf]  ;;  %v409_v20 = vrot.slane %v300_v11, 7  ;;  %v414_v29 = vrot.slane %v302_v18, 7 }
  0x3a   : > { %v13201_v60 = vld [vmem:[#allocation2 + $0x3c] sm:$0xff]   ;;  %v367_v4 = vsel %vm13004_vm5, %v365_v63, %v366_v59  ;;  %219 = vst.msk [vmem:[#allocation2 + $0x8] sm:$0x3] %vm218_vm7, %v12834_v2  ;;  %222 = vst.msk [vmem:[#allocation2 + $0x14] sm:$0x3] %vm218_vm7, %v12834_v2  ;;  %v411_v24 = vrot.slane %v13222_v17, 7 }
  0x3b   : > { %11605 = vmatmul.mubr.msk.bf16.gmra.mrb[8].mxu0 %vm718_vm6, %v13201_v60  ;;  %v13217_v7 = vld [vmem:[#allocation2 + $0xa8] sm:$0xff]   ;;  %485 = vst.msk [vmem:[#allocation2 + $0x58] sm:$0xf] %vm215_vm0, %v367_v4  ;;  %v13233_v25 = vld [vmem:[%s12992_s11 + $0x7c] sm:$0xf]  ;;  %v410_v38 = vrot.slane %v409_v20, 4 }
  0x3c   : > { %11621 = vmatmul.mubr.msk.bf16.gmra.mrb[8].mxu1 %vm718_vm6, %v13183_v45  ;;  %226 = vst.msk [vmem:[#allocation2 + $0xe0] sm:$0x3] %vm218_vm7, %v12834_v2  ;;  %229 = vst.msk [vmem:[#allocation2 + $0xec] sm:$0x3] %vm218_vm7, %v12834_v2  ;;  %v416_v34 = vrot.slane %v13233_v25, 7  ;;  %v415_v40 = vrot.slane %v414_v29, 4 }
  0x3d   : > { %11624 = vmatprep.mubr.msk.bf16.mxu1 %vm718_vm6, %v13217_v7  ;;  %511 = vst.msk [vmem:[#allocation2 + $0xc0] sm:$0xe] %vm468_vm4, %v409_v20  ;;  %514 = vst.msk [vmem:[#allocation2 + $0xcc] sm:$0xe] %vm468_vm4, %v414_v29  ;;  %v412_v46 = vsel %vm13004_vm5, %v410_v38, %v411_v24  ;;  %v348_v58 = vrot.slane %v346_v41, 4  ;;  %v13294_v36 = vld [vmem:[%s17219_s1 + $0x60] sm:$0xff]  }
  0x3e   : > { %v13235_v31 = vld [vmem:[#allocation2 + $0xb4] sm:$0xff]   ;;  %v417_v49 = vsel %vm13004_vm5, %v415_v40, %v416_v34  ;;  %512 = vst.msk [vmem:[#allocation2 + $0xc4] sm:$0xf] %vm215_vm0, %v412_v46  ;;  %v363_v41 = vrot.slane %v361_v47, 4  ;;  %v368_v61 = vrot.slane %v366_v59, 4  ;;  %v388_v9 = vrot.slane %v386_v28, 4 }
  0x3f   : > { %515 = vst.msk [vmem:[#allocation2 + $0xd0] sm:$0xf] %vm215_vm0, %v417_v49  ;;  %v393_v10 = vrot.slane %v391_v48, 4  ;;  %v398_v15 = vrot.slane %v396_v55, 4  ;;  %v12835_v21 = vmov 0.0   ;;  %v403_v28 = vrot.slane %v401_v27, 4 }
  0x40   : > { %v13240_v42 = vld [vmem:[#allocation2 + $0x48] sm:$0xff]   ;;  %471 = vst.msk [vmem:[#allocation2 + $0x20] sm:$0x1] %vm230_vm1, %v343_v52  ;;  %474 = vst.msk [vmem:[#allocation2 + $0x2c] sm:$0x1] %vm230_vm1, %v348_v58  ;;  %v408_v43 = vrot.slane %v406_v35, 4 }
  0x41   : > { %11608 = vmatprep.mubr.msk.bf16.mxu0 %vm718_vm6, %v13240_v42  ;;  %477 = vst.msk [vmem:[#allocation2 + $0x38] sm:$0x1] %vm230_vm1, %v353_v37  ;;  %483 = vst.msk [vmem:[#allocation2 + $0x50] sm:$0x1] %vm230_vm1, %v363_v41  ;;  %v12585_v48 = vld [vmem:[%s17219_s1 + $0x18] sm:$0xff]   ;;  %v413_v55 = vrot.slane %v411_v24, 4 }
  0x42   : > { %v13252_v54 = vld [vmem:[#allocation2 + $0x54] sm:$0xff]   ;;  %486 = vst.msk [vmem:[#allocation2 + $0x5c] sm:$0x1] %vm230_vm1, %v368_v61  ;;  %489 = vst.msk [vmem:[#allocation2 + $0x68] sm:$0x1] %vm230_vm1, %v373_v1  ;;  %v418_v1 = vrot.slane %v416_v34, 4 }
  0x43   : > { %11609 = vmatmul.mubr.msk.bf16.gmra.mrb[12].mxu0 %vm718_vm6, %v13252_v54  ;;  %495 = vst.msk [vmem:[#allocation2 + $0x80] sm:$0x1] %vm230_vm1, %v383_v6  ;;  %498 = vst.msk [vmem:[#allocation2 + $0x8c] sm:$0x1] %vm230_vm1, %v388_v9  ;;  %v13444_v8 = vld [vmem:[%s17219_s1 + $0xb0] sm:$0xff]   ;;  %vm8128_vm4 = vcmask 1045508  }
  0x44   : > { %11625 = vmatmul.mubr.msk.bf16.gmra.mrb[12].mxu1 %vm718_vm6, %v13235_v31  ;;  %11668 = vmatprep.mubr.msk.bf16.mxu0 %vm718_vm6, %v13137_v3  ;;  %501 = vst.msk [vmem:[#allocation2 + $0x98] sm:$0x1] %vm230_vm1, %v393_v10  ;;  %504 = vst.msk [vmem:[#allocation2 + $0xa4] sm:$0x1] %vm230_vm1, %v398_v15  ;;  %v2124_v53 = vld [vmem:[#allocation2 + $0x10] sm:$0xf] }
  0x45   : > { %11632 = vmatprep.mubr.msk.bf16.mxu1 %vm718_vm6, %v13032_v26  ;;  %v13286_v26 = vld [vmem:[%s17219_s1 + $0x10] sm:$0xff]   ;;  %536 = vst.msk [vmem:[#allocation3 + $0x90] sm:$0xff] %vm517_vm8, %v12835_v21  ;;  %518 = vst.msk [vmem:[#allocation3] sm:$0xff] %vm517_vm8, %v12835_v21  ;;  %v2127_v17 = vld [vmem:[#allocation2 + $0x1c] sm:$0xf]  ;;  %v2217_v18 = vshll.u32 %v2124_v53, 16 }
  0x46   : > { %v13377_v19 = vld [vmem:[#allocation2 + $0xcc] sm:$0xff]   ;;  %519 = vst.msk [vmem:[#allocation3 + $0x8] sm:$0xff] %vm517_vm8, %v12835_v21  ;;  %520 = vst.msk [vmem:[#allocation3 + $0x10] sm:$0xff] %vm517_vm8, %v12835_v21  ;;  %v2125_v0 = vld [vmem:[#allocation2 + $0x14] sm:$0x1]  ;;  %v2221_v20 = vshrl.u32 %v2124_v53, 16 }
  0x47   : > { %521 = vst.msk [vmem:[#allocation3 + $0x18] sm:$0xff] %vm517_vm8, %v12835_v21  ;;  %522 = vst.msk [vmem:[#allocation3 + $0x20] sm:$0xff] %vm517_vm8, %v12835_v21  ;;  %v2227_v38 = vshll.u32 %v2125_v0, 16  ;;  %v2241_v40 = vshll.u32 %v2127_v17, 16  ;;  %v2129_v46 = vld [vmem:[#allocation2 + $0x24] sm:$0xf] }
  0x48   : > { %523 = vst.msk [vmem:[#allocation3 + $0x28] sm:$0xff] %vm517_vm8, %v12835_v21  ;;  %524 = vst.msk [vmem:[#allocation3 + $0x30] sm:$0xff] %vm517_vm8, %v12835_v21  ;;  %v2256_v61 = vshrl.u32 %v2129_v46, 16  ;;  %v2259_v10 = vshll.u32 %v2129_v46, 16  ;;  %vm5966_vm0 = vsmask.f32 2304 }
  0x49   : > { %525 = vst.msk [vmem:[#allocation3 + $0x38] sm:$0xff] %vm517_vm8, %v12835_v21  ;;  %526 = vst.msk [vmem:[#allocation3 + $0x40] sm:$0xff] %vm517_vm8, %v12835_v21  ;;  %v13504_v6 = vrot.slane %v2241_v40, 5  ;;  %v13516_v34 = vrot.slane %v2227_v38, 5  ;;  %v12587_v38 = vld [vmem:[#allocation2 + $0xd8] sm:$0xff]   ;;  %s16933_s7 = sshll.u32 %s199_s6, 7 }
  0x4a   : > { %527 = vst.msk [vmem:[#allocation3 + $0x48] sm:$0xff] %vm517_vm8, %v12835_v21  ;;  %528 = vst.msk [vmem:[#allocation3 + $0x50] sm:$0xff] %vm517_vm8, %v12835_v21  ;;  %s16964_s8 = scalar_lea.vmem [#allocation4], %s16933_s7  ;;  %s11141_s9 = sshll.u32 %s12824_s15, 11 }
  0x4b   : > { %11669 = vmatmul.mubr.msk.bf16.vlgmr.msra.gmra.mrb[16].mxu0 %vm718_vm6, %v13144_v22  ;;  %529 = vst.msk [vmem:[#allocation3 + $0x58] sm:$0xff] %vm517_vm8, %v12835_v21  ;;  %530 = vst.msk [vmem:[#allocation3 + $0x60] sm:$0xff] %vm517_vm8, %v12835_v21  ;;  %s10243_s10 = sshll.u32 %s16964_s8, 4  ;;  %s17162_s19 = scalar_lea.hbm %s17221_s3, %s11141_s9  ;;  %s17164_s10 = int_to_ptr.vmem [resolvable:$true] %s10243_s10 }
  0x4c   : > { %11633 = vmatmul.mubr.msk.bf16.vlgmr.msra.gmra.mrb[16].mxu1 %vm718_vm6, %v13137_v3  ;;  %11737 = vmatpush3.bf16.msra.mxu0 %v13059_v39  ;;  %v358_v39 = vrot.slane %v356_v16, 4  ;;  %531 = vst.msk [vmem:[#allocation3 + $0x68] sm:$0xff] %vm517_vm8, %v12835_v21  ;;  %532 = vst.msk [vmem:[#allocation3 + $0x70] sm:$0xff] %vm517_vm8, %v12835_v21  ;;  %v13453_v16 = vld [vmem:[%s17219_s1 + $0x100] sm:$0xff]   ;;  %s17172_s15 = scalar_lea.sflag [#allocation5], %s199_s6  ;;  %s12754_s21 = scalar_lea.vmem %s17164_s10, 2048 }
  0x4d   : > { %11701 = vmatpush3.bf16.msra.mxu1 %v13123_v5  ;;  %11636 = vmatprep.mubr.msk.bf16.mxu1 %vm718_vm6, %v13144_v22  ;;  %v378_v5 = vrot.slane %v376_v13, 4  ;;  %v13369_v13 = vld [vmem:[#allocation2 + $0xc0] sm:$0xff]   ;;  %533 = vst.msk [vmem:[#allocation3 + $0x78] sm:$0xff] %vm517_vm8, %v12835_v21  ;;  %534 = vst.msk [vmem:[#allocation3 + $0x80] sm:$0xff] %vm517_vm8, %v12835_v21  ;;  %p12755_p12 = scmp.ne.s32.totalorder %s17164_s10, %s12754_s21  ;;  %s12836_s23 = smov [#allocation4]  }
  0x4e   : > { %11702 = vmatprep.subr.bf16.mxu1 %v12579_v12  ;;  %11672 = vmatprep.mubr.msk.bf16.mxu0 %vm718_vm6, %v13187_v51  ;;  %480 = vst.msk [vmem:[#allocation2 + $0x44] sm:$0x1] %vm230_vm1, %v358_v39  ;;  %507 = vst.msk [vmem:[#allocation2 + $0xb0] sm:$0x1] %vm230_vm1, %v403_v28  ;;  %v2120_v3 = vld [vmem:[#allocation2] sm:$0xf] }
  0x4f   : > { %11738 = vmatprep.subr.bf16.mxu0 %v12580_v32  ;;  %492 = vst.msk [vmem:[#allocation2 + $0x74] sm:$0x1] %vm230_vm1, %v378_v5  ;;  %510 = vst.msk [vmem:[#allocation2 + $0xbc] sm:$0x1] %vm230_vm1, %v408_v43  ;;  %v2184_v23 = vshrl.u32 %v2120_v3, 16  ;;  %v2187_v27 = vshll.u32 %v2120_v3, 16  ;;  %p12756_p13 = pnand %p12755_p12, %p12899_p4 }
  0x50   : > { %11739 = vmatpush3.bf16.msra.mxu0 %v12580_v32  ;;  %535 = vst.msk [vmem:[#allocation3 + $0x88] sm:$0xff] %vm517_vm8, %v12835_v21  ;;  %537 = vst.msk [vmem:[#allocation3 + $0x98] sm:$0xff] %vm517_vm8, %v12835_v21  ;;  %v2223_v32 = vrot.slane %v2221_v20, 4  ;;  %v2128_v5 = vld [vmem:[#allocation2 + $0x20] sm:$0x1]  ;;  %s12758_s26 = sshll.u32 %s12836_s23, 4  ;;  %s12759_s26 = int_to_ptr.vmem [resolvable:$false] %s12758_s26 }
  0x51   : > { %11703 = vmatpush3.bf16.msra.mxu1 %v12579_v12  ;;  %11808 = vmatprep.subr.bf16.mxu0 %v13294_v36  ;;  %538 = vst.msk [vmem:[#allocation3 + $0xa0] sm:$0xff] %vm517_vm8, %v12835_v21  ;;  %539 = vst.msk [vmem:[#allocation3 + $0xa8] sm:$0xff] %vm517_vm8, %v12835_v21  ;;  %v2186_v35 = vrot.slane %v2184_v23, 4  ;;  %v2189_v44 = vrot.slane %v2187_v27, 5  ;;  %v2130_v12 = vld [vmem:[#allocation2 + $0x28] sm:$0xf]  ;;  %p12757_p0 = pneg %p12756_p13  ;;  %p12761_p1 = scmp.lt.s32.totalorder %s17164_s10, %s12759_s26 }
  0x52   : > { %11772 = vmatprep.subr.bf16.mxu1 %v13286_v26  ;;  %540 = vst.msk [vmem:[#allocation3 + $0xb0] sm:$0xff] %vm517_vm8, %v12835_v21  ;;  %541 = vst.msk [vmem:[#allocation3 + $0xb8] sm:$0xff] %vm517_vm8, %v12835_v21  ;;  %v2265_v15 = vshll.u32 %v2130_v12, 16  ;;  %v2251_v23 = vshll.u32 %v2128_v5, 16  ;;  %v2135_v27 = vld [vmem:[#allocation2 + $0x3c] sm:$0xf] }
  0x53   : > { %11673 = vmatmul.mubr.msk.bf16.gmra.mrb[20].mxu0 %vm718_vm6, %v13201_v60  ;;  %542 = vst.msk [vmem:[#allocation3 + $0xc0] sm:$0xff] %vm517_vm8, %v12835_v21  ;;  %543 = vst.msk [vmem:[#allocation3 + $0xc8] sm:$0xff] %vm517_vm8, %v12835_v21  ;;  %s12760_s27 = scalar_lea.vmem %s12759_s26, 4096 }
  0x54   : > { %11637 = vmatmul.mubr.msk.bf16.gmra.mrb[20].mxu1 %vm718_vm6, %v13187_v51  ;;  %11676 = vmatprep.mubr.msk.bf16.mxu0 %vm718_vm6, %v13240_v42  ;;  %544 = vst.msk [vmem:[#allocation3 + $0xd0] sm:$0xff] %vm517_vm8, %v12835_v21  ;;  %545 = vst.msk [vmem:[#allocation3 + $0xd8] sm:$0xff] %vm517_vm8, %v12835_v21  ;;  %p12762_p2 = scmp.lt.s32.totalorder %s12760_s27, %s12754_s21 }
  0x55   : > { %11640 = vmatprep.mubr.msk.bf16.mxu1 %vm718_vm6, %v13201_v60  ;;  %546 = vst.msk [vmem:[#allocation3 + $0xe0] sm:$0xff] %vm517_vm8, %v12835_v21  ;;  %547 = vst.msk [vmem:[#allocation3 + $0xe8] sm:$0xff] %vm517_vm8, %v12835_v21 }
  0x56   : > { %548 = vst.msk [vmem:[#allocation3 + $0xf0] sm:$0xff] %vm517_vm8, %v12835_v21  ;;  %549 = vst.msk [vmem:[#allocation3 + $0xf8] sm:$0xff] %vm517_vm8, %v12835_v21  ;;  %v2269_v21 = vshrl.u32 %v2130_v12, 16  ;;  %p12763_p3 = por %p12762_p2, %p12761_p1 }
  0x57   : > { %513 = vst.msk [vmem:[#allocation2 + $0xc8] sm:$0x1] %vm230_vm1, %v413_v55  ;;  %516 = vst.msk [vmem:[#allocation2 + $0xd4] sm:$0x1] %vm230_vm1, %v418_v1  ;;  %vm5967_vm1 = vsmask.f32 6416 }
  0x58   : > { %270 = vst.msk [vmem:[#allocation2 + $0xe0] sm:$0x2] %vm251_vm12, %v12834_v2  ;;  %252 = vst.msk [vmem:[#allocation2 + $0x8] sm:$0x2] %vm251_vm12, %v12834_v2  ;;  %p12764_p5 = pnand %p12763_p3, %p12757_p0 }
  0x59   : > { %253 = vst.msk [vmem:[#allocation2 + $0x14] sm:$0x2] %vm251_vm12, %v12834_v2  ;;  %254 = vst.msk [vmem:[#allocation2 + $0x20] sm:$0x2] %vm251_vm12, %v12834_v2 }
  0x5a   : > { %255 = vst.msk [vmem:[#allocation2 + $0x2c] sm:$0x2] %vm251_vm12, %v12834_v2  ;;  %256 = vst.msk [vmem:[#allocation2 + $0x38] sm:$0x2] %vm251_vm12, %v12834_v2 }
  0x5b   : > { %11677 = vmatmul.mubr.msk.bf16.gmra.mrb[24].mxu0 %vm718_vm6, %v13252_v54  ;;  %257 = vst.msk [vmem:[#allocation2 + $0x44] sm:$0x2] %vm251_vm12, %v12834_v2  ;;  %258 = vst.msk [vmem:[#allocation2 + $0x50] sm:$0x2] %vm251_vm12, %v12834_v2 }
  0x5c   : > { %11641 = vmatmul.mubr.msk.bf16.gmra.mrb[24].mxu1 %vm718_vm6, %v13240_v42  ;;  %11680 = vmatprep.mubr.msk.bf16.mxu0 %vm718_vm6, %v13092_v56  ;;  %259 = vst.msk [vmem:[#allocation2 + $0x5c] sm:$0x2] %vm251_vm12, %v12834_v2  ;;  %260 = vst.msk [vmem:[#allocation2 + $0x68] sm:$0x2] %vm251_vm12, %v12834_v2 }
  0x5d   : > { %11644 = vmatprep.mubr.msk.bf16.mxu1 %vm718_vm6, %v13252_v54  ;;  %261 = vst.msk [vmem:[#allocation2 + $0x74] sm:$0x2] %vm251_vm12, %v12834_v2  ;;  %262 = vst.msk [vmem:[#allocation2 + $0x80] sm:$0x2] %vm251_vm12, %v12834_v2 }
  0x5e   : > { %263 = vst.msk [vmem:[#allocation2 + $0x8c] sm:$0x2] %vm251_vm12, %v12834_v2  ;;  %264 = vst.msk [vmem:[#allocation2 + $0x98] sm:$0x2] %vm251_vm12, %v12834_v2 }
  0x5f   : > { %265 = vst.msk [vmem:[#allocation2 + $0xa4] sm:$0x2] %vm251_vm12, %v12834_v2  ;;  %266 = vst.msk [vmem:[#allocation2 + $0xb0] sm:$0x2] %vm251_vm12, %v12834_v2 }
  0x60   : > { %267 = vst.msk [vmem:[#allocation2 + $0xbc] sm:$0x2] %vm251_vm12, %v12834_v2  ;;  %268 = vst.msk [vmem:[#allocation2 + $0xc8] sm:$0x2] %vm251_vm12, %v12834_v2 }
  0x61   : > { %269 = vst.msk [vmem:[#allocation2 + $0xd4] sm:$0x2] %vm251_vm12, %v12834_v2  ;;  %271 = vst.msk [vmem:[#allocation2 + $0xec] sm:$0x2] %vm251_vm12, %v12834_v2  ;;  %v2153_v2 = vld [vmem:[#allocation2 + $0x84] sm:$0xf] }
  0x62   : > { %vm14812_vm2 = vmor %vm5966_vm0, %vm5967_vm1 }
  0x63   : > { %11681 = vmatmul.mubr.msk.bf16.gmra.mrb[28].mxu0 %vm718_vm6, %v13095_v57  ;;  %vm15919_vm5 = vmor %vm8127_vm3, %vm8128_vm4 }
  0x64   : > { %11645 = vmatmul.mubr.msk.bf16.gmra.mrb[28].mxu1 %vm718_vm6, %v13092_v56  ;;  %11684 = vmatprep.mubr.msk.bf16.mxu0 %vm718_vm6, %v13109_v62 }
  0x65   : > { %11648 = vmatprep.mubr.msk.bf16.mxu1 %vm718_vm6, %v13095_v57 }
  0x6b   : > { %11685 = vmatmul.mubr.msk.bf16.gmra.mrb[32].mxu0 %vm718_vm6, %v13133_v14 }
  0x6c   : > { %11649 = vmatmul.mubr.msk.bf16.gmra.mrb[32].mxu1 %vm718_vm6, %v13109_v62  ;;  %11688 = vmatprep.mubr.msk.bf16.mxu0 %vm718_vm6, %v13160_v30 }
  0x6d   : > { %11652 = vmatprep.mubr.msk.bf16.mxu1 %vm718_vm6, %v13133_v14 }
  0x73   : > { %11689 = vmatmul.mubr.msk.bf16.gmra.mrb[36].mxu0 %vm718_vm6, %v13183_v45 }
  0x74   : > { %11653 = vmatmul.mubr.msk.bf16.gmra.mrb[36].mxu1 %vm718_vm6, %v13160_v30  ;;  %11692 = vmatprep.mubr.msk.bf16.mxu0 %vm718_vm6, %v13217_v7 }
  0x75   : > { %11656 = vmatprep.mubr.msk.bf16.mxu1 %vm718_vm6, %v13183_v45 }
  0x7b   : > { %11693 = vmatmul.mubr.msk.bf16.gmra.mrb[40].mxu0 %vm718_vm6, %v13235_v31 }
  0x7c   : > { %11657 = vmatmul.mubr.msk.bf16.gmra.mrb[40].mxu1 %vm718_vm6, %v13217_v7  ;;  %11696 = vmatprep.mubr.msk.bf16.mxu0 %vm718_vm6, %v13369_v13 }
  0x7d   : > { %11660 = vmatprep.mubr.msk.bf16.mxu1 %vm718_vm6, %v13235_v31 }
  0x83   : > { %11697 = vmatmul.mubr.msk.bf16.gmra.mrb[44].mxu0 %vm718_vm6, %v13377_v19 }
  0x84   : > { %11661 = vmatmul.mubr.msk.bf16.gmra.mrb[44].mxu1 %vm718_vm6, %v13369_v13  ;;  %11740 = vmatprep.mubr.msk.bf16.mxu0 %vm718_vm6, %v13187_v51 }
  0x85   : > { %11704 = vmatprep.mubr.msk.bf16.mxu1 %vm718_vm6, %v13144_v22  ;;  %v2121_v22 = vld [vmem:[#allocation2 + $0x4] sm:$0xf] }
  0x86   : > { %v2197_v33 = vshrl.u32 %v2121_v22, 16 }
  0x8b   : > { %11741 = vmatmul.mubr.msk.bf16.vlgmr.msra.gmra.mrb[48].mxu0 %vm718_vm6, %v13201_v60 }
  0x8c   : > { %11705 = vmatmul.mubr.msk.bf16.vlgmr.msra.gmra.mrb[48].mxu1 %vm718_vm6, %v13187_v51  ;;  %11809 = vmatpush3.bf16.msra.mxu0 %v13294_v36  ;;  %v2199_v51 = vrot.slane %v2197_v33, 4  ;;  %v2133_v36 = vld [vmem:[#allocation2 + $0x34] sm:$0xf]  ;;  %v2258_v33 = vrot.slane %v2256_v61, 4 }
  0x8d   : > { %11773 = vmatpush3.bf16.msra.mxu1 %v13286_v26  ;;  %11708 = vmatprep.mubr.msk.bf16.mxu1 %vm718_vm6, %v13201_v60  ;;  %v2126_v60 = vld [vmem:[#allocation2 + $0x18] sm:$0xf]  ;;  %v2132_v26 = vld [vmem:[#allocation2 + $0x30] sm:$0xf] }
  0x8e   : > { %11774 = vmatprep.subr.bf16.mxu1 %v12585_v48  ;;  %11744 = vmatprep.mubr.msk.bf16.mxu0 %vm718_vm6, %v13240_v42  ;;  %v2235_v24 = vshll.u32 %v2126_v60, 16  ;;  %v2280_v28 = vshrl.u32 %v2132_v26, 16  ;;  %v2283_v43 = vshll.u32 %v2132_v26, 16 }
  0x8f   : > { %11810 = vmatprep.subr.bf16.mxu0 %v12586_v50 }
  0x90   : > { %11811 = vmatpush3.bf16.msra.mxu0 %v12586_v50  ;;  %v2237_v41 = vrot.slane %v2235_v24, 5  ;;  %v2293_v50 = vshrl.u32 %v2133_v36, 16  ;;  %v2134_v24 = vld [vmem:[#allocation2 + $0x38] sm:$0x1] }
  0x91   : > { %11775 = vmatpush3.bf16.msra.mxu1 %v12585_v48  ;;  %11880 = vmatprep.subr.bf16.mxu0 %v13453_v16  ;;  %v2289_v48 = vshll.u32 %v2133_v36, 16 }
  0x92   : > { %11844 = vmatprep.subr.bf16.mxu1 %v13444_v8 }
  0x93   : > { %11745 = vmatmul.mubr.msk.bf16.gmra.mrb[52].mxu0 %vm718_vm6, %v13252_v54  ;;  %v13524_v53 = vrot.slane %v2289_v48, 5 }
  0x94   : > { %11709 = vmatmul.mubr.msk.bf16.gmra.mrb[52].mxu1 %vm718_vm6, %v13240_v42  ;;  %11748 = vmatprep.mubr.msk.bf16.mxu0 %vm718_vm6, %v13092_v56  ;;  %v2245_v42 = vshrl.u32 %v2127_v17, 16 }
  0x95   : > { %11712 = vmatprep.mubr.msk.bf16.mxu1 %vm718_vm6, %v13252_v54 }
  0x96   : > { %v2247_v9 = vrot.slane %v2245_v42, 4 }
  0x9b   : > { %11749 = vmatmul.mubr.msk.bf16.gmra.mrb[56].mxu0 %vm718_vm6, %v13095_v57 }
  0x9c   : > { %11713 = vmatmul.mubr.msk.bf16.gmra.mrb[56].mxu1 %vm718_vm6, %v13092_v56  ;;  %11752 = vmatprep.mubr.msk.bf16.mxu0 %vm718_vm6, %v13109_v62  ;;  %v2193_v56 = vshll.u32 %v2121_v22, 16 }
  0x9d   : > { %11716 = vmatprep.mubr.msk.bf16.mxu1 %vm718_vm6, %v13095_v57  ;;  %v2122_v57 = vld [vmem:[#allocation2 + $0x8] sm:$0x1] }
  0x9e   : > { %v13481_v47 = vrot.slane %v2193_v56, 5  ;;  %v2203_v59 = vshll.u32 %v2122_v57, 16  ;;  %v2248_v56 = vor.u32 %v2247_v9, %v13504_v6  ;;  %v2261_v57 = vrot.slane %v2259_v10, 5 }
  0xa0   : > { %v2200_v63 = vor.u32 %v2199_v51, %v13481_v47  ;;  %v2205_v29 = vrot.slane %v2203_v59, 5  ;;  %v2282_v51 = vrot.slane %v2280_v28, 4  ;;  %v2295_v59 = vrot.slane %v2293_v50, 4  ;;  %v2141_v28 = vld [vmem:[#allocation2 + $0x54] sm:$0xf] }
  0xa1   : > { %v2249_v40 = vrot.slane %v2248_v56, 4  ;;  %v2262_v42 = vor.u32 %v2261_v57, %v2258_v33  ;;  %v2142_v50 = vld [vmem:[#allocation2 + $0x58] sm:$0xf]  ;;  %v2140_v33 = vld [vmem:[#allocation2 + $0x50] sm:$0x1]  ;;  %v2355_v57 = vshll.u32 %v2141_v28, 16 }
  0xa2   : > { %v2201_v52 = vrot.slane %v2200_v63, 4 }
  0xa3   : > { %11753 = vmatmul.mubr.msk.bf16.gmra.mrb[60].mxu0 %vm718_vm6, %v13133_v14  ;;  %v2263_v10 = vrot.slane %v2262_v42, 4 }
  0xa4   : > { %11717 = vmatmul.mubr.msk.bf16.gmra.mrb[60].mxu1 %vm718_vm6, %v13109_v62  ;;  %11756 = vmatprep.mubr.msk.bf16.mxu0 %vm718_vm6, %v13160_v30  ;;  %v2123_v62 = vld [vmem:[#allocation2 + $0xc] sm:$0xf]  ;;  %v2206_v25 = vsel %vm13496_vm11, %v2201_v52, %v2205_v29  ;;  %v2138_v29 = vld [vmem:[#allocation2 + $0x48] sm:$0xf] }
  0xa5   : > { %11720 = vmatprep.mubr.msk.bf16.mxu1 %vm718_vm6, %v13133_v14  ;;  %v2190_v14 = vor.u32 %v2189_v44, %v2186_v35  ;;  %v2208_v4 = vshrl.u32 %v2123_v62, 16  ;;  %v2211_v11 = vshll.u32 %v2123_v62, 16  ;;  %v13522_v35 = vrot.slane %v2265_v15, 5  ;;  %v2131_v44 = vld [vmem:[#allocation2 + $0x2c] sm:$0x1] }
  0xa6   : > { %v2285_v62 = vrot.slane %v2283_v43, 5  ;;  %v2139_v52 = vld [vmem:[#allocation2 + $0x4c] sm:$0xf]  ;;  %v2328_v36 = vshrl.u32 %v2138_v29, 16  ;;  %v12588_v43 = vld [vmem:[#allocation2 + $0xe4] sm:$0xff]  }
  0xa7   : > { %v2191_v49 = vrot.slane %v2190_v14, 4  ;;  %v2210_v54 = vrot.slane %v2208_v4, 4  ;;  %v2213_v58 = vrot.slane %v2211_v11, 5  ;;  %v2307_v14 = vshll.u32 %v2135_v27, 16 }
  0xa8   : > { %v2253_v11 = vrot.slane %v2251_v23, 5  ;;  %v2337_v61 = vshll.u32 %v2139_v52, 16  ;;  %v2341_v1 = vshrl.u32 %v2139_v52, 16 }
  0xa9   : > { %v2214_v55 = vor.u32 %v2213_v58, %v2210_v54  ;;  %v2309_v58 = vrot.slane %v2307_v14, 5  ;;  %v2144_v14 = vld [vmem:[#allocation2 + $0x60] sm:$0xf] }
  0xaa   : > { %v2254_v9 = vsel %vm13496_vm11, %v2249_v40, %v2253_v11  ;;  %v13550_v23 = vrot.slane %v2337_v61, 5  ;;  %v2379_v40 = vshll.u32 %v2144_v14, 16 }
  0xab   : > { %11757 = vmatmul.mubr.msk.bf16.gmra.mrb[64].mxu0 %vm718_vm6, %v13183_v45  ;;  %v2215_v0 = vrot.slane %v2214_v55, 4 }
  0xac   : > { %11721 = vmatmul.mubr.msk.bf16.gmra.mrb[64].mxu1 %vm718_vm6, %v13160_v30  ;;  %11760 = vmatprep.mubr.msk.bf16.mxu0 %vm718_vm6, %v13217_v7  ;;  %v2232_v30 = vshrl.u32 %v2126_v60, 16  ;;  %v2304_v60 = vshrl.u32 %v2135_v27, 16  ;;  %v2343_v27 = vrot.slane %v2341_v1, 4 }
  0xad   : > { %11724 = vmatprep.mubr.msk.bf16.mxu1 %vm718_vm6, %v13183_v45  ;;  %v13492_v45 = vrot.slane %v2217_v18, 5 }
  0xae   : > { %v2234_v39 = vrot.slane %v2232_v30, 4  ;;  %v2275_v30 = vshll.u32 %v2131_v44, 16  ;;  %v2306_v54 = vrot.slane %v2304_v60, 4  ;;  %v2361_v44 = vshll.u32 %v2142_v50, 16 }
  0xaf   : > { %v2224_v3 = vor.u32 %v2223_v32, %v13492_v45  ;;  %v2299_v32 = vshll.u32 %v2134_v24, 16 }
  0xb0   : > { %v2238_v22 = vor.u32 %v2237_v41, %v2234_v39  ;;  %v2331_v39 = vshll.u32 %v2138_v29, 16  ;;  %v2220_v41 = vsel %vm13496_vm11, %v2215_v0, %v13492_v45  ;;  %v2277_v15 = vrot.slane %v2275_v30, 5 }
  0xb1   : > { %v2225_v4 = vrot.slane %v2224_v3, 4  ;;  %v2330_v3 = vrot.slane %v2328_v36, 4  ;;  %v13578_v24 = vrot.slane %v2361_v44, 5 }
  0xb2   : > { %v2239_v20 = vrot.slane %v2238_v22, 4  ;;  %v2333_v22 = vrot.slane %v2331_v39, 5 }
  0xb3   : > { %11761 = vmatmul.mubr.msk.bf16.gmra.mrb[68].mxu0 %vm718_vm6, %v13235_v31 }
  0xb4   : > { %11725 = vmatmul.mubr.msk.bf16.gmra.mrb[68].mxu1 %vm718_vm6, %v13217_v7  ;;  %v2196_v7 = vsel %vm13496_vm11, %v2191_v49, %v13481_v47  ;;  %11764 = vmatprep.mubr.msk.bf16.mxu0 %vm718_vm6, %v13369_v13  ;;  %v2271_v47 = vrot.slane %v2269_v21, 4  ;;  %v2286_v49 = vor.u32 %v2285_v62, %v2282_v51  ;;  %v2244_v5 = vsel %vm13496_vm11, %v2239_v20, %v13504_v6  ;;  %v2137_v21 = vld [vmem:[#allocation2 + $0x44] sm:$0x1] }
  0xb5   : > { %11728 = vmatprep.mubr.msk.bf16.mxu1 %vm718_vm6, %v13235_v31  ;;  %v2136_v31 = vld [vmem:[#allocation2 + $0x40] sm:$0xf]  ;;  %v10482_v18 = vcombine.low %v2196_v7, %v2206_v25  ;;  %v2310_v25 = vor.u32 %v2309_v58, %v2306_v54  ;;  %v2323_v6 = vshll.u32 %v2137_v21, 16  ;;  %v13554_v51 = vcombine.low %v2244_v5, %v2254_v9  ;;  %v13591_v54 = vld [vmem:[#allocation2 + $0x5c] sm:$0x1] }
  0xb6   : > { %v2313_v63 = vshll.u32 %v2136_v31, 16  ;;  %v2317_v17 = vshrl.u32 %v2136_v31, 16  ;;  %v2272_v46 = vor.u32 %v2271_v47, %v13522_v35  ;;  %v2287_v45 = vrot.slane %v2286_v49, 4  ;;  %v12591_v49 = vld [vmem:[%s17219_s1 + $0xb8] sm:$0xff]   ;;  %v13593_v58 = vld [vmem:[#allocation2 + $0x6c] sm:$0xf] }
  0xb7   : > { %v2352_v31 = vshrl.u32 %v2141_v28, 16  ;;  %v2365_v47 = vshrl.u32 %v2142_v50, 16  ;;  %v2268_v62 = vsel %vm13496_vm11, %v2263_v10, %v13522_v35  ;;  %v13567_v0 = vrot.slane %v2310_v25, 4  ;;  %v13624_v9 = vld [vmem:[#allocation2 + $0x78] sm:$0xf] }
  0xb8   : > { %v13534_v12 = vrot.slane %v2313_v63, 5  ;;  %v2319_v26 = vrot.slane %v2317_v17, 4  ;;  %v2273_v48 = vrot.slane %v2272_v46, 4  ;;  %v2292_v60 = vsel %vm13496_vm11, %v2287_v45, %v13524_v53  ;;  %v2145_v17 = vld [vmem:[#allocation2 + $0x64] sm:$0xf] }
  0xb9   : > { %v2334_v11 = vor.u32 %v2333_v22, %v2330_v3  ;;  %v13571_v35 = vrot.slane %v2323_v6, 5  ;;  %v2347_v20 = vshll.u32 %v2140_v33, 16  ;;  %v13574_v30 = vrot.slane %v2352_v31, 4  ;;  %v13626_v10 = vld [vmem:[#allocation2 + $0x7c] sm:$0xf] }
  0xba   : > { %v2320_v55 = vor.u32 %v2319_v26, %v13534_v12  ;;  %v13580_v29 = vrot.slane %v2365_v47, 4  ;;  %v2385_v42 = vshll.u32 %v2145_v17, 16  ;;  %v2389_v46 = vshrl.u32 %v2145_v17, 16  ;;  %v2146_v6 = vld [vmem:[#allocation2 + $0x68] sm:$0x1] }
  0xbb   : > { %11765 = vmatmul.mubr.msk.bf16.gmra.mrb[72].mxu0 %vm718_vm6, %v13377_v19  ;;  %v13602_v36 = vrot.slane %v2334_v11, 4  ;;  %v2403_v45 = vshll.u32 %v13593_v58, 16  ;;  %v2149_v11 = vld [vmem:[#allocation2 + $0x74] sm:$0x1] }
  0xbc   : > { %11729 = vmatmul.mubr.msk.bf16.gmra.mrb[72].mxu1 %vm718_vm6, %v13369_v13  ;;  %v2296_v13 = vor.u32 %v2295_v59, %v13524_v53  ;;  %11768 = vmatprep.mubr.msk.bf16.mxu0 %vm718_vm6, %v12587_v38  ;;  %v2278_v59 = vsel %vm13496_vm11, %v2273_v48, %v2277_v15  ;;  %v13576_v53 = vrot.slane %v2355_v57, 5  ;;  %v2368_v1 = vor.u32 %v13580_v29, %v13578_v24  ;;  %v2152_v29 = vld [vmem:[#allocation2 + $0x80] sm:$0x1] }
  0xbd   : > { %11732 = vmatprep.mubr.msk.bf16.mxu1 %vm718_vm6, %v13377_v19  ;;  %v2230_v19 = vsel %vm13496_vm11, %v2225_v4, %v13516_v34  ;;  %v2301_v34 = vrot.slane %v2299_v32, 5  ;;  %v13569_v4 = vrot.slane %v2320_v55, 4  ;;  %v13585_v52 = vcombine.low %v2268_v62, %v2278_v59  ;;  %v13659_v55 = vld [vmem:[%s17219_s1 + $0x20] sm:$0xff]  }
  0xbe   : > { %v2297_v7 = vrot.slane %v2296_v13, 4  ;;  %v10483_v56 = vcombine.low %v2220_v41, %v2230_v19  ;;  %v2316_v13 = vsel %vm13496_vm11, %v13567_v0, %v13534_v12  ;;  %v13606_v41 = vld [vmem:[#allocation2 + $0x70] sm:$0xf]  ;;  %v13611_v12 = vld [vmem:[%s17219_s1 + $0x108] sm:$0xff]   ;;  %v13616_v19 = vrot.slane %v2347_v20, 5 }
  0xbf   : > { %v2326_v26 = vsel %vm13496_vm11, %v13569_v4, %v13571_v35  ;;  %v2358_v61 = vor.u32 %v13576_v53, %v13574_v30  ;;  %v13631_v15 = vrot.slane %v2379_v40, 5  ;;  %v13633_v21 = vrot.slane %v2385_v42, 5 }
  0xc0   : > { %v2302_v63 = vsel %vm13496_vm11, %v2297_v7, %v2301_v34  ;;  %v13635_v28 = vrot.slane %v2389_v46, 4  ;;  %v2400_v48 = vshrl.u32 %v13593_v58, 16  ;;  %v2409_v7 = vshll.u32 %v13606_v41, 16 }
  0xc1   : > { %v13596_v32 = vcombine.low %v2292_v60, %v2302_v63  ;;  %v2340_v25 = vsel %vm13496_vm11, %v13602_v36, %v13550_v23  ;;  %v2413_v50 = vshrl.u32 %v13606_v41, 16  ;;  %v2424_v34 = vshrl.u32 %v13624_v9, 16  ;;  %v2154_v60 = vld [vmem:[#allocation2 + $0x88] sm:$0xf]  ;;  %v2157_v41 = vld [vmem:[#allocation2 + $0x94] sm:$0xf] }
  0xc2   : > { %v13701_v3 = vcombine.low %v2316_v13, %v2326_v26  ;;  %v2359_v31 = vrot.slane %v2358_v61, 4  ;;  %v2392_v44 = vor.u32 %v13635_v28, %v13633_v21  ;;  %v2402_v47 = vrot.slane %v2400_v48, 4  ;;  %v2155_v28 = vld [vmem:[#allocation2 + $0x8c] sm:$0x1] }
  0xc3   : > { %11769 = vmatmul.mubr.msk.bf16.gmra.mrb[76].mxu0 %vm718_vm6, %v12588_v43  ;;  %v13640_v43 = vld [vmem:[%s17219_s1 + $0x150] sm:$0xff]   ;;  %v2405_v62 = vrot.slane %v2403_v45, 5  ;;  %v13714_v59 = vrot.slane %v2409_v7, 5  ;;  %v2415_v63 = vrot.slane %v2413_v50, 4  ;;  %v2426_v0 = vrot.slane %v2424_v34, 4 }
  0xc4   : > { %11733 = vmatmul.mubr.msk.bf16.gmra.mrb[76].mxu1 %vm718_vm6, %v12587_v38  ;;  %11812 = vmatprep.mubr.msk.bf16.mxu0 %vm718_vm6, %v10483_v56  ;;  %v2376_v38 = vshrl.u32 %v2144_v14, 16  ;;  %v2395_v14 = vshll.u32 %v2146_v6, 16  ;;  %v2451_v20 = vshll.u32 %v2153_v2, 16  ;;  %v2364_v53 = vsel %vm13496_vm11, %v2359_v31, %v13578_v24 }
  0xc5   : > { %11776 = vmatprep.mubr.msk.bf16.mxu1 %vm718_vm6, %v10482_v18  ;;  %v2344_v18 = vor.u32 %v2343_v27, %v13550_v23  ;;  %v2433_v23 = vshll.u32 %v13626_v10, 16  ;;  %v2437_v27 = vshrl.u32 %v13626_v10, 16  ;;  %v2461_v40 = vshrl.u32 %v2154_v60, 16 }
  0xc6   : > { %v13622_v5 = vrot.slane %v2376_v38, 4  ;;  %v2457_v38 = vshll.u32 %v2154_v60, 16  ;;  %v2406_v13 = vor.u32 %v2405_v62, %v2402_v47  ;;  %v2397_v58 = vrot.slane %v2395_v14, 5  ;;  %v2158_v14 = vld [vmem:[#allocation2 + $0x98] sm:$0x1] }
  0xc7   : > { %v13604_v39 = vrot.slane %v2344_v18, 4  ;;  %v13722_v17 = vrot.slane %v2433_v23, 5  ;;  %v2439_v35 = vrot.slane %v2437_v27, 4  ;;  %v2448_v18 = vshrl.u32 %v2153_v2, 16  ;;  %v2160_v27 = vld [vmem:[#allocation2 + $0xa0] sm:$0xf] }
  0xc8   : > { %v2382_v57 = vor.u32 %v13631_v15, %v13622_v5  ;;  %v2416_v26 = vor.u32 %v2415_v63, %v13714_v59  ;;  %v2419_v36 = vshll.u32 %v2149_v11, 16  ;;  %v2453_v61 = vrot.slane %v2451_v20, 5  ;;  %v2162_v20 = vld [vmem:[#allocation2 + $0xa8] sm:$0xf] }
  0xc9   : > { %v2350_v22 = vsel %vm13496_vm11, %v13604_v39, %v13616_v19  ;;  %v2440_v24 = vor.u32 %v2439_v35, %v13722_v17  ;;  %v2450_v19 = vrot.slane %v2448_v18, 4  ;;  %v2463_v5 = vrot.slane %v2461_v40, 4  ;;  %v2163_v40 = vld [vmem:[#allocation2 + $0xac] sm:$0xf] }
  0xca   : > { %v13726_v30 = vcombine.low %v2340_v25, %v2350_v22  ;;  %v2383_v46 = vrot.slane %v2382_v57, 4  ;;  %v2481_v48 = vshll.u32 %v2157_v41, 16  ;;  %v2485_v45 = vshrl.u32 %v2157_v41, 16 }
  0xcb   : > { %11813 = vmatmul.mubr.msk.bf16.vlgmr.msra.gmra.mrb[80].mxu0 %vm718_vm6, %v13554_v51  ;;  %v2407_v25 = vrot.slane %v2406_v13, 4  ;;  %v2417_v50 = vrot.slane %v2416_v26, 4  ;;  %v2421_v34 = vrot.slane %v2419_v36, 5  ;;  %v2441_v6 = vrot.slane %v2440_v24, 4 }
  0xcc   : > { %11777 = vmatmul.mubr.msk.bf16.vlgmr.msra.gmra.mrb[80].mxu1 %vm718_vm6, %v10483_v56  ;;  %11881 = vmatpush3.bf16.msra.mxu0 %v13453_v16  ;;  %v2427_v16 = vshll.u32 %v13624_v9, 16  ;;  %v2369_v56 = vrot.slane %v2368_v1, 4  ;;  %v13737_v1 = vrot.slane %v2457_v38, 5  ;;  %v2388_v15 = vsel %vm13496_vm11, %v2383_v46, %v13633_v21 }
  0xcd   : > { %11845 = vmatpush3.bf16.msra.mxu1 %v13444_v8  ;;  %11780 = vmatprep.mubr.msk.bf16.mxu1 %vm718_vm6, %v13554_v51  ;;  %v2371_v8 = vshll.u32 %v13591_v54, 16  ;;  %v2156_v54 = vld [vmem:[#allocation2 + $0x90] sm:$0xf]  ;;  %v2454_v21 = vor.u32 %v2453_v61, %v2450_v19  ;;  %v13755_v2 = vrot.slane %v2481_v48, 5  ;;  %v2412_v60 = vsel %vm13496_vm11, %v2407_v25, %v13714_v59  ;;  %v2165_v19 = vld [vmem:[#allocation2 + $0xb4] sm:$0xf] }
  0xce   : > { %11846 = vmatprep.subr.bf16.mxu1 %v12591_v49  ;;  %11816 = vmatprep.mubr.msk.bf16.mxu0 %vm718_vm6, %v13585_v52  ;;  %v2429_v4 = vrot.slane %v2427_v16, 5  ;;  %v2472_v9 = vshrl.u32 %v2156_v54, 16  ;;  %v2475_v10 = vshll.u32 %v2156_v54, 16  ;;  %v2159_v16 = vld [vmem:[#allocation2 + $0x9c] sm:$0xf]  ;;  %v2464_v31 = vor.u32 %v2463_v5, %v13737_v1 }
  0xcf   : > { %11882 = vmatprep.subr.bf16.mxu0 %v13611_v12  ;;  %v2373_v33 = vrot.slane %v2371_v8, 5  ;;  %v2496_v47 = vshrl.u32 %v2159_v16, 16  ;;  %v2499_v62 = vshll.u32 %v2159_v16, 16  ;;  %v2505_v63 = vshll.u32 %v2160_v27, 16  ;;  %v2166_v61 = vld [vmem:[#allocation2 + $0xb8] sm:$0xf] }
  0xd0   : > { %11883 = vmatpush3.bf16.msra.mxu0 %v13611_v12  ;;  %v2430_v39 = vor.u32 %v2429_v4, %v2426_v0  ;;  %v2443_v12 = vshll.u32 %v2152_v29, 16  ;;  %v2477_v57 = vrot.slane %v2475_v10, 5  ;;  %v2509_v0 = vshrl.u32 %v2160_v27, 16  ;;  %v2164_v27 = vld [vmem:[#allocation2 + $0xb0] sm:$0x1] }
  0xd1   : > { %11847 = vmatpush3.bf16.msra.mxu1 %v12591_v49  ;;  %11952 = vmatprep.subr.bf16.mxu0 %v13659_v55  ;;  %v2374_v42 = vsel %vm13496_vm11, %v2369_v56, %v2373_v33  ;;  %v2393_v49 = vrot.slane %v2392_v44, 4  ;;  %v2467_v56 = vshll.u32 %v2155_v28, 16  ;;  %v2474_v33 = vrot.slane %v2472_v9, 4  ;;  %v2161_v28 = vld [vmem:[#allocation2 + $0xa4] sm:$0x1] }
  0xd2   : > { %11916 = vmatprep.subr.bf16.mxu1 %v13640_v43  ;;  %v13739_v8 = vcombine.low %v2364_v53, %v2374_v42  ;;  %v2431_v22 = vrot.slane %v2430_v39, 4  ;;  %v2445_v23 = vrot.slane %v2443_v12, 5  ;;  %v2487_v44 = vrot.slane %v2485_v45, 4 }
  0xd3   : > { %11817 = vmatmul.mubr.msk.bf16.gmra.mrb[84].mxu0 %vm718_vm6, %v13596_v32  ;;  %v2398_v7 = vsel %vm13496_vm11, %v2393_v49, %v2397_v58  ;;  %v2422_v11 = vsel %vm13496_vm11, %v2417_v50, %v2421_v34  ;;  %v2455_v18 = vrot.slane %v2454_v21, 4  ;;  %v2465_v29 = vrot.slane %v2464_v31, 4 }
  0xd4   : > { %11781 = vmatmul.mubr.msk.bf16.gmra.mrb[84].mxu1 %vm718_vm6, %v13585_v52  ;;  %11820 = vmatprep.mubr.msk.bf16.mxu0 %vm718_vm6, %v13701_v3  ;;  %v13760_v4 = vcombine.low %v2388_v15, %v2398_v7  ;;  %v2436_v35 = vsel %vm13496_vm11, %v2431_v22, %v13722_v17  ;;  %v2446_v53 = vsel %vm13496_vm11, %v2441_v6, %v2445_v23  ;;  %v2469_v38 = vrot.slane %v2467_v56, 5 }
  0xd5   : > { %11784 = vmatprep.mubr.msk.bf16.mxu1 %vm718_vm6, %v13596_v32  ;;  %v2478_v59 = vor.u32 %v2477_v57, %v2474_v33  ;;  %v2488_v42 = vor.u32 %v2487_v44, %v13755_v2  ;;  %v2491_v46 = vshll.u32 %v2158_v14, 16  ;;  %v2498_v49 = vrot.slane %v2496_v47, 4  ;;  %v2168_v44 = vld [vmem:[#allocation2 + $0xc0] sm:$0xf]  ;;  %v2169_v47 = vld [vmem:[#allocation2 + $0xc4] sm:$0xf] }
  0xd6   : > { %v2501_v13 = vrot.slane %v2499_v62, 5  ;;  %v13772_v54 = vrot.slane %v2505_v63, 5  ;;  %v2511_v17 = vrot.slane %v2509_v0, 4  ;;  %v2520_v58 = vshrl.u32 %v2162_v20, 16 }
  0xd7   : > { %v2523_v26 = vshll.u32 %v2162_v20, 16  ;;  %v13776_v36 = vcombine.low %v2412_v60, %v2422_v11  ;;  %v2529_v39 = vshll.u32 %v2163_v40, 16  ;;  %v2533_v41 = vshrl.u32 %v2163_v40, 16 }
  0xd8   : > { %v13780_v24 = vcombine.low %v2436_v35, %v2446_v53  ;;  %v2460_v12 = vsel %vm13496_vm11, %v2455_v18, %v13737_v1  ;;  %v2470_v5 = vsel %vm13496_vm11, %v2465_v29, %v2469_v38  ;;  %v2479_v9 = vrot.slane %v2478_v59, 4  ;;  %v2167_v18 = vld [vmem:[#allocation2 + $0xbc] sm:$0x1] }
  0xd9   : > { %v2489_v10 = vrot.slane %v2488_v42, 4  ;;  %v2493_v15 = vrot.slane %v2491_v46, 5  ;;  %v2502_v48 = vor.u32 %v2501_v13, %v2498_v49  ;;  %v2512_v45 = vor.u32 %v2511_v17, %v13772_v54 }
  0xda   : > { %v2522_v7 = vrot.slane %v2520_v58, 4  ;;  %v2525_v25 = vrot.slane %v2523_v26, 5  ;;  %v13790_v50 = vrot.slane %v2529_v39, 5  ;;  %v2535_v1 = vrot.slane %v2533_v41, 4 }
  0xdb   : > { %11821 = vmatmul.mubr.msk.bf16.gmra.mrb[88].mxu0 %vm718_vm6, %v13726_v30  ;;  %v2544_v34 = vshrl.u32 %v2165_v19, 16  ;;  %v2547_v16 = vshll.u32 %v2165_v19, 16  ;;  %v2515_v22 = vshll.u32 %v2161_v28, 16  ;;  %v2553_v6 = vshll.u32 %v2166_v61, 16 }
  0xdc   : > { %11785 = vmatmul.mubr.msk.bf16.gmra.mrb[88].mxu1 %vm718_vm6, %v13701_v3  ;;  %11824 = vmatprep.mubr.msk.bf16.mxu0 %vm718_vm6, %v13739_v8  ;;  %v2557_v23 = vshrl.u32 %v2166_v61, 16  ;;  %v13792_v21 = vcombine.low %v2460_v12, %v2470_v5  ;;  %v2484_v31 = vsel %vm13496_vm11, %v2479_v9, %v13755_v2  ;;  %v2494_v56 = vsel %vm13496_vm11, %v2489_v10, %v2493_v15  ;;  %v2170_v61 = vld [vmem:[#allocation2 + $0xc8] sm:$0x1]  ;;  %v592_v9 = vld [vmem:[#allocation3 + $0x10] sm:$0xff] }
  0xdd   : > { %11788 = vmatprep.mubr.msk.bf16.mxu1 %vm718_vm6, %v13726_v30  ;;  %v2503_v33 = vrot.slane %v2502_v48, 4  ;;  %v2513_v57 = vrot.slane %v2512_v45, 4  ;;  %v2526_v62 = vor.u32 %v2525_v25, %v2522_v7  ;;  %v2536_v60 = vor.u32 %v2535_v1, %v13790_v50  ;;  %v590_v45 = vld [vmem:[#allocation3] sm:$0xff]  ;;  %v593_v25 = vld [vmem:[#allocation3 + $0x18] sm:$0xff] }
  0xde   : > { %v2546_v14 = vrot.slane %v2544_v34, 4  ;;  %v2549_v63 = vrot.slane %v2547_v16, 5  ;;  %v2517_v0 = vrot.slane %v2515_v22, 5  ;;  %v2539_v2 = vshll.u32 %v2164_v27, 16 }
  0xdf   : > { %v2555_v11 = vrot.slane %v2553_v6, 5  ;;  %v2559_v35 = vrot.slane %v2557_v23, 4  ;;  %v2938_v20 = vshrl.u32 %v2168_v44, 16  ;;  %v2941_v53 = vshll.u32 %v2168_v44, 16  ;;  %v591_v6 = vld [vmem:[#allocation3 + $0x8] sm:$0xff] }
  0xe0   : > { %v2947_v29 = vshll.u32 %v2169_v47, 16  ;;  %v2951_v38 = vshrl.u32 %v2169_v47, 16  ;;  %v13808_v59 = vcombine.low %v2484_v31, %v2494_v56  ;;  %v2508_v40 = vsel %vm13496_vm11, %v2503_v33, %v13772_v54 }
  0xe1   : > { %v2527_v42 = vrot.slane %v2526_v62, 4  ;;  %v2537_v46 = vrot.slane %v2536_v60, 4  ;;  %v2550_v49 = vor.u32 %v2549_v63, %v2546_v14  ;;  %v2518_v13 = vsel %vm13496_vm11, %v2513_v57, %v2517_v0  ;;  %v608_v63 = vld [vmem:[#allocation3 + $0x90] sm:$0xff] }
  0xe2   : > { %v2541_v17 = vrot.slane %v2539_v2, 5  ;;  %v2560_v58 = vor.u32 %v2559_v35, %v2555_v11  ;;  %v2563_v26 = vshll.u32 %v2167_v18, 16  ;;  %v2940_v39 = vrot.slane %v2938_v20, 4  ;;  %v606_v2 = vld [vmem:[#allocation3 + $0x80] sm:$0xff]  ;;  %v609_v35 = vld [vmem:[#allocation3 + $0x98] sm:$0xff] }
  0xe3   : > { %11825 = vmatmul.mubr.msk.bf16.gmra.mrb[92].mxu0 %vm718_vm6, %v13760_v4  ;;  %v2943_v41 = vrot.slane %v2941_v53, 5  ;;  %v2949_v12 = vrot.slane %v2947_v29, 5  ;;  %v2953_v19 = vrot.slane %v2951_v38, 4  ;;  %v13819_v54 = vcombine.low %v2508_v40, %v2518_v13  ;;  %v607_v38 = vld [vmem:[#allocation3 + $0x88] sm:$0xff] }
  0xe4   : > { %11789 = vmatmul.mubr.msk.bf16.gmra.mrb[92].mxu1 %vm718_vm6, %v13739_v8  ;;  %11828 = vmatprep.mubr.msk.bf16.mxu0 %vm718_vm6, %v13776_v36  ;;  %v2532_v5 = vsel %vm13496_vm11, %v2527_v42, %v13790_v50  ;;  %v2542_v10 = vsel %vm13496_vm11, %v2537_v46, %v2541_v17  ;;  %v2551_v15 = vrot.slane %v2550_v49, 4  ;;  %v2561_v28 = vrot.slane %v2560_v58, 4  ;;  %v596_v58 = vld [vmem:[#allocation3 + $0x30] sm:$0xff] }
  0xe5   : > { %11792 = vmatprep.mubr.msk.bf16.mxu1 %vm718_vm6, %v13760_v4  ;;  %v2565_v48 = vrot.slane %v2563_v26, 5  ;;  %v2944_v1 = vor.u32 %v2943_v41, %v2940_v39  ;;  %v2954_v34 = vor.u32 %v2953_v19, %v2949_v12  ;;  %v2957_v16 = vshll.u32 %v2170_v61, 16  ;;  %v594_v26 = vld [vmem:[#allocation3 + $0x20] sm:$0xff]  ;;  %v612_v39 = vld [vmem:[#allocation3 + $0xb0] sm:$0xff] }
  0xe6   : > { %v13830_v23 = vcombine.low %v2532_v5, %v2542_v10  ;;  %v2556_v56 = vsel %vm13496_vm11, %v2551_v15, %v2555_v11  ;;  %v610_v19 = vld [vmem:[#allocation3 + $0xa0] sm:$0xff]  ;;  %v613_v15 = vld [vmem:[#allocation3 + $0xb8] sm:$0xff] }
  0xe7   : > { %v2566_v33 = vsel %vm13496_vm11, %v2561_v28, %v2565_v48  ;;  %v2945_v62 = vrot.slane %v2944_v1, 4  ;;  %v2955_v60 = vrot.slane %v2954_v34, 4  ;;  %v2959_v14 = vrot.slane %v2957_v16, 5 }
  0xe8   : > { %v13843_v0 = vcombine.low %v2556_v56, %v2566_v33  ;;  %v600_v56 = vld [vmem:[#allocation3 + $0x50] sm:$0xff]  ;;  %v12596_v33 = vld [vmem:[%s17219_s1 + $0x28] sm:$0xff]  }
  0xe9   : > { %v2950_v18 = vsel %vm13496_vm11, %v2945_v62, %v2949_v12  ;;  %v2960_v20 = vsel %vm13496_vm11, %v2955_v60, %v2959_v14  ;;  %v597_v12 = vld [vmem:[#allocation3 + $0x38] sm:$0xff]  ;;  %v13892_v60 = vld [vmem:[%s17219_s1 + $0x70] sm:$0xff]  }
  0xea   : > { %v13855_v13 = vcombine.low %v2950_v18, %v2960_v20  ;;  %v615_v20 = vld [vmem:[#allocation3 + $0xc8] sm:$0xff] }
  0xeb   : > { %11829 = vmatmul.mubr.msk.bf16.gmra.mrb[96].mxu0 %vm718_vm6, %v13780_v24 }
  0xec   : > { %11793 = vmatmul.mubr.msk.bf16.gmra.mrb[96].mxu1 %vm718_vm6, %v13776_v36  ;;  %11832 = vmatprep.mubr.msk.bf16.mxu0 %vm718_vm6, %v13792_v21 }
  0xed   : > { %11796 = vmatprep.mubr.msk.bf16.mxu1 %vm718_vm6, %v13780_v24 }
  0xf3   : > { %11833 = vmatmul.mubr.msk.bf16.gmra.mrb[100].mxu0 %vm718_vm6, %v13808_v59 }
  0xf4   : > { %11797 = vmatmul.mubr.msk.bf16.gmra.mrb[100].mxu1 %vm718_vm6, %v13792_v21  ;;  %11836 = vmatprep.mubr.msk.bf16.mxu0 %vm718_vm6, %v13819_v54 }
  0xf5   : > { %11800 = vmatprep.mubr.msk.bf16.mxu1 %vm718_vm6, %v13808_v59 }
  0xf7   : > { %v11598_v7 = vpop.f32.mrb[0].mxu0 }
  0xf8   : > { %v930_v50 = vadd.f32 %v11598_v7, %v592_v9  ;;  %v801_v22 = vpop.f32.mrb[1].mxu0  ;;  %v595_v9 = vld [vmem:[#allocation3 + $0x28] sm:$0xff] }
  0xf9   : > { %v928_v27 = vadd.f32 %v801_v22, %v590_v45  ;;  %v11599_v31 = vpop.f32.mrb[2].mxu0 }
  0xfa   : > { %962 = vst.msk [vmem:[#allocation3 + $0x10] sm:$0xff] %vm517_vm8, %v930_v50  ;;  %v931_v57 = vadd.f32 %v11599_v31, %v593_v25  ;;  %v804_v44 = vpop.f32.mrb[3].mxu0  ;;  %v611_v25 = vld [vmem:[#allocation3 + $0xa8] sm:$0xff] }
  0xfb   : > { %960 = vst.msk [vmem:[#allocation3] sm:$0xff] %vm517_vm8, %v928_v27  ;;  %v929_v47 = vadd.f32 %v804_v44, %v591_v6  ;;  %11837 = vmatmul.mubr.msk.bf16.gmra.mrb[104].mxu0 %vm718_vm6, %v13830_v23  ;;  %v12595_v27 = vld [vmem:[%s17219_s1 + $0x158] sm:$0xff]   ;;  %v598_v44 = vld [vmem:[#allocation3 + $0x40] sm:$0xff] }
  0xfc   : > { %11801 = vmatmul.mubr.msk.bf16.gmra.mrb[104].mxu1 %vm718_vm6, %v13819_v54  ;;  %963 = vst.msk [vmem:[#allocation3 + $0x18] sm:$0xff] %vm517_vm8, %v931_v57  ;;  %11840 = vmatprep.mubr.msk.bf16.mxu0 %vm718_vm6, %v13843_v0  ;;  %v616_v57 = vld [vmem:[#allocation3 + $0xd0] sm:$0xff] }
  0xfd   : > { %11804 = vmatprep.mubr.msk.bf16.mxu1 %vm718_vm6, %v13830_v23  ;;  %961 = vst.msk [vmem:[#allocation3 + $0x8] sm:$0xff] %vm517_vm8, %v929_v47  ;;  %v614_v47 = vld [vmem:[#allocation3 + $0xc0] sm:$0xff] }
  0xff   : > { %v11614_v11 = vpop.f32.mrb[0].mxu1 }
 0x100   : > { %v946_v53 = vadd.f32 %v11614_v11, %v608_v63  ;;  %v865_v29 = vpop.f32.mrb[1].mxu1  ;;  %v617_v63 = vld [vmem:[#allocation3 + $0xd8] sm:$0xff]  ;;  %v599_v11 = vld [vmem:[#allocation3 + $0x48] sm:$0xff] }
 0x101   : > { %v944_v40 = vadd.f32 %v865_v29, %v606_v2  ;;  %v11615_v42 = vpop.f32.mrb[2].mxu1 }
 0x102   : > { %978 = vst.msk [vmem:[#allocation3 + $0x90] sm:$0xff] %vm517_vm8, %v946_v53  ;;  %v947_v46 = vadd.f32 %v11615_v42, %v609_v35  ;;  %v868_v49 = vpop.f32.mrb[3].mxu1 }
 0x103   : > { %976 = vst.msk [vmem:[#allocation3 + $0x80] sm:$0xff] %vm517_vm8, %v944_v40  ;;  %v945_v17 = vadd.f32 %v868_v49, %v607_v38  ;;  %11841 = vmatmul.mubr.msk.bf16.gmra.mrb[108].mxu0 %vm718_vm6, %v13855_v13  ;;  %v13900_v38 = vld [vmem:[%s17219_s1 + $0xc0] sm:$0xff]  }
 0x104   : > { %979 = vst.msk [vmem:[#allocation3 + $0x98] sm:$0xff] %vm517_vm8, %v947_v46  ;;  %11805 = vmatmul.mubr.msk.bf16.gmra.mrb[108].mxu1 %vm718_vm6, %v13843_v0  ;;  %11884 = vmatprep.mubr.msk.bf16.mxu0 %vm718_vm6, %v13585_v52 }
 0x105   : > { %977 = vst.msk [vmem:[#allocation3 + $0x88] sm:$0xff] %vm517_vm8, %v945_v17  ;;  %11848 = vmatprep.mubr.msk.bf16.mxu1 %vm718_vm6, %v13554_v51 }
 0x106   : > { %v11602_v41 = vpop.f32.mrb[4].mxu0 }
 0x107   : > { %v934_v61 = vadd.f32 %v11602_v41, %v596_v58  ;;  %v817_v5 = vpop.f32.mrb[5].mxu0  ;;  %v11618_v10 = vpop.f32.mrb[4].mxu1  ;;  %v618_v41 = vld [vmem:[#allocation3 + $0xe0] sm:$0xff] }
 0x108   : > { %v932_v28 = vadd.f32 %v817_v5, %v594_v26  ;;  %v11603_v48 = vpop.f32.mrb[6].mxu0  ;;  %v950_v45 = vadd.f32 %v11618_v10, %v612_v39  ;;  %v881_v7 = vpop.f32.mrb[5].mxu1  ;;  %v620_v39 = vld [vmem:[#allocation3 + $0xf0] sm:$0xff]  ;;  %v602_v5 = vld [vmem:[#allocation3 + $0x60] sm:$0xff] }
 0x109   : > { %966 = vst.msk [vmem:[#allocation3 + $0x30] sm:$0xff] %vm517_vm8, %v934_v61  ;;  %v935_v51 = vadd.f32 %v11603_v48, %v597_v12  ;;  %v820_v1 = vpop.f32.mrb[7].mxu0  ;;  %v948_v34 = vadd.f32 %v881_v7, %v610_v19  ;;  %v11619_v16 = vpop.f32.mrb[6].mxu1  ;;  %v604_v12 = vld [vmem:[#allocation3 + $0x70] sm:$0xff]  ;;  %v621_v61 = vld [vmem:[#allocation3 + $0xf8] sm:$0xff] }
 0x10a   : > { %964 = vst.msk [vmem:[#allocation3 + $0x20] sm:$0xff] %vm517_vm8, %v932_v28  ;;  %v933_v50 = vadd.f32 %v820_v1, %v595_v9  ;;  %982 = vst.msk [vmem:[#allocation3 + $0xb0] sm:$0xff] %vm517_vm8, %v950_v45  ;;  %v951_v22 = vadd.f32 %v11619_v16, %v613_v15  ;;  %v884_v6 = vpop.f32.mrb[7].mxu1  ;;  %v619_v15 = vld [vmem:[#allocation3 + $0xe8] sm:$0xff]  ;;  %v605_v48 = vld [vmem:[#allocation3 + $0x78] sm:$0xff] }
 0x10b   : > { %967 = vst.msk [vmem:[#allocation3 + $0x38] sm:$0xff] %vm517_vm8, %v935_v51  ;;  %980 = vst.msk [vmem:[#allocation3 + $0xa0] sm:$0xff] %vm517_vm8, %v948_v34  ;;  %v949_v31 = vadd.f32 %v884_v6, %v611_v25  ;;  %11885 = vmatmul.mubr.msk.bf16.vlgmr.msra.gmra.mrb[112].mxu0 %vm718_vm6, %v13596_v32  ;;  %v603_v1 = vld [vmem:[#allocation3 + $0x68] sm:$0xff] }
 0x10c   : > { %965 = vst.msk [vmem:[#allocation3 + $0x28] sm:$0xff] %vm517_vm8, %v933_v50  ;;  %983 = vst.msk [vmem:[#allocation3 + $0xb8] sm:$0xff] %vm517_vm8, %v951_v22  ;;  %11849 = vmatmul.mubr.msk.bf16.vlgmr.msra.gmra.mrb[112].mxu1 %vm718_vm6, %v13585_v52  ;;  %v601_v52 = vld [vmem:[#allocation3 + $0x58] sm:$0xff]  ;;  %11953 = vmatpush3.bf16.msra.mxu0 %v13659_v55 }
 0x10d   : > { %981 = vst.msk [vmem:[#allocation3 + $0xa8] sm:$0xff] %vm517_vm8, %v949_v31  ;;  %11917 = vmatpush3.bf16.msra.mxu1 %v13640_v43  ;;  %11852 = vmatprep.mubr.msk.bf16.mxu1 %vm718_vm6, %v13596_v32 }
 0x10e   : > { %v11606_v62 = vpop.f32.mrb[8].mxu0  ;;  %11918 = vmatprep.subr.bf16.mxu1 %v12595_v27  ;;  %11888 = vmatprep.mubr.msk.bf16.mxu0 %vm718_vm6, %v13701_v3 }
 0x10f   : > { %v11622_v14 = vpop.f32.mrb[8].mxu1  ;;  %v938_v43 = vadd.f32 %v11606_v62, %v600_v56  ;;  %v833_v2 = vpop.f32.mrb[9].mxu0  ;;  %11954 = vmatprep.subr.bf16.mxu0 %v12596_v33 }
 0x110   : > { %v954_v35 = vadd.f32 %v11622_v14, %v616_v57  ;;  %v897_v18 = vpop.f32.mrb[9].mxu1  ;;  %v936_v53 = vadd.f32 %v833_v2, %v598_v44  ;;  %v11607_v29 = vpop.f32.mrb[10].mxu0  ;;  %11955 = vmatpush3.bf16.msra.mxu0 %v12596_v33  ;;  %v994_v33 = vld [vmem:[#allocation3 + $0x10] sm:$0xff]  ;;  %v995_v14 = vld [vmem:[#allocation3 + $0x18] sm:$0xff] }
 0x111   : > { %v952_v40 = vadd.f32 %v897_v18, %v614_v47  ;;  %v11623_v42 = vpop.f32.mrb[10].mxu1  ;;  %970 = vst.msk [vmem:[#allocation3 + $0x50] sm:$0xff] %vm517_vm8, %v938_v43  ;;  %v939_v55 = vadd.f32 %v11607_v29, %v601_v52  ;;  %v836_v46 = vpop.f32.mrb[11].mxu0  ;;  %11919 = vmatpush3.bf16.msra.mxu1 %v12595_v27  ;;  %12024 = vmatprep.subr.bf16.mxu0 %v13900_v38  ;;  %v992_v47 = vld [vmem:[#allocation3] sm:$0xff] }
 0x112   : > { %986 = vst.msk [vmem:[#allocation3 + $0xd0] sm:$0xff] %vm517_vm8, %v954_v35  ;;  %v955_v49 = vadd.f32 %v11623_v42, %v617_v63  ;;  %v900_v17 = vpop.f32.mrb[11].mxu1  ;;  %968 = vst.msk [vmem:[#allocation3 + $0x40] sm:$0xff] %vm517_vm8, %v936_v53  ;;  %v937_v58 = vadd.f32 %v836_v46, %v599_v11  ;;  %11988 = vmatprep.subr.bf16.mxu1 %v13892_v60  ;;  %v993_v11 = vld [vmem:[#allocation3 + $0x8] sm:$0xff]  ;;  %v2172_v42 = vld [vmem:[#allocation2 + $0xd0] sm:$0xf] }
 0x113   : > { %984 = vst.msk [vmem:[#allocation3 + $0xc0] sm:$0xff] %vm517_vm8, %v952_v40  ;;  %v953_v26 = vadd.f32 %v900_v17, %v615_v20  ;;  %971 = vst.msk [vmem:[#allocation3 + $0x58] sm:$0xff] %vm517_vm8, %v939_v55  ;;  %11889 = vmatmul.mubr.msk.bf16.gmra.mrb[116].mxu0 %vm718_vm6, %v13726_v30  ;;  %v2171_v40 = vld [vmem:[#allocation2 + $0xcc] sm:$0xf]  ;;  %v998_v55 = vld [vmem:[#allocation3 + $0x30] sm:$0xff] }
 0x114   : > { %987 = vst.msk [vmem:[#allocation3 + $0xd8] sm:$0xff] %vm517_vm8, %v955_v49  ;;  %11853 = vmatmul.mubr.msk.bf16.gmra.mrb[116].mxu1 %vm718_vm6, %v13701_v3  ;;  %969 = vst.msk [vmem:[#allocation3 + $0x48] sm:$0xff] %vm517_vm8, %v937_v58  ;;  %11892 = vmatprep.mubr.msk.bf16.mxu0 %vm718_vm6, %v13739_v8  ;;  %v3242_v49 = vshrl.u32 %v2171_v40, 16  ;;  %v2174_v17 = vld [vmem:[#allocation2 + $0xd8] sm:$0xf] }
 0x115   : > { %985 = vst.msk [vmem:[#allocation3 + $0xc8] sm:$0xff] %vm517_vm8, %v953_v26  ;;  %11856 = vmatprep.mubr.msk.bf16.mxu1 %vm718_vm6, %v13726_v30  ;;  %v996_v26 = vld [vmem:[#allocation3 + $0x20] sm:$0xff] }
 0x116   : > { %v11610_v28 = vpop.f32.mrb[12].mxu0 }
 0x117   : > { %v11626_v19 = vpop.f32.mrb[12].mxu1  ;;  %v942_v25 = vadd.f32 %v11610_v28, %v604_v12  ;;  %v849_v51 = vpop.f32.mrb[13].mxu0  ;;  %v3251_v12 = vshll.u32 %v2172_v42, 16  ;;  %v2175_v28 = vld [vmem:[#allocation2 + $0xdc] sm:$0xf] }
 0x118   : > { %v958_v9 = vadd.f32 %v11626_v19, %v620_v39  ;;  %v913_v10 = vpop.f32.mrb[13].mxu1  ;;  %v940_v50 = vadd.f32 %v849_v51, %v602_v5  ;;  %v11611_v22 = vpop.f32.mrb[14].mxu0  ;;  %v3255_v19 = vshrl.u32 %v2172_v42, 16 }
 0x119   : > { %v956_v45 = vadd.f32 %v913_v10, %v618_v41  ;;  %v11627_v7 = vpop.f32.mrb[14].mxu1  ;;  %974 = vst.msk [vmem:[#allocation3 + $0x70] sm:$0xff] %vm517_vm8, %v942_v25  ;;  %v943_v27 = vadd.f32 %v11611_v22, %v605_v48  ;;  %v852_v31 = vpop.f32.mrb[15].mxu0  ;;  %v3245_v41 = vshll.u32 %v2171_v40, 16  ;;  %v997_v25 = vld [vmem:[#allocation3 + $0x28] sm:$0xff] }
 0x11a   : > { %990 = vst.msk [vmem:[#allocation3 + $0xf0] sm:$0xff] %vm517_vm8, %v958_v9  ;;  %v959_v34 = vadd.f32 %v11627_v7, %v621_v61  ;;  %v916_v16 = vpop.f32.mrb[15].mxu1  ;;  %972 = vst.msk [vmem:[#allocation3 + $0x60] sm:$0xff] %vm517_vm8, %v940_v50  ;;  %v941_v56 = vadd.f32 %v852_v31, %v603_v1  ;;  %v999_v9 = vld [vmem:[#allocation3 + $0x38] sm:$0xff]  ;;  %v3244_v31 = vrot.slane %v3242_v49, 4 }
 0x11b   : > { %988 = vst.msk [vmem:[#allocation3 + $0xe0] sm:$0xff] %vm517_vm8, %v956_v45  ;;  %v957_v6 = vadd.f32 %v916_v16, %v619_v15  ;;  %975 = vst.msk [vmem:[#allocation3 + $0x78] sm:$0xff] %vm517_vm8, %v943_v27  ;;  %11893 = vmatmul.mubr.msk.bf16.gmra.mrb[120].mxu0 %vm718_vm6, %v13760_v4  ;;  %v3549_v16 = vshll.u32 %v2174_v17, 16 }
 0x11c   : > { %991 = vst.msk [vmem:[#allocation3 + $0xf8] sm:$0xff] %vm517_vm8, %v959_v34  ;;  %11857 = vmatmul.mubr.msk.bf16.gmra.mrb[120].mxu1 %vm718_vm6, %v13739_v8  ;;  %973 = vst.msk [vmem:[#allocation3 + $0x68] sm:$0xff] %vm517_vm8, %v941_v56  ;;  %11896 = vmatprep.mubr.msk.bf16.mxu0 %vm718_vm6, %v13776_v36  ;;  %v3546_v34 = vshrl.u32 %v2174_v17, 16  ;;  %v1003_v17 = vld [vmem:[#allocation3 + $0x58] sm:$0xff] }
 0x11d   : > { %989 = vst.msk [vmem:[#allocation3 + $0xe8] sm:$0xff] %vm517_vm8, %v957_v6  ;;  %11860 = vmatprep.mubr.msk.bf16.mxu1 %vm718_vm6, %v13760_v4 }
 0x11e   : > { %v11670_v43 = vpop.f32.mrb[16].mxu0 }
 0x11f   : > { %v11634_v57 = vpop.f32.mrb[16].mxu1  ;;  %v1365_v18 = vpop.f32.mrb[17].mxu0 }
 0x120   : > { %v1212_v44 = vadd.f32 %v11634_v57, %v994_v33  ;;  %v1083_v62 = vpop.f32.mrb[17].mxu1  ;;  %v11671_v53 = vpop.f32.mrb[18].mxu0 }
 0x121   : > { %v1210_v52 = vadd.f32 %v1083_v62, %v992_v47  ;;  %v11635_v63 = vpop.f32.mrb[18].mxu1  ;;  %v1368_v29 = vpop.f32.mrb[19].mxu0  ;;  %v13954_v47 = vrot.slane %v3251_v12, 5  ;;  %v3257_v62 = vrot.slane %v3255_v19, 4 }
 0x122   : > { %1244 = vst.msk [vmem:[#allocation3 + $0x10] sm:$0xff] %vm517_vm8, %v1212_v44  ;;  %v1213_v2 = vadd.f32 %v11635_v63, %v995_v14  ;;  %v1086_v35 = vpop.f32.mrb[19].mxu1  ;;  %v3247_v44 = vrot.slane %v3245_v41, 5  ;;  %v2173_v14 = vld [vmem:[#allocation2 + $0xd4] sm:$0x1]  ;;  %v3555_v63 = vshll.u32 %v2175_v28, 16 }
 0x123   : > { %1242 = vst.msk [vmem:[#allocation3] sm:$0xff] %vm517_vm8, %v1210_v52  ;;  %v1211_v20 = vadd.f32 %v1086_v35, %v993_v11  ;;  %11897 = vmatmul.mubr.msk.bf16.gmra.mrb[124].mxu0 %vm718_vm6, %v13780_v24  ;;  %v3551_v11 = vrot.slane %v3549_v16, 5  ;;  %v1002_v35 = vld [vmem:[#allocation3 + $0x50] sm:$0xff]  ;;  %v3258_v42 = vor.u32 %v3257_v62, %v13954_v47 }
 0x124   : > { %1245 = vst.msk [vmem:[#allocation3 + $0x18] sm:$0xff] %vm517_vm8, %v1213_v2  ;;  %11861 = vmatmul.mubr.msk.bf16.gmra.mrb[124].mxu1 %vm718_vm6, %v13776_v36  ;;  %11900 = vmatprep.mubr.msk.bf16.mxu0 %vm718_vm6, %v13792_v21  ;;  %v3548_v2 = vrot.slane %v3546_v34, 4  ;;  %v3248_v40 = vor.u32 %v3247_v44, %v3244_v31  ;;  %v13971_v34 = vld [vmem:[#allocation2 + $0x4] sm:$0xf] }
 0x125   : > { %1243 = vst.msk [vmem:[#allocation3 + $0x8] sm:$0xff] %vm517_vm8, %v1211_v20  ;;  %11864 = vmatprep.mubr.msk.bf16.mxu1 %vm718_vm6, %v13780_v24  ;;  %v4266_v44 = vrot.slane %v13971_v34, 5 }
 0x126   : > { %v11674_v15 = vpop.f32.mrb[20].mxu0 }
 0x127   : > { %v11638_v46 = vpop.f32.mrb[20].mxu1  ;;  %v1381_v1 = vpop.f32.mrb[21].mxu0 }
 0x128   : > { %v1216_v58 = vadd.f32 %v11638_v46, %v998_v55  ;;  %v1099_v39 = vpop.f32.mrb[21].mxu1  ;;  %v11675_v27 = vpop.f32.mrb[22].mxu0  ;;  %v3261_v55 = vshll.u32 %v2173_v14, 16  ;;  %v13995_v14 = vld [vmem:[#allocation2 + $0x10] sm:$0xf] }
 0x129   : > { %v1276_v61 = vld [vmem:[#allocation3 + $0x10] sm:$0xff]  ;;  %v1214_v5 = vadd.f32 %v1099_v39, %v996_v26  ;;  %v11639_v10 = vpop.f32.mrb[22].mxu1  ;;  %v1384_v57 = vpop.f32.mrb[23].mxu0  ;;  %v13967_v39 = vrot.slane %v3555_v63, 5 }
 0x12a   : > { %v1494_v48 = vadd.f32 %v11670_v43, %v1276_v61  ;;  %1248 = vst.msk [vmem:[#allocation3 + $0x30] sm:$0xff] %vm517_vm8, %v1216_v58  ;;  %v1274_v45 = vld [vmem:[#allocation3] sm:$0xff]  ;;  %v1217_v7 = vadd.f32 %v11639_v10, %v999_v9  ;;  %v1102_v51 = vpop.f32.mrb[23].mxu1  ;;  %v3559_v43 = vshrl.u32 %v2175_v28, 16  ;;  %v2176_v28 = vld [vmem:[#allocation2 + $0xe0] sm:$0x1] }
 0x12b   : > { %v1492_v50 = vadd.f32 %v1365_v18, %v1274_v45  ;;  %1246 = vst.msk [vmem:[#allocation3 + $0x20] sm:$0xff] %vm517_vm8, %v1214_v5  ;;  %v1277_v22 = vld [vmem:[#allocation3 + $0x18] sm:$0xff]  ;;  %v1215_v6 = vadd.f32 %v1102_v51, %v997_v25  ;;  %11901 = vmatmul.mubr.msk.bf16.gmra.mrb[128].mxu0 %vm718_vm6, %v13808_v59  ;;  %v1001_v5 = vld [vmem:[#allocation3 + $0x48] sm:$0xff] }
 0x12c   : > { %1526 = vst.msk [vmem:[#allocation3 + $0x10] sm:$0xff] %vm517_vm8, %v1494_v48  ;;  %v1495_v56 = vadd.f32 %v11671_v53, %v1277_v22  ;;  %1249 = vst.msk [vmem:[#allocation3 + $0x38] sm:$0xff] %vm517_vm8, %v1217_v7  ;;  %v1275_v33 = vld [vmem:[#allocation3 + $0x8] sm:$0xff]  ;;  %11865 = vmatmul.mubr.msk.bf16.gmra.mrb[128].mxu1 %vm718_vm6, %v13792_v21  ;;  %11904 = vmatprep.mubr.msk.bf16.mxu0 %vm718_vm6, %v13819_v54  ;;  %v1000_v53 = vld [vmem:[#allocation3 + $0x40] sm:$0xff]  ;;  %v3561_v41 = vrot.slane %v3559_v43, 4  ;;  %v3552_v48 = vor.u32 %v3551_v11, %v3548_v2 }
 0x12d   : > { %1524 = vst.msk [vmem:[#allocation3] sm:$0xff] %vm517_vm8, %v1492_v50  ;;  %v1493_v52 = vadd.f32 %v1368_v29, %v1275_v33  ;;  %1247 = vst.msk [vmem:[#allocation3 + $0x28] sm:$0xff] %vm517_vm8, %v1215_v6  ;;  %11868 = vmatprep.mubr.msk.bf16.mxu1 %vm718_vm6, %v13808_v59  ;;  %v13977_v22 = vrot.slane %v3248_v40, 4  ;;  %v1004_v43 = vld [vmem:[#allocation3 + $0x60] sm:$0xff] }
 0x12e   : > { %1527 = vst.msk [vmem:[#allocation3 + $0x18] sm:$0xff] %vm517_vm8, %v1495_v56  ;;  %v11678_v26 = vpop.f32.mrb[24].mxu0  ;;  %v3562_v31 = vor.u32 %v3561_v41, %v13967_v39  ;;  %v3565_v56 = vshll.u32 %v2176_v28, 16  ;;  %v13989_v33 = vrot.slane %v3552_v48, 4 }
 0x12f   : > { %1525 = vst.msk [vmem:[#allocation3 + $0x8] sm:$0xff] %vm517_vm8, %v1493_v52  ;;  %v11642_v18 = vpop.f32.mrb[24].mxu1  ;;  %v1397_v10 = vpop.f32.mrb[25].mxu0  ;;  %v4153_v52 = vld [vmem:[#allocation2] sm:$0xe]  ;;  %v3254_v11 = vsel %vm13496_vm11, %v13977_v22, %v13954_v47 }
 0x130   : > { %v1220_v20 = vadd.f32 %v11642_v18, %v1002_v35  ;;  %v1115_v29 = vpop.f32.mrb[25].mxu1  ;;  %v11679_v51 = vpop.f32.mrb[26].mxu0  ;;  %v4155_v35 = vld [vmem:[#allocation2 + $0x8] sm:$0x1]  ;;  %v14025_v22 = vld [vmem:[#allocation2 + $0x14] sm:$0x1] }
 0x131   : > { %v1280_v46 = vld [vmem:[#allocation3 + $0x30] sm:$0xff]  ;;  %v1218_v49 = vadd.f32 %v1115_v29, %v1000_v53  ;;  %v11643_v58 = vpop.f32.mrb[26].mxu1  ;;  %v1400_v50 = vpop.f32.mrb[27].mxu0  ;;  %v1007_v53 = vld [vmem:[#allocation3 + $0x78] sm:$0xff] }
 0x132   : > { %v1498_v12 = vadd.f32 %v11674_v15, %v1280_v46  ;;  %1252 = vst.msk [vmem:[#allocation3 + $0x50] sm:$0xff] %vm517_vm8, %v1220_v20  ;;  %v1278_v19 = vld [vmem:[#allocation3 + $0x20] sm:$0xff]  ;;  %v1221_v61 = vadd.f32 %v11643_v58, %v1003_v17  ;;  %v1118_v9 = vpop.f32.mrb[27].mxu1  ;;  %v14006_v46 = vrot.slane %v3565_v56, 5  ;;  %v1005_v58 = vld [vmem:[#allocation3 + $0x68] sm:$0xff] }
 0x133   : > { %v1496_v45 = vadd.f32 %v1381_v1, %v1278_v19  ;;  %1250 = vst.msk [vmem:[#allocation3 + $0x40] sm:$0xff] %vm517_vm8, %v1218_v49  ;;  %v1281_v7 = vld [vmem:[#allocation3 + $0x38] sm:$0xff]  ;;  %v1219_v25 = vadd.f32 %v1118_v9, %v1001_v5  ;;  %v13979_v1 = vrot.slane %v3258_v42, 4  ;;  %11905 = vmatmul.mubr.msk.bf16.gmra.mrb[132].mxu0 %vm718_vm6, %v13830_v23  ;;  %v10608_v19 = vrot.slane %v4153_v52, 9 }
 0x134   : > { %1530 = vst.msk [vmem:[#allocation3 + $0x30] sm:$0xff] %vm517_vm8, %v1498_v12  ;;  %v1499_v15 = vadd.f32 %v11675_v27, %v1281_v7  ;;  %1253 = vst.msk [vmem:[#allocation3 + $0x58] sm:$0xff] %vm517_vm8, %v1221_v61  ;;  %v1279_v16 = vld [vmem:[#allocation3 + $0x28] sm:$0xff]  ;;  %11869 = vmatmul.mubr.msk.bf16.gmra.mrb[132].mxu1 %vm718_vm6, %v13819_v54  ;;  %v3263_v27 = vrot.slane %v3261_v55, 5  ;;  %11908 = vmatprep.mubr.msk.bf16.mxu0 %vm718_vm6, %v13843_v0  ;;  %v14004_v55 = vrot.slane %v3562_v31, 4  ;;  %v4273_v61 = vrot.slane %v13995_v14, 5 }
 0x135   : > { %1528 = vst.msk [vmem:[#allocation3 + $0x20] sm:$0xff] %vm517_vm8, %v1496_v45  ;;  %v1497_v6 = vadd.f32 %v1384_v57, %v1279_v16  ;;  %1251 = vst.msk [vmem:[#allocation3 + $0x48] sm:$0xff] %vm517_vm8, %v1219_v25  ;;  %11872 = vmatprep.mubr.msk.bf16.mxu1 %vm718_vm6, %v13830_v23  ;;  %v1006_v57 = vld [vmem:[#allocation3 + $0x70] sm:$0xff]  ;;  %v4268_v45 = vrot.slane %v4266_v44, 4  ;;  %v4269_v7 = vrot.slane %v4155_v35, 5  ;;  %v4276_v52 = vrot.slane %v14025_v22, 5 }
 0x136   : > { %1531 = vst.msk [vmem:[#allocation3 + $0x38] sm:$0xff] %vm517_vm8, %v1499_v15  ;;  %v11682_v40 = vpop.f32.mrb[28].mxu0  ;;  %v3264_v42 = vsel %vm13496_vm11, %v13979_v1, %v3263_v27  ;;  %v14019_v25 = vld [vmem:[#allocation2 + $0xc] sm:$0xe]  ;;  %v14027_v1 = vld [vmem:[#allocation2 + $0x1c] sm:$0xf]  ;;  %v3558_v27 = vsel %vm13496_vm11, %v13989_v33, %v13967_v39  ;;  %v4267_v39 = vsel %vm14013_vm15, %v10608_v19, %v4266_v44 }
 0x137   : > { %1529 = vst.msk [vmem:[#allocation3 + $0x28] sm:$0xff] %vm517_vm8, %v1497_v6  ;;  %v11646_v62 = vpop.f32.mrb[28].mxu1  ;;  %v1413_v12 = vpop.f32.mrb[29].mxu0  ;;  %v10609_v31 = vrot.slane %v14019_v25, 9  ;;  %v4275_v56 = vrot.slane %v4273_v61, 4  ;;  %v4270_v33 = vsel %vm14013_vm15, %v4268_v45, %v4269_v7 }
 0x138   : > { %v1224_v63 = vadd.f32 %v11646_v62, %v1006_v57  ;;  %v1131_v2 = vpop.f32.mrb[29].mxu1  ;;  %v11683_v48 = vpop.f32.mrb[30].mxu0  ;;  %v1010_v57 = vld [vmem:[#allocation3 + $0x90] sm:$0xff]  ;;  %v4159_v35 = vld [vmem:[#allocation2 + $0x18] sm:$0xe]  ;;  %v10628_v19 = vcombine.low %v4267_v39, %v4270_v33 }
 0x139   : > { %v1284_v18 = vld [vmem:[#allocation3 + $0x50] sm:$0xff]  ;;  %v1222_v20 = vadd.f32 %v1131_v2, %v1004_v43  ;;  %v11647_v29 = vpop.f32.mrb[30].mxu1  ;;  %v1416_v16 = vpop.f32.mrb[31].mxu0  ;;  %v1008_v2 = vld [vmem:[#allocation3 + $0x80] sm:$0xff]  ;;  %v10610_v25 = vrot.slane %v4159_v35, 9 }
 0x13a   : > { %v1502_v49 = vadd.f32 %v11678_v26, %v1284_v18  ;;  %1256 = vst.msk [vmem:[#allocation3 + $0x70] sm:$0xff] %vm517_vm8, %v1224_v63  ;;  %v1282_v47 = vld [vmem:[#allocation3 + $0x40] sm:$0xff]  ;;  %v1225_v17 = vadd.f32 %v11647_v29, %v1007_v53  ;;  %v1134_v41 = vpop.f32.mrb[31].mxu1  ;;  %v4280_v63 = vrot.slane %v14027_v1, 5  ;;  %v14060_v18 = vld [vmem:[#allocation2 + $0x28] sm:$0xf] }
 0x13b   : > { %v1500_v5 = vadd.f32 %v1397_v10, %v1282_v47  ;;  %1254 = vst.msk [vmem:[#allocation3 + $0x60] sm:$0xff] %vm517_vm8, %v1222_v20  ;;  %v1285_v9 = vld [vmem:[#allocation3 + $0x58] sm:$0xff]  ;;  %v1223_v28 = vadd.f32 %v1134_v41, %v1005_v58  ;;  %11909 = vmatmul.mubr.msk.bf16.gmra.mrb[136].mxu0 %vm718_vm6, %v13855_v13  ;;  %v1009_v47 = vld [vmem:[#allocation3 + $0x88] sm:$0xff]  ;;  %v1012_v35 = vld [vmem:[#allocation3 + $0xa0] sm:$0xff] }
 0x13c   : > { %1534 = vst.msk [vmem:[#allocation3 + $0x50] sm:$0xff] %vm517_vm8, %v1502_v49  ;;  %v1503_v10 = vadd.f32 %v11679_v51, %v1285_v9  ;;  %1257 = vst.msk [vmem:[#allocation3 + $0x78] sm:$0xff] %vm517_vm8, %v1225_v17  ;;  %v1283_v15 = vld [vmem:[#allocation3 + $0x48] sm:$0xff]  ;;  %11873 = vmatmul.mubr.msk.bf16.gmra.mrb[136].mxu1 %vm718_vm6, %v13843_v0  ;;  %v14033_v51 = vcombine.low %v3254_v11, %v3264_v42  ;;  %v1011_v29 = vld [vmem:[#allocation3 + $0x98] sm:$0xff]  ;;  %v4282_v1 = vrot.slane %v4280_v63, 4 }
 0x13d   : > { %1532 = vst.msk [vmem:[#allocation3 + $0x40] sm:$0xff] %vm517_vm8, %v1500_v5  ;;  %v1501_v6 = vadd.f32 %v1400_v50, %v1283_v15  ;;  %1255 = vst.msk [vmem:[#allocation3 + $0x68] sm:$0xff] %vm517_vm8, %v1223_v28  ;;  %11876 = vmatprep.mubr.msk.bf16.mxu1 %vm718_vm6, %v13855_v13  ;;  %v3568_v50 = vsel %vm13496_vm11, %v14004_v55, %v14006_v46  ;;  %v4161_v55 = vld [vmem:[#allocation2 + $0x20] sm:$0x1]  ;;  %v14065_v5 = vld [vmem:[#allocation2 + $0x34] sm:$0xf] }
 0x13e   : > { %1535 = vst.msk [vmem:[#allocation3 + $0x58] sm:$0xff] %vm517_vm8, %v1503_v10  ;;  %11912 = vmatprep.mubr.msk.bf16.mxu0 %vm718_vm6, %v14033_v51  ;;  %v11686_v42 = vpop.f32.mrb[32].mxu0  ;;  %v14063_v41 = vcombine.low %v3558_v27, %v3568_v50  ;;  %v4294_v50 = vrot.slane %v14065_v5, 5 }
 0x13f   : > { %1533 = vst.msk [vmem:[#allocation3 + $0x48] sm:$0xff] %vm517_vm8, %v1501_v6  ;;  %v11650_v62 = vpop.f32.mrb[32].mxu1  ;;  %v1429_v58 = vpop.f32.mrb[33].mxu0  ;;  %v14073_v6 = vld [vmem:[#allocation2 + $0x24] sm:$0xe] }
 0x140   : > { %v1228_v43 = vadd.f32 %v11650_v62, %v1010_v57  ;;  %v1147_v11 = vpop.f32.mrb[33].mxu1  ;;  %v11687_v7 = vpop.f32.mrb[34].mxu0  ;;  %v4165_v57 = vld [vmem:[#allocation2 + $0x30] sm:$0xe]  ;;  %v1014_v62 = vld [vmem:[#allocation3 + $0xb0] sm:$0xff]  ;;  %v10611_v33 = vrot.slane %v14073_v6, 9 }
 0x141   : > { %v1288_v20 = vld [vmem:[#allocation3 + $0x70] sm:$0xff]  ;;  %v1226_v53 = vadd.f32 %v1147_v11, %v1008_v2  ;;  %v11651_v34 = vpop.f32.mrb[34].mxu1  ;;  %v1432_v22 = vpop.f32.mrb[35].mxu0  ;;  %v4167_v2 = vld [vmem:[#allocation2 + $0x38] sm:$0x1] }
 0x142   : > { %v1506_v44 = vadd.f32 %v11682_v40, %v1288_v20  ;;  %1260 = vst.msk [vmem:[#allocation3 + $0x90] sm:$0xff] %vm517_vm8, %v1228_v43  ;;  %v1286_v46 = vld [vmem:[#allocation3 + $0x60] sm:$0xff]  ;;  %v1229_v49 = vadd.f32 %v11651_v34, %v1011_v29  ;;  %v1150_v17 = vpop.f32.mrb[35].mxu1  ;;  %v4287_v40 = vrot.slane %v14060_v18, 5  ;;  %v14117_v6 = vld [vmem:[#allocation2 + $0x4c] sm:$0xf] }
 0x143   : > { %v1504_v9 = vadd.f32 %v1413_v12, %v1286_v46  ;;  %1258 = vst.msk [vmem:[#allocation3 + $0x80] sm:$0xff] %vm517_vm8, %v1226_v53  ;;  %v1289_v28 = vld [vmem:[#allocation3 + $0x78] sm:$0xff]  ;;  %v1227_v45 = vadd.f32 %v1150_v17, %v1009_v47  ;;  %v4283_v12 = vrot.slane %v4161_v55, 5  ;;  %11913 = vmatmul.mubr.msk.bf16.gmra.mrb[140].mxu0 %vm718_vm6, %v14063_v41  ;;  %v4281_v53 = vsel %vm14013_vm15, %v10610_v25, %v4280_v63  ;;  %v1013_v17 = vld [vmem:[#allocation3 + $0xa8] sm:$0xff]  ;;  %v14151_v18 = vld [vmem:[#allocation2 + $0x44] sm:$0x1] }
 0x144   : > { %1538 = vst.msk [vmem:[#allocation3 + $0x70] sm:$0xff] %vm517_vm8, %v1506_v44  ;;  %v1507_v10 = vadd.f32 %v11683_v48, %v1289_v28  ;;  %1261 = vst.msk [vmem:[#allocation3 + $0x98] sm:$0xff] %vm517_vm8, %v1229_v49  ;;  %v1287_v15 = vld [vmem:[#allocation3 + $0x68] sm:$0xff]  ;;  %11877 = vmatmul.mubr.msk.bf16.gmra.mrb[140].mxu1 %vm718_vm6, %v14033_v51  ;;  %v4164_v48 = vld [vmem:[#allocation2 + $0x2c] sm:$0x1]  ;;  %11956 = vmatprep.mubr.msk.bf16.mxu0 %vm718_vm6, %v10628_v19  ;;  %v4289_v43 = vrot.slane %v4287_v40, 4 }
 0x145   : > { %1536 = vst.msk [vmem:[#allocation3 + $0x60] sm:$0xff] %vm517_vm8, %v1504_v9  ;;  %v1505_v27 = vadd.f32 %v1416_v16, %v1287_v15  ;;  %1259 = vst.msk [vmem:[#allocation3 + $0x88] sm:$0xff] %vm517_vm8, %v1227_v45  ;;  %11920 = vmatprep.mubr.msk.bf16.mxu1 %vm718_vm6, %v13596_v32  ;;  %v4274_v32 = vsel %vm14013_vm15, %v10609_v31, %v4273_v61  ;;  %v4277_v16 = vsel %vm14013_vm15, %v4275_v56, %v4276_v52  ;;  %v14098_v61 = vld [vmem:[#allocation2 + $0x40] sm:$0xf]  ;;  %v1015_v52 = vld [vmem:[#allocation3 + $0xb8] sm:$0xff] }
 0x146   : > { %1539 = vst.msk [vmem:[#allocation3 + $0x78] sm:$0xff] %vm517_vm8, %v1507_v10  ;;  %v4284_v14 = vsel %vm14013_vm15, %v4282_v1, %v4283_v12  ;;  %v4290_v29 = vrot.slane %v4164_v48, 5  ;;  %v14100_v55 = vpop.f32.mrb[36].mxu0  ;;  %v10612_v44 = vrot.slane %v4165_v57, 9  ;;  %v4296_v46 = vrot.slane %v4294_v50, 4  ;;  %v12599_v25 = vld [vmem:[%s17219_s1 + $0x78] sm:$0xff]  }
 0x147   : > { %1537 = vst.msk [vmem:[#allocation3 + $0x68] sm:$0xff] %vm517_vm8, %v1505_v27  ;;  %v11654_v39 = vpop.f32.mrb[36].mxu1  ;;  %v14105_v9 = vpop.f32.mrb[37].mxu0  ;;  %v14107_v28 = vcombine.low %v4274_v32, %v4277_v16  ;;  %v4297_v45 = vrot.slane %v4167_v2, 5  ;;  %v14115_v12 = vcombine.low %v4281_v53, %v4284_v14  ;;  %v12600_v57 = vld [vmem:[%s17219_s1 + $0xc8] sm:$0xff]   ;;  %v4301_v32 = vrot.slane %v14098_v61, 5 }
 0x148   : > { %v1232_v11 = vadd.f32 %v11654_v39, %v1014_v62  ;;  %v1163_v20 = vpop.f32.mrb[37].mxu1  ;;  %v14113_v1 = vpop.f32.mrb[38].mxu0  ;;  %v14139_v39 = vld [vmem:[#allocation2 + $0x3c] sm:$0xe]  ;;  %v1018_v16 = vld [vmem:[#allocation3 + $0xd0] sm:$0xff]  ;;  %v1016_v2 = vld [vmem:[#allocation3 + $0xc0] sm:$0xff] }
 0x149   : > { %v1292_v31 = vld [vmem:[#allocation3 + $0x90] sm:$0xff]  ;;  %v1230_v56 = vadd.f32 %v1163_v20, %v1012_v35  ;;  %v11655_v34 = vpop.f32.mrb[38].mxu1  ;;  %v10613_v20 = vrot.slane %v14139_v39, 9  ;;  %v4173_v53 = vld [vmem:[#allocation2 + $0x50] sm:$0x1] }
 0x14a   : > { %v1510_v49 = vadd.f32 %v11686_v42, %v1292_v31  ;;  %1264 = vst.msk [vmem:[#allocation3 + $0xb0] sm:$0xff] %vm517_vm8, %v1232_v11  ;;  %v1290_v63 = vld [vmem:[#allocation3 + $0x80] sm:$0xff]  ;;  %v1233_v47 = vadd.f32 %v11655_v34, %v1015_v52  ;;  %v1166_v19 = vpop.f32.mrb[39].mxu1  ;;  %v1019_v31 = vld [vmem:[#allocation3 + $0xd8] sm:$0xff] }
 0x14b   : > { %v1508_v10 = vadd.f32 %v1429_v58, %v1290_v63  ;;  %1262 = vst.msk [vmem:[#allocation3 + $0xa0] sm:$0xff] %vm517_vm8, %v1230_v56  ;;  %v1293_v15 = vld [vmem:[#allocation3 + $0x98] sm:$0xff]  ;;  %v1231_v42 = vadd.f32 %v1166_v19, %v1013_v17  ;;  %v14123_v58 = vpop.f32.mrb[39].mxu0  ;;  %11957 = vmatmul.mubr.msk.bf16.vlgmr.msra.gmra.mrb[144].mxu0 %vm718_vm6, %v14107_v28  ;;  %v1017_v17 = vld [vmem:[#allocation3 + $0xc8] sm:$0xff]  ;;  %v14200_v39 = vld [vmem:[#allocation2 + $0x54] sm:$0xe] }
 0x14c   : > { %1542 = vst.msk [vmem:[#allocation3 + $0x90] sm:$0xff] %vm517_vm8, %v1510_v49  ;;  %v1511_v27 = vadd.f32 %v11687_v7, %v1293_v15  ;;  %1265 = vst.msk [vmem:[#allocation3 + $0xb8] sm:$0xff] %vm517_vm8, %v1233_v47  ;;  %v1291_v48 = vld [vmem:[#allocation3 + $0x88] sm:$0xff]  ;;  %11921 = vmatmul.mubr.msk.bf16.vlgmr.msra.gmra.mrb[144].mxu1 %vm718_vm6, %v13701_v3  ;;  %v4288_v3 = vsel %vm14013_vm15, %v10611_v33, %v4287_v40  ;;  %v4291_v7 = vsel %vm14013_vm15, %v4289_v43, %v4290_v29 }
 0x14d   : > { %1540 = vst.msk [vmem:[#allocation3 + $0x80] sm:$0xff] %vm517_vm8, %v1508_v10  ;;  %v1509_v62 = vadd.f32 %v1432_v22, %v1291_v48  ;;  %1263 = vst.msk [vmem:[#allocation3 + $0xa8] sm:$0xff] %vm517_vm8, %v1231_v42  ;;  %11989 = vmatpush3.bf16.msra.mxu1 %v13892_v60  ;;  %11924 = vmatprep.mubr.msk.bf16.mxu1 %vm718_vm6, %v13726_v30  ;;  %v4295_v30 = vsel %vm14013_vm15, %v10612_v44, %v4294_v50  ;;  %v4308_v40 = vrot.slane %v14117_v6, 5  ;;  %v14157_v22 = vld [vmem:[%s17219_s1 + $0x110] sm:$0xff]   ;;  %v14163_v50 = vld [vmem:[#allocation2 + $0x48] sm:$0xe] }
 0x14e   : > { %1543 = vst.msk [vmem:[#allocation3 + $0x98] sm:$0xff] %vm517_vm8, %v1511_v27  ;;  %v4298_v60 = vsel %vm14013_vm15, %v4296_v46, %v4297_v45  ;;  %11990 = vmatprep.subr.bf16.mxu1 %v12599_v25  ;;  %12025 = vmatpush3.bf16.msra.mxu0 %v13900_v38  ;;  %v14165_v33 = vld [vmem:[#allocation2 + $0x58] sm:$0xf]  ;;  %v14167_v35 = vcombine.low %v4288_v3, %v4291_v7  ;;  %v14173_v38 = vld [vmem:[%s17219_s1 + $0x160] sm:$0xff]   ;;  %v14175_v52 = vpop.f32.mrb[40].mxu0  ;;  %v4303_v44 = vrot.slane %v4301_v32, 4 }
 0x14f   : > { %1541 = vst.msk [vmem:[#allocation3 + $0x88] sm:$0xff] %vm517_vm8, %v1509_v62  ;;  %v11658_v5 = vpop.f32.mrb[40].mxu1  ;;  %11960 = vmatprep.mubr.msk.bf16.mxu0 %vm718_vm6, %v14115_v12  ;;  %12026 = vmatprep.subr.bf16.mxu0 %v12600_v57  ;;  %v14177_v34 = vcombine.low %v4295_v30, %v4298_v60  ;;  %v4304_v46 = vrot.slane %v14151_v18, 5  ;;  %v14184_v45 = vpop.f32.mrb[41].mxu0  ;;  %v10614_v10 = vrot.slane %v14163_v50, 9  ;;  %v4315_v15 = vrot.slane %v14165_v33, 5 }
 0x150   : > { %v1236_v43 = vadd.f32 %v11658_v5, %v1018_v16  ;;  %v1179_v11 = vpop.f32.mrb[41].mxu1  ;;  %v14191_v27 = vpop.f32.mrb[42].mxu0  ;;  %v4310_v48 = vrot.slane %v4308_v40, 4  ;;  %v4311_v62 = vrot.slane %v4173_v53, 5  ;;  %v14202_v30 = vld [vmem:[#allocation2 + $0x64] sm:$0xf] }
 0x151   : > { %v1296_v14 = vld [vmem:[#allocation3 + $0xb0] sm:$0xff]  ;;  %v1234_v29 = vadd.f32 %v1179_v11, %v1016_v2  ;;  %v11659_v56 = vpop.f32.mrb[42].mxu1  ;;  %11991 = vmatpush3.bf16.msra.mxu1 %v12599_v25  ;;  %v14223_v18 = vld [vmem:[#allocation2 + $0x70] sm:$0xf]  ;;  %v4309_v61 = vsel %vm14013_vm15, %v10614_v10, %v4308_v40  ;;  %v10615_v5 = vrot.slane %v14200_v39, 9  ;;  %v4322_v50 = vrot.slane %v14202_v30, 5 }
 0x152   : > { %v1514_v49 = vadd.f32 %v14100_v55, %v1296_v14  ;;  %1268 = vst.msk [vmem:[#allocation3 + $0xd0] sm:$0xff] %vm517_vm8, %v1236_v43  ;;  %v1294_v63 = vld [vmem:[#allocation3 + $0xa0] sm:$0xff]  ;;  %v1237_v47 = vadd.f32 %v11659_v56, %v1019_v31  ;;  %v1182_v19 = vpop.f32.mrb[43].mxu1  ;;  %12060 = vmatprep.subr.bf16.mxu1 %v14157_v22  ;;  %12027 = vmatpush3.bf16.msra.mxu0 %v12600_v57  ;;  %v14221_v60 = vld [vmem:[#allocation2 + $0x60] sm:$0xe]  ;;  %v1023_v31 = vld [vmem:[#allocation3 + $0xf8] sm:$0xff] }
 0x153   : > { %v1512_v42 = vadd.f32 %v14105_v9, %v1294_v63  ;;  %1266 = vst.msk [vmem:[#allocation3 + $0xc0] sm:$0xff] %vm517_vm8, %v1234_v29  ;;  %v1297_v25 = vld [vmem:[#allocation3 + $0xb8] sm:$0xff]  ;;  %v1235_v55 = vadd.f32 %v1182_v19, %v1017_v17  ;;  %v1464_v9 = vpop.f32.mrb[43].mxu0  ;;  %12096 = vmatprep.subr.bf16.mxu0 %v14173_v38  ;;  %11961 = vmatmul.mubr.msk.bf16.gmra.mrb[148].mxu0 %vm718_vm6, %v14167_v35  ;;  %v1020_v2 = vld [vmem:[#allocation3 + $0xe0] sm:$0xff]  ;;  %v1021_v17 = vld [vmem:[#allocation3 + $0xe8] sm:$0xff] }
 0x154   : > { %1546 = vst.msk [vmem:[#allocation3 + $0xb0] sm:$0xff] %vm517_vm8, %v1514_v49  ;;  %v1515_v3 = vadd.f32 %v14113_v1, %v1297_v25  ;;  %1269 = vst.msk [vmem:[#allocation3 + $0xd8] sm:$0xff] %vm517_vm8, %v1237_v47  ;;  %v1295_v7 = vld [vmem:[#allocation3 + $0xa8] sm:$0xff]  ;;  %11925 = vmatmul.mubr.msk.bf16.gmra.mrb[148].mxu1 %vm718_vm6, %v13739_v8  ;;  %v4302_v8 = vsel %vm14013_vm15, %v10613_v20, %v4301_v32  ;;  %11964 = vmatprep.mubr.msk.bf16.mxu0 %vm718_vm6, %v14177_v34  ;;  %v4317_v20 = vrot.slane %v4315_v15, 4  ;;  %v4179_v14 = vld [vmem:[#allocation2 + $0x68] sm:$0x1] }
 0x155   : > { %1544 = vst.msk [vmem:[#allocation3 + $0xa0] sm:$0xff] %vm517_vm8, %v1512_v42  ;;  %v1513_v57 = vadd.f32 %v14123_v58, %v1295_v7  ;;  %1267 = vst.msk [vmem:[#allocation3 + $0xc8] sm:$0xff] %vm517_vm8, %v1235_v55  ;;  %11928 = vmatprep.mubr.msk.bf16.mxu1 %vm718_vm6, %v13760_v4  ;;  %v14210_v1 = vld [vmem:[#allocation2 + $0x5c] sm:$0x1]  ;;  %v4305_v58 = vsel %vm14013_vm15, %v4303_v44, %v4304_v46  ;;  %v1022_v4 = vld [vmem:[#allocation3 + $0xf0] sm:$0xff]  ;;  %v4312_v32 = vsel %vm14013_vm15, %v4310_v48, %v4311_v62 }
 0x156   : > { %1547 = vst.msk [vmem:[#allocation3 + $0xb8] sm:$0xff] %vm517_vm8, %v1515_v3  ;;  %v4318_v53 = vrot.slane %v14210_v1, 5  ;;  %v11698_v56 = vpop.f32.mrb[44].mxu0  ;;  %v10616_v44 = vrot.slane %v14221_v60, 9  ;;  %v4329_v46 = vrot.slane %v14223_v18, 5  ;;  %v14243_v42 = vcombine.low %v4302_v8, %v4305_v58 }
 0x157   : > { %1545 = vst.msk [vmem:[#allocation3 + $0xa8] sm:$0xff] %vm517_vm8, %v1513_v57  ;;  %v11662_v16 = vpop.f32.mrb[44].mxu1  ;;  %v1477_v10 = vpop.f32.mrb[45].mxu0  ;;  %v14245_v25 = vcombine.low %v4309_v61, %v4312_v32  ;;  %v14247_v55 = vld [vmem:[#allocation2 + $0x7c] sm:$0xf]  ;;  %v4324_v7 = vrot.slane %v4322_v50, 4 }
 0x158   : > { %v1240_v43 = vadd.f32 %v11662_v16, %v1022_v4  ;;  %v1195_v11 = vpop.f32.mrb[45].mxu1  ;;  %v4325_v39 = vrot.slane %v4179_v14, 5  ;;  %v14256_v8 = vld [vmem:[#allocation2 + $0x6c] sm:$0xe]  ;;  %v4336_v60 = vrot.slane %v14247_v55, 5  ;;  %v1558_v16 = vld [vmem:[#allocation3 + $0x10] sm:$0xff]  ;;  %v4323_v32 = vsel %vm14013_vm15, %v10616_v44, %v4322_v50 }
 0x159   : > { %v1300_v6 = vld [vmem:[#allocation3 + $0xd0] sm:$0xff]  ;;  %v1238_v29 = vadd.f32 %v1195_v11, %v1020_v2  ;;  %v11663_v40 = vpop.f32.mrb[46].mxu1  ;;  %v14267_v4 = vld [vmem:[#allocation2 + $0x88] sm:$0xf]  ;;  %v1556_v2 = vld [vmem:[#allocation3] sm:$0xff] }
 0x15a   : > { %v1518_v49 = vadd.f32 %v14175_v52, %v1300_v6  ;;  %1272 = vst.msk [vmem:[#allocation3 + $0xf0] sm:$0xff] %vm517_vm8, %v1240_v43  ;;  %v1298_v63 = vld [vmem:[#allocation3 + $0xc0] sm:$0xff]  ;;  %v1241_v47 = vadd.f32 %v11663_v40, %v1023_v31  ;;  %v1198_v19 = vpop.f32.mrb[47].mxu1  ;;  %v11699_v52 = vpop.f32.mrb[46].mxu0  ;;  %v4326_v33 = vsel %vm14013_vm15, %v4324_v7, %v4325_v39  ;;  %v10617_v43 = vrot.slane %v14256_v8, 9  ;;  %v1559_v50 = vld [vmem:[#allocation3 + $0x18] sm:$0xff] }
 0x15b   : > { %v1516_v48 = vadd.f32 %v14184_v45, %v1298_v63  ;;  %1270 = vst.msk [vmem:[#allocation3 + $0xe0] sm:$0xff] %vm517_vm8, %v1238_v29  ;;  %v1301_v62 = vld [vmem:[#allocation3 + $0xd8] sm:$0xff]  ;;  %v1239_v3 = vadd.f32 %v1198_v19, %v1021_v17  ;;  %v1480_v1 = vpop.f32.mrb[47].mxu0  ;;  %v14258_v45 = vld [vmem:[#allocation2 + $0x74] sm:$0x1]  ;;  %11965 = vmatmul.mubr.msk.bf16.gmra.mrb[152].mxu0 %vm718_vm6, %v14243_v42  ;;  %v4343_v14 = vrot.slane %v14267_v4, 5  ;;  %v14299_v8 = vcombine.low %v4323_v32, %v4326_v33 }
 0x15c   : > { %1550 = vst.msk [vmem:[#allocation3 + $0xd0] sm:$0xff] %vm517_vm8, %v1518_v49  ;;  %v1519_v30 = vadd.f32 %v14191_v27, %v1301_v62  ;;  %1273 = vst.msk [vmem:[#allocation3 + $0xf8] sm:$0xff] %vm517_vm8, %v1241_v47  ;;  %v1299_v57 = vld [vmem:[#allocation3 + $0xc8] sm:$0xff]  ;;  %11929 = vmatmul.mubr.msk.bf16.gmra.mrb[152].mxu1 %vm718_vm6, %v13776_v36  ;;  %v4316_v36 = vsel %vm14013_vm15, %v10615_v5, %v4315_v15  ;;  %11968 = vmatprep.mubr.msk.bf16.mxu0 %vm718_vm6, %v14245_v25  ;;  %v4331_v15 = vrot.slane %v4329_v46, 4  ;;  %v4189_v33 = vld [vmem:[#allocation2 + $0x90] sm:$0xe] }
 0x15d   : > { %1548 = vst.msk [vmem:[#allocation3 + $0xc0] sm:$0xff] %vm517_vm8, %v1516_v48  ;;  %v1517_v58 = vadd.f32 %v1464_v9, %v1299_v57  ;;  %1271 = vst.msk [vmem:[#allocation3 + $0xe8] sm:$0xff] %vm517_vm8, %v1239_v3  ;;  %11932 = vmatprep.mubr.msk.bf16.mxu1 %vm718_vm6, %v13780_v24  ;;  %v14264_v27 = vld [vmem:[#allocation2 + $0x78] sm:$0xe]  ;;  %v4319_v9 = vsel %vm14013_vm15, %v4317_v20, %v4318_v53  ;;  %v4185_v24 = vld [vmem:[#allocation2 + $0x80] sm:$0x1] }
 0x15e   : > { %1551 = vst.msk [vmem:[#allocation3 + $0xd8] sm:$0xff] %vm517_vm8, %v1519_v30  ;;  %v4332_v20 = vrot.slane %v14258_v45, 5  ;;  %v10618_v53 = vrot.slane %v14264_v27, 9  ;;  %v11742_v40 = vpop.f32.mrb[48].mxu0  ;;  %v4338_v44 = vrot.slane %v4336_v60, 4  ;;  %v4339_v49 = vrot.slane %v4185_v24, 5 }
 0x15f   : > { %1549 = vst.msk [vmem:[#allocation3 + $0xc8] sm:$0xff] %vm517_vm8, %v1517_v58  ;;  %v11706_v61 = vpop.f32.mrb[48].mxu1  ;;  %v1557_v19 = vld [vmem:[#allocation3 + $0x8] sm:$0xff]  ;;  %v1929_v48 = vpop.f32.mrb[49].mxu0  ;;  %v14292_v62 = vcombine.low %v4316_v36, %v4319_v9  ;;  %v14294_v3 = vld [vmem:[#allocation2 + $0x84] sm:$0xe] }
 0x160   : > { %v1776_v5 = vadd.f32 %v11706_v61, %v1558_v16  ;;  %v1647_v11 = vpop.f32.mrb[49].mxu1  ;;  %v14297_v57 = vpop.f32.mrb[50].mxu0  ;;  %v4333_v36 = vsel %vm14013_vm15, %v4331_v15, %v4332_v20  ;;  %v4188_v9 = vld [vmem:[#allocation2 + $0x8c] sm:$0x1]  ;;  %v14320_v24 = vld [vmem:[#allocation2 + $0xe4] sm:$0xf]  ;;  %v4340_v18 = vsel %vm14013_vm15, %v4338_v44, %v4339_v49 }
 0x161   : > { %v1304_v6 = vld [vmem:[#allocation3 + $0xf0] sm:$0xff]  ;;  %v1774_v29 = vadd.f32 %v1647_v11, %v1556_v2  ;;  %v11707_v31 = vpop.f32.mrb[50].mxu1  ;;  %v14332_v16 = vld [vmem:[#allocation2 + $0xe8] sm:$0xf]  ;;  %v1560_v15 = vld [vmem:[#allocation3 + $0x20] sm:$0xff]  ;;  %v4346_v11 = vrot.slane %v4188_v9, 5 }
 0x162   : > { %v1522_v63 = vadd.f32 %v11698_v56, %v1304_v6  ;;  %v1302_v47 = vld [vmem:[#allocation3 + $0xe0] sm:$0xff]  ;;  %1808 = vst.msk [vmem:[#allocation3 + $0x10] sm:$0xff] %vm517_vm8, %v1776_v5  ;;  %v1777_v17 = vadd.f32 %v11707_v31, %v1559_v50  ;;  %v1650_v55 = vpop.f32.mrb[51].mxu1  ;;  %v1562_v61 = vld [vmem:[#allocation3 + $0x30] sm:$0xff]  ;;  %v4191_v20 = vld [vmem:[#allocation2 + $0x98] sm:$0x1] }
 0x163   : > { %v1520_v7 = vadd.f32 %v1477_v10, %v1302_v47  ;;  %v1305_v39 = vld [vmem:[#allocation3 + $0xf8] sm:$0xff]  ;;  %1806 = vst.msk [vmem:[#allocation3] sm:$0xff] %vm517_vm8, %v1774_v29  ;;  %v1775_v30 = vadd.f32 %v1650_v55, %v1557_v19  ;;  %v14301_v56 = vld [vmem:[#allocation2 + $0x94] sm:$0xf]  ;;  %v14307_v10 = vpop.f32.mrb[51].mxu0  ;;  %11969 = vmatmul.mubr.msk.bf16.gmra.mrb[156].mxu0 %vm718_vm6, %v14292_v62  ;;  %v3859_v47 = vshll.u32 %v14332_v16, 16 }
 0x164   : > { %1554 = vst.msk [vmem:[#allocation3 + $0xf0] sm:$0xff] %vm517_vm8, %v1522_v63  ;;  %v1523_v45 = vadd.f32 %v11699_v52, %v1305_v39  ;;  %v1303_v58 = vld [vmem:[#allocation3 + $0xe8] sm:$0xff]  ;;  %1809 = vst.msk [vmem:[#allocation3 + $0x18] sm:$0xff] %vm517_vm8, %v1777_v17  ;;  %11933 = vmatmul.mubr.msk.bf16.gmra.mrb[156].mxu1 %vm718_vm6, %v13792_v21  ;;  %v4330_v52 = vsel %vm14013_vm15, %v10617_v43, %v4329_v46  ;;  %v10619_v21 = vrot.slane %v14294_v3, 9  ;;  %v4345_v46 = vrot.slane %v4343_v14, 4  ;;  %v1563_v50 = vld [vmem:[#allocation3 + $0x38] sm:$0xff] }
 0x165   : > { %1552 = vst.msk [vmem:[#allocation3 + $0xe0] sm:$0xff] %vm517_vm8, %v1520_v7  ;;  %v1521_v27 = vadd.f32 %v1480_v1, %v1303_v58  ;;  %1807 = vst.msk [vmem:[#allocation3 + $0x8] sm:$0xff] %vm517_vm8, %v1775_v30  ;;  %11936 = vmatprep.mubr.msk.bf16.mxu1 %vm718_vm6, %v13808_v59  ;;  %v4337_v59 = vsel %vm14013_vm15, %v10618_v53, %v4336_v60  ;;  %v4350_v1 = vrot.slane %v14301_v56, 5  ;;  %11972 = vmatprep.mubr.msk.bf16.mxu0 %vm718_vm6, %v14299_v8  ;;  %v14337_v43 = vld [vmem:[#allocation2 + $0xa0] sm:$0xf]  ;;  %v1561_v3 = vld [vmem:[#allocation3 + $0x28] sm:$0xff] }
 0x166   : > { %1555 = vst.msk [vmem:[#allocation3 + $0xf8] sm:$0xff] %vm517_vm8, %v1523_v45  ;;  %v14339_v2 = vcombine.low %v4330_v52, %v4333_v36  ;;  %v3850_v53 = vshrl.u32 %v14320_v24, 16  ;;  %v14342_v44 = vpop.f32.mrb[52].mxu0  ;;  %v14344_v49 = vcombine.low %v4337_v59, %v4340_v18  ;;  %v3853_v63 = vshll.u32 %v14320_v24, 16  ;;  %v14357_v24 = vld [vmem:[#allocation2 + $0x9c] sm:$0xe] }
 0x167   : > { %1553 = vst.msk [vmem:[#allocation3 + $0xe8] sm:$0xff] %vm517_vm8, %v1521_v27  ;;  %v11710_v32 = vpop.f32.mrb[52].mxu1  ;;  %v14349_v39 = vpop.f32.mrb[53].mxu0  ;;  %v10620_v30 = vrot.slane %v4189_v33, 9  ;;  %v4357_v45 = vrot.slane %v14337_v43, 5  ;;  %v4353_v9 = vrot.slane %v4191_v20, 5 }
 0x168   : > { %v1780_v60 = vadd.f32 %v11710_v32, %v1562_v61  ;;  %v1663_v5 = vpop.f32.mrb[53].mxu1  ;;  %v14353_v36 = vpop.f32.mrb[54].mxu0  ;;  %v14366_v61 = vld [vmem:[#allocation2 + $0xac] sm:$0xf]  ;;  %v3863_v33 = vshrl.u32 %v14332_v16, 16  ;;  %v14388_v4 = vrot.slane %v3859_v47, 5 }
 0x169   : > { %v1840_v6 = vld [vmem:[#allocation3 + $0x10] sm:$0xff]  ;;  %v1778_v29 = vadd.f32 %v1663_v5, %v1560_v15  ;;  %v11711_v31 = vpop.f32.mrb[54].mxu1  ;;  %v14384_v15 = vrot.slane %v3850_v53, 4  ;;  %v4359_v5 = vrot.slane %v4357_v45, 4  ;;  %v4364_v20 = vrot.slane %v14366_v61, 5  ;;  %v1567_v47 = vld [vmem:[#allocation3 + $0x58] sm:$0xff] }
 0x16a   : > { %v2058_v17 = vadd.f32 %v11742_v40, %v1840_v6  ;;  %1812 = vst.msk [vmem:[#allocation3 + $0x30] sm:$0xff] %vm517_vm8, %v1780_v60  ;;  %v1838_v19 = vld [vmem:[#allocation3] sm:$0xff]  ;;  %v1781_v55 = vadd.f32 %v11711_v31, %v1563_v50  ;;  %v1666_v7 = vpop.f32.mrb[55].mxu1  ;;  %v4352_v40 = vrot.slane %v4350_v1, 4  ;;  %v10621_v60 = vrot.slane %v14357_v24, 9 }
 0x16b   : > { %v2056_v58 = vadd.f32 %v1929_v48, %v1838_v19  ;;  %1810 = vst.msk [vmem:[#allocation3 + $0x20] sm:$0xff] %vm517_vm8, %v1778_v29  ;;  %v1841_v27 = vld [vmem:[#allocation3 + $0x18] sm:$0xff]  ;;  %v1779_v52 = vadd.f32 %v1666_v7, %v1561_v3  ;;  %v14364_v48 = vpop.f32.mrb[55].mxu0  ;;  %11973 = vmatmul.mubr.msk.bf16.gmra.mrb[160].mxu0 %vm718_vm6, %v14339_v2  ;;  %v1564_v6 = vld [vmem:[#allocation3 + $0x40] sm:$0xff]  ;;  %v3865_v3 = vrot.slane %v3863_v33, 4 }
 0x16c   : > { %2090 = vst.msk [vmem:[#allocation3 + $0x10] sm:$0xff] %vm517_vm8, %v2058_v17  ;;  %v2059_v59 = vadd.f32 %v14297_v57, %v1841_v27  ;;  %1813 = vst.msk [vmem:[#allocation3 + $0x38] sm:$0xff] %vm517_vm8, %v1781_v55  ;;  %v1839_v18 = vld [vmem:[#allocation3 + $0x8] sm:$0xff]  ;;  %11937 = vmatmul.mubr.msk.bf16.gmra.mrb[160].mxu1 %vm718_vm6, %v13819_v54  ;;  %v4344_v57 = vsel %vm14013_vm15, %v10619_v21, %v4343_v14  ;;  %v4347_v54 = vsel %vm14013_vm15, %v4345_v46, %v4346_v11  ;;  %v1566_v14 = vld [vmem:[#allocation3 + $0x50] sm:$0xff] }
 0x16d   : > { %2088 = vst.msk [vmem:[#allocation3] sm:$0xff] %vm517_vm8, %v2056_v58  ;;  %v2057_v32 = vadd.f32 %v14307_v10, %v1839_v18  ;;  %1811 = vst.msk [vmem:[#allocation3 + $0x28] sm:$0xff] %vm517_vm8, %v1779_v52  ;;  %11940 = vmatprep.mubr.msk.bf16.mxu1 %vm718_vm6, %v13830_v23  ;;  %v4194_v10 = vld [vmem:[#allocation2 + $0xa4] sm:$0x1]  ;;  %v14386_v23 = vrot.slane %v3853_v63, 5  ;;  %11976 = vmatprep.mubr.msk.bf16.mxu0 %vm718_vm6, %v14344_v49  ;;  %v4351_v46 = vsel %vm14013_vm15, %v10620_v30, %v4350_v1  ;;  %v1565_v27 = vld [vmem:[#allocation3 + $0x48] sm:$0xff] }
 0x16e   : > { %2091 = vst.msk [vmem:[#allocation3 + $0x18] sm:$0xff] %vm517_vm8, %v2059_v59  ;;  %v4354_v16 = vsel %vm14013_vm15, %v4352_v40, %v4353_v9  ;;  %v4195_v11 = vld [vmem:[#allocation2 + $0xa8] sm:$0xe]  ;;  %v14402_v50 = vld [vmem:[#allocation2 + $0xec] sm:$0x1]  ;;  %v11750_v1 = vpop.f32.mrb[56].mxu0  ;;  %v14404_v19 = vcombine.low %v4344_v57, %v4347_v54 }
 0x16f   : > { %2089 = vst.msk [vmem:[#allocation3 + $0x8] sm:$0xff] %vm517_vm8, %v2057_v32  ;;  %v11714_v21 = vpop.f32.mrb[56].mxu1  ;;  %v4197_v31 = vld [vmem:[#allocation2 + $0xb0] sm:$0x1]  ;;  %v4360_v55 = vrot.slane %v4194_v10, 5  ;;  %v1961_v40 = vpop.f32.mrb[57].mxu0  ;;  %v14408_v9 = vcombine.low %v4351_v46, %v4354_v16 }
 0x170   : > { %v1784_v53 = vadd.f32 %v11714_v21, %v1566_v14  ;;  %v1679_v29 = vpop.f32.mrb[57].mxu1  ;;  %v10622_v24 = vrot.slane %v4195_v11, 9  ;;  %v11751_v32 = vpop.f32.mrb[58].mxu0  ;;  %v4366_v57 = vrot.slane %v4364_v20, 4  ;;  %v4367_v54 = vrot.slane %v4197_v31, 5  ;;  %v1571_v31 = vld [vmem:[#allocation3 + $0x78] sm:$0xff] }
 0x171   : > { %v1844_v63 = vld [vmem:[#allocation3 + $0x30] sm:$0xff]  ;;  %v1782_v56 = vadd.f32 %v1679_v29, %v1564_v6  ;;  %v11715_v17 = vpop.f32.mrb[58].mxu1  ;;  %v1964_v10 = vpop.f32.mrb[59].mxu0  ;;  %v14419_v14 = vld [vmem:[#allocation2 + $0xb8] sm:$0xf]  ;;  %v3869_v46 = vshll.u32 %v14402_v50, 16 }
 0x172   : > { %v2062_v7 = vadd.f32 %v14342_v44, %v1844_v63  ;;  %1816 = vst.msk [vmem:[#allocation3 + $0x50] sm:$0xff] %vm517_vm8, %v1784_v53  ;;  %v1842_v30 = vld [vmem:[#allocation3 + $0x20] sm:$0xff]  ;;  %v1785_v58 = vadd.f32 %v11715_v17, %v1567_v47  ;;  %v1682_v52 = vpop.f32.mrb[59].mxu1  ;;  %v4368_v16 = vsel %vm14013_vm15, %v4366_v57, %v4367_v54  ;;  %v4371_v11 = vrot.slane %v14419_v14, 5  ;;  %v4200_v6 = vld [vmem:[#allocation2 + $0xbc] sm:$0x1] }
 0x173   : > { %v2060_v59 = vadd.f32 %v14349_v39, %v1842_v30  ;;  %1814 = vst.msk [vmem:[#allocation3 + $0x40] sm:$0xff] %vm517_vm8, %v1782_v56  ;;  %v1845_v18 = vld [vmem:[#allocation3 + $0x38] sm:$0xff]  ;;  %v1783_v61 = vadd.f32 %v1682_v52, %v1565_v27  ;;  %v3856_v39 = vor.u32 %v14386_v23, %v14384_v15  ;;  %11977 = vmatmul.mubr.msk.bf16.gmra.mrb[164].mxu0 %vm718_vm6, %v14404_v19  ;;  %v4198_v43 = vld [vmem:[#allocation2 + $0xb4] sm:$0xe]  ;;  %v1569_v30 = vld [vmem:[#allocation3 + $0x68] sm:$0xff] }
 0x174   : > { %2094 = vst.msk [vmem:[#allocation3 + $0x30] sm:$0xff] %vm517_vm8, %v2062_v7  ;;  %v2063_v44 = vadd.f32 %v14353_v36, %v1845_v18  ;;  %1817 = vst.msk [vmem:[#allocation3 + $0x58] sm:$0xff] %vm517_vm8, %v1785_v58  ;;  %v1843_v33 = vld [vmem:[#allocation3 + $0x28] sm:$0xff]  ;;  %11941 = vmatmul.mubr.msk.bf16.gmra.mrb[164].mxu1 %vm718_vm6, %v13843_v0  ;;  %v3866_v36 = vor.u32 %v3865_v3, %v14388_v4  ;;  %v4358_v0 = vsel %vm14013_vm15, %v10621_v60, %v4357_v45  ;;  %v1568_v60 = vld [vmem:[#allocation3 + $0x60] sm:$0xff] }
 0x175   : > { %2092 = vst.msk [vmem:[#allocation3 + $0x20] sm:$0xff] %vm517_vm8, %v2060_v59  ;;  %v2061_v21 = vadd.f32 %v14364_v48, %v1843_v33  ;;  %1815 = vst.msk [vmem:[#allocation3 + $0x48] sm:$0xff] %vm517_vm8, %v1783_v61  ;;  %11944 = vmatprep.mubr.msk.bf16.mxu1 %vm718_vm6, %v13855_v13  ;;  %v4361_v48 = vsel %vm14013_vm15, %v4359_v5, %v4360_v55  ;;  %v1570_v13 = vld [vmem:[#allocation3 + $0x70] sm:$0xff]  ;;  %11980 = vmatprep.mubr.msk.bf16.mxu0 %vm718_vm6, %v14408_v9  ;;  %v3857_v5 = vrot.slane %v3856_v39, 4 }
 0x176   : > { %2095 = vst.msk [vmem:[#allocation3 + $0x38] sm:$0xff] %vm517_vm8, %v2063_v44  ;;  %v4365_v23 = vsel %vm14013_vm15, %v10622_v24, %v4364_v20  ;;  %v11754_v56 = vpop.f32.mrb[60].mxu0  ;;  %v14445_v47 = vcombine.low %v4358_v0, %v4361_v48  ;;  %v3867_v17 = vrot.slane %v3866_v36, 4  ;;  %v3871_v20 = vrot.slane %v3869_v46, 5 }
 0x177   : > { %2093 = vst.msk [vmem:[#allocation3 + $0x28] sm:$0xff] %vm517_vm8, %v2061_v21  ;;  %v11718_v15 = vpop.f32.mrb[60].mxu1  ;;  %v1977_v27 = vpop.f32.mrb[61].mxu0  ;;  %v14448_v52 = vcombine.low %v4365_v23, %v4368_v16  ;;  %v10623_v24 = vrot.slane %v4198_v43, 9  ;;  %v4373_v54 = vrot.slane %v4371_v11, 4  ;;  %v4374_v44 = vrot.slane %v4200_v6, 5 }
 0x178   : > { %v1788_v45 = vadd.f32 %v11718_v15, %v1570_v13  ;;  %v1695_v53 = vpop.f32.mrb[61].mxu1  ;;  %v11755_v57 = vpop.f32.mrb[62].mxu0  ;;  %v3862_v14 = vsel %vm13496_vm11, %v3857_v5, %v14388_v4  ;;  %v1572_v21 = vld [vmem:[#allocation3 + $0x80] sm:$0xff]  ;;  %v1575_v13 = vld [vmem:[#allocation3 + $0x98] sm:$0xff] }
 0x179   : > { %v1848_v29 = vld [vmem:[#allocation3 + $0x50] sm:$0xff]  ;;  %v1786_v50 = vadd.f32 %v1695_v53, %v1568_v60  ;;  %v11719_v63 = vpop.f32.mrb[62].mxu1  ;;  %v1980_v39 = vpop.f32.mrb[63].mxu0  ;;  %v4375_v4 = vsel %vm14013_vm15, %v4373_v54, %v4374_v44  ;;  %v1573_v60 = vld [vmem:[#allocation3 + $0x88] sm:$0xff] }
 0x17a   : > { %v2066_v55 = vadd.f32 %v11750_v1, %v1848_v29  ;;  %1820 = vst.msk [vmem:[#allocation3 + $0x70] sm:$0xff] %vm517_vm8, %v1788_v45  ;;  %v1846_v3 = vld [vmem:[#allocation3 + $0x40] sm:$0xff]  ;;  %v1789_v7 = vadd.f32 %v11719_v63, %v1571_v31  ;;  %v1698_v58 = vpop.f32.mrb[63].mxu1  ;;  %v1577_v44 = vld [vmem:[#allocation3 + $0xa8] sm:$0xff] }
 0x17b   : > { %v2064_v59 = vadd.f32 %v1961_v40, %v1846_v3  ;;  %1818 = vst.msk [vmem:[#allocation3 + $0x60] sm:$0xff] %vm517_vm8, %v1786_v50  ;;  %v1849_v18 = vld [vmem:[#allocation3 + $0x58] sm:$0xff]  ;;  %v1787_v61 = vadd.f32 %v1698_v58, %v1569_v30  ;;  %11981 = vmatmul.mubr.msk.bf16.gmra.mrb[168].mxu0 %vm718_vm6, %v14445_v47  ;;  %v1576_v30 = vld [vmem:[#allocation3 + $0xa0] sm:$0xff] }
 0x17c   : > { %2098 = vst.msk [vmem:[#allocation3 + $0x50] sm:$0xff] %vm517_vm8, %v2066_v55  ;;  %v2067_v1 = vadd.f32 %v11751_v32, %v1849_v18  ;;  %1821 = vst.msk [vmem:[#allocation3 + $0x78] sm:$0xff] %vm517_vm8, %v1789_v7  ;;  %v1847_v33 = vld [vmem:[#allocation3 + $0x48] sm:$0xff]  ;;  %11945 = vmatmul.mubr.msk.bf16.gmra.mrb[168].mxu1 %vm718_vm6, %v14033_v51  ;;  %v3872_v32 = vsel %vm13496_vm11, %v3867_v17, %v3871_v20  ;;  %v1574_v51 = vld [vmem:[#allocation3 + $0x90] sm:$0xff]  ;;  %11984 = vmatprep.mubr.msk.bf16.mxu0 %vm718_vm6, %v14448_v52 }
 0x17d   : > { %2096 = vst.msk [vmem:[#allocation3 + $0x40] sm:$0xff] %vm517_vm8, %v2064_v59  ;;  %v2065_v40 = vadd.f32 %v1964_v10, %v1847_v33  ;;  %1819 = vst.msk [vmem:[#allocation3 + $0x68] sm:$0xff] %vm517_vm8, %v1787_v61  ;;  %11948 = vmatprep.mubr.msk.bf16.mxu1 %vm718_vm6, %v14063_v41  ;;  %v4372_v41 = vsel %vm14013_vm15, %v10623_v24, %v4371_v11  ;;  %v10589_v46 = vcombine.low %v3862_v14, %v3872_v32  ;;  %v1578_v55 = vld [vmem:[#allocation3 + $0xb0] sm:$0xff]  ;;  %v1579_v59 = vld [vmem:[#allocation3 + $0xb8] sm:$0xff] }
 0x17e   : > { %2099 = vst.msk [vmem:[#allocation3 + $0x58] sm:$0xff] %vm517_vm8, %v2067_v1  ;;  %v11758_v23 = vpop.f32.mrb[64].mxu0  ;;  %v14475_v5 = vcombine.low %v4372_v41, %v4375_v4 }
 0x17f   : > { %2097 = vst.msk [vmem:[#allocation3 + $0x48] sm:$0xff] %vm517_vm8, %v2065_v40  ;;  %v11722_v10 = vpop.f32.mrb[64].mxu1  ;;  %v1993_v11 = vpop.f32.mrb[65].mxu0 }
 0x180   : > { %v1792_v37 = vadd.f32 %v11722_v10, %v1574_v51  ;;  %v1711_v36 = vpop.f32.mrb[65].mxu1  ;;  %v11759_v31 = vpop.f32.mrb[66].mxu0 }
 0x181   : > { %v1852_v0 = vld [vmem:[#allocation3 + $0x70] sm:$0xff]  ;;  %v1790_v48 = vadd.f32 %v1711_v36, %v1572_v21  ;;  %v11723_v15 = vpop.f32.mrb[66].mxu1  ;;  %v1996_v17 = vpop.f32.mrb[67].mxu0 }
 0x182   : > { %v2070_v16 = vadd.f32 %v11754_v56, %v1852_v0  ;;  %1824 = vst.msk [vmem:[#allocation3 + $0x90] sm:$0xff] %vm517_vm8, %v1792_v37  ;;  %v1850_v43 = vld [vmem:[#allocation3 + $0x60] sm:$0xff]  ;;  %v1793_v45 = vadd.f32 %v11723_v15, %v1575_v13  ;;  %v1714_v53 = vpop.f32.mrb[67].mxu1  ;;  %v12604_v37 = vld [vmem:[%s17219_s1 + $0x168] sm:$0xff]   ;;  %v1582_v36 = vld [vmem:[#allocation3 + $0xd0] sm:$0xff] }
 0x183   : > { %v2068_v6 = vadd.f32 %v1977_v27, %v1850_v43  ;;  %1822 = vst.msk [vmem:[#allocation3 + $0x80] sm:$0xff] %vm517_vm8, %v1790_v48  ;;  %v1853_v29 = vld [vmem:[#allocation3 + $0x78] sm:$0xff]  ;;  %v1791_v50 = vadd.f32 %v1714_v53, %v1573_v60  ;;  %11985 = vmatmul.mubr.msk.bf16.gmra.mrb[172].mxu0 %vm718_vm6, %v14475_v5  ;;  %v1580_v0 = vld [vmem:[#allocation3 + $0xc0] sm:$0xff]  ;;  %v14523_v13 = vld [vmem:[%s17219_s1 + $0x80] sm:$0xff]  }
 0x184   : > { %2102 = vst.msk [vmem:[#allocation3 + $0x70] sm:$0xff] %vm517_vm8, %v2070_v16  ;;  %v2071_v63 = vadd.f32 %v11755_v57, %v1853_v29  ;;  %1825 = vst.msk [vmem:[#allocation3 + $0x98] sm:$0xff] %vm517_vm8, %v1793_v45  ;;  %v1851_v56 = vld [vmem:[#allocation3 + $0x68] sm:$0xff]  ;;  %11949 = vmatmul.mubr.msk.bf16.gmra.mrb[172].mxu1 %vm718_vm6, %v10589_v46  ;;  %12028 = vmatprep.mubr.msk.bf16.mxu0 %vm718_vm6, %v14115_v12  ;;  %v1583_v16 = vld [vmem:[#allocation3 + $0xd8] sm:$0xff] }
 0x185   : > { %2100 = vst.msk [vmem:[#allocation3 + $0x60] sm:$0xff] %vm517_vm8, %v2068_v6  ;;  %v2069_v20 = vadd.f32 %v1980_v39, %v1851_v56  ;;  %1823 = vst.msk [vmem:[#allocation3 + $0x88] sm:$0xff] %vm517_vm8, %v1791_v50  ;;  %11992 = vmatprep.mubr.msk.bf16.mxu1 %vm718_vm6, %v14107_v28  ;;  %v12603_v39 = vld [vmem:[%s17219_s1 + $0x118] sm:$0xff]  }
 0x186   : > { %2103 = vst.msk [vmem:[#allocation3 + $0x78] sm:$0xff] %vm517_vm8, %v2071_v63  ;;  %v11762_v28 = vpop.f32.mrb[68].mxu0 }
 0x187   : > { %2101 = vst.msk [vmem:[#allocation3 + $0x68] sm:$0xff] %vm517_vm8, %v2069_v20  ;;  %v11726_v3 = vpop.f32.mrb[68].mxu1  ;;  %v2009_v33 = vpop.f32.mrb[69].mxu0 }
 0x188   : > { %v1796_v7 = vadd.f32 %v11726_v3, %v1578_v55  ;;  %v1727_v58 = vpop.f32.mrb[69].mxu1  ;;  %v11763_v51 = vpop.f32.mrb[70].mxu0 }
 0x189   : > { %v1856_v27 = vld [vmem:[#allocation3 + $0x90] sm:$0xff]  ;;  %v1794_v24 = vadd.f32 %v1727_v58, %v1576_v30  ;;  %v11727_v18 = vpop.f32.mrb[70].mxu1  ;;  %v2012_v4 = vpop.f32.mrb[71].mxu0 }
 0x18a   : > { %v2074_v61 = vadd.f32 %v11758_v23, %v1856_v27  ;;  %1828 = vst.msk [vmem:[#allocation3 + $0xb0] sm:$0xff] %vm517_vm8, %v1796_v7  ;;  %v1854_v57 = vld [vmem:[#allocation3 + $0x80] sm:$0xff]  ;;  %v1797_v54 = vadd.f32 %v11727_v18, %v1579_v59  ;;  %v1730_v1 = vpop.f32.mrb[71].mxu1  ;;  %v1586_v7 = vld [vmem:[#allocation3 + $0xf0] sm:$0xff] }
 0x18b   : > { %v2072_v40 = vadd.f32 %v1993_v11, %v1854_v57  ;;  %1826 = vst.msk [vmem:[#allocation3 + $0xa0] sm:$0xff] %vm517_vm8, %v1794_v24  ;;  %v1857_v14 = vld [vmem:[#allocation3 + $0x98] sm:$0xff]  ;;  %v1795_v32 = vadd.f32 %v1730_v1, %v1577_v44  ;;  %12029 = vmatmul.mubr.msk.bf16.vlgmr.msra.gmra.mrb[176].mxu0 %vm718_vm6, %v14167_v35  ;;  %v1581_v11 = vld [vmem:[#allocation3 + $0xc8] sm:$0xff]  ;;  %v1584_v27 = vld [vmem:[#allocation3 + $0xe0] sm:$0xff] }
 0x18c   : > { %2106 = vst.msk [vmem:[#allocation3 + $0x90] sm:$0xff] %vm517_vm8, %v2074_v61  ;;  %v2075_v10 = vadd.f32 %v11759_v31, %v1857_v14  ;;  %1829 = vst.msk [vmem:[#allocation3 + $0xb8] sm:$0xff] %vm517_vm8, %v1797_v54  ;;  %v1855_v41 = vld [vmem:[#allocation3 + $0x88] sm:$0xff]  ;;  %11993 = vmatmul.mubr.msk.bf16.vlgmr.msra.gmra.mrb[176].mxu1 %vm718_vm6, %v14115_v12  ;;  %v14514_v12 = vld [vmem:[%s17219_s1 + $0x30] sm:$0xff]   ;;  %12097 = vmatpush3.bf16.msra.mxu0 %v14173_v38 }
 0x18d   : > { %2104 = vst.msk [vmem:[#allocation3 + $0x80] sm:$0xff] %vm517_vm8, %v2072_v40  ;;  %v2073_v21 = vadd.f32 %v1996_v17, %v1855_v41  ;;  %1827 = vst.msk [vmem:[#allocation3 + $0xa8] sm:$0xff] %vm517_vm8, %v1795_v32  ;;  %12061 = vmatpush3.bf16.msra.mxu1 %v14157_v22  ;;  %11996 = vmatprep.mubr.msk.bf16.mxu1 %vm718_vm6, %v14167_v35 }
 0x18e   : > { %2107 = vst.msk [vmem:[#allocation3 + $0x98] sm:$0xff] %vm517_vm8, %v2075_v10  ;;  %12062 = vmatprep.subr.bf16.mxu1 %v12603_v39  ;;  %12032 = vmatprep.mubr.msk.bf16.mxu0 %vm718_vm6, %v14177_v34  ;;  %v11766_v45 = vpop.f32.mrb[72].mxu0 }
 0x18f   : > { %2105 = vst.msk [vmem:[#allocation3 + $0x88] sm:$0xff] %vm517_vm8, %v2073_v21  ;;  %v11730_v46 = vpop.f32.mrb[72].mxu1  ;;  %12098 = vmatprep.subr.bf16.mxu0 %v12604_v37  ;;  %v2025_v29 = vpop.f32.mrb[73].mxu0 }
 0x190   : > { %v1800_v22 = vadd.f32 %v11730_v46, %v1582_v36  ;;  %v1743_v48 = vpop.f32.mrb[73].mxu1  ;;  %v11767_v56 = vpop.f32.mrb[74].mxu0  ;;  %12099 = vmatpush3.bf16.msra.mxu0 %v12604_v37  ;;  %v2569_v36 = vld [vmem:[#allocation3 + $0x10] sm:$0xff] }
 0x191   : > { %v1860_v15 = vld [vmem:[#allocation3 + $0xb0] sm:$0xff]  ;;  %v1798_v23 = vadd.f32 %v1743_v48, %v1580_v0  ;;  %v11731_v43 = vpop.f32.mrb[74].mxu1  ;;  %12063 = vmatpush3.bf16.msra.mxu1 %v12603_v39  ;;  %v2028_v55 = vpop.f32.mrb[75].mxu0  ;;  %12168 = vmatprep.subr.bf16.mxu0 %v14523_v13  ;;  %v2567_v0 = vld [vmem:[#allocation3] sm:$0xff] }
 0x192   : > { %v2078_v60 = vadd.f32 %v11762_v28, %v1860_v15  ;;  %1832 = vst.msk [vmem:[#allocation3 + $0xd0] sm:$0xff] %vm517_vm8, %v1800_v22  ;;  %v1858_v38 = vld [vmem:[#allocation3 + $0xa0] sm:$0xff]  ;;  %v1801_v53 = vadd.f32 %v11731_v43, %v1583_v16  ;;  %v1746_v6 = vpop.f32.mrb[75].mxu1  ;;  %12132 = vmatprep.subr.bf16.mxu1 %v14514_v12  ;;  %v1587_v28 = vld [vmem:[#allocation3 + $0xf8] sm:$0xff] }
 0x193   : > { %v2076_v50 = vadd.f32 %v2009_v33, %v1858_v38  ;;  %1830 = vst.msk [vmem:[#allocation3 + $0xc0] sm:$0xff] %vm517_vm8, %v1798_v23  ;;  %v1861_v31 = vld [vmem:[#allocation3 + $0xb8] sm:$0xff]  ;;  %v1799_v63 = vadd.f32 %v1746_v6, %v1581_v11  ;;  %12033 = vmatmul.mubr.msk.bf16.gmra.mrb[180].mxu0 %vm718_vm6, %v14243_v42  ;;  %v1585_v33 = vld [vmem:[#allocation3 + $0xe8] sm:$0xff] }
 0x194   : > { %2110 = vst.msk [vmem:[#allocation3 + $0xb0] sm:$0xff] %vm517_vm8, %v2078_v60  ;;  %v2079_v17 = vadd.f32 %v11763_v51, %v1861_v31  ;;  %1833 = vst.msk [vmem:[#allocation3 + $0xd8] sm:$0xff] %vm517_vm8, %v1801_v53  ;;  %v1859_v20 = vld [vmem:[#allocation3 + $0xa8] sm:$0xff]  ;;  %11997 = vmatmul.mubr.msk.bf16.gmra.mrb[180].mxu1 %vm718_vm6, %v14177_v34  ;;  %12036 = vmatprep.mubr.msk.bf16.mxu0 %vm718_vm6, %v14245_v25  ;;  %v2570_v16 = vld [vmem:[#allocation3 + $0x18] sm:$0xff] }
 0x195   : > { %2108 = vst.msk [vmem:[#allocation3 + $0xa0] sm:$0xff] %vm517_vm8, %v2076_v50  ;;  %v2077_v3 = vadd.f32 %v2012_v4, %v1859_v20  ;;  %1831 = vst.msk [vmem:[#allocation3 + $0xc8] sm:$0xff] %vm517_vm8, %v1799_v63  ;;  %12000 = vmatprep.mubr.msk.bf16.mxu1 %vm718_vm6, %v14243_v42  ;;  %v2568_v11 = vld [vmem:[#allocation3 + $0x8] sm:$0xff] }
 0x196   : > { %2111 = vst.msk [vmem:[#allocation3 + $0xb8] sm:$0xff] %vm517_vm8, %v2079_v17  ;;  %v11770_v57 = vpop.f32.mrb[76].mxu0 }
 0x197   : > { %2109 = vst.msk [vmem:[#allocation3 + $0xa8] sm:$0xff] %vm517_vm8, %v2077_v3  ;;  %v11734_v30 = vpop.f32.mrb[76].mxu1  ;;  %v2041_v40 = vpop.f32.mrb[77].mxu0 }
 0x198   : > { %v1804_v58 = vadd.f32 %v11734_v30, %v1586_v7  ;;  %v1759_v24 = vpop.f32.mrb[77].mxu1  ;;  %v11771_v10 = vpop.f32.mrb[78].mxu0  ;;  %v2573_v7 = vld [vmem:[#allocation3 + $0x30] sm:$0xff] }
 0x199   : > { %v1864_v59 = vld [vmem:[#allocation3 + $0xd0] sm:$0xff]  ;;  %v1802_v18 = vadd.f32 %v1759_v24, %v1584_v27  ;;  %v11735_v61 = vpop.f32.mrb[78].mxu1  ;;  %v2044_v37 = vpop.f32.mrb[79].mxu0  ;;  %v2571_v27 = vld [vmem:[#allocation3 + $0x20] sm:$0xff] }
 0x19a   : > { %v2082_v54 = vadd.f32 %v11766_v45, %v1864_v59  ;;  %1836 = vst.msk [vmem:[#allocation3 + $0xf0] sm:$0xff] %vm517_vm8, %v1804_v58  ;;  %v1862_v44 = vld [vmem:[#allocation3 + $0xc0] sm:$0xff]  ;;  %v1805_v1 = vadd.f32 %v11735_v61, %v1587_v28  ;;  %v1762_v39 = vpop.f32.mrb[79].mxu1  ;;  %v2574_v28 = vld [vmem:[#allocation3 + $0x38] sm:$0xff] }
 0x19b   : > { %v2080_v14 = vadd.f32 %v2025_v29, %v1862_v44  ;;  %1834 = vst.msk [vmem:[#allocation3 + $0xe0] sm:$0xff] %vm517_vm8, %v1802_v18  ;;  %v1865_v32 = vld [vmem:[#allocation3 + $0xd8] sm:$0xff]  ;;  %v1803_v51 = vadd.f32 %v1762_v39, %v1585_v33  ;;  %12037 = vmatmul.mubr.msk.bf16.gmra.mrb[184].mxu0 %vm718_vm6, %v14292_v62  ;;  %v2572_v33 = vld [vmem:[#allocation3 + $0x28] sm:$0xff] }
 0x19c   : > { %2114 = vst.msk [vmem:[#allocation3 + $0xd0] sm:$0xff] %vm517_vm8, %v2082_v54  ;;  %v2083_v41 = vadd.f32 %v11767_v56, %v1865_v32  ;;  %1837 = vst.msk [vmem:[#allocation3 + $0xf8] sm:$0xff] %vm517_vm8, %v1805_v1  ;;  %v1863_v4 = vld [vmem:[#allocation3 + $0xc8] sm:$0xff]  ;;  %12001 = vmatmul.mubr.msk.bf16.gmra.mrb[184].mxu1 %vm718_vm6, %v14245_v25  ;;  %12040 = vmatprep.mubr.msk.bf16.mxu0 %vm718_vm6, %v14299_v8 }
 0x19d   : > { %2112 = vst.msk [vmem:[#allocation3 + $0xc0] sm:$0xff] %vm517_vm8, %v2080_v14  ;;  %v2081_v21 = vadd.f32 %v2028_v55, %v1863_v4  ;;  %1835 = vst.msk [vmem:[#allocation3 + $0xe8] sm:$0xff] %vm517_vm8, %v1803_v51  ;;  %12004 = vmatprep.mubr.msk.bf16.mxu1 %vm718_vm6, %v14292_v62 }
 0x19e   : > { %2115 = vst.msk [vmem:[#allocation3 + $0xd8] sm:$0xff] %vm517_vm8, %v2083_v41  ;;  %v11814_v45 = vpop.f32.mrb[80].mxu0 }
 0x19f   : > { %2113 = vst.msk [vmem:[#allocation3 + $0xc8] sm:$0xff] %vm517_vm8, %v2081_v21  ;;  %v11778_v46 = vpop.f32.mrb[80].mxu1  ;;  %v3050_v29 = vpop.f32.mrb[81].mxu0 }
 0x1a0   : > { %v2875_v22 = vadd.f32 %v11778_v46, %v2569_v36  ;;  %v2746_v48 = vpop.f32.mrb[81].mxu1  ;;  %v11815_v56 = vpop.f32.mrb[82].mxu0  ;;  %v4202_v36 = vld [vmem:[#allocation2 + $0xc4] sm:$0xf] }
 0x1a1   : > { %v1868_v15 = vld [vmem:[#allocation3 + $0xf0] sm:$0xff]  ;;  %v2873_v23 = vadd.f32 %v2746_v48, %v2567_v0  ;;  %v11779_v43 = vpop.f32.mrb[82].mxu1  ;;  %v3053_v55 = vpop.f32.mrb[83].mxu0  ;;  %v2575_v48 = vld [vmem:[#allocation3 + $0x40] sm:$0xff] }
 0x1a2   : > { %v2086_v60 = vadd.f32 %v11770_v57, %v1868_v15  ;;  %v1866_v38 = vld [vmem:[#allocation3 + $0xe0] sm:$0xff]  ;;  %2907 = vst.msk [vmem:[#allocation3 + $0x10] sm:$0xff] %vm517_vm8, %v2875_v22  ;;  %v2876_v53 = vadd.f32 %v11779_v43, %v2570_v16  ;;  %v2749_v6 = vpop.f32.mrb[83].mxu1  ;;  %v2577_v46 = vld [vmem:[#allocation3 + $0x50] sm:$0xff]  ;;  %v2578_v43 = vld [vmem:[#allocation3 + $0x58] sm:$0xff] }
 0x1a3   : > { %v2084_v50 = vadd.f32 %v2041_v40, %v1866_v38  ;;  %v1869_v31 = vld [vmem:[#allocation3 + $0xf8] sm:$0xff]  ;;  %2905 = vst.msk [vmem:[#allocation3] sm:$0xff] %vm517_vm8, %v2873_v23  ;;  %v2874_v63 = vadd.f32 %v2749_v6, %v2568_v11  ;;  %12041 = vmatmul.mubr.msk.bf16.gmra.mrb[188].mxu0 %vm718_vm6, %v14339_v2  ;;  %v4751_v38 = vrot.slane %v4202_v36, 5 }
 0x1a4   : > { %2118 = vst.msk [vmem:[#allocation3 + $0xf0] sm:$0xff] %vm517_vm8, %v2086_v60  ;;  %v2087_v17 = vadd.f32 %v11771_v10, %v1869_v31  ;;  %v1867_v20 = vld [vmem:[#allocation3 + $0xe8] sm:$0xff]  ;;  %2908 = vst.msk [vmem:[#allocation3 + $0x18] sm:$0xff] %vm517_vm8, %v2876_v53  ;;  %12005 = vmatmul.mubr.msk.bf16.gmra.mrb[188].mxu1 %vm718_vm6, %v14299_v8  ;;  %12044 = vmatprep.mubr.msk.bf16.mxu0 %vm718_vm6, %v14344_v49 }
 0x1a5   : > { %2116 = vst.msk [vmem:[#allocation3 + $0xe0] sm:$0xff] %vm517_vm8, %v2084_v50  ;;  %v2085_v3 = vadd.f32 %v2044_v37, %v1867_v20  ;;  %2906 = vst.msk [vmem:[#allocation3 + $0x8] sm:$0xff] %vm517_vm8, %v2874_v63  ;;  %12008 = vmatprep.mubr.msk.bf16.mxu1 %vm718_vm6, %v14339_v2  ;;  %v4201_v63 = vld [vmem:[#allocation2 + $0xc0] sm:$0xe] }
 0x1a6   : > { %2119 = vst.msk [vmem:[#allocation3 + $0xf8] sm:$0xff] %vm517_vm8, %v2087_v17  ;;  %v11818_v57 = vpop.f32.mrb[84].mxu0 }
 0x1a7   : > { %2117 = vst.msk [vmem:[#allocation3 + $0xe8] sm:$0xff] %vm517_vm8, %v2085_v3  ;;  %v11782_v30 = vpop.f32.mrb[84].mxu1  ;;  %v3066_v40 = vpop.f32.mrb[85].mxu0  ;;  %v4203_v3 = vld [vmem:[#allocation2 + $0xc8] sm:$0x1] }
 0x1a8   : > { %v2879_v58 = vadd.f32 %v11782_v30, %v2573_v7  ;;  %v2762_v24 = vpop.f32.mrb[85].mxu1  ;;  %v11819_v10 = vpop.f32.mrb[86].mxu0 }
 0x1a9   : > { %v2963_v59 = vld [vmem:[#allocation3 + $0x10] sm:$0xff]  ;;  %v2877_v18 = vadd.f32 %v2762_v24, %v2571_v27  ;;  %v11783_v61 = vpop.f32.mrb[86].mxu1  ;;  %v3069_v37 = vpop.f32.mrb[87].mxu0  ;;  %v14597_v27 = vld [vmem:[#allocation2 + $0xd0] sm:$0xf] }
 0x1aa   : > { %v3179_v54 = vadd.f32 %v11814_v45, %v2963_v59  ;;  %2911 = vst.msk [vmem:[#allocation3 + $0x30] sm:$0xff] %vm517_vm8, %v2879_v58  ;;  %v2961_v44 = vld [vmem:[#allocation3] sm:$0xff]  ;;  %v2880_v1 = vadd.f32 %v11783_v61, %v2574_v28  ;;  %v2765_v39 = vpop.f32.mrb[87].mxu1  ;;  %v10662_v59 = vrot.slane %v4201_v63, 9  ;;  %v4754_v28 = vrot.slane %v4203_v3, 5  ;;  %v2581_v61 = vld [vmem:[#allocation3 + $0x70] sm:$0xff] }
 0x1ab   : > { %v3177_v14 = vadd.f32 %v3050_v29, %v2961_v44  ;;  %2909 = vst.msk [vmem:[#allocation3 + $0x20] sm:$0xff] %vm517_vm8, %v2877_v18  ;;  %v2964_v32 = vld [vmem:[#allocation3 + $0x18] sm:$0xff]  ;;  %v2878_v51 = vadd.f32 %v2765_v39, %v2572_v33  ;;  %12045 = vmatmul.mubr.msk.bf16.gmra.mrb[192].mxu0 %vm718_vm6, %v14404_v19  ;;  %v2576_v29 = vld [vmem:[#allocation3 + $0x48] sm:$0xff]  ;;  %v4753_v18 = vrot.slane %v4751_v38, 4  ;;  %v5041_v44 = vrot.slane %v14597_v27, 5  ;;  %v2579_v33 = vld [vmem:[#allocation3 + $0x60] sm:$0xff] }
 0x1ac   : > { %3211 = vst.msk [vmem:[#allocation3 + $0x10] sm:$0xff] %vm517_vm8, %v3179_v54  ;;  %v3180_v41 = vadd.f32 %v11815_v56, %v2964_v32  ;;  %2912 = vst.msk [vmem:[#allocation3 + $0x38] sm:$0xff] %vm517_vm8, %v2880_v1  ;;  %v2962_v4 = vld [vmem:[#allocation3 + $0x8] sm:$0xff]  ;;  %12009 = vmatmul.mubr.msk.bf16.gmra.mrb[192].mxu1 %vm718_vm6, %v14344_v49  ;;  %12048 = vmatprep.mubr.msk.bf16.mxu0 %vm718_vm6, %v14408_v9  ;;  %v4204_v54 = vld [vmem:[#allocation2 + $0xcc] sm:$0xe] }
 0x1ad   : > { %3209 = vst.msk [vmem:[#allocation3] sm:$0xff] %vm517_vm8, %v3177_v14  ;;  %v3178_v21 = vadd.f32 %v3053_v55, %v2962_v4  ;;  %2910 = vst.msk [vmem:[#allocation3 + $0x28] sm:$0xff] %vm517_vm8, %v2878_v51  ;;  %12012 = vmatprep.mubr.msk.bf16.mxu1 %vm718_vm6, %v14404_v19  ;;  %v2582_v51 = vld [vmem:[#allocation3 + $0x78] sm:$0xff]  ;;  %v4752_v4 = vsel %vm14013_vm15, %v10662_v59, %v4751_v38  ;;  %v2583_v27 = vld [vmem:[#allocation3 + $0x80] sm:$0xff] }
 0x1ae   : > { %3212 = vst.msk [vmem:[#allocation3 + $0x18] sm:$0xff] %vm517_vm8, %v3180_v41  ;;  %v11822_v60 = vpop.f32.mrb[88].mxu0  ;;  %v14641_v59 = vld [vmem:[#allocation2 + $0xe0] sm:$0x1] }
 0x1af   : > { %3210 = vst.msk [vmem:[#allocation3 + $0x8] sm:$0xff] %vm517_vm8, %v3178_v21  ;;  %v11786_v22 = vpop.f32.mrb[88].mxu1  ;;  %v3082_v31 = vpop.f32.mrb[89].mxu0 }
 0x1b0   : > { %v2883_v0 = vadd.f32 %v11786_v22, %v2577_v46  ;;  %v2778_v15 = vpop.f32.mrb[89].mxu1  ;;  %v11823_v55 = vpop.f32.mrb[90].mxu0  ;;  %v2580_v46 = vld [vmem:[#allocation3 + $0x68] sm:$0xff] }
 0x1b1   : > { %v2967_v23 = vld [vmem:[#allocation3 + $0x30] sm:$0xff]  ;;  %v2881_v16 = vadd.f32 %v2778_v15, %v2575_v48  ;;  %v11787_v45 = vpop.f32.mrb[90].mxu1  ;;  %v3085_v58 = vpop.f32.mrb[91].mxu0  ;;  %v4755_v48 = vsel %vm14013_vm15, %v4753_v18, %v4754_v28  ;;  %v10686_v15 = vrot.slane %v4204_v54, 9  ;;  %v14643_v18 = vld [vmem:[#allocation2 + $0xe8] sm:$0xf] }
 0x1b2   : > { %v3183_v53 = vadd.f32 %v11818_v57, %v2967_v23  ;;  %2915 = vst.msk [vmem:[#allocation3 + $0x50] sm:$0xff] %vm517_vm8, %v2883_v0  ;;  %v2965_v11 = vld [vmem:[#allocation3 + $0x20] sm:$0xff]  ;;  %v2884_v6 = vadd.f32 %v11787_v45, %v2578_v43  ;;  %v2781_v50 = vpop.f32.mrb[91].mxu1 }
 0x1b3   : > { %v3181_v56 = vadd.f32 %v3066_v40, %v2965_v11  ;;  %2913 = vst.msk [vmem:[#allocation3 + $0x40] sm:$0xff] %vm517_vm8, %v2881_v16  ;;  %v2968_v17 = vld [vmem:[#allocation3 + $0x38] sm:$0xff]  ;;  %v2882_v20 = vadd.f32 %v2781_v50, %v2576_v29  ;;  %12049 = vmatmul.mubr.msk.bf16.gmra.mrb[196].mxu0 %vm718_vm6, %v14445_v47  ;;  %v4206_v40 = vld [vmem:[#allocation2 + $0xd4] sm:$0x1] }
 0x1b4   : > { %3215 = vst.msk [vmem:[#allocation3 + $0x30] sm:$0xff] %vm517_vm8, %v3183_v53  ;;  %v3184_v7 = vadd.f32 %v11819_v10, %v2968_v17  ;;  %2916 = vst.msk [vmem:[#allocation3 + $0x58] sm:$0xff] %vm517_vm8, %v2884_v6  ;;  %v2966_v30 = vld [vmem:[#allocation3 + $0x28] sm:$0xff]  ;;  %12013 = vmatmul.mubr.msk.bf16.gmra.mrb[196].mxu1 %vm718_vm6, %v14408_v9  ;;  %12052 = vmatprep.mubr.msk.bf16.mxu0 %vm718_vm6, %v14448_v52  ;;  %v5043_v53 = vrot.slane %v5041_v44, 4  ;;  %v5044_v38 = vrot.slane %v4206_v40, 5  ;;  %v2585_v17 = vld [vmem:[#allocation3 + $0x90] sm:$0xff] }
 0x1b5   : > { %3213 = vst.msk [vmem:[#allocation3 + $0x20] sm:$0xff] %vm517_vm8, %v3181_v56  ;;  %v3182_v24 = vadd.f32 %v3069_v37, %v2966_v30  ;;  %2914 = vst.msk [vmem:[#allocation3 + $0x48] sm:$0xff] %vm517_vm8, %v2882_v20  ;;  %12016 = vmatprep.mubr.msk.bf16.mxu1 %vm718_vm6, %v14445_v47  ;;  %v5906_v56 = vld [vmem:[#allocation2] sm:$0xe]  ;;  %v5907_v30 = vld [vmem:[#allocation2 + $0x4] sm:$0xf] }
 0x1b6   : > { %3216 = vst.msk [vmem:[#allocation3 + $0x38] sm:$0xff] %vm517_vm8, %v3184_v7  ;;  %v11826_v41 = vpop.f32.mrb[92].mxu0  ;;  %v5045_v3 = vsel %vm14013_vm15, %v5043_v53, %v5044_v38  ;;  %v14639_v7 = vld [vmem:[#allocation2 + $0xd8] sm:$0xe]  ;;  %v14667_v38 = vld [vmem:[#allocation2 + $0xe4] sm:$0xe] }
 0x1b7   : > { %3214 = vst.msk [vmem:[#allocation3 + $0x28] sm:$0xff] %vm517_vm8, %v3182_v24  ;;  %v11790_v57 = vpop.f32.mrb[92].mxu1  ;;  %v3098_v0 = vpop.f32.mrb[93].mxu0 }
 0x1b8   : > { %v2887_v1 = vadd.f32 %v11790_v57, %v2581_v61  ;;  %v2794_v39 = vpop.f32.mrb[93].mxu1  ;;  %v11827_v45 = vpop.f32.mrb[94].mxu0  ;;  %v2586_v57 = vld [vmem:[#allocation3 + $0x98] sm:$0xff] }
 0x1b9   : > { %v2971_v14 = vld [vmem:[#allocation3 + $0x50] sm:$0xff]  ;;  %v2885_v32 = vadd.f32 %v2794_v39, %v2579_v33  ;;  %v11791_v10 = vpop.f32.mrb[94].mxu1  ;;  %v3101_v29 = vpop.f32.mrb[95].mxu0  ;;  %v5973_v33 = vshll.u32 %v5906_v56, 16 }
 0x1ba   : > { %v3187_v37 = vadd.f32 %v11822_v60, %v2971_v14  ;;  %2919 = vst.msk [vmem:[#allocation3 + $0x70] sm:$0xff] %vm517_vm8, %v2887_v1  ;;  %v2969_v21 = vld [vmem:[#allocation3 + $0x40] sm:$0xff]  ;;  %v2888_v36 = vadd.f32 %v11791_v10, %v2582_v51  ;;  %v2797_v22 = vpop.f32.mrb[95].mxu1  ;;  %v14616_v60 = vld [vmem:[#allocation2 + $0xdc] sm:$0xf] }
 0x1bb   : > { %v3185_v23 = vadd.f32 %v3082_v31, %v2969_v21  ;;  %2917 = vst.msk [vmem:[#allocation3 + $0x60] sm:$0xff] %vm517_vm8, %v2885_v32  ;;  %v2972_v16 = vld [vmem:[#allocation3 + $0x58] sm:$0xff]  ;;  %v2886_v43 = vadd.f32 %v2797_v22, %v2580_v46  ;;  %v14626_v31 = vcombine.low %v4752_v4, %v4755_v48  ;;  %12053 = vmatmul.mubr.msk.bf16.gmra.mrb[200].mxu0 %vm718_vm6, %v14475_v5  ;;  %v5331_v63 = vrot.slane %v14616_v60, 5  ;;  %v2584_v32 = vld [vmem:[#allocation3 + $0x88] sm:$0xff]  ;;  %v2593_v60 = vld [vmem:[#allocation3 + $0xd0] sm:$0xff] }
 0x1bc   : > { %3219 = vst.msk [vmem:[#allocation3 + $0x50] sm:$0xff] %vm517_vm8, %v3187_v37  ;;  %v3188_v11 = vadd.f32 %v11823_v55, %v2972_v16  ;;  %2920 = vst.msk [vmem:[#allocation3 + $0x78] sm:$0xff] %vm517_vm8, %v2888_v36  ;;  %v2970_v6 = vld [vmem:[#allocation3 + $0x48] sm:$0xff]  ;;  %12017 = vmatmul.mubr.msk.bf16.gmra.mrb[200].mxu1 %vm718_vm6, %v14448_v52  ;;  %v5042_v55 = vsel %vm14013_vm15, %v10686_v15, %v5041_v44  ;;  %v5970_v44 = vshrl.u32 %v5906_v56, 16  ;;  %v5979_v37 = vshrl.u32 %v5907_v30, 16 }
 0x1bd   : > { %3217 = vst.msk [vmem:[#allocation3 + $0x40] sm:$0xff] %vm517_vm8, %v3185_v23  ;;  %v3186_v50 = vadd.f32 %v3085_v58, %v2970_v6  ;;  %2918 = vst.msk [vmem:[#allocation3 + $0x68] sm:$0xff] %vm517_vm8, %v2886_v43  ;;  %12020 = vmatprep.mubr.msk.bf16.mxu1 %vm718_vm6, %v14475_v5  ;;  %12056 = vmatprep.mubr.msk.bf16.mxu0 %vm718_vm6, %v14626_v31  ;;  %v14650_v4 = vcombine.low %v5042_v55, %v5045_v3  ;;  %v5908_v48 = vld [vmem:[#allocation2 + $0x8] sm:$0x3]  ;;  %v5982_v15 = vshll.u32 %v5907_v30, 16  ;;  %v2589_v55 = vld [vmem:[#allocation3 + $0xb0] sm:$0xff] }
 0x1be   : > { %3220 = vst.msk [vmem:[#allocation3 + $0x58] sm:$0xff] %vm517_vm8, %v3188_v11  ;;  %v14645_v1 = vpop.f32.mrb[96].mxu0  ;;  %v10710_v43 = vrot.slane %v14639_v7, 9  ;;  %v14665_v53 = vrot.slane %v5331_v63, 4  ;;  %v14674_v6 = vrot.slane %v5970_v44, 5  ;;  %v10734_v3 = vrot.slane %v14667_v38, 9 }
 0x1bf   : > { %3218 = vst.msk [vmem:[#allocation3 + $0x48] sm:$0xff] %vm517_vm8, %v3186_v50  ;;  %v11794_v20 = vpop.f32.mrb[96].mxu1  ;;  %v14648_v10 = vpop.f32.mrb[97].mxu0  ;;  %v14676_v50 = vrot.slane %v5973_v33, 6  ;;  %v14681_v56 = vld [vmem:[#allocation2 + $0xec] sm:$0x1] }
 0x1c0   : > { %v2891_v58 = vadd.f32 %v11794_v20, %v2585_v17  ;;  %v2810_v24 = vpop.f32.mrb[97].mxu1  ;;  %v14653_v22 = vpop.f32.mrb[98].mxu0  ;;  %v5981_v17 = vrot.slane %v5979_v37, 5  ;;  %v5909_v20 = vld [vmem:[#allocation2 + $0xc] sm:$0xe] }
 0x1c1   : > { %v2975_v28 = vld [vmem:[#allocation3 + $0x70] sm:$0xff]  ;;  %v2889_v61 = vadd.f32 %v2810_v24, %v2583_v27  ;;  %v11795_v54 = vpop.f32.mrb[98].mxu1  ;;  %v5992_v27 = vshll.u32 %v5908_v48, 16  ;;  %v6001_v37 = vshll.u32 %v5909_v20, 16 }
 0x1c2   : > { %v3191_v39 = vadd.f32 %v11826_v41, %v2975_v28  ;;  %2923 = vst.msk [vmem:[#allocation3 + $0x90] sm:$0xff] %vm517_vm8, %v2891_v58  ;;  %v2973_v40 = vld [vmem:[#allocation3 + $0x60] sm:$0xff]  ;;  %v2892_v14 = vadd.f32 %v11795_v54, %v2586_v57  ;;  %v2813_v51 = vpop.f32.mrb[99].mxu1  ;;  %v5621_v41 = vrot.slane %v14643_v18, 5  ;;  %v5984_v58 = vrot.slane %v5982_v15, 6  ;;  %v14694_v57 = vld [vmem:[%s17219_s1 + $0x38] sm:$0xff]  }
 0x1c3   : > { %v3189_v21 = vadd.f32 %v3098_v0, %v2973_v40  ;;  %2921 = vst.msk [vmem:[#allocation3 + $0x80] sm:$0xff] %vm517_vm8, %v2889_v61  ;;  %v2976_v36 = vld [vmem:[#allocation3 + $0x78] sm:$0xff]  ;;  %v2890_v46 = vadd.f32 %v2813_v51, %v2584_v32  ;;  %v14660_v0 = vpop.f32.mrb[99].mxu0  ;;  %12057 = vmatmul.mubr.msk.bf16.gmra.mrb[204].mxu0 %vm718_vm6, %v14650_v4  ;;  %v2587_v28 = vld [vmem:[#allocation3 + $0xa0] sm:$0xff]  ;;  %v5976_v32 = vor.u32 %v14676_v50, %v14674_v6  ;;  %v5998_v51 = vshrl.u32 %v5909_v20, 16 }
 0x1c4   : > { %3223 = vst.msk [vmem:[#allocation3 + $0x70] sm:$0xff] %vm517_vm8, %v3191_v39  ;;  %v3192_v23 = vadd.f32 %v11827_v45, %v2976_v36  ;;  %2924 = vst.msk [vmem:[#allocation3 + $0x98] sm:$0xff] %vm517_vm8, %v2892_v14  ;;  %v2974_v16 = vld [vmem:[#allocation3 + $0x68] sm:$0xff]  ;;  %12021 = vmatmul.mubr.msk.bf16.gmra.mrb[204].mxu1 %vm718_vm6, %v14626_v31  ;;  %v5334_v45 = vrot.slane %v14641_v59, 5  ;;  %12100 = vmatprep.mubr.msk.bf16.mxu0 %vm718_vm6, %v14177_v34  ;;  %v14689_v30 = vrot.slane %v5621_v41, 4  ;;  %v2590_v39 = vld [vmem:[#allocation3 + $0xb8] sm:$0xff] }
 0x1c5   : > { %3221 = vst.msk [vmem:[#allocation3 + $0x60] sm:$0xff] %vm517_vm8, %v3189_v21  ;;  %v3190_v11 = vadd.f32 %v3101_v29, %v2974_v16  ;;  %2922 = vst.msk [vmem:[#allocation3 + $0x88] sm:$0xff] %vm517_vm8, %v2890_v46  ;;  %12064 = vmatprep.mubr.msk.bf16.mxu1 %vm718_vm6, %v14167_v35  ;;  %v5989_v29 = vshrl.u32 %v5908_v48, 16  ;;  %v14696_v54 = vld [vmem:[#allocation2 + $0x10] sm:$0xf]  ;;  %v2588_v48 = vld [vmem:[#allocation3 + $0xa8] sm:$0xff] }
 0x1c6   : > { %3224 = vst.msk [vmem:[#allocation3 + $0x78] sm:$0xff] %vm517_vm8, %v3192_v23  ;;  %v14698_v14 = vpop.f32.mrb[100].mxu0  ;;  %v5624_v16 = vrot.slane %v14681_v56, 5 }
 0x1c7   : > { %3222 = vst.msk [vmem:[#allocation3 + $0x68] sm:$0xff] %vm517_vm8, %v3190_v11  ;;  %v11798_v35 = vpop.f32.mrb[100].mxu1  ;;  %v14704_v23 = vpop.f32.mrb[101].mxu0  ;;  %v14707_v11 = vrot.slane %v5989_v29, 5 }
 0x1c8   : > { %v2895_v24 = vadd.f32 %v11798_v35, %v2589_v55  ;;  %v2826_v61 = vpop.f32.mrb[101].mxu1  ;;  %v14711_v20 = vpop.f32.mrb[102].mxu0  ;;  %v14718_v35 = vor.u32 %v5984_v58, %v5981_v17  ;;  %v6007_v17 = vshrl.u32 %v14696_v54, 16  ;;  %v6010_v58 = vshll.u32 %v14696_v54, 16  ;;  %v12609_v54 = vld [vmem:[%s17219_s1 + $0xd0] sm:$0xff]  }
 0x1c9   : > { %v2979_v44 = vld [vmem:[#allocation3 + $0x90] sm:$0xff]  ;;  %v2893_v33 = vadd.f32 %v2826_v61, %v2587_v28  ;;  %v11799_v40 = vpop.f32.mrb[102].mxu1  ;;  %v14722_v28 = vld [vmem:[#allocation2 + $0x18] sm:$0xe]  ;;  %v14729_v61 = vpop.f32.mrb[103].mxu0 }
 0x1ca   : > { %v3195_v21 = vadd.f32 %v14645_v1, %v2979_v44  ;;  %2927 = vst.msk [vmem:[#allocation3 + $0xb0] sm:$0xff] %vm517_vm8, %v2895_v24  ;;  %v2977_v36 = vld [vmem:[#allocation3 + $0x80] sm:$0xff]  ;;  %v2896_v46 = vadd.f32 %v11799_v40, %v2590_v39  ;;  %v2829_v15 = vpop.f32.mrb[103].mxu1  ;;  %v14716_v1 = vld [vmem:[%s17219_s1 + $0x88] sm:$0xff]   ;;  %v14720_v24 = vrot.slane %v5992_v27, 6  ;;  %v6029_v39 = vshll.u32 %v14722_v28, 16 }
 0x1cb   : > { %v3193_v55 = vadd.f32 %v14648_v10, %v2977_v36  ;;  %2925 = vst.msk [vmem:[#allocation3 + $0xa0] sm:$0xff] %vm517_vm8, %v2893_v33  ;;  %v2980_v6 = vld [vmem:[#allocation3 + $0x98] sm:$0xff]  ;;  %v2894_v50 = vadd.f32 %v2829_v15, %v2588_v48  ;;  %v14731_v44 = vld [vmem:[#allocation2 + $0x14] sm:$0x3]  ;;  %12101 = vmatmul.mubr.msk.bf16.vlgmr.msra.gmra.mrb[208].mxu0 %vm718_vm6, %v14243_v42  ;;  %v14762_v33 = vld [vmem:[#allocation2 + $0x1c] sm:$0xf] }
 0x1cc   : > { %3227 = vst.msk [vmem:[#allocation3 + $0x90] sm:$0xff] %vm517_vm8, %v3195_v21  ;;  %v3196_v10 = vadd.f32 %v14653_v22, %v2980_v6  ;;  %2928 = vst.msk [vmem:[#allocation3 + $0xb8] sm:$0xff] %vm517_vm8, %v2896_v46  ;;  %v2978_v29 = vld [vmem:[#allocation3 + $0x88] sm:$0xff]  ;;  %12065 = vmatmul.mubr.msk.bf16.vlgmr.msra.gmra.mrb[208].mxu1 %vm718_vm6, %v14177_v34  ;;  %v14741_v34 = vrot.slane %v5998_v51, 5  ;;  %v14743_v22 = vrot.slane %v6001_v37, 6  ;;  %12169 = vmatpush3.bf16.msra.mxu0 %v14523_v13  ;;  %v2591_v37 = vld [vmem:[#allocation3 + $0xc0] sm:$0xff] }
 0x1cd   : > { %3225 = vst.msk [vmem:[#allocation3 + $0x80] sm:$0xff] %vm517_vm8, %v3193_v55  ;;  %v3194_v27 = vadd.f32 %v14660_v0, %v2978_v29  ;;  %2926 = vst.msk [vmem:[#allocation3 + $0xa8] sm:$0xff] %vm517_vm8, %v2894_v50  ;;  %12133 = vmatpush3.bf16.msra.mxu1 %v14514_v12  ;;  %12068 = vmatprep.mubr.msk.bf16.mxu1 %vm718_vm6, %v14243_v42  ;;  %v14755_v12 = vsel %vm14013_vm15, %v10710_v43, %v5331_v63  ;;  %v14757_v0 = vrot.slane %v5976_v32, 4  ;;  %v14781_v51 = vld [vmem:[#allocation2 + $0x24] sm:$0xe]  ;;  %v2594_v15 = vld [vmem:[#allocation3 + $0xd8] sm:$0xff] }
 0x1ce   : > { %3228 = vst.msk [vmem:[#allocation3 + $0x98] sm:$0xff] %vm517_vm8, %v3196_v10  ;;  %12134 = vmatprep.subr.bf16.mxu1 %v14694_v57  ;;  %v6026_v42 = vshrl.u32 %v14722_v28, 16  ;;  %12104 = vmatprep.mubr.msk.bf16.mxu0 %vm718_vm6, %v14245_v25  ;;  %v14775_v63 = vsel %vm14013_vm15, %v14665_v53, %v5334_v45  ;;  %v5987_v43 = vrot.slane %v14718_v35, 4  ;;  %v5995_v40 = vor.u32 %v14720_v24, %v14707_v11  ;;  %v14788_v53 = vld [vmem:[%s17219_s1 + $0x120] sm:$0xff]   ;;  %v14790_v6 = vpop.f32.mrb[104].mxu0 }
 0x1cf   : > { %3226 = vst.msk [vmem:[#allocation3 + $0x88] sm:$0xff] %vm517_vm8, %v3194_v27  ;;  %v11802_v7 = vpop.f32.mrb[104].mxu1  ;;  %v6017_v32 = vshrl.u32 %v14731_v44, 16  ;;  %12170 = vmatprep.subr.bf16.mxu0 %v14716_v1  ;;  %v6009_v59 = vrot.slane %v6007_v17, 5  ;;  %v6012_v36 = vrot.slane %v6010_v58, 6  ;;  %v6020_v46 = vshll.u32 %v14731_v44, 16 }
 0x1d0   : > { %v2899_v13 = vadd.f32 %v11802_v7, %v2593_v60  ;;  %v2842_v21 = vpop.f32.mrb[105].mxu1  ;;  %v6004_v50 = vor.u32 %v14743_v22, %v14741_v34  ;;  %v6035_v28 = vshrl.u32 %v14762_v33, 16  ;;  %v6038_v10 = vshll.u32 %v14762_v33, 16  ;;  %v2592_v58 = vld [vmem:[#allocation3 + $0xc8] sm:$0xff]  ;;  %v14799_v60 = vpop.f32.mrb[105].mxu0  ;;  %12171 = vmatpush3.bf16.msra.mxu0 %v14716_v1 }
 0x1d1   : > { %v2983_v45 = vld [vmem:[#allocation3 + $0xb0] sm:$0xff]  ;;  %v2897_v48 = vadd.f32 %v2842_v21, %v2591_v37  ;;  %v11803_v55 = vpop.f32.mrb[106].mxu1  ;;  %12135 = vmatpush3.bf16.msra.mxu1 %v14694_v57  ;;  %v14801_v7 = vrot.slane %v6026_v42, 5  ;;  %v14803_v57 = vrot.slane %v6029_v39, 6  ;;  %v6054_v42 = vshrl.u32 %v14781_v51, 16  ;;  %12240 = vmatprep.subr.bf16.mxu0 %v14788_v53 }
 0x1d2   : > { %v3199_v29 = vadd.f32 %v14698_v14, %v2983_v45  ;;  %2931 = vst.msk [vmem:[#allocation3 + $0xd0] sm:$0xff] %vm517_vm8, %v2899_v13  ;;  %v2981_v44 = vld [vmem:[#allocation3 + $0xa0] sm:$0xff]  ;;  %v2900_v17 = vadd.f32 %v11803_v55, %v2594_v15  ;;  %v2845_v27 = vpop.f32.mrb[107].mxu1  ;;  %12204 = vmatprep.subr.bf16.mxu1 %v12609_v54  ;;  %v14807_v14 = vpop.f32.mrb[106].mxu0  ;;  %v5914_v54 = vld [vmem:[#allocation2 + $0x20] sm:$0x3]  ;;  %v14825_v21 = vor.u32 %v6012_v36, %v6009_v59 }
 0x1d3   : > { %v3197_v34 = vadd.f32 %v14704_v23, %v2981_v44  ;;  %2929 = vst.msk [vmem:[#allocation3 + $0xc0] sm:$0xff] %vm517_vm8, %v2897_v48  ;;  %v2984_v22 = vld [vmem:[#allocation3 + $0xb8] sm:$0xff]  ;;  %v2898_v33 = vadd.f32 %v2845_v27, %v2592_v58  ;;  %v6057_v39 = vshll.u32 %v14781_v51, 16  ;;  %v14823_v1 = vpop.f32.mrb[107].mxu0  ;;  %v14827_v45 = vrot.slane %v6017_v32, 5  ;;  %12105 = vmatmul.mubr.msk.bf16.gmra.mrb[212].mxu0 %vm718_vm6, %v14292_v62  ;;  %v2597_v59 = vld [vmem:[#allocation3 + $0xf0] sm:$0xff] }
 0x1d4   : > { %3231 = vst.msk [vmem:[#allocation3 + $0xb0] sm:$0xff] %vm517_vm8, %v3199_v29  ;;  %v3200_v23 = vadd.f32 %v14711_v20, %v2984_v22  ;;  %2932 = vst.msk [vmem:[#allocation3 + $0xd8] sm:$0xff] %vm517_vm8, %v2900_v17  ;;  %v2982_v37 = vld [vmem:[#allocation3 + $0xa8] sm:$0xff]  ;;  %12069 = vmatmul.mubr.msk.bf16.gmra.mrb[212].mxu1 %vm718_vm6, %v14245_v25  ;;  %v14829_v48 = vrot.slane %v6020_v46, 6  ;;  %v14843_v25 = vsel %vm14013_vm15, %v10734_v3, %v5621_v41  ;;  %v6037_v32 = vrot.slane %v6035_v28, 5 }
 0x1d5   : > { %3229 = vst.msk [vmem:[#allocation3 + $0xa0] sm:$0xff] %vm517_vm8, %v3197_v34  ;;  %v3198_v20 = vadd.f32 %v14729_v61, %v2982_v37  ;;  %2930 = vst.msk [vmem:[#allocation3 + $0xc8] sm:$0xff] %vm517_vm8, %v2898_v33  ;;  %12072 = vmatprep.mubr.msk.bf16.mxu1 %vm718_vm6, %v14292_v62  ;;  %v6040_v51 = vrot.slane %v6038_v10, 6  ;;  %v14853_v61 = vsel %vm14013_vm15, %v14689_v30, %v5624_v16  ;;  %v6045_v41 = vshrl.u32 %v5914_v54, 16  ;;  %v5916_v3 = vld [vmem:[#allocation2 + $0x28] sm:$0xf] }
 0x1d6   : > { %3232 = vst.msk [vmem:[#allocation3 + $0xb8] sm:$0xff] %vm517_vm8, %v3200_v23  ;;  %v5986_v18 = vsel %vm14812_vm2, %v14757_v0, %v14718_v35  ;;  %v6048_v38 = vshll.u32 %v5914_v54, 16  ;;  %12108 = vmatprep.mubr.msk.bf16.mxu0 %vm718_vm6, %v14299_v8  ;;  %v5996_v26 = vsel %vm14812_vm2, %v5987_v43, %v5995_v40  ;;  %v6032_v62 = vor.u32 %v14803_v57, %v14801_v7  ;;  %v2595_v0 = vld [vmem:[#allocation3 + $0xe0] sm:$0xff]  ;;  %v2598_v40 = vld [vmem:[#allocation3 + $0xf8] sm:$0xff]  ;;  %v14882_v10 = vpop.f32.mrb[108].mxu0  ;;  %v2596_v7 = vld [vmem:[#allocation3 + $0xe8] sm:$0xff] }
 0x1d7   : > { %3230 = vst.msk [vmem:[#allocation3 + $0xa8] sm:$0xff] %vm517_vm8, %v3198_v20  ;;  %v11806_v36 = vpop.f32.mrb[108].mxu1  ;;  %v14871_v56 = vrot.slane %v6054_v42, 5  ;;  %v14873_v30 = vrot.slane %v6057_v39, 6  ;;  %v14875_v15 = vrot.slane %v6004_v50, 4  ;;  %v6015_v55 = vrot.slane %v14825_v21, 4 }
 0x1d8   : > { %v2903_v16 = vadd.f32 %v11806_v36, %v2597_v59  ;;  %v2858_v46 = vpop.f32.mrb[109].mxu1  ;;  %v6023_v11 = vor.u32 %v14829_v48, %v14827_v45  ;;  %v14880_v35 = vld [vmem:[#allocation2 + $0x30] sm:$0xe]  ;;  %v14884_v29 = vor.u32 %v6040_v51, %v6037_v32  ;;  %v6063_v44 = vshrl.u32 %v5916_v3, 16  ;;  %v14888_v34 = vpop.f32.mrb[109].mxu0 }
 0x1d9   : > { %v2987_v24 = vld [vmem:[#allocation3 + $0xd0] sm:$0xff]  ;;  %v2901_v43 = vadd.f32 %v2858_v46, %v2595_v0  ;;  %v11807_v28 = vpop.f32.mrb[110].mxu1  ;;  %v6066_v17 = vshll.u32 %v5916_v3, 16  ;;  %v14890_v22 = vrot.slane %v6045_v41, 5  ;;  %v14892_v33 = vrot.slane %v6048_v38, 6  ;;  %v14896_v23 = vpop.f32.mrb[110].mxu0 }
 0x1da   : > { %v3203_v50 = vadd.f32 %v14790_v6, %v2987_v24  ;;  %2935 = vst.msk [vmem:[#allocation3 + $0xf0] sm:$0xff] %vm517_vm8, %v2903_v16  ;;  %v2985_v58 = vld [vmem:[#allocation3 + $0xc0] sm:$0xff]  ;;  %v2904_v27 = vadd.f32 %v11807_v28, %v2598_v40  ;;  %v2861_v57 = vpop.f32.mrb[111].mxu1  ;;  %v14898_v6 = vrot.slane %v6032_v62, 4  ;;  %v6060_v37 = vor.u32 %v14873_v30, %v14871_v56  ;;  %v14915_v51 = vld [vmem:[#allocation2 + $0x2c] sm:$0x3] }
 0x1db   : > { %v3201_v54 = vadd.f32 %v14799_v60, %v2985_v58  ;;  %2933 = vst.msk [vmem:[#allocation3 + $0xe0] sm:$0xff] %vm517_vm8, %v2901_v43  ;;  %v2988_v42 = vld [vmem:[#allocation3 + $0xd8] sm:$0xff]  ;;  %v2902_v39 = vadd.f32 %v2861_v57, %v2596_v7  ;;  %v14907_v60 = vpop.f32.mrb[111].mxu0  ;;  %v14911_v20 = vcombine.low %v14755_v12, %v14775_v63  ;;  %v6082_v41 = vshrl.u32 %v14880_v35, 16  ;;  %v14925_v38 = vld [vmem:[#allocation2 + $0x34] sm:$0xf]  ;;  %12109 = vmatmul.mubr.msk.bf16.gmra.mrb[216].mxu0 %vm718_vm6, %v14339_v2 }
 0x1dc   : > { %3235 = vst.msk [vmem:[#allocation3 + $0xd0] sm:$0xff] %vm517_vm8, %v3203_v50  ;;  %v3204_v45 = vadd.f32 %v14807_v14, %v2988_v42  ;;  %2936 = vst.msk [vmem:[#allocation3 + $0xf8] sm:$0xff] %vm517_vm8, %v2904_v27  ;;  %v2986_v48 = vld [vmem:[#allocation3 + $0xc8] sm:$0xff]  ;;  %12073 = vmatmul.mubr.msk.bf16.gmra.mrb[216].mxu1 %vm718_vm6, %v14299_v8  ;;  %v14923_v8 = vcombine.low %v5986_v18, %v5996_v26  ;;  %v6065_v12 = vrot.slane %v6063_v44, 5  ;;  %v6068_v63 = vrot.slane %v6066_v17, 6  ;;  %v3267_v26 = vld [vmem:[#allocation3 + $0x10] sm:$0xff] }
 0x1dd   : > { %3233 = vst.msk [vmem:[#allocation3 + $0xc0] sm:$0xff] %vm517_vm8, %v3201_v54  ;;  %v3202_v14 = vadd.f32 %v14823_v1, %v2986_v48  ;;  %2934 = vst.msk [vmem:[#allocation3 + $0xe8] sm:$0xff] %vm517_vm8, %v2902_v39  ;;  %12076 = vmatprep.mubr.msk.bf16.mxu1 %vm718_vm6, %v14339_v2  ;;  %v6014_v1 = vsel %vm14812_vm2, %v14875_v15, %v14825_v21  ;;  %v14936_v3 = vsel %vm14812_vm2, %v6015_v55, %v6023_v11  ;;  %v14939_v59 = vld [vmem:[#allocation2 + $0x38] sm:$0x3]  ;;  %v14954_v0 = vld [vmem:[#allocation2 + $0x3c] sm:$0xe] }
 0x1de   : > { %3236 = vst.msk [vmem:[#allocation3 + $0xd8] sm:$0xff] %vm517_vm8, %v3204_v45  ;;  %v6043_v18 = vrot.slane %v14884_v29, 4  ;;  %v6085_v36 = vshll.u32 %v14880_v35, 16  ;;  %12112 = vmatprep.mubr.msk.bf16.mxu0 %vm718_vm6, %v14344_v49  ;;  %v6051_v56 = vor.u32 %v14892_v33, %v14890_v22  ;;  %v14951_v30 = vrot.slane %v6060_v37, 4  ;;  %v3265_v55 = vld [vmem:[#allocation3] sm:$0xff]  ;;  %v3268_v44 = vld [vmem:[#allocation3 + $0x18] sm:$0xff] }
 0x1df   : > { %3234 = vst.msk [vmem:[#allocation3 + $0xc8] sm:$0xff] %vm517_vm8, %v3202_v14  ;;  %v11850_v62 = vpop.f32.mrb[112].mxu1  ;;  %v6073_v16 = vshrl.u32 %v14915_v51, 16  ;;  %v6076_v35 = vshll.u32 %v14915_v51, 16  ;;  %v14957_v24 = vrot.slane %v6082_v41, 5  ;;  %v6091_v43 = vshrl.u32 %v14925_v38, 16 }
 0x1e0   : > { %v3483_v46 = vadd.f32 %v11850_v62, %v3267_v26  ;;  %v3354_v11 = vpop.f32.mrb[113].mxu1  ;;  %v14960_v50 = vpop.f32.mrb[112].mxu0  ;;  %v14962_v58 = vor.u32 %v6068_v63, %v6065_v12  ;;  %v6094_v27 = vshll.u32 %v14925_v38, 16  ;;  %v6101_v7 = vshrl.u32 %v14939_v59, 16  ;;  %v3266_v54 = vld [vmem:[#allocation3 + $0x8] sm:$0xff] }
 0x1e1   : > { %v2991_v40 = vld [vmem:[#allocation3 + $0xf0] sm:$0xff]  ;;  %v3481_v28 = vadd.f32 %v3354_v11, %v3265_v55  ;;  %v11851_v17 = vpop.f32.mrb[114].mxu1  ;;  %v14968_v39 = vpop.f32.mrb[113].mxu0  ;;  %v14970_v37 = vrot.slane %v6085_v36, 6  ;;  %v6104_v45 = vshll.u32 %v14939_v59, 16  ;;  %v6110_v12 = vshrl.u32 %v14954_v0, 16 }
 0x1e2   : > { %v3207_v57 = vadd.f32 %v14882_v10, %v2991_v40  ;;  %v2989_v22 = vld [vmem:[#allocation3 + $0xe0] sm:$0xff]  ;;  %3515 = vst.msk [vmem:[#allocation3 + $0x10] sm:$0xff] %vm517_vm8, %v3483_v46  ;;  %v3484_v33 = vadd.f32 %v11851_v17, %v3268_v44  ;;  %v3357_v42 = vpop.f32.mrb[115].mxu1  ;;  %v14975_v14 = vpop.f32.mrb[114].mxu0  ;;  %v14977_v10 = vld [vmem:[#allocation2 + $0x40] sm:$0xf]  ;;  %v14990_v59 = vsel %vm14812_vm2, %v6043_v18, %v6051_v56  ;;  %v17233_v21 = vsel %vm14812_vm2, %v14951_v30, %v14962_v58 }
 0x1e3   : > { %v3205_v48 = vadd.f32 %v14888_v34, %v2989_v22  ;;  %v2992_v51 = vld [vmem:[#allocation3 + $0xf8] sm:$0xff]  ;;  %3513 = vst.msk [vmem:[#allocation3] sm:$0xff] %vm517_vm8, %v3481_v28  ;;  %v3482_v41 = vadd.f32 %v3357_v42, %v3266_v54  ;;  %v6113_v63 = vshll.u32 %v14954_v0, 16  ;;  %v14986_v34 = vpop.f32.mrb[115].mxu0  ;;  %v14992_v26 = vrot.slane %v6073_v16, 5  ;;  %12113 = vmatmul.mubr.msk.bf16.gmra.mrb[220].mxu0 %vm718_vm6, %v14404_v19 }
 0x1e4   : > { %3239 = vst.msk [vmem:[#allocation3 + $0xf0] sm:$0xff] %vm517_vm8, %v3207_v57  ;;  %v3208_v38 = vadd.f32 %v14896_v23, %v2992_v51  ;;  %v2990_v36 = vld [vmem:[#allocation3 + $0xe8] sm:$0xff]  ;;  %3516 = vst.msk [vmem:[#allocation3 + $0x18] sm:$0xff] %vm517_vm8, %v3484_v33  ;;  %12077 = vmatmul.mubr.msk.bf16.gmra.mrb[220].mxu1 %vm718_vm6, %v14344_v49  ;;  %v14994_v62 = vrot.slane %v6076_v35, 6  ;;  %v14996_v0 = vld [vmem:[#allocation2 + $0x44] sm:$0x3]  ;;  %v6088_v55 = vor.u32 %v14970_v37, %v14957_v24  ;;  %12116 = vmatprep.mubr.msk.bf16.mxu0 %vm718_vm6, %v14408_v9 }
 0x1e5   : > { %3237 = vst.msk [vmem:[#allocation3 + $0xe0] sm:$0xff] %vm517_vm8, %v3205_v48  ;;  %v3206_v23 = vadd.f32 %v14907_v60, %v2990_v36  ;;  %3514 = vst.msk [vmem:[#allocation3 + $0x8] sm:$0xff] %vm517_vm8, %v3482_v41  ;;  %12080 = vmatprep.mubr.msk.bf16.mxu1 %vm718_vm6, %v14404_v19  ;;  %v6093_v18 = vrot.slane %v6091_v43, 5  ;;  %v6096_v56 = vrot.slane %v6094_v27, 6  ;;  %v5924_v16 = vld [vmem:[#allocation2 + $0x48] sm:$0xe] }
 0x1e6   : > { %v5925_v46 = vld [vmem:[#allocation2 + $0x4c] sm:$0xf]  ;;  %3240 = vst.msk [vmem:[#allocation3 + $0xf8] sm:$0xff] %vm517_vm8, %v3208_v38  ;;  %v6071_v60 = vrot.slane %v14962_v58, 4  ;;  %v15013_v11 = vrot.slane %v6101_v7, 5  ;;  %v6119_v35 = vshrl.u32 %v14977_v10, 16 }
 0x1e7   : > { %v15016_v40 = vld [vmem:[#allocation2 + $0x50] sm:$0x3]  ;;  %3238 = vst.msk [vmem:[#allocation3 + $0xe8] sm:$0xff] %vm517_vm8, %v3206_v23  ;;  %v3271_v43 = vld [vmem:[#allocation3 + $0x30] sm:$0xff]  ;;  %v11854_v28 = vpop.f32.mrb[116].mxu1  ;;  %v15021_v44 = vrot.slane %v6104_v45, 6  ;;  %v15031_v45 = vor.u32 %v6096_v56, %v6093_v18 }
 0x1e8   : > { %v15023_v19 = vrot.slane %v6110_v12, 5  ;;  %v15025_v17 = vrot.slane %v6113_v63, 6  ;;  %v6122_v24 = vshll.u32 %v14977_v10, 16  ;;  %v3487_v27 = vadd.f32 %v11854_v28, %v3271_v43  ;;  %v3269_v7 = vld [vmem:[#allocation3 + $0x20] sm:$0xff]  ;;  %v3370_v57 = vpop.f32.mrb[117].mxu1  ;;  %v3272_v48 = vld [vmem:[#allocation3 + $0x38] sm:$0xff] }
 0x1e9   : > { %v6129_v22 = vshrl.u32 %v14996_v0, 16  ;;  %v6138_v33 = vshrl.u32 %v5924_v16, 16  ;;  %v6141_v54 = vshll.u32 %v5924_v16, 16  ;;  %v3571_v42 = vld [vmem:[#allocation3 + $0x10] sm:$0xff]  ;;  %v3485_v37 = vadd.f32 %v3370_v57, %v3269_v7  ;;  %v11855_v51 = vpop.f32.mrb[118].mxu1  ;;  %v15029_v41 = vpop.f32.mrb[116].mxu0 }
 0x1ea   : > { %v6147_v12 = vshrl.u32 %v5925_v46, 16  ;;  %v6150_v63 = vshll.u32 %v5925_v46, 16  ;;  %v3787_v38 = vadd.f32 %v14960_v50, %v3571_v42  ;;  %3519 = vst.msk [vmem:[#allocation3 + $0x30] sm:$0xff] %vm517_vm8, %v3487_v27  ;;  %v3569_v10 = vld [vmem:[#allocation3] sm:$0xff]  ;;  %v3488_v36 = vadd.f32 %v11855_v51, %v3272_v48  ;;  %v3270_v23 = vld [vmem:[#allocation3 + $0x28] sm:$0xff]  ;;  %v3373_v43 = vpop.f32.mrb[119].mxu1 }
 0x1eb   : > { %v15035_v28 = vpop.f32.mrb[117].mxu0  ;;  %v6121_v16 = vrot.slane %v6119_v35, 5  ;;  %v6132_v7 = vshll.u32 %v14996_v0, 16  ;;  %v3785_v57 = vadd.f32 %v14968_v39, %v3569_v10  ;;  %3517 = vst.msk [vmem:[#allocation3 + $0x20] sm:$0xff] %vm517_vm8, %v3485_v37  ;;  %v3572_v18 = vld [vmem:[#allocation3 + $0x18] sm:$0xff]  ;;  %v3486_v56 = vadd.f32 %v3373_v43, %v3270_v23  ;;  %12117 = vmatmul.mubr.msk.bf16.gmra.mrb[224].mxu0 %vm718_vm6, %v14445_v47  ;;  %v3273_v23 = vld [vmem:[#allocation3 + $0x40] sm:$0xff] }
 0x1ec   : > { %v15040_v46 = vpop.f32.mrb[118].mxu0  ;;  %v6124_v50 = vrot.slane %v6122_v24, 6  ;;  %v6157_v27 = vshrl.u32 %v15016_v40, 16  ;;  %3819 = vst.msk [vmem:[#allocation3 + $0x10] sm:$0xff] %vm517_vm8, %v3787_v38  ;;  %v3788_v42 = vadd.f32 %v14975_v14, %v3572_v18  ;;  %3520 = vst.msk [vmem:[#allocation3 + $0x38] sm:$0xff] %vm517_vm8, %v3488_v36  ;;  %v3570_v35 = vld [vmem:[#allocation3 + $0x8] sm:$0xff]  ;;  %12081 = vmatmul.mubr.msk.bf16.gmra.mrb[224].mxu1 %vm718_vm6, %v14408_v9  ;;  %v6116_v14 = vor.u32 %v15025_v17, %v15023_v19 }
 0x1ed   : > { %v15048_v39 = vpop.f32.mrb[119].mxu0  ;;  %v15050_v0 = vrot.slane %v6138_v33, 5  ;;  %v6143_v37 = vrot.slane %v6141_v54, 6  ;;  %v6160_v48 = vshll.u32 %v15016_v40, 16  ;;  %3817 = vst.msk [vmem:[#allocation3] sm:$0xff] %vm517_vm8, %v3785_v57  ;;  %v3786_v24 = vadd.f32 %v14986_v34, %v3570_v35  ;;  %3518 = vst.msk [vmem:[#allocation3 + $0x28] sm:$0xff] %vm517_vm8, %v3486_v56  ;;  %12084 = vmatprep.mubr.msk.bf16.mxu1 %vm718_vm6, %v14445_v47  ;;  %12120 = vmatprep.mubr.msk.bf16.mxu0 %vm718_vm6, %v14448_v52 }
 0x1ee   : > { %v6149_v9 = vrot.slane %v6147_v12, 5  ;;  %v6152_v51 = vrot.slane %v6150_v63, 6  ;;  %v5927_v38 = vld [vmem:[#allocation2 + $0x54] sm:$0xe]  ;;  %3820 = vst.msk [vmem:[#allocation3 + $0x18] sm:$0xff] %vm517_vm8, %v3788_v42  ;;  %v6079_v40 = vor.u32 %v14994_v62, %v14992_v26  ;;  %v15065_v34 = vrot.slane %v6088_v55, 4 }
 0x1ef   : > { %v6099_v33 = vrot.slane %v15031_v45, 4  ;;  %v6107_v54 = vor.u32 %v15021_v44, %v15013_v11  ;;  %v5928_v10 = vld [vmem:[#allocation2 + $0x58] sm:$0xf]  ;;  %3818 = vst.msk [vmem:[#allocation3 + $0x8] sm:$0xff] %vm517_vm8, %v3786_v24  ;;  %v3275_v19 = vld [vmem:[#allocation3 + $0x50] sm:$0xff]  ;;  %v11858_v17 = vpop.f32.mrb[120].mxu1  ;;  %v15073_v12 = vor.u32 %v6124_v50, %v6121_v16  ;;  %v6144_v57 = vor.u32 %v6143_v37, %v15050_v0 }
 0x1f0   : > { %v15075_v47 = vrot.slane %v6129_v22, 5  ;;  %v15077_v63 = vrot.slane %v6132_v7, 6  ;;  %v15079_v55 = vrot.slane %v6157_v27, 5  ;;  %v3491_v36 = vadd.f32 %v11858_v17, %v3275_v19  ;;  %v3386_v43 = vpop.f32.mrb[121].mxu1  ;;  %v15084_v56 = vld [vmem:[#allocation2 + $0x5c] sm:$0x3] }
 0x1f1   : > { %v15082_v18 = vrot.slane %v6160_v48, 6  ;;  %v6166_v42 = vshrl.u32 %v5927_v38, 16  ;;  %v3575_v35 = vld [vmem:[#allocation3 + $0x30] sm:$0xff]  ;;  %v3489_v24 = vadd.f32 %v3386_v43, %v3273_v23  ;;  %v3276_v16 = vld [vmem:[#allocation3 + $0x58] sm:$0xff]  ;;  %v11859_v50 = vpop.f32.mrb[122].mxu1  ;;  %v15086_v22 = vpop.f32.mrb[120].mxu0  ;;  %v15090_v27 = vor.u32 %v6152_v51, %v6149_v9 }
 0x1f2   : > { %v15088_v7 = vrot.slane %v6116_v14, 4  ;;  %v6169_v19 = vshll.u32 %v5927_v38, 16  ;;  %v3791_v17 = vadd.f32 %v15029_v41, %v3575_v35  ;;  %3523 = vst.msk [vmem:[#allocation3 + $0x50] sm:$0xff] %vm517_vm8, %v3491_v36  ;;  %v3573_v0 = vld [vmem:[#allocation3 + $0x20] sm:$0xff]  ;;  %v3492_v37 = vadd.f32 %v11859_v50, %v3276_v16  ;;  %v3274_v48 = vld [vmem:[#allocation3 + $0x48] sm:$0xff]  ;;  %v3389_v32 = vpop.f32.mrb[123].mxu1 }
 0x1f3   : > { %v15094_v49 = vpop.f32.mrb[121].mxu0  ;;  %v6175_v23 = vshrl.u32 %v5928_v10, 16  ;;  %v6178_v43 = vshll.u32 %v5928_v10, 16  ;;  %v3789_v2 = vadd.f32 %v15035_v28, %v3573_v0  ;;  %3521 = vst.msk [vmem:[#allocation3 + $0x40] sm:$0xff] %vm517_vm8, %v3489_v24  ;;  %v3576_v14 = vld [vmem:[#allocation3 + $0x38] sm:$0xff]  ;;  %v3490_v9 = vadd.f32 %v3389_v32, %v3274_v48  ;;  %12121 = vmatmul.mubr.msk.bf16.gmra.mrb[228].mxu0 %vm718_vm6, %v14475_v5 }
 0x1f4   : > { %v15098_v51 = vpop.f32.mrb[122].mxu0  ;;  %v6127_v41 = vrot.slane %v15073_v12, 4  ;;  %v6135_v38 = vor.u32 %v15077_v63, %v15075_v47  ;;  %3823 = vst.msk [vmem:[#allocation3 + $0x30] sm:$0xff] %vm517_vm8, %v3791_v17  ;;  %v3792_v36 = vadd.f32 %v15040_v46, %v3576_v14  ;;  %3524 = vst.msk [vmem:[#allocation3 + $0x58] sm:$0xff] %vm517_vm8, %v3492_v37  ;;  %v3574_v10 = vld [vmem:[#allocation3 + $0x28] sm:$0xff]  ;;  %12085 = vmatmul.mubr.msk.bf16.gmra.mrb[228].mxu1 %vm718_vm6, %v14448_v52  ;;  %v15110_v32 = vrot.slane %v6144_v57, 4 }
 0x1f5   : > { %v15108_v28 = vpop.f32.mrb[123].mxu0  ;;  %v6163_v35 = vor.u32 %v15082_v18, %v15079_v55  ;;  %v15114_v24 = vrot.slane %v6166_v42, 5  ;;  %v5930_v47 = vld [vmem:[#allocation2 + $0x60] sm:$0xe]  ;;  %3821 = vst.msk [vmem:[#allocation3 + $0x20] sm:$0xff] %vm517_vm8, %v3789_v2  ;;  %v3790_v46 = vadd.f32 %v15048_v39, %v3574_v10  ;;  %3522 = vst.msk [vmem:[#allocation3 + $0x48] sm:$0xff] %vm517_vm8, %v3490_v9  ;;  %12088 = vmatprep.mubr.msk.bf16.mxu1 %vm718_vm6, %v14475_v5  ;;  %12124 = vmatprep.mubr.msk.bf16.mxu0 %vm718_vm6, %v14626_v31 }
 0x1f6   : > { %v6155_v52 = vrot.slane %v15090_v27, 4  ;;  %v15122_v63 = vrot.slane %v6169_v19, 6  ;;  %v6185_v57 = vshrl.u32 %v15084_v56, 16  ;;  %3824 = vst.msk [vmem:[#allocation3 + $0x38] sm:$0xff] %vm517_vm8, %v3792_v36  ;;  %v6080_v2 = vsel %vm14812_vm2, %v6071_v60, %v6079_v40  ;;  %v3279_v42 = vld [vmem:[#allocation3 + $0x70] sm:$0xff]  ;;  %v15162_v0 = vpop.f32.mrb[124].mxu0 }
 0x1f7   : > { %v6177_v39 = vrot.slane %v6175_v23, 5  ;;  %v6180_v55 = vrot.slane %v6178_v43, 6  ;;  %v6188_v18 = vshll.u32 %v15084_v56, 16  ;;  %3822 = vst.msk [vmem:[#allocation3 + $0x28] sm:$0xff] %vm517_vm8, %v3790_v46  ;;  %v11862_v16 = vpop.f32.mrb[124].mxu1  ;;  %v6098_v5 = vsel %vm14812_vm2, %v15065_v34, %v15031_v45  ;;  %v3277_v56 = vld [vmem:[#allocation3 + $0x60] sm:$0xff] }
 0x1f8   : > { %v6108_v26 = vsel %vm14812_vm2, %v6099_v33, %v6107_v54  ;;  %v6194_v62 = vshrl.u32 %v5930_v47, 16  ;;  %v6197_v60 = vshll.u32 %v5930_v47, 16  ;;  %v3495_v40 = vadd.f32 %v11862_v16, %v3279_v42  ;;  %v3402_v50 = vpop.f32.mrb[125].mxu1  ;;  %v15160_v44 = vld [vmem:[#allocation2 + $0x64] sm:$0xf]  ;;  %v3280_v54 = vld [vmem:[#allocation3 + $0x78] sm:$0xff] }
 0x1f9   : > { %v6126_v19 = vsel %vm14812_vm2, %v15088_v7, %v15073_v12  ;;  %v6136_v34 = vsel %vm14812_vm2, %v6127_v41, %v6135_v38  ;;  %v6154_v11 = vsel %vm14812_vm2, %v15110_v32, %v15090_v27  ;;  %v3579_v45 = vld [vmem:[#allocation3 + $0x50] sm:$0xff]  ;;  %v3493_v33 = vadd.f32 %v3402_v50, %v3277_v56  ;;  %v11863_v17 = vpop.f32.mrb[126].mxu1  ;;  %v3278_v43 = vld [vmem:[#allocation3 + $0x68] sm:$0xff]  ;;  %v15172_v9 = vpop.f32.mrb[125].mxu0  ;;  %v5933_v47 = vld [vmem:[#allocation2 + $0x6c] sm:$0xe] }
 0x1fa   : > { %v6164_v37 = vsel %vm14812_vm2, %v6155_v52, %v6163_v35  ;;  %v6172_v12 = vor.u32 %v15122_v63, %v15114_v24  ;;  %v15168_v7 = vrot.slane %v6185_v57, 5  ;;  %v3795_v48 = vadd.f32 %v15086_v22, %v3579_v45  ;;  %3527 = vst.msk [vmem:[#allocation3 + $0x70] sm:$0xff] %vm517_vm8, %v3495_v40  ;;  %v3577_v27 = vld [vmem:[#allocation3 + $0x40] sm:$0xff]  ;;  %v3405_v14 = vpop.f32.mrb[127].mxu1  ;;  %v15180_v35 = vpop.f32.mrb[126].mxu0 }
 0x1fb   : > { %v3496_v23 = vadd.f32 %v11863_v17, %v3280_v54  ;;  %v15174_v41 = vor.u32 %v6180_v55, %v6177_v39  ;;  %v15176_v38 = vrot.slane %v6188_v18, 6  ;;  %v3793_v36 = vadd.f32 %v15094_v49, %v3577_v27  ;;  %3525 = vst.msk [vmem:[#allocation3 + $0x60] sm:$0xff] %vm517_vm8, %v3493_v33  ;;  %v3580_v10 = vld [vmem:[#allocation3 + $0x58] sm:$0xff]  ;;  %v15191_v49 = vpop.f32.mrb[127].mxu0  ;;  %12125 = vmatmul.mubr.msk.bf16.gmra.mrb[232].mxu0 %vm718_vm6, %v14650_v4  ;;  %v5934_v30 = vld [vmem:[#allocation2 + $0x70] sm:$0xf] }
 0x1fc   : > { %v3494_v32 = vadd.f32 %v3405_v14, %v3278_v43  ;;  %v15182_v22 = vrot.slane %v6194_v62, 5  ;;  %v15184_v24 = vrot.slane %v6197_v60, 6  ;;  %3827 = vst.msk [vmem:[#allocation3 + $0x50] sm:$0xff] %vm517_vm8, %v3795_v48  ;;  %v3796_v46 = vadd.f32 %v15098_v51, %v3580_v10  ;;  %v3578_v52 = vld [vmem:[#allocation3 + $0x48] sm:$0xff]  ;;  %12089 = vmatmul.mubr.msk.bf16.gmra.mrb[232].mxu1 %vm718_vm6, %v14626_v31  ;;  %12128 = vmatprep.mubr.msk.bf16.mxu0 %vm718_vm6, %v14911_v20  ;;  %v3281_v62 = vld [vmem:[#allocation3 + $0x80] sm:$0xff] }
 0x1fd   : > { %3528 = vst.msk [vmem:[#allocation3 + $0x78] sm:$0xff] %vm517_vm8, %v3496_v23  ;;  %v15199_v63 = vcombine.low %v6014_v1, %v14936_v3  ;;  %v17232_v51 = vsel %vm14812_vm2, %v14898_v6, %v14884_v29  ;;  %v6203_v31 = vshrl.u32 %v15160_v44, 16  ;;  %3825 = vst.msk [vmem:[#allocation3 + $0x40] sm:$0xff] %vm517_vm8, %v3793_v36  ;;  %v3794_v39 = vadd.f32 %v15108_v28, %v3578_v52  ;;  %v15226_v1 = vld [vmem:[#allocation2 + $0x68] sm:$0x3]  ;;  %v3282_v48 = vld [vmem:[#allocation3 + $0x88] sm:$0xff] }
 0x1fe   : > { %v15207_v57 = vcombine.low %v17232_v51, %v14990_v59  ;;  %3526 = vst.msk [vmem:[#allocation3 + $0x68] sm:$0xff] %vm517_vm8, %v3494_v32  ;;  %12092 = vmatprep.mubr.msk.bf16.mxu1 %vm718_vm6, %v14650_v4  ;;  %v15220_v15 = vcombine.low %v17233_v21, %v6080_v2  ;;  %v15222_v29 = vcombine.low %v6098_v5, %v6108_v26  ;;  %v15224_v6 = vrot.slane %v6172_v12, 4  ;;  %v3283_v2 = vld [vmem:[#allocation3 + $0x90] sm:$0xff]  ;;  %v15244_v5 = vld [vmem:[#allocation2 + $0x78] sm:$0xe]  ;;  %v15248_v45 = vpop.f32.mrb[128].mxu0 }
 0x1ff   : > { %3828 = vst.msk [vmem:[#allocation3 + $0x58] sm:$0xff] %vm517_vm8, %v3796_v46  ;;  %v15231_v3 = vcombine.low %v6126_v19, %v6136_v34  ;;  %v15233_v59 = vcombine.low %v6154_v11, %v6164_v37  ;;  %v6206_v28 = vshll.u32 %v15160_v44, 16  ;;  %v6222_v58 = vshrl.u32 %v5933_v47, 16  ;;  %3826 = vst.msk [vmem:[#allocation3 + $0x48] sm:$0xff] %vm517_vm8, %v3794_v39  ;;  %v11866_v55 = vpop.f32.mrb[128].mxu1  ;;  %v3284_v11 = vld [vmem:[#allocation3 + $0x98] sm:$0xff] }
 0x200   : > { %v6183_v18 = vrot.slane %v15174_v41, 4  ;;  %v6191_v4 = vor.u32 %v15176_v38, %v15168_v7  ;;  %v6200_v42 = vor.u32 %v15184_v24, %v15182_v22  ;;  %v6225_v16 = vshll.u32 %v5933_v47, 16  ;;  %v3418_v60 = vpop.f32.mrb[129].mxu1  ;;  %v15256_v23 = vpop.f32.mrb[129].mxu0  ;;  %v5937_v22 = vld [vmem:[#allocation2 + $0x7c] sm:$0xf] }
 0x201   : > { %v3499_v26 = vadd.f32 %v11866_v55, %v3283_v2  ;;  %v6205_v40 = vrot.slane %v6203_v31, 5  ;;  %v6213_v56 = vshrl.u32 %v15226_v1, 16  ;;  %v6216_v50 = vshll.u32 %v15226_v1, 16  ;;  %v3583_v19 = vld [vmem:[#allocation3 + $0x70] sm:$0xff]  ;;  %v11867_v44 = vpop.f32.mrb[130].mxu1  ;;  %v15262_v32 = vpop.f32.mrb[130].mxu0 }
 0x202   : > { %v3497_v34 = vadd.f32 %v3418_v60, %v3281_v62  ;;  %v6182_v33 = vsel %vm14812_vm2, %v15224_v6, %v15174_v41  ;;  %v6231_v54 = vshrl.u32 %v5934_v30, 16  ;;  %v6234_v17 = vshll.u32 %v5934_v30, 16  ;;  %v3581_v12 = vld [vmem:[#allocation3 + $0x60] sm:$0xff]  ;;  %v3421_v27 = vpop.f32.mrb[131].mxu1  ;;  %v15299_v2 = vld [vmem:[#allocation2 + $0x80] sm:$0x3] }
 0x203   : > { %v3799_v37 = vadd.f32 %v15162_v0, %v3583_v19  ;;  %3531 = vst.msk [vmem:[#allocation3 + $0x90] sm:$0xff] %vm517_vm8, %v3499_v26  ;;  %v3500_v7 = vadd.f32 %v11867_v44, %v3284_v11  ;;  %v6208_v43 = vrot.slane %v6206_v28, 6  ;;  %v15258_v14 = vrot.slane %v6222_v58, 5  ;;  %v15280_v31 = vld [vmem:[#allocation2 + $0x74] sm:$0x3] }
 0x204   : > { %v3797_v38 = vadd.f32 %v15172_v9, %v3581_v12  ;;  %3529 = vst.msk [vmem:[#allocation3 + $0x80] sm:$0xff] %vm517_vm8, %v3497_v34  ;;  %v3584_v36 = vld [vmem:[#allocation3 + $0x78] sm:$0xff]  ;;  %v3498_v10 = vadd.f32 %v3421_v27, %v3282_v48  ;;  %v15264_v0 = vrot.slane %v6225_v16, 6  ;;  %v6250_v24 = vshrl.u32 %v15244_v5, 16  ;;  %12093 = vmatmul.mubr.msk.bf16.gmra.mrb[236].mxu1 %vm718_vm6, %v14911_v20  ;;  %v15272_v9 = vpop.f32.mrb[131].mxu0  ;;  %v3285_v60 = vld [vmem:[#allocation3 + $0xa0] sm:$0xff] }
 0x205   : > { %3831 = vst.msk [vmem:[#allocation3 + $0x70] sm:$0xff] %vm517_vm8, %v3799_v37  ;;  %v3800_v47 = vadd.f32 %v15180_v35, %v3584_v36  ;;  %3532 = vst.msk [vmem:[#allocation3 + $0x98] sm:$0xff] %vm517_vm8, %v3500_v7  ;;  %v3582_v46 = vld [vmem:[#allocation3 + $0x68] sm:$0xff]  ;;  %v15276_v52 = vsel %vm14812_vm2, %v6183_v18, %v6191_v4  ;;  %v15278_v51 = vrot.slane %v6200_v42, 4  ;;  %v6253_v39 = vshll.u32 %v15244_v5, 16  ;;  %12136 = vmatprep.mubr.msk.bf16.mxu1 %vm718_vm6, %v14923_v8  ;;  %v3287_v4 = vld [vmem:[#allocation3 + $0xb0] sm:$0xff] }
 0x206   : > { %3829 = vst.msk [vmem:[#allocation3 + $0x60] sm:$0xff] %vm517_vm8, %v3797_v38  ;;  %v3798_v35 = vadd.f32 %v15191_v49, %v3582_v46  ;;  %3530 = vst.msk [vmem:[#allocation3 + $0x88] sm:$0xff] %vm517_vm8, %v3498_v10  ;;  %v15288_v20 = vrot.slane %v6213_v56, 5  ;;  %v6233_v21 = vrot.slane %v6231_v54, 5  ;;  %v6236_v1 = vrot.slane %v6234_v17, 6  ;;  %v15315_v56 = vld [vmem:[%s17219_s1 + $0xd8] sm:$0xff]  }
 0x207   : > { %v5939_v28 = vld [vmem:[#allocation2 + $0x84] sm:$0xe]  ;;  %3832 = vst.msk [vmem:[#allocation3 + $0x78] sm:$0xff] %vm517_vm8, %v3800_v47  ;;  %v17234_v30 = vcombine.low %v14843_v25, %v14853_v61  ;;  %v15295_v58 = vor.u32 %v6208_v43, %v6205_v40  ;;  %v15297_v49 = vrot.slane %v6216_v50, 6  ;;  %v6259_v55 = vshrl.u32 %v5937_v22, 16  ;;  %v11870_v42 = vpop.f32.mrb[132].mxu1 }
 0x208   : > { %v6262_v8 = vshll.u32 %v5937_v22, 16  ;;  %v5940_v18 = vld [vmem:[#allocation2 + $0x88] sm:$0xf]  ;;  %3830 = vst.msk [vmem:[#allocation3 + $0x68] sm:$0xff] %vm517_vm8, %v3798_v35  ;;  %v6228_v25 = vor.u32 %v15264_v0, %v15258_v14  ;;  %v6241_v61 = vshrl.u32 %v15280_v31, 16  ;;  %v6244_v16 = vshll.u32 %v15280_v31, 16 }
 0x209   : > { %12129 = vmatmul.mubr.msk.bf16.gmra.mrb[236].mxu0 %vm718_vm6, %v17234_v30  ;;  %v15308_v5 = vrot.slane %v6250_v24, 5  ;;  %v15310_v26 = vld [vmem:[#allocation2 + $0x8c] sm:$0x3]  ;;  %v3503_v62 = vadd.f32 %v11870_v42, %v3287_v4  ;;  %v3434_v40 = vpop.f32.mrb[133].mxu1  ;;  %v15317_v50 = vrot.slane %v6253_v39, 6  ;;  %v6278_v19 = vshrl.u32 %v5939_v28, 16 }
 0x20a   : > { %12172 = vmatprep.mubr.msk.bf16.mxu0 %vm718_vm6, %v15199_v63  ;;  %v6281_v34 = vshll.u32 %v5939_v28, 16  ;;  %v3587_v11 = vld [vmem:[#allocation3 + $0x90] sm:$0xff]  ;;  %v3501_v44 = vadd.f32 %v3434_v40, %v3285_v60  ;;  %v3288_v54 = vld [vmem:[#allocation3 + $0xb8] sm:$0xff]  ;;  %v11871_v17 = vpop.f32.mrb[134].mxu1  ;;  %v15319_v37 = vpop.f32.mrb[132].mxu0  ;;  %v15321_v12 = vor.u32 %v6236_v1, %v6233_v21  ;;  %v6287_v7 = vshrl.u32 %v5940_v18, 16 }
 0x20b   : > { %v6290_v48 = vshll.u32 %v5940_v18, 16  ;;  %v3803_v27 = vadd.f32 %v15248_v45, %v3587_v11  ;;  %3535 = vst.msk [vmem:[#allocation3 + $0xb0] sm:$0xff] %vm517_vm8, %v3503_v62  ;;  %v3585_v43 = vld [vmem:[#allocation3 + $0x80] sm:$0xff]  ;;  %v3504_v38 = vadd.f32 %v11871_v17, %v3288_v54  ;;  %v3286_v36 = vld [vmem:[#allocation3 + $0xa8] sm:$0xff]  ;;  %v3437_v10 = vpop.f32.mrb[135].mxu1  ;;  %v15325_v22 = vpop.f32.mrb[133].mxu0  ;;  %v6256_v40 = vor.u32 %v15317_v50, %v15308_v5 }
 0x20c   : > { %v6261_v24 = vrot.slane %v6259_v55, 5  ;;  %v6264_v47 = vrot.slane %v6262_v8, 6  ;;  %v3801_v46 = vadd.f32 %v15256_v23, %v3585_v43  ;;  %3533 = vst.msk [vmem:[#allocation3 + $0xa0] sm:$0xff] %vm517_vm8, %v3501_v44  ;;  %v3588_v31 = vld [vmem:[#allocation3 + $0x98] sm:$0xff]  ;;  %v3502_v39 = vadd.f32 %v3437_v10, %v3286_v36  ;;  %v15329_v35 = vpop.f32.mrb[134].mxu0  ;;  %12137 = vmatmul.mubr.msk.bf16.vlgmr.msra.gmra.mrb[240].mxu1 %vm718_vm6, %v15199_v63  ;;  %v12753_v63 = vld [vmem:[%s17219_s1 + $0xd0] sm:$0xff]  }
 0x20d   : > { %v6269_v45 = vshrl.u32 %v15299_v2, 16  ;;  %v6272_v21 = vshll.u32 %v15299_v2, 16  ;;  %3835 = vst.msk [vmem:[#allocation3 + $0x90] sm:$0xff] %vm517_vm8, %v3803_v27  ;;  %v3804_v1 = vadd.f32 %v15262_v32, %v3588_v31  ;;  %3536 = vst.msk [vmem:[#allocation3 + $0xb8] sm:$0xff] %vm517_vm8, %v3504_v38  ;;  %v3586_v28 = vld [vmem:[#allocation3 + $0x88] sm:$0xff]  ;;  %v15338_v23 = vpop.f32.mrb[135].mxu0  ;;  %12205 = vmatpush3.bf16.msra.mxu1 %v12753_v63  ;;  %12140 = vmatprep.mubr.msk.bf16.mxu1 %vm718_vm6, %v15207_v57 }
 0x20e   : > { %v15340_v30 = vrot.slane %v6278_v19, 5  ;;  %v15342_v55 = vrot.slane %v6281_v34, 6  ;;  %v6297_v8 = vshrl.u32 %v15310_v26, 16  ;;  %v12612_v2 = vld [vmem:[%s17219_s1 + $0x128] sm:$0xff]   ;;  %3833 = vst.msk [vmem:[#allocation3 + $0x80] sm:$0xff] %vm517_vm8, %v3801_v46  ;;  %v3802_v32 = vadd.f32 %v15272_v9, %v3586_v28  ;;  %3534 = vst.msk [vmem:[#allocation3 + $0xa8] sm:$0xff] %vm517_vm8, %v3502_v39  ;;  %12206 = vmatprep.subr.bf16.mxu1 %v15315_v56 }
 0x20f   : > { %v6289_v18 = vrot.slane %v6287_v7, 5  ;;  %v6292_v4 = vrot.slane %v6290_v48, 6  ;;  %v6300_v42 = vshll.u32 %v15310_v26, 16  ;;  %3836 = vst.msk [vmem:[#allocation3 + $0x98] sm:$0xff] %vm517_vm8, %v3804_v1  ;;  %v6219_v9 = vor.u32 %v15297_v49, %v15288_v20  ;;  %v15369_v19 = vld [vmem:[#allocation2 + $0x90] sm:$0xe] }
 0x210   : > { %v15363_v62 = vrot.slane %v6241_v61, 5  ;;  %v15365_v60 = vrot.slane %v6244_v16, 6  ;;  %v15374_v26 = vld [vmem:[%s17219_s1 + $0x170] sm:$0xff]   ;;  %3834 = vst.msk [vmem:[#allocation3 + $0x88] sm:$0xff] %vm517_vm8, %v3802_v32  ;;  %v3291_v34 = vld [vmem:[#allocation3 + $0xd0] sm:$0xff]  ;;  %v11874_v11 = vpop.f32.mrb[136].mxu1  ;;  %v15387_v50 = vor.u32 %v6264_v47, %v6261_v24  ;;  %v6284_v48 = vor.u32 %v15342_v55, %v15340_v30 }
 0x211   : > { %12173 = vmatmul.mubr.msk.bf16.vlgmr.msra.gmra.mrb[240].mxu0 %vm718_vm6, %v15207_v57  ;;  %v6211_v61 = vrot.slane %v15295_v58, 4  ;;  %v15384_v16 = vrot.slane %v6228_v25, 4  ;;  %v6239_v5 = vrot.slane %v15321_v12, 4  ;;  %v3507_v44 = vadd.f32 %v11874_v11, %v3291_v34  ;;  %v3289_v54 = vld [vmem:[#allocation3 + $0xc0] sm:$0xff]  ;;  %v3450_v17 = vpop.f32.mrb[137].mxu1  ;;  %v15400_v14 = vld [vmem:[%s17219_s1 + $0x40] sm:$0xff]   ;;  %12207 = vmatpush3.bf16.msra.mxu1 %v15315_v56 }
 0x212   : > { %12241 = vmatpush3.bf16.msra.mxu0 %v14788_v53  ;;  %12176 = vmatprep.mubr.msk.bf16.mxu0 %vm718_vm6, %v15220_v15  ;;  %v15389_v7 = vrot.slane %v6269_v45, 5  ;;  %v15391_v53 = vrot.slane %v6272_v21, 6  ;;  %v15395_v27 = vld [vmem:[#allocation2 + $0x94] sm:$0xf]  ;;  %v3591_v0 = vld [vmem:[#allocation3 + $0xb0] sm:$0xff]  ;;  %v3505_v25 = vadd.f32 %v3450_v17, %v3289_v54  ;;  %v3292_v43 = vld [vmem:[#allocation3 + $0xd8] sm:$0xff]  ;;  %v15405_v10 = vor.u32 %v6292_v4, %v6289_v18 }
 0x213   : > { %12242 = vmatprep.subr.bf16.mxu0 %v12612_v2  ;;  %v11875_v38 = vpop.f32.mrb[138].mxu1  ;;  %v15402_v36 = vpop.f32.mrb[136].mxu0  ;;  %v15407_v24 = vrot.slane %v6297_v8, 5  ;;  %v15409_v47 = vrot.slane %v6300_v42, 6  ;;  %v3807_v46 = vadd.f32 %v15319_v37, %v3591_v0  ;;  %3539 = vst.msk [vmem:[#allocation3 + $0xd0] sm:$0xff] %vm517_vm8, %v3507_v44  ;;  %v3589_v31 = vld [vmem:[#allocation3 + $0xa0] sm:$0xff]  ;;  %v6247_v28 = vor.u32 %v15365_v60, %v15363_v62  ;;  %12276 = vmatprep.subr.bf16.mxu1 %v15374_v26 }
 0x214   : > { %v3508_v39 = vadd.f32 %v11875_v38, %v3292_v43  ;;  %v3290_v45 = vld [vmem:[#allocation3 + $0xc8] sm:$0xff]  ;;  %v3453_v21 = vpop.f32.mrb[139].mxu1  ;;  %v15413_v1 = vpop.f32.mrb[137].mxu0  ;;  %v15417_v56 = vrot.slane %v6256_v40, 4  ;;  %v3805_v30 = vadd.f32 %v15325_v22, %v3589_v31  ;;  %3537 = vst.msk [vmem:[#allocation3 + $0xc0] sm:$0xff] %vm517_vm8, %v3505_v25  ;;  %v3592_v37 = vld [vmem:[#allocation3 + $0xb8] sm:$0xff]  ;;  %12141 = vmatmul.mubr.msk.bf16.gmra.mrb[244].mxu1 %vm718_vm6, %v15220_v15  ;;  %v6220_v11 = vsel %vm14812_vm2, %v6211_v61, %v6219_v9 }
 0x215   : > { %v3506_v55 = vadd.f32 %v3453_v21, %v3290_v45  ;;  %v15422_v8 = vpop.f32.mrb[138].mxu0  ;;  %v6306_v32 = vshrl.u32 %v15369_v19, 16  ;;  %v6309_v63 = vshll.u32 %v15369_v19, 16  ;;  %3839 = vst.msk [vmem:[#allocation3 + $0xb0] sm:$0xff] %vm517_vm8, %v3807_v46  ;;  %v3808_v18 = vadd.f32 %v15329_v35, %v3592_v37  ;;  %v3590_v4 = vld [vmem:[#allocation3 + $0xa8] sm:$0xff]  ;;  %12144 = vmatprep.mubr.msk.bf16.mxu1 %vm718_vm6, %v15222_v29  ;;  %v3295_v17 = vld [vmem:[#allocation3 + $0xf0] sm:$0xff] }
 0x216   : > { %12243 = vmatpush3.bf16.msra.mxu0 %v12612_v2  ;;  %3540 = vst.msk [vmem:[#allocation3 + $0xd8] sm:$0xff] %vm517_vm8, %v3508_v39  ;;  %v15431_v22 = vpop.f32.mrb[139].mxu0  ;;  %v6267_v42 = vrot.slane %v15387_v50, 4  ;;  %v6275_v2 = vor.u32 %v15391_v53, %v15389_v7  ;;  %v15436_v62 = vrot.slane %v6284_v48, 4  ;;  %3837 = vst.msk [vmem:[#allocation3 + $0xa0] sm:$0xff] %vm517_vm8, %v3805_v30  ;;  %v3806_v35 = vadd.f32 %v15338_v23, %v3590_v4  ;;  %v3296_v25 = vld [vmem:[#allocation3 + $0xf8] sm:$0xff] }
 0x217   : > { %12312 = vmatprep.subr.bf16.mxu0 %v15400_v14  ;;  %3538 = vst.msk [vmem:[#allocation3 + $0xc8] sm:$0xff] %vm517_vm8, %v3506_v55  ;;  %v6295_v60 = vrot.slane %v15405_v10, 4  ;;  %v6303_v40 = vor.u32 %v15409_v47, %v15407_v24  ;;  %v15447_v19 = vld [vmem:[#allocation2 + $0x98] sm:$0x3]  ;;  %v6315_v34 = vshrl.u32 %v15395_v27, 16  ;;  %3840 = vst.msk [vmem:[#allocation3 + $0xb8] sm:$0xff] %vm517_vm8, %v3808_v18  ;;  %v6210_v23 = vsel %vm14812_vm2, %v15278_v51, %v15295_v58 }
 0x218   : > { %v6238_v44 = vsel %vm14812_vm2, %v15384_v16, %v15321_v12  ;;  %v6318_v54 = vshll.u32 %v15395_v27, 16  ;;  %3838 = vst.msk [vmem:[#allocation3 + $0xa8] sm:$0xff] %vm517_vm8, %v3806_v35  ;;  %v11878_v7 = vpop.f32.mrb[140].mxu1  ;;  %v6248_v51 = vsel %vm14812_vm2, %v6239_v5, %v6247_v28  ;;  %v6266_v20 = vsel %vm14812_vm2, %v15417_v56, %v15387_v50  ;;  %v15480_v9 = vld [vmem:[#allocation2 + $0x9c] sm:$0xe]  ;;  %v3293_v16 = vld [vmem:[#allocation3 + $0xe0] sm:$0xff] }
 0x219   : > { %12177 = vmatmul.mubr.msk.bf16.gmra.mrb[244].mxu0 %vm718_vm6, %v15222_v29  ;;  %v15478_v58 = vrot.slane %v6306_v32, 5  ;;  %v6311_v49 = vrot.slane %v6309_v63, 6  ;;  %v3511_v61 = vadd.f32 %v11878_v7, %v3295_v17  ;;  %v3466_v53 = vpop.f32.mrb[141].mxu1  ;;  %v6276_v48 = vsel %vm14812_vm2, %v6267_v42, %v6275_v2  ;;  %v5946_v27 = vld [vmem:[#allocation2 + $0xa0] sm:$0xf]  ;;  %v15489_v38 = vpop.f32.mrb[140].mxu0 }
 0x21a   : > { %12180 = vmatprep.mubr.msk.bf16.mxu0 %vm718_vm6, %v15231_v3  ;;  %v6294_v12 = vsel %vm14812_vm2, %v15436_v62, %v15405_v10  ;;  %v6325_v5 = vshrl.u32 %v15447_v19, 16  ;;  %v3595_v50 = vld [vmem:[#allocation3 + $0xd0] sm:$0xff]  ;;  %v3509_v0 = vadd.f32 %v3466_v53, %v3293_v16  ;;  %v11879_v43 = vpop.f32.mrb[142].mxu1  ;;  %v6304_v24 = vsel %vm14812_vm2, %v6295_v60, %v6303_v40  ;;  %v3294_v45 = vld [vmem:[#allocation3 + $0xe8] sm:$0xff]  ;;  %v15496_v28 = vpop.f32.mrb[141].mxu0 }
 0x21b   : > { %v6317_v47 = vrot.slane %v6315_v34, 5  ;;  %v6328_v46 = vshll.u32 %v15447_v19, 16  ;;  %v3811_v31 = vadd.f32 %v15402_v36, %v3595_v50  ;;  %3543 = vst.msk [vmem:[#allocation3 + $0xf0] sm:$0xff] %vm517_vm8, %v3511_v61  ;;  %v3593_v10 = vld [vmem:[#allocation3 + $0xc0] sm:$0xff]  ;;  %v3512_v39 = vadd.f32 %v11879_v43, %v3296_v25  ;;  %v3469_v21 = vpop.f32.mrb[143].mxu1  ;;  %v15501_v63 = vpop.f32.mrb[142].mxu0 }
 0x21c   : > { %v6320_v56 = vrot.slane %v6318_v54, 6  ;;  %v6334_v30 = vshrl.u32 %v15480_v9, 16  ;;  %v3809_v37 = vadd.f32 %v15413_v1, %v3593_v10  ;;  %3541 = vst.msk [vmem:[#allocation3 + $0xe0] sm:$0xff] %vm517_vm8, %v3509_v0  ;;  %v3510_v32 = vadd.f32 %v3469_v21, %v3294_v45  ;;  %12145 = vmatmul.mubr.msk.bf16.gmra.mrb[248].mxu1 %vm718_vm6, %v15231_v3  ;;  %v15510_v1 = vpop.f32.mrb[143].mxu0  ;;  %v15520_v62 = vld [vmem:[#allocation2 + $0xa4] sm:$0x3] }
 0x21d   : > { %v3596_v55 = vld [vmem:[#allocation3 + $0xd8] sm:$0xff]  ;;  %v6312_v36 = vor.u32 %v6311_v49, %v15478_v58  ;;  %v6337_v18 = vshll.u32 %v15480_v9, 16  ;;  %3843 = vst.msk [vmem:[#allocation3 + $0xd0] sm:$0xff] %vm517_vm8, %v3811_v31  ;;  %3544 = vst.msk [vmem:[#allocation3 + $0xf8] sm:$0xff] %vm517_vm8, %v3512_v39  ;;  %v15518_v2 = vcombine.low %v6182_v33, %v15276_v52  ;;  %v6343_v35 = vshrl.u32 %v5946_v27, 16  ;;  %12148 = vmatprep.mubr.msk.bf16.mxu1 %vm718_vm6, %v15233_v59  ;;  %v3873_v58 = vld [vmem:[#allocation3] sm:$0xff] }
 0x21e   : > { %v3812_v4 = vadd.f32 %v15422_v8, %v3596_v55  ;;  %v3594_v42 = vld [vmem:[#allocation3 + $0xc8] sm:$0xff]  ;;  %v6346_v8 = vshll.u32 %v5946_v27, 16  ;;  %3841 = vst.msk [vmem:[#allocation3 + $0xc0] sm:$0xff] %vm517_vm8, %v3809_v37  ;;  %3542 = vst.msk [vmem:[#allocation3 + $0xe8] sm:$0xff] %vm517_vm8, %v3510_v32  ;;  %v15527_v40 = vcombine.low %v6210_v23, %v6220_v11  ;;  %v15529_v19 = vrot.slane %v6325_v5, 5  ;;  %v3875_v11 = vld [vmem:[#allocation3 + $0x10] sm:$0xff] }
 0x21f   : > { %v3810_v60 = vadd.f32 %v15431_v22, %v3594_v42  ;;  %v15531_v41 = vrot.slane %v6328_v46, 6  ;;  %v15536_v6 = vcombine.low %v6238_v44, %v6248_v51  ;;  %v15538_v33 = vcombine.low %v6266_v20, %v6276_v48  ;;  %v5948_v34 = vld [vmem:[#allocation2 + $0xa8] sm:$0xe]  ;;  %v5949_v23 = vld [vmem:[#allocation2 + $0xac] sm:$0xf]  ;;  %v11922_v54 = vpop.f32.mrb[144].mxu1 }
 0x220   : > { %3844 = vst.msk [vmem:[#allocation3 + $0xd8] sm:$0xff] %vm517_vm8, %v3812_v4  ;;  %v15540_v52 = vcombine.low %v6294_v12, %v6304_v24  ;;  %v15542_v22 = vor.u32 %v6320_v56, %v6317_v47  ;;  %v15547_v17 = vrot.slane %v6312_v36, 4  ;;  %v15549_v7 = vrot.slane %v6334_v30, 5  ;;  %v3962_v49 = vpop.f32.mrb[145].mxu1  ;;  %v15555_v53 = vld [vmem:[#allocation2 + $0xb0] sm:$0x3] }
 0x221   : > { %12181 = vmatmul.mubr.msk.bf16.gmra.mrb[248].mxu0 %vm718_vm6, %v15233_v59  ;;  %3842 = vst.msk [vmem:[#allocation3 + $0xc8] sm:$0xff] %vm517_vm8, %v3810_v60  ;;  %v15551_v44 = vrot.slane %v6337_v18, 6  ;;  %v6353_v51 = vshrl.u32 %v15520_v62, 16  ;;  %v4091_v20 = vadd.f32 %v11922_v54, %v3875_v11  ;;  %v6345_v9 = vrot.slane %v6343_v35, 5  ;;  %v3876_v5 = vld [vmem:[#allocation3 + $0x18] sm:$0xff]  ;;  %v11923_v27 = vpop.f32.mrb[146].mxu1 }
 0x222   : > { %12184 = vmatprep.mubr.msk.bf16.mxu0 %vm718_vm6, %v15518_v2  ;;  %v6348_v61 = vrot.slane %v6346_v8, 6  ;;  %v6356_v16 = vshll.u32 %v15520_v62, 16  ;;  %v3599_v48 = vld [vmem:[#allocation3 + $0xf0] sm:$0xff]  ;;  %v4089_v12 = vadd.f32 %v3962_v49, %v3873_v58  ;;  %v15557_v50 = vpop.f32.mrb[144].mxu0  ;;  %v6331_v0 = vor.u32 %v15531_v41, %v15529_v19  ;;  %v3874_v31 = vld [vmem:[#allocation3 + $0x8] sm:$0xff]  ;;  %v3965_v10 = vpop.f32.mrb[147].mxu1 }
 0x223   : > { %v6362_v25 = vshrl.u32 %v5948_v34, 16  ;;  %v6365_v43 = vshll.u32 %v5948_v34, 16  ;;  %v3815_v24 = vadd.f32 %v15489_v38, %v3599_v48  ;;  %v3597_v47 = vld [vmem:[#allocation3 + $0xe0] sm:$0xff]  ;;  %4123 = vst.msk [vmem:[#allocation3 + $0x10] sm:$0xff] %vm517_vm8, %v4091_v20  ;;  %v4092_v46 = vadd.f32 %v11923_v27, %v3876_v5  ;;  %v15563_v39 = vpop.f32.mrb[145].mxu0  ;;  %v3879_v54 = vld [vmem:[#allocation3 + $0x30] sm:$0xff] }
 0x224   : > { %v6371_v45 = vshrl.u32 %v5949_v23, 16  ;;  %v6374_v21 = vshll.u32 %v5949_v23, 16  ;;  %v3813_v56 = vadd.f32 %v15496_v28, %v3597_v47  ;;  %v3600_v30 = vld [vmem:[#allocation3 + $0xf8] sm:$0xff]  ;;  %4121 = vst.msk [vmem:[#allocation3] sm:$0xff] %vm517_vm8, %v4089_v12  ;;  %v4090_v37 = vadd.f32 %v3965_v10, %v3874_v31  ;;  %v15567_v55 = vpop.f32.mrb[146].mxu0  ;;  %12149 = vmatmul.mubr.msk.bf16.gmra.mrb[252].mxu1 %vm718_vm6, %v15518_v2 }
 0x225   : > { %v6323_v38 = vrot.slane %v15542_v22, 4  ;;  %v6340_v32 = vor.u32 %v15551_v44, %v15549_v7  ;;  %3847 = vst.msk [vmem:[#allocation3 + $0xf0] sm:$0xff] %vm517_vm8, %v3815_v24  ;;  %v3816_v36 = vadd.f32 %v15501_v63, %v3600_v30  ;;  %v3598_v18 = vld [vmem:[#allocation3 + $0xe8] sm:$0xff]  ;;  %4124 = vst.msk [vmem:[#allocation3 + $0x18] sm:$0xff] %vm517_vm8, %v4092_v46  ;;  %v15577_v28 = vpop.f32.mrb[147].mxu0  ;;  %v15579_v4 = vor.u32 %v6348_v61, %v6345_v9  ;;  %v3877_v61 = vld [vmem:[#allocation3 + $0x20] sm:$0xff] }
 0x226   : > { %v15581_v42 = vrot.slane %v6353_v51, 5  ;;  %v15583_v62 = vrot.slane %v6356_v16, 6  ;;  %v5951_v35 = vld [vmem:[#allocation2 + $0xb4] sm:$0xe]  ;;  %3845 = vst.msk [vmem:[#allocation3 + $0xe0] sm:$0xff] %vm517_vm8, %v3813_v56  ;;  %v3814_v8 = vadd.f32 %v15510_v1, %v3598_v18  ;;  %4122 = vst.msk [vmem:[#allocation3 + $0x8] sm:$0xff] %vm517_vm8, %v4090_v37  ;;  %12152 = vmatprep.mubr.msk.bf16.mxu1 %vm718_vm6, %v15527_v40  ;;  %v6322_v1 = vsel %vm14812_vm2, %v15547_v17, %v15542_v22 }
 0x227   : > { %v15590_v63 = vrot.slane %v6362_v25, 5  ;;  %v15592_v60 = vrot.slane %v6365_v43, 6  ;;  %v6381_v19 = vshrl.u32 %v15555_v53, 16  ;;  %v5952_v41 = vld [vmem:[#allocation2 + $0xb8] sm:$0xf]  ;;  %3848 = vst.msk [vmem:[#allocation3 + $0xf8] sm:$0xff] %vm517_vm8, %v3816_v36  ;;  %v6332_v44 = vsel %vm14812_vm2, %v6323_v38, %v6331_v0 }
 0x228   : > { %v6373_v34 = vrot.slane %v6371_v45, 5  ;;  %v6376_v23 = vrot.slane %v6374_v21, 6  ;;  %v6384_v11 = vshll.u32 %v15555_v53, 16  ;;  %3846 = vst.msk [vmem:[#allocation3 + $0xe8] sm:$0xff] %vm517_vm8, %v3814_v8  ;;  %v11926_v7 = vpop.f32.mrb[148].mxu1  ;;  %v15608_v51 = vrot.slane %v6340_v32, 4 }
 0x229   : > { %12185 = vmatmul.mubr.msk.bf16.gmra.mrb[252].mxu0 %vm718_vm6, %v15527_v40  ;;  %v15610_v20 = vld [vmem:[#allocation2 + $0xbc] sm:$0x3]  ;;  %v6390_v58 = vshrl.u32 %v5951_v35, 16  ;;  %v6393_v49 = vshll.u32 %v5951_v35, 16  ;;  %v4095_v9 = vadd.f32 %v11926_v7, %v3879_v54  ;;  %v3978_v16 = vpop.f32.mrb[149].mxu1  ;;  %v6351_v53 = vrot.slane %v15579_v4, 4 }
 0x22a   : > { %12188 = vmatprep.mubr.msk.bf16.mxu0 %vm718_vm6, %v15536_v6  ;;  %v6359_v48 = vor.u32 %v15583_v62, %v15581_v42  ;;  %v6399_v12 = vshrl.u32 %v5952_v41, 16  ;;  %v15615_v5 = vld [vmem:[#allocation2 + $0xc0] sm:$0xe]  ;;  %v4093_v25 = vadd.f32 %v3978_v16, %v3877_v61  ;;  %v3880_v0 = vld [vmem:[#allocation3 + $0x38] sm:$0xff]  ;;  %v11927_v43 = vpop.f32.mrb[150].mxu1  ;;  %v15617_v24 = vpop.f32.mrb[148].mxu0  ;;  %v6368_v47 = vor.u32 %v15592_v60, %v15590_v63 }
 0x22b   : > { %v4378_v27 = vld [vmem:[#allocation3 + $0x10] sm:$0xff]  ;;  %v15621_v46 = vrot.slane %v6381_v19, 5  ;;  %v6402_v31 = vshll.u32 %v5952_v41, 16  ;;  %4127 = vst.msk [vmem:[#allocation3 + $0x30] sm:$0xff] %vm517_vm8, %v4095_v9  ;;  %v4376_v45 = vld [vmem:[#allocation3] sm:$0xff]  ;;  %v4096_v21 = vadd.f32 %v11927_v43, %v3880_v0  ;;  %v3878_v56 = vld [vmem:[#allocation3 + $0x28] sm:$0xff]  ;;  %v15627_v38 = vor.u32 %v6376_v23, %v6373_v34 }
 0x22c   : > { %v4684_v10 = vadd.f32 %v15557_v50, %v4378_v27  ;;  %v3981_v30 = vpop.f32.mrb[151].mxu1  ;;  %v15625_v37 = vpop.f32.mrb[149].mxu0  ;;  %v15629_v32 = vrot.slane %v6384_v11, 6  ;;  %v4682_v36 = vadd.f32 %v15563_v39, %v4376_v45  ;;  %4125 = vst.msk [vmem:[#allocation3 + $0x20] sm:$0xff] %vm517_vm8, %v4093_v25  ;;  %v4379_v18 = vld [vmem:[#allocation3 + $0x18] sm:$0xff]  ;;  %v15635_v50 = vrot.slane %v6390_v58, 5  ;;  %12153 = vmatmul.mubr.msk.bf16.gmra.mrb[0].mxu1 %vm718_vm6, %v15536_v6 }
 0x22d   : > { %v4094_v42 = vadd.f32 %v3981_v30, %v3878_v56  ;;  %v15633_v62 = vpop.f32.mrb[150].mxu0  ;;  %v15637_v35 = vrot.slane %v6393_v49, 6  ;;  %v5955_v8 = vld [vmem:[#allocation2 + $0xc4] sm:$0xf]  ;;  %v4685_v63 = vadd.f32 %v15567_v55, %v4379_v18  ;;  %4128 = vst.msk [vmem:[#allocation3 + $0x38] sm:$0xff] %vm517_vm8, %v4096_v21  ;;  %v4377_v60 = vld [vmem:[#allocation3 + $0x8] sm:$0xff]  ;;  %12156 = vmatprep.mubr.msk.bf16.mxu1 %vm718_vm6, %v15538_v33  ;;  %v6350_v7 = vsel %vm14812_vm2, %v15608_v51, %v15579_v4 }
 0x22e   : > { %4716 = vst.msk [vmem:[#allocation3 + $0x10] sm:$0xff] %vm517_vm8, %v4684_v10  ;;  %v15644_v39 = vpop.f32.mrb[151].mxu0  ;;  %v6401_v19 = vrot.slane %v6399_v12, 5  ;;  %v6409_v41 = vshrl.u32 %v15610_v20, 16  ;;  %v6412_v34 = vshll.u32 %v15610_v20, 16  ;;  %4714 = vst.msk [vmem:[#allocation3] sm:$0xff] %vm517_vm8, %v4682_v36  ;;  %v4683_v23 = vadd.f32 %v15577_v28, %v4377_v60 }
 0x22f   : > { %4126 = vst.msk [vmem:[#allocation3 + $0x28] sm:$0xff] %vm517_vm8, %v4094_v42  ;;  %v6404_v55 = vrot.slane %v6402_v31, 6  ;;  %v6788_v11 = vshrl.u32 %v15615_v5, 16  ;;  %v6791_v54 = vshll.u32 %v15615_v5, 16  ;;  %4717 = vst.msk [vmem:[#allocation3 + $0x18] sm:$0xff] %vm517_vm8, %v4685_v63  ;;  %v15663_v28 = vcombine.low %v6322_v1, %v6332_v44  ;;  %v3883_v49 = vld [vmem:[#allocation3 + $0x50] sm:$0xff] }
 0x230   : > { %v6797_v20 = vshrl.u32 %v5955_v8, 16  ;;  %v6800_v58 = vshll.u32 %v5955_v8, 16  ;;  %4715 = vst.msk [vmem:[#allocation3 + $0x8] sm:$0xff] %vm517_vm8, %v4683_v23  ;;  %v11930_v9 = vpop.f32.mrb[152].mxu1  ;;  %v6360_v61 = vsel %vm14812_vm2, %v6351_v53, %v6359_v48  ;;  %v15674_v22 = vrot.slane %v6368_v47, 4  ;;  %v3881_v44 = vld [vmem:[#allocation3 + $0x40] sm:$0xff] }
 0x231   : > { %12189 = vmatmul.mubr.msk.bf16.gmra.mrb[0].mxu0 %vm718_vm6, %v15538_v33  ;;  %v6379_v17 = vrot.slane %v15627_v38, 4  ;;  %v6387_v1 = vor.u32 %v15629_v32, %v15621_v46  ;;  %v4099_v4 = vadd.f32 %v11930_v9, %v3883_v49  ;;  %v3994_v51 = vpop.f32.mrb[153].mxu1  ;;  %v6396_v16 = vor.u32 %v15637_v35, %v15635_v50  ;;  %v5956_v27 = vld [vmem:[#allocation2 + $0xc8] sm:$0x3]  ;;  %v11966_v43 = vpop.f32.mrb[152].mxu0  ;;  %v3882_v56 = vld [vmem:[#allocation3 + $0x48] sm:$0xff] }
 0x232   : > { %12192 = vmatprep.mubr.msk.bf16.mxu0 %vm718_vm6, %v15540_v52  ;;  %v15681_v12 = vrot.slane %v6409_v41, 5  ;;  %v15683_v5 = vrot.slane %v6412_v34, 6  ;;  %v4382_v25 = vld [vmem:[#allocation3 + $0x30] sm:$0xff]  ;;  %v4097_v53 = vadd.f32 %v3994_v51, %v3881_v44  ;;  %v3884_v48 = vld [vmem:[#allocation3 + $0x58] sm:$0xff]  ;;  %v11931_v0 = vpop.f32.mrb[154].mxu1  ;;  %v15685_v47 = vor.u32 %v6404_v55, %v6401_v19  ;;  %v4587_v32 = vpop.f32.mrb[153].mxu0 }
 0x233   : > { %v15687_v31 = vrot.slane %v6788_v11, 5  ;;  %v6793_v46 = vrot.slane %v6791_v54, 6  ;;  %v4688_v10 = vadd.f32 %v15617_v24, %v4382_v25  ;;  %4131 = vst.msk [vmem:[#allocation3 + $0x50] sm:$0xff] %vm517_vm8, %v4099_v4  ;;  %v4380_v45 = vld [vmem:[#allocation3 + $0x20] sm:$0xff]  ;;  %v4100_v21 = vadd.f32 %v11931_v0, %v3884_v48  ;;  %v3997_v30 = vpop.f32.mrb[155].mxu1  ;;  %v11967_v8 = vpop.f32.mrb[154].mxu0 }
 0x234   : > { %v6799_v36 = vrot.slane %v6797_v20, 5  ;;  %v6802_v18 = vrot.slane %v6800_v58, 6  ;;  %v4686_v42 = vadd.f32 %v15625_v37, %v4380_v45  ;;  %4129 = vst.msk [vmem:[#allocation3 + $0x40] sm:$0xff] %vm517_vm8, %v4097_v53  ;;  %v4383_v50 = vld [vmem:[#allocation3 + $0x38] sm:$0xff]  ;;  %v4098_v35 = vadd.f32 %v3997_v30, %v3882_v56  ;;  %12157 = vmatmul.mubr.msk.bf16.gmra.mrb[4].mxu1 %vm718_vm6, %v15540_v52  ;;  %v4590_v41 = vpop.f32.mrb[155].mxu0  ;;  %v3886_v53 = vld [vmem:[#allocation3 + $0x68] sm:$0xff] }
 0x235   : > { %v6807_v63 = vshrl.u32 %v5956_v27, 16  ;;  %v6810_v60 = vshll.u32 %v5956_v27, 16  ;;  %4720 = vst.msk [vmem:[#allocation3 + $0x30] sm:$0xff] %vm517_vm8, %v4688_v10  ;;  %v4689_v24 = vadd.f32 %v15633_v62, %v4383_v50  ;;  %4132 = vst.msk [vmem:[#allocation3 + $0x58] sm:$0xff] %vm517_vm8, %v4100_v21  ;;  %12160 = vmatprep.mubr.msk.bf16.mxu1 %vm718_vm6, %v15663_v28  ;;  %v15703_v34 = vcombine.low %v6350_v7, %v6360_v61  ;;  %v3887_v7 = vld [vmem:[#allocation3 + $0x70] sm:$0xff]  ;;  %v3885_v61 = vld [vmem:[#allocation3 + $0x60] sm:$0xff] }
 0x236   : > { %v4381_v19 = vld [vmem:[#allocation3 + $0x28] sm:$0xff]  ;;  %4718 = vst.msk [vmem:[#allocation3 + $0x20] sm:$0xff] %vm517_vm8, %v4686_v42  ;;  %4130 = vst.msk [vmem:[#allocation3 + $0x48] sm:$0xff] %vm517_vm8, %v4098_v35  ;;  %v6378_v62 = vsel %vm14812_vm2, %v15674_v22, %v15627_v38  ;;  %v6397_v23 = vrot.slane %v6396_v16, 4  ;;  %v6407_v55 = vrot.slane %v15685_v47, 4  ;;  %v6415_v11 = vor.u32 %v15683_v5, %v15681_v12  ;;  %v3888_v4 = vld [vmem:[#allocation3 + $0x78] sm:$0xff] }
 0x237   : > { %v4687_v37 = vadd.f32 %v15644_v39, %v4381_v19  ;;  %4721 = vst.msk [vmem:[#allocation3 + $0x38] sm:$0xff] %vm517_vm8, %v4689_v24  ;;  %v6388_v39 = vsel %vm14812_vm2, %v6379_v17, %v6387_v1  ;;  %v6794_v54 = vor.u32 %v6793_v46, %v15687_v31  ;;  %v11934_v38 = vpop.f32.mrb[156].mxu1  ;;  %v15721_v20 = vor.u32 %v6802_v18, %v6799_v36  ;;  %v11970_v51 = vpop.f32.mrb[156].mxu0  ;;  %v3891_v50 = vld [vmem:[#allocation3 + $0x90] sm:$0xff]  ;;  %v3889_v24 = vld [vmem:[#allocation3 + $0x80] sm:$0xff] }
 0x238   : > { %v6809_v58 = vrot.slane %v6807_v63, 5  ;;  %v6812_v49 = vrot.slane %v6810_v60, 6  ;;  %v4103_v9 = vadd.f32 %v11934_v38, %v3887_v7  ;;  %v4010_v22 = vpop.f32.mrb[157].mxu1  ;;  %v15723_v16 = vcombine.low %v6378_v62, %v6388_v39  ;;  %v4603_v0 = vpop.f32.mrb[157].mxu0  ;;  %v3892_v62 = vld [vmem:[#allocation3 + $0x98] sm:$0xff]  ;;  %v3890_v7 = vld [vmem:[#allocation3 + $0x88] sm:$0xff] }
 0x239   : > { %12193 = vmatmul.mubr.msk.bf16.gmra.mrb[4].mxu0 %vm718_vm6, %v15663_v28  ;;  %4719 = vst.msk [vmem:[#allocation3 + $0x28] sm:$0xff] %vm517_vm8, %v4687_v37  ;;  %v4101_v1 = vadd.f32 %v4010_v22, %v3885_v61  ;;  %v11935_v44 = vpop.f32.mrb[158].mxu1  ;;  %v6406_v12 = vsel %vm14812_vm2, %v6397_v23, %v15685_v47  ;;  %v6416_v31 = vsel %vm14812_vm2, %v6407_v55, %v6415_v11  ;;  %v6795_v46 = vrot.slane %v6794_v54, 4  ;;  %v11971_v56 = vpop.f32.mrb[158].mxu0 }
 0x23a   : > { %12196 = vmatprep.mubr.msk.bf16.mxu0 %vm718_vm6, %v15703_v34  ;;  %v4386_v17 = vld [vmem:[#allocation3 + $0x50] sm:$0xff]  ;;  %4135 = vst.msk [vmem:[#allocation3 + $0x70] sm:$0xff] %vm517_vm8, %v4103_v9  ;;  %v4104_v25 = vadd.f32 %v11935_v44, %v3888_v4  ;;  %v4013_v48 = vpop.f32.mrb[159].mxu1  ;;  %v6805_v47 = vrot.slane %v15721_v20, 4  ;;  %v4606_v18 = vpop.f32.mrb[159].mxu0  ;;  %v15741_v42 = vcombine.low %v6406_v12, %v6416_v31 }
 0x23b   : > { %v4692_v5 = vadd.f32 %v11966_v43, %v4386_v17  ;;  %v4384_v27 = vld [vmem:[#allocation3 + $0x40] sm:$0xff]  ;;  %4133 = vst.msk [vmem:[#allocation3 + $0x60] sm:$0xff] %vm517_vm8, %v4101_v1  ;;  %v4102_v21 = vadd.f32 %v4013_v48, %v3886_v53  ;;  %v6813_v43 = vor.u32 %v6812_v49, %v6809_v58 }
 0x23c   : > { %v4690_v10 = vadd.f32 %v4587_v32, %v4384_v27  ;;  %v4387_v45 = vld [vmem:[#allocation3 + $0x58] sm:$0xff]  ;;  %4136 = vst.msk [vmem:[#allocation3 + $0x78] sm:$0xff] %vm517_vm8, %v4104_v25  ;;  %12161 = vmatmul.mubr.msk.bf16.gmra.mrb[8].mxu1 %vm718_vm6, %v15703_v34  ;;  %v3893_v27 = vld [vmem:[#allocation3 + $0xa0] sm:$0xff] }
 0x23d   : > { %4724 = vst.msk [vmem:[#allocation3 + $0x50] sm:$0xff] %vm517_vm8, %v4692_v5  ;;  %v4693_v30 = vadd.f32 %v11967_v8, %v4387_v45  ;;  %v4385_v36 = vld [vmem:[#allocation3 + $0x48] sm:$0xff]  ;;  %4134 = vst.msk [vmem:[#allocation3 + $0x68] sm:$0xff] %vm517_vm8, %v4102_v21  ;;  %12164 = vmatprep.mubr.msk.bf16.mxu1 %vm718_vm6, %v15723_v16  ;;  %v6804_v8 = vsel %vm14812_vm2, %v6795_v46, %v15721_v20  ;;  %v6814_v63 = vsel %vm14812_vm2, %v6805_v47, %v6813_v43 }
 0x23e   : > { %4722 = vst.msk [vmem:[#allocation3 + $0x40] sm:$0xff] %vm517_vm8, %v4690_v10  ;;  %v4691_v32 = vadd.f32 %v4590_v41, %v4385_v36  ;;  %v11974_v39 = vpop.f32.mrb[160].mxu0  ;;  %v15755_v20 = vcombine.low %v6804_v8, %v6814_v63  ;;  %v3894_v21 = vld [vmem:[#allocation3 + $0xa8] sm:$0xff]  ;;  %v12616_v63 = vld [vmem:[%s17219_s1 + $0x48] sm:$0xff]  }
 0x23f   : > { %4725 = vst.msk [vmem:[#allocation3 + $0x58] sm:$0xff] %vm517_vm8, %v4693_v30  ;;  %v11938_v35 = vpop.f32.mrb[160].mxu1  ;;  %v4619_v58 = vpop.f32.mrb[161].mxu0  ;;  %v12615_v43 = vld [vmem:[%s17219_s1 + $0x178] sm:$0xff]  }
 0x240   : > { %4723 = vst.msk [vmem:[#allocation3 + $0x48] sm:$0xff] %vm517_vm8, %v4691_v32  ;;  %v4107_v60 = vadd.f32 %v11938_v35, %v3891_v50  ;;  %v4026_v19 = vpop.f32.mrb[161].mxu1  ;;  %v11975_v22 = vpop.f32.mrb[162].mxu0 }
 0x241   : > { %12197 = vmatmul.mubr.msk.bf16.gmra.mrb[8].mxu0 %vm718_vm6, %v15723_v16  ;;  %v4390_v41 = vld [vmem:[#allocation3 + $0x70] sm:$0xff]  ;;  %v4105_v37 = vadd.f32 %v4026_v19, %v3889_v24  ;;  %v11939_v23 = vpop.f32.mrb[162].mxu1  ;;  %v4622_v4 = vpop.f32.mrb[163].mxu0 }
 0x242   : > { %12200 = vmatprep.mubr.msk.bf16.mxu0 %vm718_vm6, %v15741_v42  ;;  %v4696_v55 = vadd.f32 %v11970_v51, %v4390_v41  ;;  %4139 = vst.msk [vmem:[#allocation3 + $0x90] sm:$0xff] %vm517_vm8, %v4107_v60  ;;  %v4388_v11 = vld [vmem:[#allocation3 + $0x60] sm:$0xff]  ;;  %v4108_v54 = vadd.f32 %v11939_v23, %v3892_v62  ;;  %v4029_v38 = vpop.f32.mrb[163].mxu1  ;;  %v3895_v51 = vld [vmem:[#allocation3 + $0xb0] sm:$0xff] }
 0x243   : > { %v4694_v49 = vadd.f32 %v4603_v0, %v4388_v11  ;;  %4137 = vst.msk [vmem:[#allocation3 + $0x80] sm:$0xff] %vm517_vm8, %v4105_v37  ;;  %v4391_v9 = vld [vmem:[#allocation3 + $0x78] sm:$0xff]  ;;  %v4106_v61 = vadd.f32 %v4029_v38, %v3890_v7  ;;  %v3899_v24 = vld [vmem:[#allocation3 + $0xd0] sm:$0xff]  ;;  %v3897_v41 = vld [vmem:[#allocation3 + $0xc0] sm:$0xff] }
 0x244   : > { %4728 = vst.msk [vmem:[#allocation3 + $0x70] sm:$0xff] %vm517_vm8, %v4696_v55  ;;  %v4697_v17 = vadd.f32 %v11971_v56, %v4391_v9  ;;  %4140 = vst.msk [vmem:[#allocation3 + $0x98] sm:$0xff] %vm517_vm8, %v4108_v54  ;;  %v4389_v1 = vld [vmem:[#allocation3 + $0x68] sm:$0xff]  ;;  %12165 = vmatmul.mubr.msk.bf16.gmra.mrb[12].mxu1 %vm718_vm6, %v15741_v42  ;;  %v3896_v0 = vld [vmem:[#allocation3 + $0xb8] sm:$0xff] }
 0x245   : > { %4726 = vst.msk [vmem:[#allocation3 + $0x60] sm:$0xff] %vm517_vm8, %v4694_v49  ;;  %v4695_v44 = vadd.f32 %v4606_v18, %v4389_v1  ;;  %4138 = vst.msk [vmem:[#allocation3 + $0x88] sm:$0xff] %vm517_vm8, %v4106_v61  ;;  %12208 = vmatprep.mubr.msk.bf16.mxu1 %vm718_vm6, %v15207_v57  ;;  %v15804_v62 = vld [vmem:[%s17219_s1 + $0xe0] sm:$0xff]   ;;  %v3900_v55 = vld [vmem:[#allocation3 + $0xd8] sm:$0xff] }
 0x246   : > { %4729 = vst.msk [vmem:[#allocation3 + $0x78] sm:$0xff] %vm517_vm8, %v4697_v17  ;;  %v11978_v57 = vpop.f32.mrb[164].mxu0 }
 0x247   : > { %4727 = vst.msk [vmem:[#allocation3 + $0x68] sm:$0xff] %vm517_vm8, %v4695_v44  ;;  %v11942_v12 = vpop.f32.mrb[164].mxu1  ;;  %v4635_v47 = vpop.f32.mrb[165].mxu0 }
 0x248   : > { %v4111_v5 = vadd.f32 %v11942_v12, %v3895_v51  ;;  %v4042_v25 = vpop.f32.mrb[165].mxu1  ;;  %v11979_v32 = vpop.f32.mrb[166].mxu0 }
 0x249   : > { %12201 = vmatmul.mubr.msk.bf16.gmra.mrb[12].mxu0 %vm718_vm6, %v15755_v20  ;;  %v4394_v53 = vld [vmem:[#allocation3 + $0x90] sm:$0xff]  ;;  %v4109_v48 = vadd.f32 %v4042_v25, %v3893_v27  ;;  %v11943_v31 = vpop.f32.mrb[166].mxu1  ;;  %v4638_v8 = vpop.f32.mrb[167].mxu0 }
 0x24a   : > { %12244 = vmatprep.mubr.msk.bf16.mxu0 %vm718_vm6, %v15220_v15  ;;  %v4700_v46 = vadd.f32 %v11974_v39, %v4394_v53  ;;  %4143 = vst.msk [vmem:[#allocation3 + $0xb0] sm:$0xff] %vm517_vm8, %v4111_v5  ;;  %v4392_v10 = vld [vmem:[#allocation3 + $0x80] sm:$0xff]  ;;  %v4112_v45 = vadd.f32 %v11943_v31, %v3896_v0  ;;  %v4045_v56 = vpop.f32.mrb[167].mxu1  ;;  %v3903_v5 = vld [vmem:[#allocation3 + $0xf0] sm:$0xff] }
 0x24b   : > { %v4698_v30 = vadd.f32 %v4619_v58, %v4392_v10  ;;  %4141 = vst.msk [vmem:[#allocation3 + $0xa0] sm:$0xff] %vm517_vm8, %v4109_v48  ;;  %v4395_v36 = vld [vmem:[#allocation3 + $0x98] sm:$0xff]  ;;  %v4110_v18 = vadd.f32 %v4045_v56, %v3894_v21  ;;  %v3898_v58 = vld [vmem:[#allocation3 + $0xc8] sm:$0xff]  ;;  %v3901_v53 = vld [vmem:[#allocation3 + $0xe0] sm:$0xff] }
 0x24c   : > { %4732 = vst.msk [vmem:[#allocation3 + $0x90] sm:$0xff] %vm517_vm8, %v4700_v46  ;;  %v4701_v50 = vadd.f32 %v11975_v22, %v4395_v36  ;;  %4144 = vst.msk [vmem:[#allocation3 + $0xb8] sm:$0xff] %vm517_vm8, %v4112_v45  ;;  %v4393_v35 = vld [vmem:[#allocation3 + $0x88] sm:$0xff]  ;;  %12209 = vmatmul.mubr.msk.bf16.vlgmr.msra.gmra.mrb[16].mxu1 %vm718_vm6, %v15220_v15  ;;  %v15795_v15 = vld [vmem:[%s17219_s1 + $0x90] sm:$0xff]  }
 0x24d   : > { %4730 = vst.msk [vmem:[#allocation3 + $0x80] sm:$0xff] %vm517_vm8, %v4698_v30  ;;  %v4699_v60 = vadd.f32 %v4622_v4, %v4393_v35  ;;  %4142 = vst.msk [vmem:[#allocation3 + $0xa8] sm:$0xff] %vm517_vm8, %v4110_v18  ;;  %12277 = vmatpush3.bf16.msra.mxu1 %v15374_v26  ;;  %12212 = vmatprep.mubr.msk.bf16.mxu1 %vm718_vm6, %v15222_v29 }
 0x24e   : > { %4733 = vst.msk [vmem:[#allocation3 + $0x98] sm:$0xff] %vm517_vm8, %v4701_v50  ;;  %12278 = vmatprep.subr.bf16.mxu1 %v12615_v43  ;;  %v11982_v54 = vpop.f32.mrb[168].mxu0 }
 0x24f   : > { %4731 = vst.msk [vmem:[#allocation3 + $0x88] sm:$0xff] %vm517_vm8, %v4699_v60  ;;  %v11946_v19 = vpop.f32.mrb[168].mxu1  ;;  %v4651_v9 = vpop.f32.mrb[169].mxu0 }
 0x250   : > { %v4115_v26 = vadd.f32 %v11946_v19, %v3899_v24  ;;  %v4058_v37 = vpop.f32.mrb[169].mxu1  ;;  %v11983_v1 = vpop.f32.mrb[170].mxu0  ;;  %v4758_v24 = vld [vmem:[#allocation3 + $0x10] sm:$0xff] }
 0x251   : > { %12245 = vmatmul.mubr.msk.bf16.vlgmr.msra.gmra.mrb[16].mxu0 %vm718_vm6, %v15222_v29  ;;  %v4398_v23 = vld [vmem:[#allocation3 + $0xb0] sm:$0xff]  ;;  %v4113_v39 = vadd.f32 %v4058_v37, %v3897_v41  ;;  %v11947_v11 = vpop.f32.mrb[170].mxu1  ;;  %12279 = vmatpush3.bf16.msra.mxu1 %v12615_v43  ;;  %v4654_v51 = vpop.f32.mrb[171].mxu0  ;;  %v4756_v41 = vld [vmem:[#allocation3] sm:$0xff] }
 0x252   : > { %12313 = vmatpush3.bf16.msra.mxu0 %v15400_v14  ;;  %12248 = vmatprep.mubr.msk.bf16.mxu0 %vm718_vm6, %v15231_v3  ;;  %v4704_v7 = vadd.f32 %v11978_v57, %v4398_v23  ;;  %4147 = vst.msk [vmem:[#allocation3 + $0xd0] sm:$0xff] %vm517_vm8, %v4115_v26  ;;  %v4396_v14 = vld [vmem:[#allocation3 + $0xa0] sm:$0xff]  ;;  %v4116_v38 = vadd.f32 %v11947_v11, %v3900_v55  ;;  %v4061_v49 = vpop.f32.mrb[171].mxu1  ;;  %v3904_v57 = vld [vmem:[#allocation3 + $0xf8] sm:$0xff] }
 0x253   : > { %12314 = vmatprep.subr.bf16.mxu0 %v12616_v63  ;;  %12348 = vmatprep.subr.bf16.mxu1 %v15795_v15  ;;  %v4702_v61 = vadd.f32 %v4635_v47, %v4396_v14  ;;  %4145 = vst.msk [vmem:[#allocation3 + $0xc0] sm:$0xff] %vm517_vm8, %v4113_v39  ;;  %v4399_v22 = vld [vmem:[#allocation3 + $0xb8] sm:$0xff]  ;;  %v4114_v17 = vadd.f32 %v4061_v49, %v3898_v58  ;;  %v3902_v47 = vld [vmem:[#allocation3 + $0xe8] sm:$0xff]  ;;  %v5958_v14 = vld [vmem:[#allocation2 + $0xd0] sm:$0xf] }
 0x254   : > { %4736 = vst.msk [vmem:[#allocation3 + $0xb0] sm:$0xff] %vm517_vm8, %v4704_v7  ;;  %v4705_v4 = vadd.f32 %v11979_v32, %v4399_v22  ;;  %4148 = vst.msk [vmem:[#allocation3 + $0xd8] sm:$0xff] %vm517_vm8, %v4116_v38  ;;  %v4397_v44 = vld [vmem:[#allocation3 + $0xa8] sm:$0xff]  ;;  %12213 = vmatmul.mubr.msk.bf16.gmra.mrb[20].mxu1 %vm718_vm6, %v15231_v3  ;;  %v5957_v23 = vld [vmem:[#allocation2 + $0xcc] sm:$0xe] }
 0x255   : > { %4734 = vst.msk [vmem:[#allocation3 + $0xa0] sm:$0xff] %vm517_vm8, %v4702_v61  ;;  %v4703_v12 = vadd.f32 %v4638_v8, %v4397_v44  ;;  %4146 = vst.msk [vmem:[#allocation3 + $0xc8] sm:$0xff] %vm517_vm8, %v4114_v17  ;;  %12216 = vmatprep.mubr.msk.bf16.mxu1 %vm718_vm6, %v15233_v59  ;;  %v4759_v11 = vld [vmem:[#allocation3 + $0x18] sm:$0xff] }
 0x256   : > { %12315 = vmatpush3.bf16.msra.mxu0 %v12616_v63  ;;  %4737 = vst.msk [vmem:[#allocation3 + $0xb8] sm:$0xff] %vm517_vm8, %v4705_v4  ;;  %v11986_v10 = vpop.f32.mrb[172].mxu0 }
 0x257   : > { %12384 = vmatprep.subr.bf16.mxu0 %v15804_v62  ;;  %4735 = vst.msk [vmem:[#allocation3 + $0xa8] sm:$0xff] %vm517_vm8, %v4703_v12  ;;  %v11950_v27 = vpop.f32.mrb[172].mxu1  ;;  %v4667_v30 = vpop.f32.mrb[173].mxu0 }
 0x258   : > { %v4119_v25 = vadd.f32 %v11950_v27, %v3903_v5  ;;  %v4074_v48 = vpop.f32.mrb[173].mxu1  ;;  %v11987_v50 = vpop.f32.mrb[174].mxu0 }
 0x259   : > { %12249 = vmatmul.mubr.msk.bf16.gmra.mrb[20].mxu0 %vm718_vm6, %v15233_v59  ;;  %v4402_v0 = vld [vmem:[#allocation3 + $0xd0] sm:$0xff]  ;;  %v4117_v31 = vadd.f32 %v4074_v48, %v3901_v53  ;;  %v11951_v46 = vpop.f32.mrb[174].mxu1  ;;  %v4670_v63 = vpop.f32.mrb[175].mxu0  ;;  %v7105_v53 = vshrl.u32 %v5958_v14, 16 }
 0x25a   : > { %12252 = vmatprep.mubr.msk.bf16.mxu0 %vm718_vm6, %v15518_v2  ;;  %v4708_v45 = vadd.f32 %v11982_v54, %v4402_v0  ;;  %4151 = vst.msk [vmem:[#allocation3 + $0xf0] sm:$0xff] %vm517_vm8, %v4119_v25  ;;  %v4400_v21 = vld [vmem:[#allocation3 + $0xc0] sm:$0xff]  ;;  %v4120_v56 = vadd.f32 %v11951_v46, %v3904_v57  ;;  %v4077_v43 = vpop.f32.mrb[175].mxu1  ;;  %v7099_v25 = vshll.u32 %v5957_v23, 16  ;;  %v7108_v0 = vshll.u32 %v5958_v14, 16  ;;  %v4762_v57 = vld [vmem:[#allocation3 + $0x30] sm:$0xff] }
 0x25b   : > { %v4706_v36 = vadd.f32 %v4651_v9, %v4400_v21  ;;  %4149 = vst.msk [vmem:[#allocation3 + $0xe0] sm:$0xff] %vm517_vm8, %v4117_v31  ;;  %v4403_v18 = vld [vmem:[#allocation3 + $0xd8] sm:$0xff]  ;;  %v4118_v32 = vadd.f32 %v4077_v43, %v3902_v47  ;;  %v4757_v9 = vld [vmem:[#allocation3 + $0x8] sm:$0xff]  ;;  %v5959_v31 = vld [vmem:[#allocation2 + $0xd4] sm:$0x3]  ;;  %v7107_v43 = vrot.slane %v7105_v53, 5 }
 0x25c   : > { %4740 = vst.msk [vmem:[#allocation3 + $0xd0] sm:$0xff] %vm517_vm8, %v4708_v45  ;;  %v4709_v35 = vadd.f32 %v11983_v1, %v4403_v18  ;;  %4152 = vst.msk [vmem:[#allocation3 + $0xf8] sm:$0xff] %vm517_vm8, %v4120_v56  ;;  %v4401_v8 = vld [vmem:[#allocation3 + $0xc8] sm:$0xff]  ;;  %12217 = vmatmul.mubr.msk.bf16.gmra.mrb[24].mxu1 %vm718_vm6, %v15518_v2  ;;  %v4760_v21 = vld [vmem:[#allocation3 + $0x20] sm:$0xff]  ;;  %v15858_v47 = vrot.slane %v7099_v25, 6 }
 0x25d   : > { %4738 = vst.msk [vmem:[#allocation3 + $0xc0] sm:$0xff] %vm517_vm8, %v4706_v36  ;;  %v4707_v60 = vadd.f32 %v4654_v51, %v4401_v8  ;;  %4150 = vst.msk [vmem:[#allocation3 + $0xe8] sm:$0xff] %vm517_vm8, %v4118_v32  ;;  %12220 = vmatprep.mubr.msk.bf16.mxu1 %vm718_vm6, %v15527_v40  ;;  %v7096_v51 = vshrl.u32 %v5957_v23, 16  ;;  %v4763_v32 = vld [vmem:[#allocation3 + $0x38] sm:$0xff]  ;;  %v7110_v8 = vrot.slane %v7108_v0, 6 }
 0x25e   : > { %4741 = vst.msk [vmem:[#allocation3 + $0xd8] sm:$0xff] %vm517_vm8, %v4709_v35  ;;  %v12030_v7 = vpop.f32.mrb[176].mxu0  ;;  %v5961_v23 = vld [vmem:[#allocation2 + $0xdc] sm:$0xf] }
 0x25f   : > { %4739 = vst.msk [vmem:[#allocation3 + $0xc8] sm:$0xff] %vm517_vm8, %v4707_v60  ;;  %v11994_v19 = vpop.f32.mrb[176].mxu1  ;;  %v5135_v22 = vpop.f32.mrb[177].mxu0 }
 0x260   : > { %v4974_v26 = vadd.f32 %v11994_v19, %v4758_v24  ;;  %v4845_v37 = vpop.f32.mrb[177].mxu1  ;;  %v12031_v44 = vpop.f32.mrb[178].mxu0 }
 0x261   : > { %12253 = vmatmul.mubr.msk.bf16.gmra.mrb[24].mxu0 %vm718_vm6, %v15527_v40  ;;  %v4406_v39 = vld [vmem:[#allocation3 + $0xf0] sm:$0xff]  ;;  %v4972_v55 = vadd.f32 %v4845_v37, %v4756_v41  ;;  %v11995_v54 = vpop.f32.mrb[178].mxu1  ;;  %v5138_v27 = vpop.f32.mrb[179].mxu0 }
 0x262   : > { %12256 = vmatprep.mubr.msk.bf16.mxu0 %vm718_vm6, %v15536_v6  ;;  %v4712_v38 = vadd.f32 %v11986_v10, %v4406_v39  ;;  %v4404_v58 = vld [vmem:[#allocation3 + $0xe0] sm:$0xff]  ;;  %5006 = vst.msk [vmem:[#allocation3 + $0x10] sm:$0xff] %vm517_vm8, %v4974_v26  ;;  %v4975_v49 = vadd.f32 %v11995_v54, %v4759_v11  ;;  %v4848_v61 = vpop.f32.mrb[179].mxu1  ;;  %v15856_v10 = vrot.slane %v7096_v51, 5  ;;  %v4761_v26 = vld [vmem:[#allocation3 + $0x28] sm:$0xff] }
 0x263   : > { %v4710_v17 = vadd.f32 %v4667_v30, %v4404_v58  ;;  %v4407_v1 = vld [vmem:[#allocation3 + $0xf8] sm:$0xff]  ;;  %5004 = vst.msk [vmem:[#allocation3] sm:$0xff] %vm517_vm8, %v4972_v55  ;;  %v4973_v4 = vadd.f32 %v4848_v61, %v4757_v9  ;;  %v5960_v30 = vld [vmem:[#allocation2 + $0xd8] sm:$0xe]  ;;  %v7118_v9 = vshll.u32 %v5959_v31, 16 }
 0x264   : > { %4744 = vst.msk [vmem:[#allocation3 + $0xf0] sm:$0xff] %vm517_vm8, %v4712_v38  ;;  %v4713_v12 = vadd.f32 %v11987_v50, %v4407_v1  ;;  %v4405_v5 = vld [vmem:[#allocation3 + $0xe8] sm:$0xff]  ;;  %5007 = vst.msk [vmem:[#allocation3 + $0x18] sm:$0xff] %vm517_vm8, %v4975_v49  ;;  %12221 = vmatmul.mubr.msk.bf16.gmra.mrb[28].mxu1 %vm718_vm6, %v15536_v6  ;;  %v7404_v14 = vshrl.u32 %v5960_v30, 16  ;;  %v7407_v38 = vshll.u32 %v5960_v30, 16  ;;  %v7416_v1 = vshll.u32 %v5961_v23, 16 }
 0x265   : > { %4742 = vst.msk [vmem:[#allocation3 + $0xe0] sm:$0xff] %vm517_vm8, %v4710_v17  ;;  %v4711_v48 = vadd.f32 %v4670_v63, %v4405_v5  ;;  %5005 = vst.msk [vmem:[#allocation3 + $0x8] sm:$0xff] %vm517_vm8, %v4973_v4  ;;  %12224 = vmatprep.mubr.msk.bf16.mxu1 %vm718_vm6, %v15538_v33  ;;  %v7115_v63 = vshrl.u32 %v5959_v31, 16  ;;  %v7413_v17 = vshrl.u32 %v5961_v23, 16  ;;  %v7102_v4 = vor.u32 %v15858_v47, %v15856_v10 }
 0x266   : > { %4745 = vst.msk [vmem:[#allocation3 + $0xf8] sm:$0xff] %vm517_vm8, %v4713_v12  ;;  %v12034_v35 = vpop.f32.mrb[180].mxu0  ;;  %v15878_v12 = vor.u32 %v7110_v8, %v7107_v43  ;;  %v7409_v25 = vrot.slane %v7407_v38, 6  ;;  %v7120_v31 = vrot.slane %v7118_v9, 6  ;;  %v8019_v9 = vld [vmem:[#allocation2] sm:$0xc] }
 0x267   : > { %4743 = vst.msk [vmem:[#allocation3 + $0xe8] sm:$0xff] %vm517_vm8, %v4711_v48  ;;  %v11998_v46 = vpop.f32.mrb[180].mxu1  ;;  %v5151_v37 = vpop.f32.mrb[181].mxu0  ;;  %v7117_v5 = vrot.slane %v7115_v63, 5  ;;  %v4764_v48 = vld [vmem:[#allocation3 + $0x40] sm:$0xff]  ;;  %v7415_v30 = vrot.slane %v7413_v17, 5 }
 0x268   : > { %v4978_v45 = vadd.f32 %v11998_v46, %v4762_v57  ;;  %v4861_v56 = vpop.f32.mrb[181].mxu1  ;;  %v12035_v54 = vpop.f32.mrb[182].mxu0 }
 0x269   : > { %12257 = vmatmul.mubr.msk.bf16.gmra.mrb[28].mxu0 %vm718_vm6, %v15538_v33  ;;  %v5048_v36 = vld [vmem:[#allocation3 + $0x10] sm:$0xff]  ;;  %v4976_v18 = vadd.f32 %v4861_v56, %v4760_v21  ;;  %v11999_v50 = vpop.f32.mrb[182].mxu1  ;;  %v5154_v49 = vpop.f32.mrb[183].mxu0  ;;  %v4767_v21 = vld [vmem:[#allocation3 + $0x58] sm:$0xff] }
 0x26a   : > { %12260 = vmatprep.mubr.msk.bf16.mxu0 %vm718_vm6, %v15540_v52  ;;  %v5264_v60 = vadd.f32 %v12030_v7, %v5048_v36  ;;  %5010 = vst.msk [vmem:[#allocation3 + $0x30] sm:$0xff] %vm517_vm8, %v4978_v45  ;;  %v5046_v24 = vld [vmem:[#allocation3] sm:$0xff]  ;;  %v4979_v19 = vadd.f32 %v11999_v50, %v4763_v32  ;;  %v4864_v41 = vpop.f32.mrb[183].mxu1  ;;  %v7418_v36 = vrot.slane %v7416_v1, 6  ;;  %v4765_v50 = vld [vmem:[#allocation3 + $0x48] sm:$0xff] }
 0x26b   : > { %v5262_v39 = vadd.f32 %v5135_v22, %v5046_v24  ;;  %5008 = vst.msk [vmem:[#allocation3 + $0x20] sm:$0xff] %vm517_vm8, %v4976_v18  ;;  %v5049_v55 = vld [vmem:[#allocation3 + $0x18] sm:$0xff]  ;;  %v4977_v11 = vadd.f32 %v4864_v41, %v4761_v26  ;;  %v5962_v22 = vld [vmem:[#allocation2 + $0xe0] sm:$0x3]  ;;  %v15882_v41 = vrot.slane %v7102_v4, 4 }
 0x26c   : > { %5296 = vst.msk [vmem:[#allocation3 + $0x10] sm:$0xff] %vm517_vm8, %v5264_v60  ;;  %v5265_v58 = vadd.f32 %v12031_v44, %v5049_v55  ;;  %5011 = vst.msk [vmem:[#allocation3 + $0x38] sm:$0xff] %vm517_vm8, %v4979_v19  ;;  %v5047_v7 = vld [vmem:[#allocation3 + $0x8] sm:$0xff]  ;;  %12225 = vmatmul.mubr.msk.bf16.gmra.mrb[32].mxu1 %vm718_vm6, %v15540_v52  ;;  %v4766_v44 = vld [vmem:[#allocation3 + $0x50] sm:$0xff]  ;;  %v7423_v57 = vshrl.u32 %v5962_v22, 16  ;;  %v7426_v46 = vshll.u32 %v5962_v22, 16 }
 0x26d   : > { %5294 = vst.msk [vmem:[#allocation3] sm:$0xff] %vm517_vm8, %v5262_v39  ;;  %v5263_v61 = vadd.f32 %v5138_v27, %v5047_v7  ;;  %5009 = vst.msk [vmem:[#allocation3 + $0x28] sm:$0xff] %vm517_vm8, %v4977_v11  ;;  %12228 = vmatprep.mubr.msk.bf16.mxu1 %vm718_vm6, %v15663_v28  ;;  %v7406_v27 = vrot.slane %v7404_v14, 5  ;;  %v15884_v39 = vld [vmem:[#allocation2 + $0x4] sm:$0xf]  ;;  %v7113_v11 = vrot.slane %v15878_v12, 4  ;;  %v7121_v14 = vor.u32 %v7120_v31, %v7117_v5 }
 0x26e   : > { %5297 = vst.msk [vmem:[#allocation3 + $0x18] sm:$0xff] %vm517_vm8, %v5265_v58  ;;  %v12038_v47 = vpop.f32.mrb[184].mxu0  ;;  %v15895_v58 = vor.u32 %v7418_v36, %v7415_v30  ;;  %v7428_v7 = vrot.slane %v7426_v46, 6  ;;  %v7112_v17 = vsel %vm14812_vm2, %v15882_v41, %v15878_v12  ;;  %v8021_v4 = vld [vmem:[#allocation2 + $0x8] sm:$0x3]  ;;  %v4769_v30 = vld [vmem:[#allocation3 + $0x68] sm:$0xff] }
 0x26f   : > { %5295 = vst.msk [vmem:[#allocation3 + $0x8] sm:$0xff] %vm517_vm8, %v5263_v61  ;;  %v12002_v51 = vpop.f32.mrb[184].mxu1  ;;  %v5167_v63 = vpop.f32.mrb[185].mxu0  ;;  %v7410_v23 = vor.u32 %v7409_v25, %v7406_v27  ;;  %v8132_v61 = vrot.slane %v15884_v39, 6  ;;  %v7122_v27 = vsel %vm14812_vm2, %v7113_v11, %v7121_v14  ;;  %v15912_v25 = vld [vmem:[#allocation2 + $0x10] sm:$0xf] }
 0x270   : > { %v4982_v53 = vadd.f32 %v12002_v51, %v4766_v44  ;;  %v4877_v0 = vpop.f32.mrb[185].mxu1  ;;  %v12039_v26 = vpop.f32.mrb[186].mxu0  ;;  %v4768_v51 = vld [vmem:[#allocation3 + $0x60] sm:$0xff]  ;;  %v7421_v12 = vrot.slane %v15895_v58, 4  ;;  %v15929_v39 = vcombine.low %v7112_v17, %v7122_v27  ;;  %v8022_v11 = vld [vmem:[#allocation2 + $0xc] sm:$0xc] }
 0x271   : > { %12261 = vmatmul.mubr.msk.bf16.gmra.mrb[32].mxu0 %vm718_vm6, %v15663_v28  ;;  %v5052_v45 = vld [vmem:[#allocation3 + $0x30] sm:$0xff]  ;;  %v4980_v10 = vadd.f32 %v4877_v0, %v4764_v48  ;;  %v12003_v56 = vpop.f32.mrb[186].mxu1  ;;  %v15908_v1 = vrot.slane %v7410_v23, 4  ;;  %v4771_v0 = vld [vmem:[#allocation3 + $0x78] sm:$0xff]  ;;  %v8139_v14 = vrot.slane %v15912_v25, 6 }
 0x272   : > { %12264 = vmatprep.mubr.msk.bf16.mxu0 %vm718_vm6, %v15703_v34  ;;  %v5268_v18 = vadd.f32 %v12034_v35, %v5052_v45  ;;  %5014 = vst.msk [vmem:[#allocation3 + $0x50] sm:$0xff] %vm517_vm8, %v4982_v53  ;;  %v5050_v43 = vld [vmem:[#allocation3 + $0x20] sm:$0xff]  ;;  %v4983_v32 = vadd.f32 %v12003_v56, %v4767_v21  ;;  %v4880_v8 = vpop.f32.mrb[187].mxu1  ;;  %v10888_v45 = vrot.slane %v8019_v9, 10  ;;  %v4775_v25 = vld [vmem:[#allocation3 + $0x98] sm:$0xff] }
 0x273   : > { %v5266_v60 = vadd.f32 %v5151_v37, %v5050_v43  ;;  %5012 = vst.msk [vmem:[#allocation3 + $0x40] sm:$0xff] %vm517_vm8, %v4980_v10  ;;  %v5053_v24 = vld [vmem:[#allocation3 + $0x38] sm:$0xff]  ;;  %v4981_v19 = vadd.f32 %v4880_v8, %v4765_v50  ;;  %v5170_v37 = vpop.f32.mrb[187].mxu0  ;;  %v8134_v43 = vrot.slane %v8132_v61, 4 }
 0x274   : > { %5300 = vst.msk [vmem:[#allocation3 + $0x30] sm:$0xff] %vm517_vm8, %v5268_v18  ;;  %v5269_v35 = vadd.f32 %v12035_v54, %v5053_v24  ;;  %5015 = vst.msk [vmem:[#allocation3 + $0x58] sm:$0xff] %vm517_vm8, %v4983_v32  ;;  %v5051_v55 = vld [vmem:[#allocation3 + $0x28] sm:$0xff]  ;;  %12229 = vmatmul.mubr.msk.bf16.gmra.mrb[36].mxu1 %vm718_vm6, %v15703_v34  ;;  %v7425_v54 = vrot.slane %v7423_v57, 5  ;;  %v8135_v32 = vrot.slane %v8021_v4, 6 }
 0x275   : > { %5298 = vst.msk [vmem:[#allocation3 + $0x20] sm:$0xff] %vm517_vm8, %v5266_v60  ;;  %v5267_v38 = vadd.f32 %v5154_v49, %v5051_v55  ;;  %5013 = vst.msk [vmem:[#allocation3 + $0x48] sm:$0xff] %vm517_vm8, %v4981_v19  ;;  %12232 = vmatprep.mubr.msk.bf16.mxu1 %vm718_vm6, %v15723_v16  ;;  %v4770_v49 = vld [vmem:[#allocation3 + $0x70] sm:$0xff] }
 0x276   : > { %5301 = vst.msk [vmem:[#allocation3 + $0x38] sm:$0xff] %vm517_vm8, %v5269_v35  ;;  %v12042_v57 = vpop.f32.mrb[188].mxu0  ;;  %v7429_v46 = vor.u32 %v7428_v7, %v7425_v54  ;;  %v8024_v54 = vld [vmem:[#allocation2 + $0x14] sm:$0x3]  ;;  %v4774_v7 = vld [vmem:[#allocation3 + $0x90] sm:$0xff] }
 0x277   : > { %5299 = vst.msk [vmem:[#allocation3 + $0x28] sm:$0xff] %vm517_vm8, %v5267_v38  ;;  %v12006_v22 = vpop.f32.mrb[188].mxu1  ;;  %v5183_v18 = vpop.f32.mrb[189].mxu0  ;;  %v8136_v38 = vsel %vm15919_vm5, %v8134_v43, %v8135_v32 }
 0x278   : > { %v4986_v44 = vadd.f32 %v12006_v22, %v4770_v49  ;;  %v4893_v5 = vpop.f32.mrb[189].mxu1  ;;  %v12043_v24 = vpop.f32.mrb[190].mxu0  ;;  %v7430_v55 = vsel %vm14812_vm2, %v7421_v12, %v7429_v46  ;;  %v8025_v49 = vld [vmem:[#allocation2 + $0x18] sm:$0xc]  ;;  %v15953_v22 = vld [vmem:[#allocation2 + $0x28] sm:$0xf] }
 0x279   : > { %12265 = vmatmul.mubr.msk.bf16.gmra.mrb[36].mxu0 %vm718_vm6, %v15723_v16  ;;  %v5056_v53 = vld [vmem:[#allocation3 + $0x50] sm:$0xff]  ;;  %v4984_v48 = vadd.f32 %v4893_v5, %v4768_v51  ;;  %v12007_v31 = vpop.f32.mrb[190].mxu1  ;;  %v8142_v12 = vrot.slane %v8024_v54, 6  ;;  %v8153_v43 = vrot.slane %v15953_v22, 6 }
 0x27a   : > { %12268 = vmatprep.mubr.msk.bf16.mxu0 %vm718_vm6, %v15741_v42  ;;  %v5272_v10 = vadd.f32 %v12038_v47, %v5056_v53  ;;  %5018 = vst.msk [vmem:[#allocation3 + $0x70] sm:$0xff] %vm517_vm8, %v4986_v44  ;;  %v5054_v21 = vld [vmem:[#allocation3 + $0x40] sm:$0xff]  ;;  %v4987_v56 = vadd.f32 %v12007_v31, %v4771_v0  ;;  %v4896_v36 = vpop.f32.mrb[191].mxu1  ;;  %v15923_v47 = vld [vmem:[#allocation2 + $0x1c] sm:$0xf]  ;;  %v10889_v44 = vrot.slane %v8022_v11, 10 }
 0x27b   : > { %v5270_v50 = vadd.f32 %v5167_v63, %v5054_v21  ;;  %5016 = vst.msk [vmem:[#allocation3 + $0x60] sm:$0xff] %vm517_vm8, %v4984_v48  ;;  %v5057_v8 = vld [vmem:[#allocation3 + $0x58] sm:$0xff]  ;;  %v4985_v60 = vadd.f32 %v4896_v36, %v4769_v30  ;;  %v5186_v63 = vpop.f32.mrb[191].mxu0  ;;  %v8027_v51 = vld [vmem:[#allocation2 + $0x20] sm:$0x3]  ;;  %v8141_v31 = vrot.slane %v8139_v14, 4 }
 0x27c   : > { %5304 = vst.msk [vmem:[#allocation3 + $0x50] sm:$0xff] %vm517_vm8, %v5272_v10  ;;  %v5273_v41 = vadd.f32 %v12039_v26, %v5057_v8  ;;  %5019 = vst.msk [vmem:[#allocation3 + $0x78] sm:$0xff] %vm517_vm8, %v4987_v56  ;;  %v5055_v23 = vld [vmem:[#allocation3 + $0x48] sm:$0xff]  ;;  %12233 = vmatmul.mubr.msk.bf16.gmra.mrb[40].mxu1 %vm718_vm6, %v15741_v42  ;;  %v7420_v26 = vsel %vm14812_vm2, %v15908_v1, %v15895_v58  ;;  %v8146_v58 = vrot.slane %v15923_v47, 6  ;;  %v4772_v1 = vld [vmem:[#allocation3 + $0x80] sm:$0xff]  ;;  %v10890_v36 = vrot.slane %v8025_v49, 10 }
 0x27d   : > { %5302 = vst.msk [vmem:[#allocation3 + $0x40] sm:$0xff] %vm517_vm8, %v5270_v50  ;;  %v5271_v35 = vadd.f32 %v5170_v37, %v5055_v23  ;;  %5017 = vst.msk [vmem:[#allocation3 + $0x68] sm:$0xff] %vm517_vm8, %v4985_v60  ;;  %12236 = vmatprep.mubr.msk.bf16.mxu1 %vm718_vm6, %v15755_v20  ;;  %v8133_v37 = vsel %vm15919_vm5, %v10888_v45, %v8132_v61  ;;  %v15955_v61 = vcombine.low %v7420_v26, %v7430_v55  ;;  %v4773_v21 = vld [vmem:[#allocation3 + $0x88] sm:$0xff]  ;;  %v15964_v26 = vld [vmem:[#allocation2 + $0x24] sm:$0xc] }
 0x27e   : > { %5305 = vst.msk [vmem:[#allocation3 + $0x58] sm:$0xff] %vm517_vm8, %v5273_v41  ;;  %v12046_v48 = vpop.f32.mrb[192].mxu0  ;;  %v10908_v0 = vcombine.low %v8133_v37, %v8136_v38  ;;  %v8148_v47 = vrot.slane %v8146_v58, 4  ;;  %v8149_v41 = vrot.slane %v8027_v51, 6  ;;  %v8140_v11 = vsel %vm15919_vm5, %v10889_v44, %v8139_v14  ;;  %v15989_v14 = vld [vmem:[#allocation2 + $0x40] sm:$0xf] }
 0x27f   : > { %5303 = vst.msk [vmem:[#allocation3 + $0x48] sm:$0xff] %vm517_vm8, %v5271_v35  ;;  %v12010_v9 = vpop.f32.mrb[192].mxu1  ;;  %v5199_v30 = vpop.f32.mrb[193].mxu0  ;;  %v8143_v37 = vsel %vm15919_vm5, %v8141_v31, %v8142_v12  ;;  %v8031_v51 = vld [vmem:[#allocation2 + $0x30] sm:$0xc]  ;;  %v4782_v22 = vld [vmem:[#allocation3 + $0xd0] sm:$0xff] }
 0x280   : > { %v4990_v17 = vadd.f32 %v12010_v9, %v4774_v7  ;;  %v4909_v4 = vpop.f32.mrb[193].mxu1  ;;  %v12047_v60 = vpop.f32.mrb[194].mxu0  ;;  %v8150_v54 = vsel %vm15919_vm5, %v8148_v47, %v8149_v41  ;;  %v10891_v7 = vrot.slane %v15964_v26, 10  ;;  %v8033_v31 = vld [vmem:[#allocation2 + $0x38] sm:$0x3] }
 0x281   : > { %12269 = vmatmul.mubr.msk.bf16.gmra.mrb[40].mxu0 %vm718_vm6, %v15755_v20  ;;  %v5060_v5 = vld [vmem:[#allocation3 + $0x70] sm:$0xff]  ;;  %v4988_v27 = vadd.f32 %v4909_v4, %v4772_v1  ;;  %v12011_v53 = vpop.f32.mrb[194].mxu1  ;;  %v5202_v35 = vpop.f32.mrb[195].mxu0  ;;  %v8155_v4 = vrot.slane %v8153_v43, 4  ;;  %v16012_v26 = vld [vmem:[#allocation2 + $0x4c] sm:$0xf] }
 0x282   : > { %12272 = vmatprep.mubr.msk.bf16.mxu0 %vm718_vm6, %v15929_v39  ;;  %v5276_v46 = vadd.f32 %v12042_v57, %v5060_v5  ;;  %5022 = vst.msk [vmem:[#allocation3 + $0x90] sm:$0xff] %vm517_vm8, %v4990_v17  ;;  %v5058_v45 = vld [vmem:[#allocation3 + $0x60] sm:$0xff]  ;;  %v4991_v10 = vadd.f32 %v12011_v53, %v4775_v25  ;;  %v4912_v56 = vpop.f32.mrb[195].mxu1 }
 0x283   : > { %v5274_v32 = vadd.f32 %v5183_v18, %v5058_v45  ;;  %5020 = vst.msk [vmem:[#allocation3 + $0x80] sm:$0xff] %vm517_vm8, %v4988_v27  ;;  %v5061_v50 = vld [vmem:[#allocation3 + $0x78] sm:$0xff]  ;;  %v4989_v8 = vadd.f32 %v4912_v56, %v4773_v21  ;;  %v15966_v18 = vld [vmem:[#allocation2 + $0x34] sm:$0xf] }
 0x284   : > { %5308 = vst.msk [vmem:[#allocation3 + $0x70] sm:$0xff] %vm517_vm8, %v5276_v46  ;;  %v5277_v57 = vadd.f32 %v12043_v24, %v5061_v50  ;;  %5023 = vst.msk [vmem:[#allocation3 + $0x98] sm:$0xff] %vm517_vm8, %v4991_v10  ;;  %v5059_v23 = vld [vmem:[#allocation3 + $0x68] sm:$0xff]  ;;  %12237 = vmatmul.mubr.msk.bf16.gmra.mrb[44].mxu1 %vm718_vm6, %v15929_v39  ;;  %v15972_v24 = vld [vmem:[#allocation2 + $0x2c] sm:$0x3]  ;;  %v8160_v9 = vrot.slane %v15966_v18, 6 }
 0x285   : > { %5306 = vst.msk [vmem:[#allocation3 + $0x60] sm:$0xff] %vm517_vm8, %v5274_v32  ;;  %v5275_v55 = vadd.f32 %v5186_v63, %v5059_v23  ;;  %5021 = vst.msk [vmem:[#allocation3 + $0x88] sm:$0xff] %vm517_vm8, %v4989_v8  ;;  %12280 = vmatprep.mubr.msk.bf16.mxu1 %vm718_vm6, %v15222_v29  ;;  %v4778_v63 = vld [vmem:[#allocation3 + $0xb0] sm:$0xff]  ;;  %v8147_v29 = vsel %vm15919_vm5, %v10890_v36, %v8146_v58  ;;  %v4776_v17 = vld [vmem:[#allocation3 + $0xa0] sm:$0xff]  ;;  %v8156_v44 = vrot.slane %v15972_v24, 6  ;;  %v8167_v32 = vrot.slane %v15989_v14, 6 }
 0x286   : > { %5309 = vst.msk [vmem:[#allocation3 + $0x78] sm:$0xff] %vm517_vm8, %v5277_v57  ;;  %v4779_v27 = vld [vmem:[#allocation3 + $0xb8] sm:$0xff]  ;;  %v15994_v53 = vpop.f32.mrb[196].mxu0  ;;  %v4777_v10 = vld [vmem:[#allocation3 + $0xa8] sm:$0xff]  ;;  %v16001_v36 = vcombine.low %v8147_v29, %v8150_v54  ;;  %v10892_v57 = vrot.slane %v8031_v51, 10  ;;  %v8162_v23 = vrot.slane %v8160_v9, 4 }
 0x287   : > { %5307 = vst.msk [vmem:[#allocation3 + $0x68] sm:$0xff] %vm517_vm8, %v5275_v55  ;;  %v12014_v38 = vpop.f32.mrb[196].mxu1  ;;  %v15999_v56 = vpop.f32.mrb[197].mxu0  ;;  %v12619_v50 = vld [vmem:[%s17219_s1 + $0x98] sm:$0xff]   ;;  %v16039_v29 = vld [vmem:[#allocation2 + $0x48] sm:$0xc] }
 0x288   : > { %v4994_v49 = vadd.f32 %v12014_v38, %v4778_v63  ;;  %v4925_v1 = vpop.f32.mrb[197].mxu1  ;;  %v16008_v41 = vpop.f32.mrb[198].mxu0  ;;  %v12620_v63 = vld [vmem:[%s17219_s1 + $0xe8] sm:$0xff]   ;;  %v16060_v51 = vld [vmem:[#allocation2 + $0x58] sm:$0xf] }
 0x289   : > { %12273 = vmatmul.mubr.msk.bf16.gmra.mrb[44].mxu0 %vm718_vm6, %v15955_v61  ;;  %v5064_v5 = vld [vmem:[#allocation3 + $0x90] sm:$0xff]  ;;  %v4992_v58 = vadd.f32 %v4925_v1, %v4776_v17  ;;  %v12015_v25 = vpop.f32.mrb[198].mxu1  ;;  %v4780_v17 = vld [vmem:[#allocation3 + $0xc0] sm:$0xff]  ;;  %v4783_v18 = vld [vmem:[#allocation3 + $0xd8] sm:$0xff] }
 0x28a   : > { %12316 = vmatprep.mubr.msk.bf16.mxu0 %vm718_vm6, %v10908_v0  ;;  %v15996_v0 = vcombine.low %v8140_v11, %v8143_v37  ;;  %v5280_v12 = vadd.f32 %v12046_v48, %v5064_v5  ;;  %5026 = vst.msk [vmem:[#allocation3 + $0xb0] sm:$0xff] %vm517_vm8, %v4994_v49  ;;  %v5062_v46 = vld [vmem:[#allocation3 + $0x80] sm:$0xff]  ;;  %v4995_v45 = vadd.f32 %v12015_v25, %v4779_v27  ;;  %v4928_v21 = vpop.f32.mrb[199].mxu1  ;;  %v8163_v11 = vrot.slane %v8033_v31, 6  ;;  %v16020_v37 = vld [vmem:[#allocation2 + $0x3c] sm:$0xc] }
 0x28b   : > { %v5278_v8 = vadd.f32 %v5199_v30, %v5062_v46  ;;  %5024 = vst.msk [vmem:[#allocation3 + $0xa0] sm:$0xff] %vm517_vm8, %v4992_v58  ;;  %v5065_v48 = vld [vmem:[#allocation3 + $0x98] sm:$0xff]  ;;  %v4993_v47 = vadd.f32 %v4928_v21, %v4777_v10  ;;  %v16018_v30 = vpop.f32.mrb[199].mxu0  ;;  %v16065_v5 = vld [vmem:[%s17219_s1 + $0x180] sm:$0xff]   ;;  %v10894_v46 = vrot.slane %v16039_v29, 10 }
 0x28c   : > { %5312 = vst.msk [vmem:[#allocation3 + $0x90] sm:$0xff] %vm517_vm8, %v5280_v12  ;;  %v5281_v55 = vadd.f32 %v12047_v60, %v5065_v48  ;;  %5027 = vst.msk [vmem:[#allocation3 + $0xb8] sm:$0xff] %vm517_vm8, %v4995_v45  ;;  %v5063_v24 = vld [vmem:[#allocation3 + $0x88] sm:$0xff]  ;;  %12281 = vmatmul.mubr.msk.bf16.vlgmr.msra.gmra.mrb[48].mxu1 %vm718_vm6, %v15231_v3  ;;  %v8154_v3 = vsel %vm15919_vm5, %v10891_v7, %v8153_v43  ;;  %v8157_v60 = vsel %vm15919_vm5, %v8155_v4, %v8156_v44  ;;  %v8039_v7 = vld [vmem:[#allocation2 + $0x50] sm:$0x3] }
 0x28d   : > { %5310 = vst.msk [vmem:[#allocation3 + $0x80] sm:$0xff] %vm517_vm8, %v5278_v8  ;;  %v5279_v38 = vadd.f32 %v5202_v35, %v5063_v24  ;;  %5025 = vst.msk [vmem:[#allocation3 + $0xa8] sm:$0xff] %vm517_vm8, %v4993_v47  ;;  %12349 = vmatpush3.bf16.msra.mxu1 %v15795_v15  ;;  %12284 = vmatprep.mubr.msk.bf16.mxu1 %vm718_vm6, %v15233_v59  ;;  %v8036_v35 = vld [vmem:[#allocation2 + $0x44] sm:$0x3]  ;;  %v8174_v15 = vrot.slane %v16012_v26, 6  ;;  %v16045_v59 = vld [vmem:[%s17219_s1 + $0x130] sm:$0xff]   ;;  %v8161_v4 = vsel %vm15919_vm5, %v10892_v57, %v8160_v9 }
 0x28e   : > { %5313 = vst.msk [vmem:[#allocation3 + $0x98] sm:$0xff] %vm517_vm8, %v5281_v55  ;;  %12350 = vmatprep.subr.bf16.mxu1 %v12619_v50  ;;  %v10893_v43 = vrot.slane %v16020_v37, 10  ;;  %v8164_v44 = vsel %vm15919_vm5, %v8162_v23, %v8163_v11  ;;  %v16067_v31 = vpop.f32.mrb[200].mxu0  ;;  %v16069_v9 = vcombine.low %v8154_v3, %v8157_v60  ;;  %v8170_v12 = vrot.slane %v8036_v35, 6  ;;  %v4781_v8 = vld [vmem:[#allocation3 + $0xc8] sm:$0xff]  ;;  %v4786_v29 = vld [vmem:[#allocation3 + $0xf0] sm:$0xff] }
 0x28f   : > { %5311 = vst.msk [vmem:[#allocation3 + $0x88] sm:$0xff] %vm517_vm8, %v5279_v38  ;;  %v12018_v54 = vpop.f32.mrb[200].mxu1  ;;  %v5231_v47 = vpop.f32.mrb[201].mxu0  ;;  %v8176_v57 = vrot.slane %v8174_v15, 4  ;;  %v8177_v23 = vrot.slane %v8039_v7, 6  ;;  %v16079_v11 = vcombine.low %v8161_v4, %v8164_v44  ;;  %v8181_v35 = vrot.slane %v16060_v51, 6 }
 0x290   : > { %v4998_v49 = vadd.f32 %v12018_v54, %v4782_v22  ;;  %v4941_v1 = vpop.f32.mrb[201].mxu1  ;;  %v16081_v37 = vld [vmem:[#allocation2 + $0x64] sm:$0xf]  ;;  %v8043_v54 = vld [vmem:[#allocation2 + $0x60] sm:$0xc]  ;;  %v4784_v7 = vld [vmem:[#allocation3 + $0xe0] sm:$0xff] }
 0x291   : > { %12317 = vmatmul.mubr.msk.bf16.vlgmr.msra.gmra.mrb[48].mxu0 %vm718_vm6, %v15996_v0  ;;  %v5068_v58 = vld [vmem:[#allocation3 + $0xb0] sm:$0xff]  ;;  %v4996_v27 = vadd.f32 %v4941_v1, %v4780_v17  ;;  %v12019_v25 = vpop.f32.mrb[202].mxu1  ;;  %12351 = vmatpush3.bf16.msra.mxu1 %v12619_v50  ;;  %v8178_v14 = vsel %vm15919_vm5, %v8176_v57, %v8177_v23  ;;  %v8045_v1 = vld [vmem:[#allocation2 + $0x68] sm:$0x3] }
 0x292   : > { %12385 = vmatpush3.bf16.msra.mxu0 %v15804_v62  ;;  %12320 = vmatprep.mubr.msk.bf16.mxu0 %vm718_vm6, %v16001_v36  ;;  %v8169_v62 = vrot.slane %v8167_v32, 4  ;;  %v5284_v45 = vadd.f32 %v15994_v53, %v5068_v58  ;;  %5030 = vst.msk [vmem:[#allocation3 + $0xd0] sm:$0xff] %vm517_vm8, %v4998_v49  ;;  %v5066_v10 = vld [vmem:[#allocation3 + $0xa0] sm:$0xff]  ;;  %v4999_v21 = vadd.f32 %v12019_v25, %v4783_v18  ;;  %v4944_v48 = vpop.f32.mrb[203].mxu1  ;;  %v12055_v53 = vpop.f32.mrb[202].mxu0  ;;  %v8183_v18 = vrot.slane %v8181_v35, 4 }
 0x293   : > { %12386 = vmatprep.subr.bf16.mxu0 %v12620_v63  ;;  %12420 = vmatprep.subr.bf16.mxu1 %v16045_v59  ;;  %v5282_v55 = vadd.f32 %v15999_v56, %v5066_v10  ;;  %5028 = vst.msk [vmem:[#allocation3 + $0xc0] sm:$0xff] %vm517_vm8, %v4996_v27  ;;  %v5069_v50 = vld [vmem:[#allocation3 + $0xb8] sm:$0xff]  ;;  %v4997_v24 = vadd.f32 %v4944_v48, %v4781_v8  ;;  %v5234_v56 = vpop.f32.mrb[203].mxu0  ;;  %v4785_v10 = vld [vmem:[#allocation3 + $0xe8] sm:$0xff]  ;;  %v10896_v48 = vrot.slane %v8043_v54, 10 }
 0x294   : > { %5316 = vst.msk [vmem:[#allocation3 + $0xb0] sm:$0xff] %vm517_vm8, %v5284_v45  ;;  %v5285_v38 = vadd.f32 %v16008_v41, %v5069_v50  ;;  %5031 = vst.msk [vmem:[#allocation3 + $0xd8] sm:$0xff] %vm517_vm8, %v4999_v21  ;;  %v5067_v3 = vld [vmem:[#allocation3 + $0xa8] sm:$0xff]  ;;  %12285 = vmatmul.mubr.msk.bf16.gmra.mrb[52].mxu1 %vm718_vm6, %v15518_v2  ;;  %v8168_v41 = vsel %vm15919_vm5, %v10893_v43, %v8167_v32  ;;  %v8171_v2 = vsel %vm15919_vm5, %v8169_v62, %v8170_v12  ;;  %v16114_v43 = vld [vmem:[#allocation2 + $0x70] sm:$0xf] }
 0x295   : > { %5314 = vst.msk [vmem:[#allocation3 + $0xa0] sm:$0xff] %vm517_vm8, %v5282_v55  ;;  %v5283_v60 = vadd.f32 %v16018_v30, %v5067_v3  ;;  %5029 = vst.msk [vmem:[#allocation3 + $0xc8] sm:$0xff] %vm517_vm8, %v4997_v24  ;;  %12288 = vmatprep.mubr.msk.bf16.mxu1 %vm718_vm6, %v15527_v40  ;;  %v8175_v40 = vsel %vm15919_vm5, %v10894_v46, %v8174_v15  ;;  %v8042_v32 = vld [vmem:[#allocation2 + $0x5c] sm:$0x3]  ;;  %v8188_v30 = vrot.slane %v16081_v37, 6  ;;  %v4787_v62 = vld [vmem:[#allocation3 + $0xf8] sm:$0xff] }
 0x296   : > { %12387 = vmatpush3.bf16.msra.mxu0 %v12620_v63  ;;  %v8040_v63 = vld [vmem:[#allocation2 + $0x54] sm:$0xc]  ;;  %5317 = vst.msk [vmem:[#allocation3 + $0xb8] sm:$0xff] %vm517_vm8, %v5285_v38  ;;  %v16116_v15 = vcombine.low %v8168_v41, %v8171_v2  ;;  %v12058_v58 = vpop.f32.mrb[204].mxu0  ;;  %v16118_v27 = vcombine.low %v8175_v40, %v8178_v14  ;;  %v8184_v25 = vrot.slane %v8042_v32, 6  ;;  %v8195_v57 = vrot.slane %v16114_v43, 6 }
 0x297   : > { %12456 = vmatprep.subr.bf16.mxu0 %v16065_v5  ;;  %5315 = vst.msk [vmem:[#allocation3 + $0xa8] sm:$0xff] %vm517_vm8, %v5283_v60  ;;  %v12022_v22 = vpop.f32.mrb[204].mxu1  ;;  %v10895_v17 = vrot.slane %v8040_v63, 10  ;;  %v5247_v8 = vpop.f32.mrb[205].mxu0  ;;  %v8190_v37 = vrot.slane %v8188_v30, 4  ;;  %v8191_v38 = vrot.slane %v8045_v1, 6  ;;  %v8189_v32 = vsel %vm15919_vm5, %v10896_v48, %v8188_v30 }
 0x298   : > { %v5002_v26 = vadd.f32 %v12022_v22, %v4786_v29  ;;  %v4957_v49 = vpop.f32.mrb[205].mxu1  ;;  %v12059_v24 = vpop.f32.mrb[206].mxu0  ;;  %v16128_v41 = vld [vmem:[#allocation2 + $0x6c] sm:$0xc]  ;;  %v8185_v63 = vsel %vm15919_vm5, %v8183_v18, %v8184_v25  ;;  %v16145_v40 = vld [vmem:[#allocation2 + $0x78] sm:$0xc] }
 0x299   : > { %12321 = vmatmul.mubr.msk.bf16.gmra.mrb[52].mxu0 %vm718_vm6, %v16069_v9  ;;  %v5072_v4 = vld [vmem:[#allocation3 + $0xd0] sm:$0xff]  ;;  %v5000_v44 = vadd.f32 %v4957_v49, %v4784_v7  ;;  %v12023_v51 = vpop.f32.mrb[206].mxu1  ;;  %v5250_v60 = vpop.f32.mrb[207].mxu0  ;;  %v10897_v29 = vrot.slane %v16128_v41, 10  ;;  %v8197_v49 = vrot.slane %v8195_v57, 4  ;;  %v10898_v18 = vrot.slane %v16145_v40, 10 }
 0x29a   : > { %12324 = vmatprep.mubr.msk.bf16.mxu0 %vm718_vm6, %v16079_v11  ;;  %v5288_v12 = vadd.f32 %v16067_v31, %v5072_v4  ;;  %5034 = vst.msk [vmem:[#allocation3 + $0xf0] sm:$0xff] %vm517_vm8, %v5002_v26  ;;  %v5070_v46 = vld [vmem:[#allocation3 + $0xc0] sm:$0xff]  ;;  %v5003_v45 = vadd.f32 %v12023_v51, %v4787_v62  ;;  %v4960_v21 = vpop.f32.mrb[207].mxu1  ;;  %v8051_v1 = vld [vmem:[#allocation2 + $0x80] sm:$0x3]  ;;  %v5339_v62 = vld [vmem:[#allocation3 + $0x18] sm:$0xff] }
 0x29b   : > { %v5286_v23 = vadd.f32 %v5231_v47, %v5070_v46  ;;  %5032 = vst.msk [vmem:[#allocation3 + $0xe0] sm:$0xff] %vm517_vm8, %v5000_v44  ;;  %v5073_v55 = vld [vmem:[#allocation3 + $0xd8] sm:$0xff]  ;;  %v5001_v50 = vadd.f32 %v4960_v21, %v4785_v10  ;;  %v16130_v47 = vld [vmem:[#allocation2 + $0x7c] sm:$0xf]  ;;  %v5336_v26 = vld [vmem:[#allocation3] sm:$0xff]  ;;  %v8205_v41 = vrot.slane %v8051_v1, 6 }
 0x29c   : > { %5320 = vst.msk [vmem:[#allocation3 + $0xd0] sm:$0xff] %vm517_vm8, %v5288_v12  ;;  %v5289_v31 = vadd.f32 %v12055_v53, %v5073_v55  ;;  %5035 = vst.msk [vmem:[#allocation3 + $0xf8] sm:$0xff] %vm517_vm8, %v5003_v45  ;;  %v5071_v3 = vld [vmem:[#allocation3 + $0xc8] sm:$0xff]  ;;  %12289 = vmatmul.mubr.msk.bf16.gmra.mrb[56].mxu1 %vm718_vm6, %v15536_v6  ;;  %v16136_v53 = vld [vmem:[#allocation2 + $0x74] sm:$0x3]  ;;  %v8182_v6 = vsel %vm15919_vm5, %v10895_v17, %v8181_v35  ;;  %v8192_v35 = vsel %vm15919_vm5, %v8190_v37, %v8191_v38 }
 0x29d   : > { %5318 = vst.msk [vmem:[#allocation3 + $0xc0] sm:$0xff] %vm517_vm8, %v5286_v23  ;;  %v5287_v2 = vadd.f32 %v5234_v56, %v5071_v3  ;;  %5033 = vst.msk [vmem:[#allocation3 + $0xe8] sm:$0xff] %vm517_vm8, %v5001_v50  ;;  %12292 = vmatprep.mubr.msk.bf16.mxu1 %vm718_vm6, %v15538_v33  ;;  %v16147_v56 = vld [vmem:[#allocation2 + $0x88] sm:$0xf]  ;;  %v5338_v33 = vld [vmem:[#allocation3 + $0x10] sm:$0xff]  ;;  %v8202_v22 = vrot.slane %v16130_v47, 6  ;;  %v16168_v23 = vcombine.low %v8182_v6, %v8185_v63 }
 0x29e   : > { %5321 = vst.msk [vmem:[#allocation3 + $0xd8] sm:$0xff] %vm517_vm8, %v5289_v31  ;;  %v8198_v17 = vrot.slane %v16136_v53, 6  ;;  %v16161_v51 = vpop.f32.mrb[208].mxu0  ;;  %v8209_v25 = vrot.slane %v16147_v56, 6  ;;  %v5337_v10 = vld [vmem:[#allocation3 + $0x8] sm:$0xff]  ;;  %v16170_v55 = vcombine.low %v8189_v32, %v8192_v35  ;;  %v5342_v35 = vld [vmem:[#allocation3 + $0x30] sm:$0xff] }
 0x29f   : > { %5319 = vst.msk [vmem:[#allocation3 + $0xc8] sm:$0xff] %vm517_vm8, %v5287_v2  ;;  %v12066_v14 = vpop.f32.mrb[208].mxu1  ;;  %v16166_v48 = vpop.f32.mrb[209].mxu0  ;;  %v16172_v50 = vld [vmem:[#allocation2 + $0x94] sm:$0xf]  ;;  %v8204_v3 = vrot.slane %v8202_v22, 4 }
 0x2a0   : > { %v5554_v54 = vadd.f32 %v12066_v14, %v5338_v33  ;;  %v5425_v7 = vpop.f32.mrb[209].mxu1  ;;  %v16177_v47 = vld [vmem:[#allocation2 + $0x84] sm:$0xc]  ;;  %v16185_v6 = vld [vmem:[#allocation2 + $0x8c] sm:$0x3]  ;;  %v8216_v33 = vrot.slane %v16172_v50, 6 }
 0x2a1   : > { %12325 = vmatmul.mubr.msk.bf16.gmra.mrb[56].mxu0 %vm718_vm6, %v16116_v15  ;;  %v5076_v4 = vld [vmem:[#allocation3 + $0xf0] sm:$0xff]  ;;  %v5552_v44 = vadd.f32 %v5425_v7, %v5336_v26  ;;  %v12067_v30 = vpop.f32.mrb[210].mxu1  ;;  %v8057_v32 = vld [vmem:[#allocation2 + $0x98] sm:$0x3]  ;;  %v8203_v26 = vsel %vm15919_vm5, %v10898_v18, %v8202_v22  ;;  %v8206_v43 = vsel %vm15919_vm5, %v8204_v3, %v8205_v41  ;;  %v16218_v7 = vld [vmem:[#allocation2 + $0xe8] sm:$0xf] }
 0x2a2   : > { %12328 = vmatprep.mubr.msk.bf16.mxu0 %vm718_vm6, %v16118_v27  ;;  %v5292_v12 = vadd.f32 %v12058_v58, %v5076_v4  ;;  %v5074_v46 = vld [vmem:[#allocation3 + $0xe0] sm:$0xff]  ;;  %5586 = vst.msk [vmem:[#allocation3 + $0x10] sm:$0xff] %vm517_vm8, %v5554_v54  ;;  %v5555_v45 = vadd.f32 %v12067_v30, %v5339_v62  ;;  %v5428_v21 = vpop.f32.mrb[211].mxu1  ;;  %v16175_v58 = vpop.f32.mrb[210].mxu0  ;;  %v16187_v63 = vld [vmem:[#allocation2 + $0xe4] sm:$0xe] }
 0x2a3   : > { %v5290_v37 = vadd.f32 %v5247_v8, %v5074_v46  ;;  %v5077_v38 = vld [vmem:[#allocation3 + $0xf8] sm:$0xff]  ;;  %5584 = vst.msk [vmem:[#allocation3] sm:$0xff] %vm517_vm8, %v5552_v44  ;;  %v5553_v31 = vadd.f32 %v5428_v21, %v5337_v10  ;;  %v16183_v8 = vpop.f32.mrb[211].mxu0  ;;  %v16196_v14 = vld [vmem:[#allocation2 + $0xa0] sm:$0xf]  ;;  %v7712_v62 = vshrl.u32 %v16187_v63, 16 }
 0x2a4   : > { %5324 = vst.msk [vmem:[#allocation3 + $0xf0] sm:$0xff] %vm517_vm8, %v5292_v12  ;;  %v5293_v2 = vadd.f32 %v12059_v24, %v5077_v38  ;;  %v5075_v53 = vld [vmem:[#allocation3 + $0xe8] sm:$0xff]  ;;  %5587 = vst.msk [vmem:[#allocation3 + $0x18] sm:$0xff] %vm517_vm8, %v5555_v45  ;;  %12293 = vmatmul.mubr.msk.bf16.gmra.mrb[60].mxu1 %vm718_vm6, %v15540_v52  ;;  %v16193_v24 = vld [vmem:[#allocation2 + $0x90] sm:$0xc]  ;;  %v8196_v52 = vsel %vm15919_vm5, %v10897_v29, %v8195_v57  ;;  %v8211_v57 = vrot.slane %v8209_v25, 4 }
 0x2a5   : > { %5322 = vst.msk [vmem:[#allocation3 + $0xe0] sm:$0xff] %vm517_vm8, %v5290_v37  ;;  %v5291_v40 = vadd.f32 %v5250_v60, %v5075_v53  ;;  %5585 = vst.msk [vmem:[#allocation3 + $0x8] sm:$0xff] %vm517_vm8, %v5553_v31  ;;  %12296 = vmatprep.mubr.msk.bf16.mxu1 %vm718_vm6, %v15663_v28  ;;  %v8199_v60 = vsel %vm15919_vm5, %v8197_v49, %v8198_v17  ;;  %v10899_v28 = vrot.slane %v16177_v47, 10  ;;  %v8212_v29 = vrot.slane %v16185_v6, 6  ;;  %v5340_v17 = vld [vmem:[#allocation3 + $0x20] sm:$0xff]  ;;  %v5343_v18 = vld [vmem:[#allocation3 + $0x38] sm:$0xff] }
 0x2a6   : > { %5325 = vst.msk [vmem:[#allocation3 + $0xf8] sm:$0xff] %vm517_vm8, %v5293_v2  ;;  %v10900_v4 = vrot.slane %v16193_v24, 10  ;;  %v8223_v44 = vrot.slane %v16196_v14, 6  ;;  %v16223_v46 = vpop.f32.mrb[212].mxu0  ;;  %v8218_v45 = vrot.slane %v8216_v33, 4  ;;  %v8219_v10 = vrot.slane %v8057_v32, 6 }
 0x2a7   : > { %5323 = vst.msk [vmem:[#allocation3 + $0xe8] sm:$0xff] %vm517_vm8, %v5291_v40  ;;  %v12070_v54 = vpop.f32.mrb[212].mxu1  ;;  %v5341_v31 = vld [vmem:[#allocation3 + $0x28] sm:$0xff]  ;;  %v16229_v41 = vpop.f32.mrb[213].mxu0  ;;  %v16231_v47 = vcombine.low %v8196_v52, %v8199_v60  ;;  %v16233_v2 = vcombine.low %v8203_v26, %v8206_v43  ;;  %v16241_v32 = vld [vmem:[#allocation2 + $0xa4] sm:$0x3]  ;;  %v8210_v26 = vsel %vm15919_vm5, %v10899_v28, %v8209_v25 }
 0x2a8   : > { %v5558_v49 = vadd.f32 %v12070_v54, %v5342_v35  ;;  %v5441_v1 = vpop.f32.mrb[213].mxu1  ;;  %v16235_v53 = vld [vmem:[#allocation2 + $0x9c] sm:$0xc]  ;;  %v16239_v24 = vpop.f32.mrb[214].mxu0  ;;  %v7715_v35 = vshll.u32 %v16187_v63, 16  ;;  %v7721_v54 = vshrl.u32 %v16218_v7, 16  ;;  %v8217_v56 = vsel %vm15919_vm5, %v10900_v4, %v8216_v33 }
 0x2a9   : > { %12329 = vmatmul.mubr.msk.bf16.gmra.mrb[60].mxu0 %vm718_vm6, %v16168_v23  ;;  %v5628_v22 = vld [vmem:[#allocation3 + $0x10] sm:$0xff]  ;;  %v5556_v30 = vadd.f32 %v5441_v1, %v5340_v17  ;;  %v12071_v12 = vpop.f32.mrb[214].mxu1  ;;  %v16256_v63 = vld [vmem:[#allocation2 + $0xec] sm:$0x3]  ;;  %v7724_v43 = vshll.u32 %v16218_v7, 16  ;;  %v16270_v25 = vrot.slane %v7712_v62, 5 }
 0x2aa   : > { %12332 = vmatprep.mubr.msk.bf16.mxu0 %vm718_vm6, %v16170_v55  ;;  %v5844_v21 = vadd.f32 %v16161_v51, %v5628_v22  ;;  %5590 = vst.msk [vmem:[#allocation3 + $0x30] sm:$0xff] %vm517_vm8, %v5558_v49  ;;  %v5626_v37 = vld [vmem:[#allocation3] sm:$0xff]  ;;  %v5559_v38 = vadd.f32 %v12071_v12, %v5343_v18  ;;  %v5444_v3 = vpop.f32.mrb[215].mxu1  ;;  %v16272_v28 = vld [vmem:[#allocation2 + $0xac] sm:$0xf]  ;;  %v8225_v50 = vrot.slane %v8223_v44, 4 }
 0x2ab   : > { %v5842_v6 = vadd.f32 %v16166_v48, %v5626_v37  ;;  %5588 = vst.msk [vmem:[#allocation3 + $0x20] sm:$0xff] %vm517_vm8, %v5556_v30  ;;  %v5629_v40 = vld [vmem:[#allocation3 + $0x18] sm:$0xff]  ;;  %v5557_v51 = vadd.f32 %v5444_v3, %v5341_v31  ;;  %v16250_v48 = vpop.f32.mrb[215].mxu0  ;;  %v5346_v33 = vld [vmem:[#allocation3 + $0x50] sm:$0xff]  ;;  %v16286_v7 = vrot.slane %v7715_v35, 6  ;;  %v7723_v49 = vrot.slane %v7721_v54, 5 }
 0x2ac   : > { %5876 = vst.msk [vmem:[#allocation3 + $0x10] sm:$0xff] %vm517_vm8, %v5844_v21  ;;  %v5845_v52 = vadd.f32 %v16175_v58, %v5629_v40  ;;  %5591 = vst.msk [vmem:[#allocation3 + $0x38] sm:$0xff] %vm517_vm8, %v5559_v38  ;;  %v5627_v60 = vld [vmem:[#allocation3 + $0x8] sm:$0xff]  ;;  %12297 = vmatmul.mubr.msk.bf16.gmra.mrb[64].mxu1 %vm718_vm6, %v15703_v34  ;;  %v8213_v34 = vsel %vm15919_vm5, %v8211_v57, %v8212_v29  ;;  %v8226_v57 = vrot.slane %v16241_v32, 6  ;;  %v7731_v17 = vshrl.u32 %v16256_v63, 16  ;;  %v5344_v62 = vld [vmem:[#allocation3 + $0x40] sm:$0xff] }
 0x2ad   : > { %5874 = vst.msk [vmem:[#allocation3] sm:$0xff] %vm517_vm8, %v5842_v6  ;;  %v5843_v58 = vadd.f32 %v16183_v8, %v5627_v60  ;;  %5589 = vst.msk [vmem:[#allocation3 + $0x28] sm:$0xff] %vm517_vm8, %v5557_v51  ;;  %12300 = vmatprep.mubr.msk.bf16.mxu1 %vm718_vm6, %v15723_v16  ;;  %v8220_v16 = vsel %vm15919_vm5, %v8218_v45, %v8219_v10  ;;  %v10901_v8 = vrot.slane %v16235_v53, 10  ;;  %v7734_v1 = vshll.u32 %v16256_v63, 16  ;;  %v8061_v18 = vld [vmem:[#allocation2 + $0xa8] sm:$0xc] }
 0x2ae   : > { %5877 = vst.msk [vmem:[#allocation3 + $0x18] sm:$0xff] %vm517_vm8, %v5845_v52  ;;  %v7726_v30 = vrot.slane %v7724_v43, 6  ;;  %v8230_v12 = vrot.slane %v16272_v28, 6  ;;  %v5347_v21 = vld [vmem:[#allocation3 + $0x58] sm:$0xff]  ;;  %v12110_v38 = vpop.f32.mrb[216].mxu0  ;;  %v16291_v31 = vcombine.low %v8210_v26, %v8213_v34  ;;  %v5345_v51 = vld [vmem:[#allocation3 + $0x48] sm:$0xff]  ;;  %v16295_v54 = vcombine.low %v8217_v56, %v8220_v16 }
 0x2af   : > { %5875 = vst.msk [vmem:[#allocation3 + $0x8] sm:$0xff] %vm517_vm8, %v5843_v58  ;;  %v12074_v29 = vpop.f32.mrb[216].mxu1  ;;  %v8063_v3 = vld [vmem:[#allocation2 + $0xb0] sm:$0x3]  ;;  %v5747_v35 = vpop.f32.mrb[217].mxu0  ;;  %v8224_v52 = vsel %vm15919_vm5, %v10901_v8, %v8223_v44  ;;  %v8227_v43 = vsel %vm15919_vm5, %v8225_v50, %v8226_v57  ;;  %v10902_v58 = vrot.slane %v8061_v18, 10 }
 0x2b0   : > { %v5562_v4 = vadd.f32 %v12074_v29, %v5346_v33  ;;  %v5457_v22 = vpop.f32.mrb[217].mxu1  ;;  %v12111_v63 = vpop.f32.mrb[218].mxu0  ;;  %v8232_v56 = vrot.slane %v8230_v12, 4  ;;  %v8233_v28 = vrot.slane %v8063_v3, 6  ;;  %v16312_v16 = vld [vmem:[#allocation2 + $0xb8] sm:$0xf] }
 0x2b1   : > { %12333 = vmatmul.mubr.msk.bf16.gmra.mrb[64].mxu0 %vm718_vm6, %v16231_v47  ;;  %v5632_v45 = vld [vmem:[#allocation3 + $0x30] sm:$0xff]  ;;  %v5560_v10 = vadd.f32 %v5457_v22, %v5344_v62  ;;  %v12075_v37 = vpop.f32.mrb[218].mxu1  ;;  %v5750_v44 = vpop.f32.mrb[219].mxu0  ;;  %v7736_v50 = vrot.slane %v7734_v1, 6  ;;  %v8231_v1 = vsel %vm15919_vm5, %v10902_v58, %v8230_v12 }
 0x2b2   : > { %12336 = vmatprep.mubr.msk.bf16.mxu0 %vm718_vm6, %v16233_v2  ;;  %v5848_v53 = vadd.f32 %v16223_v46, %v5632_v45  ;;  %5594 = vst.msk [vmem:[#allocation3 + $0x50] sm:$0xff] %vm517_vm8, %v5562_v4  ;;  %v5630_v6 = vld [vmem:[#allocation3 + $0x20] sm:$0xff]  ;;  %v5563_v40 = vadd.f32 %v12075_v37, %v5347_v21  ;;  %v5460_v32 = vpop.f32.mrb[219].mxu1  ;;  %v5350_v57 = vld [vmem:[#allocation3 + $0x70] sm:$0xff]  ;;  %v8234_v4 = vsel %vm15919_vm5, %v8232_v56, %v8233_v28 }
 0x2b3   : > { %v5846_v60 = vadd.f32 %v16229_v41, %v5630_v6  ;;  %5592 = vst.msk [vmem:[#allocation3 + $0x40] sm:$0xff] %vm517_vm8, %v5560_v10  ;;  %v5633_v26 = vld [vmem:[#allocation3 + $0x38] sm:$0xff]  ;;  %v5561_v46 = vadd.f32 %v5460_v32, %v5345_v51  ;;  %v7718_v41 = vor.u32 %v16286_v7, %v16270_v25  ;;  %v8064_v25 = vld [vmem:[#allocation2 + $0xb4] sm:$0xc]  ;;  %v16337_v58 = vcombine.low %v8231_v1, %v8234_v4 }
 0x2b4   : > { %5880 = vst.msk [vmem:[#allocation3 + $0x30] sm:$0xff] %vm517_vm8, %v5848_v53  ;;  %v5849_v34 = vadd.f32 %v16239_v24, %v5633_v26  ;;  %5595 = vst.msk [vmem:[#allocation3 + $0x58] sm:$0xff] %vm517_vm8, %v5563_v40  ;;  %v5631_v14 = vld [vmem:[#allocation3 + $0x28] sm:$0xff]  ;;  %12301 = vmatmul.mubr.msk.bf16.gmra.mrb[68].mxu1 %vm718_vm6, %v15741_v42  ;;  %v16319_v24 = vor.u32 %v7726_v30, %v7723_v49  ;;  %v7733_v42 = vrot.slane %v7731_v17, 5  ;;  %v5348_v7 = vld [vmem:[#allocation3 + $0x60] sm:$0xff]  ;;  %v10903_v32 = vrot.slane %v8064_v25, 10 }
 0x2b5   : > { %5878 = vst.msk [vmem:[#allocation3 + $0x20] sm:$0xff] %vm517_vm8, %v5846_v60  ;;  %v5847_v8 = vadd.f32 %v16250_v48, %v5631_v14  ;;  %5593 = vst.msk [vmem:[#allocation3 + $0x48] sm:$0xff] %vm517_vm8, %v5561_v46  ;;  %12304 = vmatprep.mubr.msk.bf16.mxu1 %vm718_vm6, %v15755_v20  ;;  %v8066_v48 = vld [vmem:[#allocation2 + $0xbc] sm:$0x3]  ;;  %v8237_v20 = vrot.slane %v16312_v16, 6  ;;  %v16328_v17 = vcombine.low %v8224_v52, %v8227_v43  ;;  %v5351_v30 = vld [vmem:[#allocation3 + $0x78] sm:$0xff] }
 0x2b6   : > { %5881 = vst.msk [vmem:[#allocation3 + $0x38] sm:$0xff] %vm517_vm8, %v5849_v34  ;;  %v12114_v45 = vpop.f32.mrb[220].mxu0  ;;  %v7719_v10 = vrot.slane %v7718_v41, 4  ;;  %v7729_v21 = vrot.slane %v16319_v24, 4  ;;  %v7737_v37 = vor.u32 %v7736_v50, %v7733_v42  ;;  %v5349_v40 = vld [vmem:[#allocation3 + $0x68] sm:$0xff]  ;;  %v8240_v52 = vrot.slane %v8066_v48, 6 }
 0x2b7   : > { %5879 = vst.msk [vmem:[#allocation3 + $0x28] sm:$0xff] %vm517_vm8, %v5847_v8  ;;  %v12078_v33 = vpop.f32.mrb[220].mxu1  ;;  %v5763_v12 = vpop.f32.mrb[221].mxu0  ;;  %v8239_v34 = vrot.slane %v8237_v20, 4  ;;  %v5352_v16 = vld [vmem:[#allocation3 + $0x80] sm:$0xff]  ;;  %v5355_v25 = vld [vmem:[#allocation3 + $0x98] sm:$0xff] }
 0x2b8   : > { %v5566_v29 = vadd.f32 %v12078_v33, %v5350_v57  ;;  %v5473_v49 = vpop.f32.mrb[221].mxu1  ;;  %v12115_v43 = vpop.f32.mrb[222].mxu0  ;;  %v7728_v56 = vsel %vm14812_vm2, %v7719_v10, %v16319_v24 }
 0x2b9   : > { %12337 = vmatmul.mubr.msk.bf16.gmra.mrb[68].mxu0 %vm718_vm6, %v16291_v31  ;;  %v5636_v62 = vld [vmem:[#allocation3 + $0x50] sm:$0xff]  ;;  %v5564_v22 = vadd.f32 %v5473_v49, %v5348_v7  ;;  %v12079_v18 = vpop.f32.mrb[222].mxu1  ;;  %v5766_v41 = vpop.f32.mrb[223].mxu0  ;;  %v8241_v28 = vsel %vm15919_vm5, %v8239_v34, %v8240_v52  ;;  %v5353_v49 = vld [vmem:[#allocation3 + $0x88] sm:$0xff]  ;;  %v5359_v52 = vld [vmem:[#allocation3 + $0xb8] sm:$0xff] }
 0x2ba   : > { %12340 = vmatprep.mubr.msk.bf16.mxu0 %vm718_vm6, %v16295_v54  ;;  %v5852_v3 = vadd.f32 %v12110_v38, %v5636_v62  ;;  %5598 = vst.msk [vmem:[#allocation3 + $0x70] sm:$0xff] %vm517_vm8, %v5566_v29  ;;  %v5634_v53 = vld [vmem:[#allocation3 + $0x40] sm:$0xff]  ;;  %v5567_v6 = vadd.f32 %v12079_v18, %v5351_v30  ;;  %v5476_v51 = vpop.f32.mrb[223].mxu1  ;;  %v5357_v34 = vld [vmem:[#allocation3 + $0xa8] sm:$0xff] }
 0x2bb   : > { %v5850_v60 = vadd.f32 %v5747_v35, %v5634_v53  ;;  %5596 = vst.msk [vmem:[#allocation3 + $0x60] sm:$0xff] %vm517_vm8, %v5564_v22  ;;  %v5637_v26 = vld [vmem:[#allocation3 + $0x58] sm:$0xff]  ;;  %v5565_v46 = vadd.f32 %v5476_v51, %v5349_v40  ;;  %v5356_v40 = vld [vmem:[#allocation3 + $0xa0] sm:$0xff] }
 0x2bc   : > { %5884 = vst.msk [vmem:[#allocation3 + $0x50] sm:$0xff] %vm517_vm8, %v5852_v3  ;;  %v5853_v38 = vadd.f32 %v12111_v63, %v5637_v26  ;;  %5599 = vst.msk [vmem:[#allocation3 + $0x78] sm:$0xff] %vm517_vm8, %v5567_v6  ;;  %v5635_v14 = vld [vmem:[#allocation3 + $0x48] sm:$0xff]  ;;  %12305 = vmatmul.mubr.msk.bf16.gmra.mrb[72].mxu1 %vm718_vm6, %v15929_v39  ;;  %v7738_v63 = vsel %vm14812_vm2, %v7729_v21, %v7737_v37  ;;  %v5354_v39 = vld [vmem:[#allocation3 + $0x90] sm:$0xff] }
 0x2bd   : > { %5882 = vst.msk [vmem:[#allocation3 + $0x40] sm:$0xff] %vm517_vm8, %v5850_v60  ;;  %v5851_v35 = vadd.f32 %v5750_v44, %v5635_v14  ;;  %5597 = vst.msk [vmem:[#allocation3 + $0x68] sm:$0xff] %vm517_vm8, %v5565_v46  ;;  %12308 = vmatprep.mubr.msk.bf16.mxu1 %vm718_vm6, %v15955_v61  ;;  %v8238_v61 = vsel %vm15919_vm5, %v10903_v32, %v8237_v20  ;;  %v10869_v24 = vcombine.low %v7728_v56, %v7738_v63  ;;  %v5358_v3 = vld [vmem:[#allocation3 + $0xb0] sm:$0xff] }
 0x2be   : > { %5885 = vst.msk [vmem:[#allocation3 + $0x58] sm:$0xff] %vm517_vm8, %v5853_v38  ;;  %v12118_v33 = vpop.f32.mrb[224].mxu0  ;;  %v16363_v4 = vcombine.low %v8238_v61, %v8241_v28 }
 0x2bf   : > { %5883 = vst.msk [vmem:[#allocation3 + $0x48] sm:$0xff] %vm517_vm8, %v5851_v35  ;;  %v12082_v44 = vpop.f32.mrb[224].mxu1  ;;  %v5779_v20 = vpop.f32.mrb[225].mxu0 }
 0x2c0   : > { %v5570_v13 = vadd.f32 %v12082_v44, %v5354_v39  ;;  %v5489_v8 = vpop.f32.mrb[225].mxu1  ;;  %v12119_v18 = vpop.f32.mrb[226].mxu0 }
 0x2c1   : > { %12341 = vmatmul.mubr.msk.bf16.gmra.mrb[72].mxu0 %vm718_vm6, %v16328_v17  ;;  %v5640_v42 = vld [vmem:[#allocation3 + $0x70] sm:$0xff]  ;;  %v5568_v50 = vadd.f32 %v5489_v8, %v5352_v16  ;;  %v12083_v57 = vpop.f32.mrb[226].mxu1  ;;  %v5782_v21 = vpop.f32.mrb[227].mxu0 }
 0x2c2   : > { %12344 = vmatprep.mubr.msk.bf16.mxu0 %vm718_vm6, %v16337_v58  ;;  %v5856_v48 = vadd.f32 %v12114_v45, %v5640_v42  ;;  %5602 = vst.msk [vmem:[#allocation3 + $0x90] sm:$0xff] %vm517_vm8, %v5570_v13  ;;  %v5638_v29 = vld [vmem:[#allocation3 + $0x60] sm:$0xff]  ;;  %v5571_v7 = vadd.f32 %v12083_v57, %v5355_v25  ;;  %v5492_v1 = vpop.f32.mrb[227].mxu1  ;;  %v12624_v13 = vld [vmem:[%s17219_s1 + $0x188] sm:$0xff]  }
 0x2c3   : > { %v5854_v62 = vadd.f32 %v5763_v12, %v5638_v29  ;;  %5600 = vst.msk [vmem:[#allocation3 + $0x80] sm:$0xff] %vm517_vm8, %v5568_v50  ;;  %v5641_v22 = vld [vmem:[#allocation3 + $0x78] sm:$0xff]  ;;  %v5569_v30 = vadd.f32 %v5492_v1, %v5353_v49  ;;  %v5361_v1 = vld [vmem:[#allocation3 + $0xc8] sm:$0xff] }
 0x2c4   : > { %5888 = vst.msk [vmem:[#allocation3 + $0x70] sm:$0xff] %vm517_vm8, %v5856_v48  ;;  %v5857_v10 = vadd.f32 %v12115_v43, %v5641_v22  ;;  %5603 = vst.msk [vmem:[#allocation3 + $0x98] sm:$0xff] %vm517_vm8, %v5571_v7  ;;  %v5639_v45 = vld [vmem:[#allocation3 + $0x68] sm:$0xff]  ;;  %12309 = vmatmul.mubr.msk.bf16.gmra.mrb[76].mxu1 %vm718_vm6, %v10869_v24  ;;  %v5363_v57 = vld [vmem:[#allocation3 + $0xd8] sm:$0xff] }
 0x2c5   : > { %5886 = vst.msk [vmem:[#allocation3 + $0x60] sm:$0xff] %vm517_vm8, %v5854_v62  ;;  %v5855_v37 = vadd.f32 %v5766_v41, %v5639_v45  ;;  %5601 = vst.msk [vmem:[#allocation3 + $0x88] sm:$0xff] %vm517_vm8, %v5569_v30  ;;  %12352 = vmatprep.mubr.msk.bf16.mxu1 %vm718_vm6, %v15996_v0  ;;  %v12623_v41 = vld [vmem:[%s17219_s1 + $0x138] sm:$0xff]  }
 0x2c6   : > { %5889 = vst.msk [vmem:[#allocation3 + $0x78] sm:$0xff] %vm517_vm8, %v5857_v10  ;;  %v12122_v0 = vpop.f32.mrb[228].mxu0 }
 0x2c7   : > { %5887 = vst.msk [vmem:[#allocation3 + $0x68] sm:$0xff] %vm517_vm8, %v5855_v37  ;;  %v12086_v53 = vpop.f32.mrb[228].mxu1  ;;  %v5795_v14 = vpop.f32.mrb[229].mxu0 }
 0x2c8   : > { %v5574_v6 = vadd.f32 %v12086_v53, %v5358_v3  ;;  %v5505_v51 = vpop.f32.mrb[229].mxu1  ;;  %v12123_v39 = vpop.f32.mrb[230].mxu0  ;;  %v5366_v3 = vld [vmem:[#allocation3 + $0xf0] sm:$0xff] }
 0x2c9   : > { %12345 = vmatmul.mubr.msk.bf16.gmra.mrb[76].mxu0 %vm718_vm6, %v16363_v4  ;;  %v5644_v12 = vld [vmem:[#allocation3 + $0x90] sm:$0xff]  ;;  %v5572_v32 = vadd.f32 %v5505_v51, %v5356_v40  ;;  %v12087_v60 = vpop.f32.mrb[230].mxu1  ;;  %v5798_v28 = vpop.f32.mrb[231].mxu0  ;;  %v5364_v40 = vld [vmem:[#allocation3 + $0xe0] sm:$0xff] }
 0x2ca   : > { %12388 = vmatprep.mubr.msk.bf16.mxu0 %vm718_vm6, %v16001_v36  ;;  %v5860_v26 = vadd.f32 %v12118_v33, %v5644_v12  ;;  %5606 = vst.msk [vmem:[#allocation3 + $0xb0] sm:$0xff] %vm517_vm8, %v5574_v6  ;;  %v5642_v46 = vld [vmem:[#allocation3 + $0x80] sm:$0xff]  ;;  %v5575_v43 = vadd.f32 %v12087_v60, %v5359_v52  ;;  %v5508_v38 = vpop.f32.mrb[231].mxu1  ;;  %v5367_v52 = vld [vmem:[#allocation3 + $0xf8] sm:$0xff] }
 0x2cb   : > { %v5858_v35 = vadd.f32 %v5779_v20, %v5642_v46  ;;  %5604 = vst.msk [vmem:[#allocation3 + $0xa0] sm:$0xff] %vm517_vm8, %v5572_v32  ;;  %v5645_v56 = vld [vmem:[#allocation3 + $0x98] sm:$0xff]  ;;  %v5573_v63 = vadd.f32 %v5508_v38, %v5357_v34  ;;  %v5365_v34 = vld [vmem:[#allocation3 + $0xe8] sm:$0xff] }
 0x2cc   : > { %5892 = vst.msk [vmem:[#allocation3 + $0x90] sm:$0xff] %vm517_vm8, %v5860_v26  ;;  %v5861_v44 = vadd.f32 %v12119_v18, %v5645_v56  ;;  %5607 = vst.msk [vmem:[#allocation3 + $0xb8] sm:$0xff] %vm517_vm8, %v5575_v43  ;;  %v5643_v61 = vld [vmem:[#allocation3 + $0x88] sm:$0xff]  ;;  %12353 = vmatmul.mubr.msk.bf16.vlgmr.msra.gmra.mrb[80].mxu1 %vm718_vm6, %v16001_v36  ;;  %v5362_v36 = vld [vmem:[#allocation3 + $0xd0] sm:$0xff] }
 0x2cd   : > { %5890 = vst.msk [vmem:[#allocation3 + $0x80] sm:$0xff] %vm517_vm8, %v5858_v35  ;;  %v5859_v16 = vadd.f32 %v5782_v21, %v5643_v61  ;;  %5605 = vst.msk [vmem:[#allocation3 + $0xa8] sm:$0xff] %vm517_vm8, %v5573_v63  ;;  %12421 = vmatpush3.bf16.msra.mxu1 %v16045_v59  ;;  %12356 = vmatprep.mubr.msk.bf16.mxu1 %vm718_vm6, %v16069_v9  ;;  %v5360_v59 = vld [vmem:[#allocation3 + $0xc0] sm:$0xff] }
 0x2ce   : > { %5893 = vst.msk [vmem:[#allocation3 + $0x98] sm:$0xff] %vm517_vm8, %v5861_v44  ;;  %12422 = vmatprep.subr.bf16.mxu1 %v12623_v41  ;;  %v12126_v48 = vpop.f32.mrb[232].mxu0 }
 0x2cf   : > { %5891 = vst.msk [vmem:[#allocation3 + $0x88] sm:$0xff] %vm517_vm8, %v5859_v16  ;;  %v12090_v8 = vpop.f32.mrb[232].mxu1  ;;  %v5811_v20 = vpop.f32.mrb[233].mxu0 }
 0x2d0   : > { %v5578_v24 = vadd.f32 %v12090_v8, %v5362_v36  ;;  %v5521_v42 = vpop.f32.mrb[233].mxu1  ;;  %v12127_v18 = vpop.f32.mrb[234].mxu0  ;;  %v6417_v8 = vld [vmem:[#allocation3] sm:$0xff] }
 0x2d1   : > { %12389 = vmatmul.mubr.msk.bf16.vlgmr.msra.gmra.mrb[80].mxu0 %vm718_vm6, %v16069_v9  ;;  %v5648_v50 = vld [vmem:[#allocation3 + $0xb0] sm:$0xff]  ;;  %v5576_v25 = vadd.f32 %v5521_v42, %v5360_v59  ;;  %v12091_v33 = vpop.f32.mrb[234].mxu1  ;;  %12423 = vmatpush3.bf16.msra.mxu1 %v12623_v41  ;;  %v5814_v21 = vpop.f32.mrb[235].mxu0 }
 0x2d2   : > { %12457 = vmatpush3.bf16.msra.mxu0 %v16065_v5  ;;  %12392 = vmatprep.mubr.msk.bf16.mxu0 %vm718_vm6, %v16079_v11  ;;  %v5864_v29 = vadd.f32 %v12122_v0, %v5648_v50  ;;  %5610 = vst.msk [vmem:[#allocation3 + $0xd0] sm:$0xff] %vm517_vm8, %v5578_v24  ;;  %v5646_v7 = vld [vmem:[#allocation3 + $0xa0] sm:$0xff]  ;;  %v5579_v49 = vadd.f32 %v12091_v33, %v5363_v57  ;;  %v5524_v5 = vpop.f32.mrb[235].mxu1  ;;  %v6420_v50 = vld [vmem:[#allocation3 + $0x18] sm:$0xff] }
 0x2d3   : > { %12458 = vmatprep.subr.bf16.mxu0 %v12624_v13  ;;  %v5862_v62 = vadd.f32 %v5795_v14, %v5646_v7  ;;  %5608 = vst.msk [vmem:[#allocation3 + $0xc0] sm:$0xff] %vm517_vm8, %v5576_v25  ;;  %v5649_v22 = vld [vmem:[#allocation3 + $0xb8] sm:$0xff]  ;;  %v5577_v30 = vadd.f32 %v5524_v5, %v5361_v1  ;;  %v6418_v7 = vld [vmem:[#allocation3 + $0x8] sm:$0xff] }
 0x2d4   : > { %5896 = vst.msk [vmem:[#allocation3 + $0xb0] sm:$0xff] %vm517_vm8, %v5864_v29  ;;  %v5865_v10 = vadd.f32 %v12123_v39, %v5649_v22  ;;  %5611 = vst.msk [vmem:[#allocation3 + $0xd8] sm:$0xff] %vm517_vm8, %v5579_v49  ;;  %v5647_v45 = vld [vmem:[#allocation3 + $0xa8] sm:$0xff]  ;;  %12357 = vmatmul.mubr.msk.bf16.gmra.mrb[84].mxu1 %vm718_vm6, %v16079_v11 }
 0x2d5   : > { %5894 = vst.msk [vmem:[#allocation3 + $0xa0] sm:$0xff] %vm517_vm8, %v5862_v62  ;;  %v5863_v37 = vadd.f32 %v5798_v28, %v5647_v45  ;;  %5609 = vst.msk [vmem:[#allocation3 + $0xc8] sm:$0xff] %vm517_vm8, %v5577_v30  ;;  %12360 = vmatprep.mubr.msk.bf16.mxu1 %vm718_vm6, %v16116_v15 }
 0x2d6   : > { %12459 = vmatpush3.bf16.msra.mxu0 %v12624_v13  ;;  %5897 = vst.msk [vmem:[#allocation3 + $0xb8] sm:$0xff] %vm517_vm8, %v5865_v10  ;;  %v6419_v13 = vld [vmem:[#allocation3 + $0x10] sm:$0xff] }
 0x2d7   : > { %5895 = vst.msk [vmem:[#allocation3 + $0xa8] sm:$0xff] %vm517_vm8, %v5863_v37  ;;  %v12094_v53 = vpop.f32.mrb[236].mxu1 }
 0x2d8   : > { %v5582_v6 = vadd.f32 %v12094_v53, %v5366_v3  ;;  %v5537_v51 = vpop.f32.mrb[237].mxu1  ;;  %v6421_v53 = vld [vmem:[#allocation3 + $0x20] sm:$0xff] }
 0x2d9   : > { %12393 = vmatmul.mubr.msk.bf16.gmra.mrb[84].mxu0 %vm718_vm6, %v16116_v15  ;;  %v5652_v12 = vld [vmem:[#allocation3 + $0xd0] sm:$0xff]  ;;  %v5580_v32 = vadd.f32 %v5537_v51, %v5364_v40  ;;  %v12095_v60 = vpop.f32.mrb[238].mxu1 }
 0x2da   : > { %12396 = vmatprep.mubr.msk.bf16.mxu0 %vm718_vm6, %v16118_v27  ;;  %v5868_v26 = vadd.f32 %v12126_v48, %v5652_v12  ;;  %5614 = vst.msk [vmem:[#allocation3 + $0xf0] sm:$0xff] %vm517_vm8, %v5582_v6  ;;  %v5650_v46 = vld [vmem:[#allocation3 + $0xc0] sm:$0xff]  ;;  %v5583_v43 = vadd.f32 %v12095_v60, %v5367_v52  ;;  %v5540_v38 = vpop.f32.mrb[239].mxu1  ;;  %v6424_v12 = vld [vmem:[#allocation3 + $0x38] sm:$0xff] }
 0x2db   : > { %v5866_v41 = vadd.f32 %v5811_v20, %v5650_v46  ;;  %5612 = vst.msk [vmem:[#allocation3 + $0xe0] sm:$0xff] %vm517_vm8, %v5580_v32  ;;  %v5653_v35 = vld [vmem:[#allocation3 + $0xd8] sm:$0xff]  ;;  %v5581_v56 = vadd.f32 %v5540_v38, %v5365_v34  ;;  %v6422_v46 = vld [vmem:[#allocation3 + $0x28] sm:$0xff] }
 0x2dc   : > { %v12130_v0 = vpop.f32.mrb[236].mxu0  ;;  %5900 = vst.msk [vmem:[#allocation3 + $0xd0] sm:$0xff] %vm517_vm8, %v5868_v26  ;;  %v5869_v39 = vadd.f32 %v12127_v18, %v5653_v35  ;;  %5615 = vst.msk [vmem:[#allocation3 + $0xf8] sm:$0xff] %vm517_vm8, %v5583_v43  ;;  %v5651_v44 = vld [vmem:[#allocation3 + $0xc8] sm:$0xff]  ;;  %12361 = vmatmul.mubr.msk.bf16.gmra.mrb[88].mxu1 %vm718_vm6, %v16118_v27 }
 0x2dd   : > { %v5827_v14 = vpop.f32.mrb[237].mxu0  ;;  %5898 = vst.msk [vmem:[#allocation3 + $0xc0] sm:$0xff] %vm517_vm8, %v5866_v41  ;;  %v5867_v28 = vadd.f32 %v5814_v21, %v5651_v44  ;;  %5613 = vst.msk [vmem:[#allocation3 + $0xe8] sm:$0xff] %vm517_vm8, %v5581_v56  ;;  %12364 = vmatprep.mubr.msk.bf16.mxu1 %vm718_vm6, %v16168_v23  ;;  %v6423_v21 = vld [vmem:[#allocation3 + $0x30] sm:$0xff] }
 0x2de   : > { %v12131_v63 = vpop.f32.mrb[238].mxu0  ;;  %5901 = vst.msk [vmem:[#allocation3 + $0xd8] sm:$0xff] %vm517_vm8, %v5869_v39 }
 0x2df   : > { %v5830_v61 = vpop.f32.mrb[239].mxu0  ;;  %5899 = vst.msk [vmem:[#allocation3 + $0xc8] sm:$0xff] %vm517_vm8, %v5867_v28  ;;  %v12138_v16 = vpop.f32.mrb[240].mxu1  ;;  %v6427_v28 = vld [vmem:[#allocation3 + $0x50] sm:$0xff] }
 0x2e0   : > { %v6725_v36 = vadd.f32 %v12138_v16, %v6419_v13  ;;  %v6596_v24 = vpop.f32.mrb[241].mxu1 }
 0x2e1   : > { %12397 = vmatmul.mubr.msk.bf16.gmra.mrb[88].mxu0 %vm718_vm6, %v16168_v23  ;;  %v5656_v59 = vld [vmem:[#allocation3 + $0xf0] sm:$0xff]  ;;  %v6723_v42 = vadd.f32 %v6596_v24, %v6417_v8  ;;  %v12139_v25 = vpop.f32.mrb[242].mxu1 }
 0x2e2   : > { %12400 = vmatprep.mubr.msk.bf16.mxu0 %vm718_vm6, %v16170_v55  ;;  %v5872_v33 = vadd.f32 %v12130_v0, %v5656_v59  ;;  %v5654_v48 = vld [vmem:[#allocation3 + $0xe0] sm:$0xff]  ;;  %6757 = vst.msk [vmem:[#allocation3 + $0x10] sm:$0xff] %vm517_vm8, %v6725_v36  ;;  %v6726_v29 = vadd.f32 %v12139_v25, %v6420_v50  ;;  %v6599_v49 = vpop.f32.mrb[243].mxu1 }
 0x2e3   : > { %v5870_v5 = vadd.f32 %v5827_v14, %v5654_v48  ;;  %v5657_v20 = vld [vmem:[#allocation3 + $0xf8] sm:$0xff]  ;;  %6755 = vst.msk [vmem:[#allocation3] sm:$0xff] %vm517_vm8, %v6723_v42  ;;  %v6724_v62 = vadd.f32 %v6599_v49, %v6418_v7  ;;  %v6425_v36 = vld [vmem:[#allocation3 + $0x40] sm:$0xff]  ;;  %v6426_v7 = vld [vmem:[#allocation3 + $0x48] sm:$0xff] }
 0x2e4   : > { %v12174_v57 = vpop.f32.mrb[240].mxu0  ;;  %5904 = vst.msk [vmem:[#allocation3 + $0xf0] sm:$0xff] %vm517_vm8, %v5872_v33  ;;  %v5873_v30 = vadd.f32 %v12131_v63, %v5657_v20  ;;  %v5655_v18 = vld [vmem:[#allocation3 + $0xe8] sm:$0xff]  ;;  %6758 = vst.msk [vmem:[#allocation3 + $0x18] sm:$0xff] %vm517_vm8, %v6726_v29  ;;  %12365 = vmatmul.mubr.msk.bf16.gmra.mrb[92].mxu1 %vm718_vm6, %v16170_v55  ;;  %v6428_v42 = vld [vmem:[#allocation3 + $0x58] sm:$0xff] }
 0x2e5   : > { %v6904_v1 = vpop.f32.mrb[241].mxu0  ;;  %5902 = vst.msk [vmem:[#allocation3 + $0xe0] sm:$0xff] %vm517_vm8, %v5870_v5  ;;  %v5871_v45 = vadd.f32 %v5830_v61, %v5655_v18  ;;  %6756 = vst.msk [vmem:[#allocation3 + $0x8] sm:$0xff] %vm517_vm8, %v6724_v62  ;;  %12368 = vmatprep.mubr.msk.bf16.mxu1 %vm718_vm6, %v16231_v47  ;;  %v8068_v61 = vld [vmem:[#allocation2 + $0xc4] sm:$0xf] }
 0x2e6   : > { %v12175_v22 = vpop.f32.mrb[242].mxu0  ;;  %5905 = vst.msk [vmem:[#allocation3 + $0xf8] sm:$0xff] %vm517_vm8, %v5873_v30  ;;  %v8067_v5 = vld [vmem:[#allocation2 + $0xc0] sm:$0xc]  ;;  %v8069_v18 = vld [vmem:[#allocation2 + $0xc8] sm:$0x3] }
 0x2e7   : > { %v6907_v10 = vpop.f32.mrb[243].mxu0  ;;  %5903 = vst.msk [vmem:[#allocation3 + $0xe8] sm:$0xff] %vm517_vm8, %v5871_v45  ;;  %v12142_v37 = vpop.f32.mrb[244].mxu1 }
 0x2e8   : > { %v6729_v3 = vadd.f32 %v12142_v37, %v6423_v21  ;;  %v6612_v6 = vpop.f32.mrb[245].mxu1  ;;  %v8071_v37 = vld [vmem:[#allocation2 + $0xd0] sm:$0xf] }
 0x2e9   : > { %12401 = vmatmul.mubr.msk.bf16.gmra.mrb[92].mxu0 %vm718_vm6, %v16231_v47  ;;  %v6817_v40 = vld [vmem:[#allocation3 + $0x10] sm:$0xff]  ;;  %v6727_v51 = vadd.f32 %v6612_v6, %v6421_v53  ;;  %v12143_v32 = vpop.f32.mrb[246].mxu1  ;;  %v10942_v53 = vrot.slane %v8067_v5, 10 }
 0x2ea   : > { %12404 = vmatprep.mubr.msk.bf16.mxu0 %vm718_vm6, %v16233_v2  ;;  %v7033_v60 = vadd.f32 %v12174_v57, %v6817_v40  ;;  %6761 = vst.msk [vmem:[#allocation3 + $0x30] sm:$0xff] %vm517_vm8, %v6729_v3  ;;  %v6815_v0 = vld [vmem:[#allocation3] sm:$0xff]  ;;  %v6730_v26 = vadd.f32 %v12143_v32, %v6424_v12  ;;  %v6615_v43 = vpop.f32.mrb[247].mxu1  ;;  %v8617_v57 = vrot.slane %v8068_v61, 6  ;;  %v8620_v40 = vrot.slane %v8069_v18, 6 }
 0x2eb   : > { %v7031_v38 = vadd.f32 %v6904_v1, %v6815_v0  ;;  %6759 = vst.msk [vmem:[#allocation3 + $0x20] sm:$0xff] %vm517_vm8, %v6727_v51  ;;  %v6818_v14 = vld [vmem:[#allocation3 + $0x18] sm:$0xff]  ;;  %v6728_v41 = vadd.f32 %v6615_v43, %v6422_v46  ;;  %v6431_v51 = vld [vmem:[#allocation3 + $0x70] sm:$0xff]  ;;  %v6429_v0 = vld [vmem:[#allocation3 + $0x60] sm:$0xff] }
 0x2ec   : > { %v12178_v52 = vpop.f32.mrb[244].mxu0  ;;  %7065 = vst.msk [vmem:[#allocation3 + $0x10] sm:$0xff] %vm517_vm8, %v7033_v60  ;;  %v7034_v56 = vadd.f32 %v12175_v22, %v6818_v14  ;;  %6762 = vst.msk [vmem:[#allocation3 + $0x38] sm:$0xff] %vm517_vm8, %v6730_v26  ;;  %v6816_v63 = vld [vmem:[#allocation3 + $0x8] sm:$0xff]  ;;  %12369 = vmatmul.mubr.msk.bf16.gmra.mrb[96].mxu1 %vm718_vm6, %v16233_v2  ;;  %v8619_v6 = vrot.slane %v8617_v57, 4 }
 0x2ed   : > { %v6920_v34 = vpop.f32.mrb[245].mxu0  ;;  %7063 = vst.msk [vmem:[#allocation3] sm:$0xff] %vm517_vm8, %v7031_v38  ;;  %v7032_v44 = vadd.f32 %v6907_v10, %v6816_v63  ;;  %6760 = vst.msk [vmem:[#allocation3 + $0x28] sm:$0xff] %vm517_vm8, %v6728_v41  ;;  %12372 = vmatprep.mubr.msk.bf16.mxu1 %vm718_vm6, %v16291_v31  ;;  %v8070_v32 = vld [vmem:[#allocation2 + $0xcc] sm:$0xc] }
 0x2ee   : > { %v12179_v35 = vpop.f32.mrb[246].mxu0  ;;  %7066 = vst.msk [vmem:[#allocation3 + $0x18] sm:$0xff] %vm517_vm8, %v7034_v56  ;;  %v8072_v46 = vld [vmem:[#allocation2 + $0xd4] sm:$0x3]  ;;  %v6432_v38 = vld [vmem:[#allocation3 + $0x78] sm:$0xff] }
 0x2ef   : > { %v6923_v39 = vpop.f32.mrb[247].mxu0  ;;  %7064 = vst.msk [vmem:[#allocation3 + $0x8] sm:$0xff] %vm517_vm8, %v7032_v44  ;;  %v12146_v13 = vpop.f32.mrb[248].mxu1  ;;  %v6430_v44 = vld [vmem:[#allocation3 + $0x68] sm:$0xff] }
 0x2f0   : > { %v6733_v16 = vadd.f32 %v12146_v13, %v6427_v28  ;;  %v6628_v8 = vpop.f32.mrb[249].mxu1  ;;  %v8621_v13 = vsel %vm15919_vm5, %v8619_v6, %v8620_v40  ;;  %v6434_v6 = vld [vmem:[#allocation3 + $0x88] sm:$0xff] }
 0x2f1   : > { %12405 = vmatmul.mubr.msk.bf16.gmra.mrb[96].mxu0 %vm718_vm6, %v16291_v31  ;;  %v6821_v24 = vld [vmem:[#allocation3 + $0x30] sm:$0xff]  ;;  %v6731_v59 = vadd.f32 %v6628_v8, %v6425_v36  ;;  %v12147_v50 = vpop.f32.mrb[250].mxu1 }
 0x2f2   : > { %12408 = vmatprep.mubr.msk.bf16.mxu0 %vm718_vm6, %v16295_v54  ;;  %v7037_v33 = vadd.f32 %v12178_v52, %v6821_v24  ;;  %6765 = vst.msk [vmem:[#allocation3 + $0x50] sm:$0xff] %vm517_vm8, %v6733_v16  ;;  %v6819_v48 = vld [vmem:[#allocation3 + $0x20] sm:$0xff]  ;;  %v6734_v29 = vadd.f32 %v12147_v50, %v6428_v42  ;;  %v6631_v49 = vpop.f32.mrb[251].mxu1  ;;  %v8907_v52 = vrot.slane %v8071_v37, 6  ;;  %v10966_v16 = vrot.slane %v8070_v32, 10 }
 0x2f3   : > { %v7035_v20 = vadd.f32 %v6920_v34, %v6819_v48  ;;  %6763 = vst.msk [vmem:[#allocation3 + $0x40] sm:$0xff] %vm517_vm8, %v6731_v59  ;;  %v6822_v62 = vld [vmem:[#allocation3 + $0x38] sm:$0xff]  ;;  %v6732_v22 = vadd.f32 %v6631_v49, %v6426_v7  ;;  %v8910_v50 = vrot.slane %v8072_v46, 6  ;;  %v6435_v7 = vld [vmem:[#allocation3 + $0x90] sm:$0xff] }
 0x2f4   : > { %v12182_v25 = vpop.f32.mrb[248].mxu0  ;;  %7069 = vst.msk [vmem:[#allocation3 + $0x30] sm:$0xff] %vm517_vm8, %v7037_v33  ;;  %v7038_v10 = vadd.f32 %v12179_v35, %v6822_v62  ;;  %6766 = vst.msk [vmem:[#allocation3 + $0x58] sm:$0xff] %vm517_vm8, %v6734_v29  ;;  %v6820_v45 = vld [vmem:[#allocation3 + $0x28] sm:$0xff]  ;;  %12373 = vmatmul.mubr.msk.bf16.gmra.mrb[100].mxu1 %vm718_vm6, %v16295_v54  ;;  %v8618_v35 = vsel %vm15919_vm5, %v10942_v53, %v8617_v57  ;;  %v8909_v42 = vrot.slane %v8907_v52, 4  ;;  %v6433_v62 = vld [vmem:[#allocation3 + $0x80] sm:$0xff] }
 0x2f5   : > { %v6936_v1 = vpop.f32.mrb[249].mxu0  ;;  %7067 = vst.msk [vmem:[#allocation3 + $0x20] sm:$0xff] %vm517_vm8, %v7035_v20  ;;  %v7036_v3 = vadd.f32 %v6923_v39, %v6820_v45  ;;  %6764 = vst.msk [vmem:[#allocation3 + $0x48] sm:$0xff] %vm517_vm8, %v6732_v22  ;;  %12376 = vmatprep.mubr.msk.bf16.mxu1 %vm718_vm6, %v16328_v17  ;;  %v16497_v29 = vcombine.low %v8618_v35, %v8621_v13  ;;  %v6437_v35 = vld [vmem:[#allocation3 + $0xa0] sm:$0xff] }
 0x2f6   : > { %v12183_v30 = vpop.f32.mrb[250].mxu0  ;;  %7070 = vst.msk [vmem:[#allocation3 + $0x38] sm:$0xff] %vm517_vm8, %v7038_v10  ;;  %v8911_v5 = vsel %vm15919_vm5, %v8909_v42, %v8910_v50  ;;  %v6436_v10 = vld [vmem:[#allocation3 + $0x98] sm:$0xff] }
 0x2f7   : > { %v6939_v21 = vpop.f32.mrb[251].mxu0  ;;  %7068 = vst.msk [vmem:[#allocation3 + $0x28] sm:$0xff] %vm517_vm8, %v7036_v3  ;;  %v12150_v12 = vpop.f32.mrb[252].mxu1 }
 0x2f8   : > { %v6737_v60 = vadd.f32 %v12150_v12, %v6431_v51  ;;  %v6644_v26 = vpop.f32.mrb[253].mxu1 }
 0x2f9   : > { %12409 = vmatmul.mubr.msk.bf16.gmra.mrb[100].mxu0 %vm718_vm6, %v16328_v17  ;;  %v6825_v43 = vld [vmem:[#allocation3 + $0x50] sm:$0xff]  ;;  %v6735_v34 = vadd.f32 %v6644_v26, %v6429_v0  ;;  %v12151_v14 = vpop.f32.mrb[254].mxu1 }
 0x2fa   : > { %12412 = vmatprep.mubr.msk.bf16.mxu0 %vm718_vm6, %v16337_v58  ;;  %v7041_v56 = vadd.f32 %v12182_v25, %v6825_v43  ;;  %6769 = vst.msk [vmem:[#allocation3 + $0x70] sm:$0xff] %vm517_vm8, %v6737_v60  ;;  %v6823_v63 = vld [vmem:[#allocation3 + $0x40] sm:$0xff]  ;;  %v6738_v39 = vadd.f32 %v12151_v14, %v6432_v38  ;;  %v6647_v61 = vpop.f32.mrb[255].mxu1  ;;  %v6439_v38 = vld [vmem:[#allocation3 + $0xb0] sm:$0xff] }
 0x2fb   : > { %v7039_v36 = vadd.f32 %v6936_v1, %v6823_v63  ;;  %6767 = vst.msk [vmem:[#allocation3 + $0x60] sm:$0xff] %vm517_vm8, %v6735_v34  ;;  %v6826_v8 = vld [vmem:[#allocation3 + $0x58] sm:$0xff]  ;;  %v6736_v24 = vadd.f32 %v6647_v61, %v6430_v44  ;;  %v8908_v1 = vsel %vm15919_vm5, %v10966_v16, %v8907_v52 }
 0x2fc   : > { %v12186_v41 = vpop.f32.mrb[252].mxu0  ;;  %7073 = vst.msk [vmem:[#allocation3 + $0x50] sm:$0xff] %vm517_vm8, %v7041_v56  ;;  %v7042_v25 = vadd.f32 %v12183_v30, %v6826_v8  ;;  %6770 = vst.msk [vmem:[#allocation3 + $0x78] sm:$0xff] %vm517_vm8, %v6738_v39  ;;  %v6824_v57 = vld [vmem:[#allocation3 + $0x48] sm:$0xff]  ;;  %12377 = vmatmul.mubr.msk.bf16.gmra.mrb[104].mxu1 %vm718_vm6, %v16337_v58  ;;  %v16510_v12 = vcombine.low %v8908_v1, %v8911_v5  ;;  %v6440_v44 = vld [vmem:[#allocation3 + $0xb8] sm:$0xff] }
 0x2fd   : > { %v6952_v28 = vpop.f32.mrb[253].mxu0  ;;  %7071 = vst.msk [vmem:[#allocation3 + $0x40] sm:$0xff] %vm517_vm8, %v7039_v36  ;;  %v7040_v48 = vadd.f32 %v6939_v21, %v6824_v57  ;;  %6768 = vst.msk [vmem:[#allocation3 + $0x68] sm:$0xff] %vm517_vm8, %v6736_v24  ;;  %12380 = vmatprep.mubr.msk.bf16.mxu1 %vm718_vm6, %v16363_v4  ;;  %v6438_v36 = vld [vmem:[#allocation3 + $0xa8] sm:$0xff]  ;;  %v6441_v5 = vld [vmem:[#allocation3 + $0xc0] sm:$0xff] }
 0x2fe   : > { %v12187_v59 = vpop.f32.mrb[254].mxu0  ;;  %7074 = vst.msk [vmem:[#allocation3 + $0x58] sm:$0xff] %vm517_vm8, %v7042_v25 }
 0x2ff   : > { %v6955_v33 = vpop.f32.mrb[255].mxu0  ;;  %7072 = vst.msk [vmem:[#allocation3 + $0x48] sm:$0xff] %vm517_vm8, %v7040_v48  ;;  %v12154_v49 = vpop.f32.mrb[0].mxu1 }
 0x300   : > { %v6741_v20 = vadd.f32 %v12154_v49, %v6435_v7  ;;  %v6660_v22 = vpop.f32.mrb[1].mxu1  ;;  %v6443_v49 = vld [vmem:[#allocation3 + $0xd0] sm:$0xff] }
 0x301   : > { %12413 = vmatmul.mubr.msk.bf16.gmra.mrb[104].mxu0 %vm718_vm6, %v16363_v4  ;;  %v6829_v30 = vld [vmem:[#allocation3 + $0x70] sm:$0xff]  ;;  %v6739_v18 = vadd.f32 %v6660_v22, %v6433_v62  ;;  %v12155_v45 = vpop.f32.mrb[2].mxu1 }
 0x302   : > { %12416 = vmatprep.mubr.msk.bf16.mxu0 %vm718_vm6, %v16497_v29  ;;  %v7045_v37 = vadd.f32 %v12186_v41, %v6829_v30  ;;  %6773 = vst.msk [vmem:[#allocation3 + $0x90] sm:$0xff] %vm517_vm8, %v6741_v20  ;;  %v6827_v3 = vld [vmem:[#allocation3 + $0x60] sm:$0xff]  ;;  %v6742_v53 = vadd.f32 %v12155_v45, %v6436_v10  ;;  %v6663_v40 = vpop.f32.mrb[3].mxu1  ;;  %v6444_v30 = vld [vmem:[#allocation3 + $0xd8] sm:$0xff] }
 0x303   : > { %v7043_v32 = vadd.f32 %v6952_v28, %v6827_v3  ;;  %6771 = vst.msk [vmem:[#allocation3 + $0x80] sm:$0xff] %vm517_vm8, %v6739_v18  ;;  %v6830_v52 = vld [vmem:[#allocation3 + $0x78] sm:$0xff]  ;;  %v6740_v60 = vadd.f32 %v6663_v40, %v6434_v6 }
 0x304   : > { %v12190_v21 = vpop.f32.mrb[0].mxu0  ;;  %7077 = vst.msk [vmem:[#allocation3 + $0x70] sm:$0xff] %vm517_vm8, %v7045_v37  ;;  %v7046_v26 = vadd.f32 %v12187_v59, %v6830_v52  ;;  %6774 = vst.msk [vmem:[#allocation3 + $0x98] sm:$0xff] %vm517_vm8, %v6742_v53  ;;  %v6828_v46 = vld [vmem:[#allocation3 + $0x68] sm:$0xff]  ;;  %12381 = vmatmul.mubr.msk.bf16.gmra.mrb[108].mxu1 %vm718_vm6, %v16497_v29 }
 0x305   : > { %v6968_v51 = vpop.f32.mrb[1].mxu0  ;;  %7075 = vst.msk [vmem:[#allocation3 + $0x60] sm:$0xff] %vm517_vm8, %v7043_v32  ;;  %v7044_v34 = vadd.f32 %v6955_v33, %v6828_v46  ;;  %6772 = vst.msk [vmem:[#allocation3 + $0x88] sm:$0xff] %vm517_vm8, %v6740_v60  ;;  %12424 = vmatprep.mubr.msk.bf16.mxu1 %vm718_vm6, %v16069_v9  ;;  %v6442_v37 = vld [vmem:[#allocation3 + $0xc8] sm:$0xff]  ;;  %v6447_v46 = vld [vmem:[#allocation3 + $0xf0] sm:$0xff] }
 0x306   : > { %v12191_v0 = vpop.f32.mrb[2].mxu0  ;;  %7078 = vst.msk [vmem:[#allocation3 + $0x78] sm:$0xff] %vm517_vm8, %v7046_v26 }
 0x307   : > { %v6971_v43 = vpop.f32.mrb[3].mxu0  ;;  %7076 = vst.msk [vmem:[#allocation3 + $0x68] sm:$0xff] %vm517_vm8, %v7044_v34  ;;  %v12158_v14 = vpop.f32.mrb[4].mxu1  ;;  %v6445_v34 = vld [vmem:[#allocation3 + $0xe0] sm:$0xff] }
 0x308   : > { %v6745_v41 = vadd.f32 %v12158_v14, %v6439_v38  ;;  %v6676_v56 = vpop.f32.mrb[5].mxu1 }
 0x309   : > { %12417 = vmatmul.mubr.msk.bf16.gmra.mrb[108].mxu0 %vm718_vm6, %v16510_v12  ;;  %v6833_v63 = vld [vmem:[#allocation3 + $0x90] sm:$0xff]  ;;  %v6743_v39 = vadd.f32 %v6676_v56, %v6437_v35  ;;  %v12159_v61 = vpop.f32.mrb[6].mxu1  ;;  %v6448_v35 = vld [vmem:[#allocation3 + $0xf8] sm:$0xff] }
 0x30a   : > { %12460 = vmatprep.mubr.msk.bf16.mxu0 %vm718_vm6, %v16079_v11  ;;  %v7049_v28 = vadd.f32 %v12190_v21, %v6833_v63  ;;  %6777 = vst.msk [vmem:[#allocation3 + $0xb0] sm:$0xff] %vm517_vm8, %v6745_v41  ;;  %v6831_v13 = vld [vmem:[#allocation3 + $0x80] sm:$0xff]  ;;  %v6746_v16 = vadd.f32 %v12159_v61, %v6440_v44  ;;  %v6679_v8 = vpop.f32.mrb[7].mxu1  ;;  %v6446_v61 = vld [vmem:[#allocation3 + $0xe8] sm:$0xff] }
 0x30b   : > { %v7047_v59 = vadd.f32 %v6968_v51, %v6831_v13  ;;  %6775 = vst.msk [vmem:[#allocation3 + $0xa0] sm:$0xff] %vm517_vm8, %v6743_v39  ;;  %v6834_v42 = vld [vmem:[#allocation3 + $0x98] sm:$0xff]  ;;  %v6744_v50 = vadd.f32 %v6679_v8, %v6438_v36 }
 0x30c   : > { %v12194_v9 = vpop.f32.mrb[4].mxu0  ;;  %7081 = vst.msk [vmem:[#allocation3 + $0x90] sm:$0xff] %vm517_vm8, %v7049_v28  ;;  %v7050_v57 = vadd.f32 %v12191_v0, %v6834_v42  ;;  %6778 = vst.msk [vmem:[#allocation3 + $0xb8] sm:$0xff] %vm517_vm8, %v6746_v16  ;;  %v6832_v33 = vld [vmem:[#allocation3 + $0x88] sm:$0xff]  ;;  %12425 = vmatmul.mubr.msk.bf16.vlgmr.msra.gmra.mrb[112].mxu1 %vm718_vm6, %v16079_v11 }
 0x30d   : > { %v6984_v24 = vpop.f32.mrb[5].mxu0  ;;  %7079 = vst.msk [vmem:[#allocation3 + $0x80] sm:$0xff] %vm517_vm8, %v7047_v59  ;;  %v7048_v7 = vadd.f32 %v6971_v43, %v6832_v33  ;;  %6776 = vst.msk [vmem:[#allocation3 + $0xa8] sm:$0xff] %vm517_vm8, %v6744_v50  ;;  %12428 = vmatprep.mubr.msk.bf16.mxu1 %vm718_vm6, %v16116_v15  ;;  %v7123_v33 = vld [vmem:[#allocation3] sm:$0xff] }
 0x30e   : > { %v12195_v25 = vpop.f32.mrb[6].mxu0  ;;  %7082 = vst.msk [vmem:[#allocation3 + $0x98] sm:$0xff] %vm517_vm8, %v7050_v57 }
 0x30f   : > { %v6987_v48 = vpop.f32.mrb[7].mxu0  ;;  %7080 = vst.msk [vmem:[#allocation3 + $0x88] sm:$0xff] %vm517_vm8, %v7048_v7  ;;  %v12162_v1 = vpop.f32.mrb[8].mxu1 }
 0x310   : > { %v6749_v11 = vadd.f32 %v12162_v1, %v6443_v49  ;;  %v6692_v20 = vpop.f32.mrb[9].mxu1  ;;  %v7126_v1 = vld [vmem:[#allocation3 + $0x18] sm:$0xff] }
 0x311   : > { %12461 = vmatmul.mubr.msk.bf16.vlgmr.msra.gmra.mrb[112].mxu0 %vm718_vm6, %v16116_v15  ;;  %v6837_v62 = vld [vmem:[#allocation3 + $0xb0] sm:$0xff]  ;;  %v6747_v22 = vadd.f32 %v6692_v20, %v6441_v5  ;;  %v12163_v18 = vpop.f32.mrb[10].mxu1 }
 0x312   : > { %12464 = vmatprep.mubr.msk.bf16.mxu0 %vm718_vm6, %v16118_v27  ;;  %v7053_v45 = vadd.f32 %v12194_v9, %v6837_v62  ;;  %6781 = vst.msk [vmem:[#allocation3 + $0xd0] sm:$0xff] %vm517_vm8, %v6749_v11  ;;  %v6835_v21 = vld [vmem:[#allocation3 + $0xa0] sm:$0xff]  ;;  %v6750_v15 = vadd.f32 %v12163_v18, %v6444_v30  ;;  %v6695_v3 = vpop.f32.mrb[11].mxu1 }
 0x313   : > { %v7051_v6 = vadd.f32 %v6984_v24, %v6835_v21  ;;  %6779 = vst.msk [vmem:[#allocation3 + $0xc0] sm:$0xff] %vm517_vm8, %v6747_v22  ;;  %v6838_v40 = vld [vmem:[#allocation3 + $0xb8] sm:$0xff]  ;;  %v6748_v51 = vadd.f32 %v6695_v3, %v6442_v37  ;;  %v7124_v22 = vld [vmem:[#allocation3 + $0x8] sm:$0xff] }
 0x314   : > { %v12198_v10 = vpop.f32.mrb[8].mxu0  ;;  %7085 = vst.msk [vmem:[#allocation3 + $0xb0] sm:$0xff] %vm517_vm8, %v7053_v45  ;;  %v7054_v52 = vadd.f32 %v12195_v25, %v6838_v40  ;;  %6782 = vst.msk [vmem:[#allocation3 + $0xd8] sm:$0xff] %vm517_vm8, %v6750_v15  ;;  %v6836_v60 = vld [vmem:[#allocation3 + $0xa8] sm:$0xff]  ;;  %12429 = vmatmul.mubr.msk.bf16.gmra.mrb[116].mxu1 %vm718_vm6, %v16118_v27  ;;  %v7125_v25 = vld [vmem:[#allocation3 + $0x10] sm:$0xff] }
 0x315   : > { %v7000_v53 = vpop.f32.mrb[9].mxu0  ;;  %7083 = vst.msk [vmem:[#allocation3 + $0xa0] sm:$0xff] %vm517_vm8, %v7051_v6  ;;  %v7052_v26 = vadd.f32 %v6987_v48, %v6836_v60  ;;  %6780 = vst.msk [vmem:[#allocation3 + $0xc8] sm:$0xff] %vm517_vm8, %v6748_v51  ;;  %12432 = vmatprep.mubr.msk.bf16.mxu1 %vm718_vm6, %v16168_v23  ;;  %v7129_v40 = vld [vmem:[#allocation3 + $0x30] sm:$0xff] }
 0x316   : > { %v12199_v32 = vpop.f32.mrb[10].mxu0  ;;  %7086 = vst.msk [vmem:[#allocation3 + $0xb8] sm:$0xff] %vm517_vm8, %v7054_v52 }
 0x317   : > { %v7003_v0 = vpop.f32.mrb[11].mxu0  ;;  %7084 = vst.msk [vmem:[#allocation3 + $0xa8] sm:$0xff] %vm517_vm8, %v7052_v26  ;;  %v12166_v43 = vpop.f32.mrb[12].mxu1  ;;  %v7130_v26 = vld [vmem:[#allocation3 + $0x38] sm:$0xff] }
 0x318   : > { %v6753_v27 = vadd.f32 %v12166_v43, %v6447_v46  ;;  %v6708_v38 = vpop.f32.mrb[13].mxu1 }
 0x319   : > { %12465 = vmatmul.mubr.msk.bf16.gmra.mrb[116].mxu0 %vm718_vm6, %v16168_v23  ;;  %v6841_v14 = vld [vmem:[#allocation3 + $0xd0] sm:$0xff]  ;;  %v6751_v41 = vadd.f32 %v6708_v38, %v6445_v34  ;;  %v12167_v56 = vpop.f32.mrb[14].mxu1  ;;  %v7128_v38 = vld [vmem:[#allocation3 + $0x28] sm:$0xff] }
 0x31a   : > { %12468 = vmatprep.mubr.msk.bf16.mxu0 %vm718_vm6, %v16170_v55  ;;  %v7057_v39 = vadd.f32 %v12198_v10, %v6841_v14  ;;  %6785 = vst.msk [vmem:[#allocation3 + $0xf0] sm:$0xff] %vm517_vm8, %v6753_v27  ;;  %v6839_v44 = vld [vmem:[#allocation3 + $0xc0] sm:$0xff]  ;;  %v6754_v23 = vadd.f32 %v12167_v56, %v6448_v35  ;;  %v6711_v9 = vpop.f32.mrb[15].mxu1 }
 0x31b   : > { %v7055_v13 = vadd.f32 %v7000_v53, %v6839_v44  ;;  %6783 = vst.msk [vmem:[#allocation3 + $0xe0] sm:$0xff] %vm517_vm8, %v6751_v41  ;;  %v6842_v16 = vld [vmem:[#allocation3 + $0xd8] sm:$0xff]  ;;  %v6752_v36 = vadd.f32 %v6711_v9, %v6446_v61 }
 0x31c   : > { %v12202_v63 = vpop.f32.mrb[12].mxu0  ;;  %7089 = vst.msk [vmem:[#allocation3 + $0xd0] sm:$0xff] %vm517_vm8, %v7057_v39  ;;  %v7058_v24 = vadd.f32 %v12199_v32, %v6842_v16  ;;  %6786 = vst.msk [vmem:[#allocation3 + $0xf8] sm:$0xff] %vm517_vm8, %v6754_v23  ;;  %v6840_v59 = vld [vmem:[#allocation3 + $0xc8] sm:$0xff]  ;;  %12433 = vmatmul.mubr.msk.bf16.gmra.mrb[120].mxu1 %vm718_vm6, %v16170_v55  ;;  %v7127_v32 = vld [vmem:[#allocation3 + $0x20] sm:$0xff] }
 0x31d   : > { %v7016_v28 = vpop.f32.mrb[13].mxu0  ;;  %7087 = vst.msk [vmem:[#allocation3 + $0xc0] sm:$0xff] %vm517_vm8, %v7055_v13  ;;  %v7056_v50 = vadd.f32 %v7003_v0, %v6840_v59  ;;  %6784 = vst.msk [vmem:[#allocation3 + $0xe8] sm:$0xff] %vm517_vm8, %v6752_v36  ;;  %12436 = vmatprep.mubr.msk.bf16.mxu1 %vm718_vm6, %v16231_v47  ;;  %v7133_v13 = vld [vmem:[#allocation3 + $0x50] sm:$0xff]  ;;  %v7131_v36 = vld [vmem:[#allocation3 + $0x40] sm:$0xff] }
 0x31e   : > { %v12203_v8 = vpop.f32.mrb[14].mxu0  ;;  %7090 = vst.msk [vmem:[#allocation3 + $0xd8] sm:$0xff] %vm517_vm8, %v7058_v24 }
 0x31f   : > { %v7019_v42 = vpop.f32.mrb[15].mxu0  ;;  %7088 = vst.msk [vmem:[#allocation3 + $0xc8] sm:$0xff] %vm517_vm8, %v7056_v50  ;;  %v12210_v57 = vpop.f32.mrb[16].mxu1 }
 0x320   : > { %v7341_v55 = vadd.f32 %v12210_v57, %v7125_v25  ;;  %v7212_v48 = vpop.f32.mrb[17].mxu1 }
 0x321   : > { %12469 = vmatmul.mubr.msk.bf16.gmra.mrb[120].mxu0 %vm718_vm6, %v16231_v47  ;;  %v6845_v7 = vld [vmem:[#allocation3 + $0xf0] sm:$0xff]  ;;  %v7339_v49 = vadd.f32 %v7212_v48, %v7123_v33  ;;  %v12211_v11 = vpop.f32.mrb[18].mxu1  ;;  %v7132_v48 = vld [vmem:[#allocation3 + $0x48] sm:$0xff] }
 0x322   : > { %12472 = vmatprep.mubr.msk.bf16.mxu0 %vm718_vm6, %v16233_v2  ;;  %v7061_v20 = vadd.f32 %v12202_v63, %v6845_v7  ;;  %v6843_v62 = vld [vmem:[#allocation3 + $0xe0] sm:$0xff]  ;;  %7373 = vst.msk [vmem:[#allocation3 + $0x10] sm:$0xff] %vm517_vm8, %v7341_v55  ;;  %v7342_v47 = vadd.f32 %v12211_v11, %v7126_v1  ;;  %v7215_v30 = vpop.f32.mrb[19].mxu1  ;;  %v8073_v1 = vld [vmem:[#allocation2 + $0xd8] sm:$0xc] }
 0x323   : > { %v7059_v10 = vadd.f32 %v7016_v28, %v6843_v62  ;;  %v6846_v45 = vld [vmem:[#allocation3 + $0xf8] sm:$0xff]  ;;  %7371 = vst.msk [vmem:[#allocation3] sm:$0xff] %vm517_vm8, %v7339_v49  ;;  %v7340_v21 = vadd.f32 %v7215_v30, %v7124_v22  ;;  %v8074_v28 = vld [vmem:[#allocation2 + $0xdc] sm:$0xf] }
 0x324   : > { %v12246_v5 = vpop.f32.mrb[16].mxu0  ;;  %7093 = vst.msk [vmem:[#allocation3 + $0xf0] sm:$0xff] %vm517_vm8, %v7061_v20  ;;  %v7062_v37 = vadd.f32 %v12203_v8, %v6846_v45  ;;  %v6844_v3 = vld [vmem:[#allocation3 + $0xe8] sm:$0xff]  ;;  %7374 = vst.msk [vmem:[#allocation3 + $0x18] sm:$0xff] %vm517_vm8, %v7342_v47  ;;  %12437 = vmatmul.mubr.msk.bf16.gmra.mrb[124].mxu1 %vm718_vm6, %v16233_v2  ;;  %v9197_v57 = vrot.slane %v8074_v28, 6 }
 0x325   : > { %v7520_v18 = vpop.f32.mrb[17].mxu0  ;;  %7091 = vst.msk [vmem:[#allocation3 + $0xe0] sm:$0xff] %vm517_vm8, %v7059_v10  ;;  %v7060_v6 = vadd.f32 %v7019_v42, %v6844_v3  ;;  %7372 = vst.msk [vmem:[#allocation3 + $0x8] sm:$0xff] %vm517_vm8, %v7340_v21  ;;  %12440 = vmatprep.mubr.msk.bf16.mxu1 %vm718_vm6, %v16291_v31  ;;  %v7134_v42 = vld [vmem:[#allocation3 + $0x58] sm:$0xff]  ;;  %v8075_v47 = vld [vmem:[#allocation2 + $0xe0] sm:$0x3] }
 0x326   : > { %v12247_v15 = vpop.f32.mrb[18].mxu0  ;;  %7094 = vst.msk [vmem:[#allocation3 + $0xf8] sm:$0xff] %vm517_vm8, %v7062_v37  ;;  %v8077_v10 = vld [vmem:[#allocation2 + $0xe8] sm:$0xf]  ;;  %v10990_v21 = vrot.slane %v8073_v1, 10  ;;  %v9200_v37 = vrot.slane %v8075_v47, 6 }
 0x327   : > { %v7523_v53 = vpop.f32.mrb[19].mxu0  ;;  %7092 = vst.msk [vmem:[#allocation3 + $0xe8] sm:$0xff] %vm517_vm8, %v7060_v6  ;;  %v12214_v51 = vpop.f32.mrb[20].mxu1  ;;  %v9487_v6 = vrot.slane %v8077_v10, 6 }
 0x328   : > { %v7345_v2 = vadd.f32 %v12214_v51, %v7129_v40  ;;  %v7228_v52 = vpop.f32.mrb[21].mxu1  ;;  %v7135_v51 = vld [vmem:[#allocation3 + $0x60] sm:$0xff] }
 0x329   : > { %12473 = vmatmul.mubr.msk.bf16.gmra.mrb[124].mxu0 %vm718_vm6, %v16291_v31  ;;  %v7433_v60 = vld [vmem:[#allocation3 + $0x10] sm:$0xff]  ;;  %v7343_v0 = vadd.f32 %v7228_v52, %v7127_v32  ;;  %v12215_v46 = vpop.f32.mrb[22].mxu1  ;;  %v8078_v32 = vld [vmem:[#allocation2 + $0xec] sm:$0x3] }
 0x32a   : > { %12476 = vmatprep.mubr.msk.bf16.mxu0 %vm718_vm6, %v16295_v54  ;;  %v7649_v27 = vadd.f32 %v12246_v5, %v7433_v60  ;;  %7377 = vst.msk [vmem:[#allocation3 + $0x30] sm:$0xff] %vm517_vm8, %v7345_v2  ;;  %v7431_v34 = vld [vmem:[#allocation3] sm:$0xff]  ;;  %v7346_v31 = vadd.f32 %v12215_v46, %v7130_v26  ;;  %v7231_v14 = vpop.f32.mrb[23].mxu1  ;;  %v9198_v46 = vsel %vm15919_vm5, %v10990_v21, %v9197_v57 }
 0x32b   : > { %v7647_v35 = vadd.f32 %v7520_v18, %v7431_v34  ;;  %7375 = vst.msk [vmem:[#allocation3 + $0x20] sm:$0xff] %vm517_vm8, %v7343_v0  ;;  %v7434_v56 = vld [vmem:[#allocation3 + $0x18] sm:$0xff]  ;;  %v7344_v63 = vadd.f32 %v7231_v14, %v7128_v38 }
 0x32c   : > { %v12250_v43 = vpop.f32.mrb[20].mxu0  ;;  %7681 = vst.msk [vmem:[#allocation3 + $0x10] sm:$0xff] %vm517_vm8, %v7649_v27  ;;  %v7650_v44 = vadd.f32 %v12247_v15, %v7434_v56  ;;  %7378 = vst.msk [vmem:[#allocation3 + $0x38] sm:$0xff] %vm517_vm8, %v7346_v31  ;;  %v7432_v23 = vld [vmem:[#allocation3 + $0x8] sm:$0xff]  ;;  %12441 = vmatmul.mubr.msk.bf16.gmra.mrb[128].mxu1 %vm718_vm6, %v16295_v54  ;;  %v9199_v15 = vrot.slane %v9197_v57, 4  ;;  %v7138_v0 = vld [vmem:[#allocation3 + $0x78] sm:$0xff] }
 0x32d   : > { %v7536_v41 = vpop.f32.mrb[21].mxu0  ;;  %7679 = vst.msk [vmem:[#allocation3] sm:$0xff] %vm517_vm8, %v7647_v35  ;;  %v7648_v9 = vadd.f32 %v7523_v53, %v7432_v23  ;;  %7376 = vst.msk [vmem:[#allocation3 + $0x28] sm:$0xff] %vm517_vm8, %v7344_v63  ;;  %12444 = vmatprep.mubr.msk.bf16.mxu1 %vm718_vm6, %v16328_v17  ;;  %v8076_v53 = vld [vmem:[#allocation2 + $0xe4] sm:$0xc]  ;;  %v7136_v31 = vld [vmem:[#allocation3 + $0x68] sm:$0xff] }
 0x32e   : > { %v12251_v39 = vpop.f32.mrb[22].mxu0  ;;  %7682 = vst.msk [vmem:[#allocation3 + $0x18] sm:$0xff] %vm517_vm8, %v7650_v44  ;;  %v11014_v35 = vrot.slane %v8076_v53, 10  ;;  %v9489_v23 = vrot.slane %v9487_v6, 4 }
 0x32f   : > { %v7539_v61 = vpop.f32.mrb[23].mxu0  ;;  %7680 = vst.msk [vmem:[#allocation3 + $0x8] sm:$0xff] %vm517_vm8, %v7648_v9  ;;  %v12218_v16 = vpop.f32.mrb[24].mxu1 }
 0x330   : > { %v7349_v54 = vadd.f32 %v12218_v16, %v7133_v13  ;;  %v7244_v8 = vpop.f32.mrb[25].mxu1 }
 0x331   : > { %12477 = vmatmul.mubr.msk.bf16.gmra.mrb[128].mxu0 %vm718_vm6, %v16328_v17  ;;  %v7437_v24 = vld [vmem:[#allocation3 + $0x30] sm:$0xff]  ;;  %v7347_v59 = vadd.f32 %v7244_v8, %v7131_v36  ;;  %v12219_v50 = vpop.f32.mrb[26].mxu1 }
 0x332   : > { %12480 = vmatprep.mubr.msk.bf16.mxu0 %vm718_vm6, %v16337_v58  ;;  %v7653_v55 = vadd.f32 %v12250_v43, %v7437_v24  ;;  %7381 = vst.msk [vmem:[#allocation3 + $0x50] sm:$0xff] %vm517_vm8, %v7349_v54  ;;  %v7435_v17 = vld [vmem:[#allocation3 + $0x20] sm:$0xff]  ;;  %v7350_v33 = vadd.f32 %v12219_v50, %v7134_v42  ;;  %v7247_v7 = vpop.f32.mrb[27].mxu1  ;;  %v7141_v36 = vld [vmem:[#allocation3 + $0x90] sm:$0xff] }
 0x333   : > { %v7651_v11 = vadd.f32 %v7536_v41, %v7435_v17  ;;  %7379 = vst.msk [vmem:[#allocation3 + $0x40] sm:$0xff] %vm517_vm8, %v7347_v59  ;;  %v7438_v5 = vld [vmem:[#allocation3 + $0x38] sm:$0xff]  ;;  %v7348_v20 = vadd.f32 %v7247_v7, %v7132_v48  ;;  %v9201_v41 = vsel %vm15919_vm5, %v9199_v15, %v9200_v37  ;;  %v7139_v42 = vld [vmem:[#allocation3 + $0x80] sm:$0xff] }
 0x334   : > { %v12254_v25 = vpop.f32.mrb[24].mxu0  ;;  %7685 = vst.msk [vmem:[#allocation3 + $0x30] sm:$0xff] %vm517_vm8, %v7653_v55  ;;  %v7654_v22 = vadd.f32 %v12251_v39, %v7438_v5  ;;  %7382 = vst.msk [vmem:[#allocation3 + $0x58] sm:$0xff] %vm517_vm8, %v7350_v33  ;;  %v7436_v30 = vld [vmem:[#allocation3 + $0x28] sm:$0xff]  ;;  %12445 = vmatmul.mubr.msk.bf16.gmra.mrb[132].mxu1 %vm718_vm6, %v16337_v58  ;;  %v7137_v58 = vld [vmem:[#allocation3 + $0x70] sm:$0xff]  ;;  %v10995_v54 = vcombine.low %v9198_v46, %v9201_v41 }
 0x335   : > { %v7552_v49 = vpop.f32.mrb[25].mxu0  ;;  %7683 = vst.msk [vmem:[#allocation3 + $0x20] sm:$0xff] %vm517_vm8, %v7651_v11  ;;  %v7652_v45 = vadd.f32 %v7539_v61, %v7436_v30  ;;  %7380 = vst.msk [vmem:[#allocation3 + $0x48] sm:$0xff] %vm517_vm8, %v7348_v20  ;;  %12448 = vmatprep.mubr.msk.bf16.mxu1 %vm718_vm6, %v16363_v4  ;;  %v9490_v61 = vrot.slane %v8078_v32, 6  ;;  %v7142_v55 = vld [vmem:[#allocation3 + $0x98] sm:$0xff]  ;;  %v7143_v37 = vld [vmem:[#allocation3 + $0xa0] sm:$0xff] }
 0x336   : > { %v12255_v62 = vpop.f32.mrb[26].mxu0  ;;  %7686 = vst.msk [vmem:[#allocation3 + $0x38] sm:$0xff] %vm517_vm8, %v7654_v22  ;;  %v7149_v41 = vld [vmem:[#allocation3 + $0xd0] sm:$0xff] }
 0x337   : > { %v7555_v18 = vpop.f32.mrb[27].mxu0  ;;  %7684 = vst.msk [vmem:[#allocation3 + $0x28] sm:$0xff] %vm517_vm8, %v7652_v45  ;;  %v12222_v3 = vpop.f32.mrb[28].mxu1  ;;  %v9491_v24 = vsel %vm15919_vm5, %v9489_v23, %v9490_v61  ;;  %v7145_v45 = vld [vmem:[#allocation3 + $0xb0] sm:$0xff]  ;;  %v7150_v61 = vld [vmem:[#allocation3 + $0xd8] sm:$0xff] }
 0x338   : > { %v7353_v40 = vadd.f32 %v12222_v3, %v7137_v58  ;;  %v7260_v2 = vpop.f32.mrb[29].mxu1 }
 0x339   : > { %12481 = vmatmul.mubr.msk.bf16.gmra.mrb[132].mxu0 %vm718_vm6, %v16363_v4  ;;  %v7441_v52 = vld [vmem:[#allocation3 + $0x50] sm:$0xff]  ;;  %v7351_v60 = vadd.f32 %v7260_v2, %v7135_v51  ;;  %v12223_v26 = vpop.f32.mrb[30].mxu1 }
 0x33a   : > { %12484 = vmatprep.mubr.msk.bf16.mxu0 %vm718_vm6, %v16497_v29  ;;  %v7657_v43 = vadd.f32 %v12254_v25, %v7441_v52  ;;  %7385 = vst.msk [vmem:[#allocation3 + $0x70] sm:$0xff] %vm517_vm8, %v7353_v40  ;;  %v7439_v27 = vld [vmem:[#allocation3 + $0x40] sm:$0xff]  ;;  %v7354_v34 = vadd.f32 %v12223_v26, %v7138_v0  ;;  %v7263_v38 = vpop.f32.mrb[31].mxu1 }
 0x33b   : > { %v7655_v56 = vadd.f32 %v7552_v49, %v7439_v27  ;;  %7383 = vst.msk [vmem:[#allocation3 + $0x60] sm:$0xff] %vm517_vm8, %v7351_v60  ;;  %v7442_v63 = vld [vmem:[#allocation3 + $0x58] sm:$0xff]  ;;  %v7352_v39 = vadd.f32 %v7263_v38, %v7136_v31  ;;  %v7140_v49 = vld [vmem:[#allocation3 + $0x88] sm:$0xff] }
 0x33c   : > { %v12258_v4 = vpop.f32.mrb[28].mxu0  ;;  %7689 = vst.msk [vmem:[#allocation3 + $0x50] sm:$0xff] %vm517_vm8, %v7657_v43  ;;  %v7658_v9 = vadd.f32 %v12255_v62, %v7442_v63  ;;  %7386 = vst.msk [vmem:[#allocation3 + $0x78] sm:$0xff] %vm517_vm8, %v7354_v34  ;;  %v7440_v28 = vld [vmem:[#allocation3 + $0x48] sm:$0xff]  ;;  %12449 = vmatmul.mubr.msk.bf16.gmra.mrb[136].mxu1 %vm718_vm6, %v16497_v29  ;;  %v9488_v29 = vsel %vm15919_vm5, %v11014_v35, %v9487_v6  ;;  %v7146_v6 = vld [vmem:[#allocation3 + $0xb8] sm:$0xff] }
 0x33d   : > { %v7568_v14 = vpop.f32.mrb[29].mxu0  ;;  %7687 = vst.msk [vmem:[#allocation3 + $0x40] sm:$0xff] %vm517_vm8, %v7655_v56  ;;  %v7656_v16 = vadd.f32 %v7555_v18, %v7440_v28  ;;  %7384 = vst.msk [vmem:[#allocation3 + $0x68] sm:$0xff] %vm517_vm8, %v7352_v39  ;;  %12452 = vmatprep.mubr.msk.bf16.mxu1 %vm718_vm6, %v16510_v12  ;;  %v11019_v5 = vcombine.low %v9488_v29, %v9491_v24  ;;  %v7144_v60 = vld [vmem:[#allocation3 + $0xa8] sm:$0xff]  ;;  %v7147_v63 = vld [vmem:[#allocation3 + $0xc0] sm:$0xff] }
 0x33e   : > { %v12259_v44 = vpop.f32.mrb[30].mxu0  ;;  %7690 = vst.msk [vmem:[#allocation3 + $0x58] sm:$0xff] %vm517_vm8, %v7658_v9 }
 0x33f   : > { %v7571_v13 = vpop.f32.mrb[31].mxu0  ;;  %7688 = vst.msk [vmem:[#allocation3 + $0x48] sm:$0xff] %vm517_vm8, %v7656_v16  ;;  %v12226_v8 = vpop.f32.mrb[32].mxu1 }
 0x340   : > { %v7357_v59 = vadd.f32 %v12226_v8, %v7141_v36  ;;  %v7276_v50 = vpop.f32.mrb[33].mxu1  ;;  %v7148_v36 = vld [vmem:[#allocation3 + $0xc8] sm:$0xff] }
 0x341   : > { %12485 = vmatmul.mubr.msk.bf16.gmra.mrb[136].mxu0 %vm718_vm6, %v16510_v12  ;;  %v7445_v25 = vld [vmem:[#allocation3 + $0x70] sm:$0xff]  ;;  %v7355_v57 = vadd.f32 %v7276_v50, %v7139_v42  ;;  %v12227_v17 = vpop.f32.mrb[34].mxu1 }
 0x342   : > { %12488 = vmatprep.mubr.msk.bf16.mxu0 %vm718_vm6, %v10995_v54  ;;  %v7661_v33 = vadd.f32 %v12258_v4, %v7445_v25  ;;  %7389 = vst.msk [vmem:[#allocation3 + $0x90] sm:$0xff] %vm517_vm8, %v7357_v59  ;;  %v7443_v48 = vld [vmem:[#allocation3 + $0x60] sm:$0xff]  ;;  %v7358_v7 = vadd.f32 %v12227_v17, %v7142_v55  ;;  %v7279_v1 = vpop.f32.mrb[35].mxu1 }
 0x343   : > { %v7659_v20 = vadd.f32 %v7568_v14, %v7443_v48  ;;  %7387 = vst.msk [vmem:[#allocation3 + $0x80] sm:$0xff] %vm517_vm8, %v7355_v57  ;;  %v7446_v19 = vld [vmem:[#allocation3 + $0x78] sm:$0xff]  ;;  %v7356_v62 = vadd.f32 %v7279_v1, %v7140_v49 }
 0x344   : > { %v12262_v12 = vpop.f32.mrb[32].mxu0  ;;  %7693 = vst.msk [vmem:[#allocation3 + $0x70] sm:$0xff] %vm517_vm8, %v7661_v33  ;;  %v7662_v22 = vadd.f32 %v12259_v44, %v7446_v19  ;;  %7390 = vst.msk [vmem:[#allocation3 + $0x98] sm:$0xff] %vm517_vm8, %v7358_v7  ;;  %v7444_v30 = vld [vmem:[#allocation3 + $0x68] sm:$0xff]  ;;  %12453 = vmatmul.mubr.msk.bf16.gmra.mrb[140].mxu1 %vm718_vm6, %v10995_v54  ;;  %v7151_v7 = vld [vmem:[#allocation3 + $0xe0] sm:$0xff] }
 0x345   : > { %v7584_v11 = vpop.f32.mrb[33].mxu0  ;;  %7691 = vst.msk [vmem:[#allocation3 + $0x60] sm:$0xff] %vm517_vm8, %v7659_v20  ;;  %v7660_v10 = vadd.f32 %v7571_v13, %v7444_v30  ;;  %7388 = vst.msk [vmem:[#allocation3 + $0x88] sm:$0xff] %vm517_vm8, %v7356_v62  ;;  %v7152_v30 = vld [vmem:[#allocation3 + $0xe8] sm:$0xff] }
 0x346   : > { %v12263_v47 = vpop.f32.mrb[34].mxu0  ;;  %7694 = vst.msk [vmem:[#allocation3 + $0x78] sm:$0xff] %vm517_vm8, %v7662_v22 }
 0x347   : > { %v7587_v18 = vpop.f32.mrb[35].mxu0  ;;  %7692 = vst.msk [vmem:[#allocation3 + $0x68] sm:$0xff] %vm517_vm8, %v7660_v10  ;;  %v12230_v21 = vpop.f32.mrb[36].mxu1 }
 0x348   : > { %v7361_v15 = vadd.f32 %v12230_v21, %v7145_v45  ;;  %v7292_v58 = vpop.f32.mrb[37].mxu1 }
 0x349   : > { %12489 = vmatmul.mubr.msk.bf16.gmra.mrb[140].mxu0 %vm718_vm6, %v11019_v5  ;;  %v7449_v3 = vld [vmem:[#allocation3 + $0x90] sm:$0xff]  ;;  %v7359_v53 = vadd.f32 %v7292_v58, %v7143_v37  ;;  %v12231_v40 = vpop.f32.mrb[38].mxu1  ;;  %v7154_v5 = vld [vmem:[#allocation3 + $0xf8] sm:$0xff]  ;;  %vm10195_vm6 = vcmask 125952  }
 0x34a   : > { %v7665_v2 = vadd.f32 %v12262_v12, %v7449_v3  ;;  %7393 = vst.msk [vmem:[#allocation3 + $0xb0] sm:$0xff] %vm517_vm8, %v7361_v15  ;;  %v7447_v32 = vld [vmem:[#allocation3 + $0x80] sm:$0xff]  ;;  %v7362_v52 = vadd.f32 %v12231_v40, %v7146_v6  ;;  %v7295_v0 = vpop.f32.mrb[39].mxu1  ;;  %v7153_v12 = vld [vmem:[#allocation3 + $0xf0] sm:$0xff] }
 0x34b   : > { %v7663_v4 = vadd.f32 %v7584_v11, %v7447_v32  ;;  %7391 = vst.msk [vmem:[#allocation3 + $0xa0] sm:$0xff] %vm517_vm8, %v7359_v53  ;;  %v7450_v46 = vld [vmem:[#allocation3 + $0x98] sm:$0xff]  ;;  %v7360_v43 = vadd.f32 %v7295_v0, %v7144_v60  ;;  %v7741_v40 = vld [vmem:[#allocation3 + $0x10] sm:$0xff]  ;;  %v7739_v32 = vld [vmem:[#allocation3] sm:$0xff] }
 0x34c   : > { %v12266_v51 = vpop.f32.mrb[36].mxu0  ;;  %7697 = vst.msk [vmem:[#allocation3 + $0x90] sm:$0xff] %vm517_vm8, %v7665_v2  ;;  %v7666_v34 = vadd.f32 %v12263_v47, %v7450_v46  ;;  %7394 = vst.msk [vmem:[#allocation3 + $0xb8] sm:$0xff] %vm517_vm8, %v7362_v52  ;;  %v7448_v31 = vld [vmem:[#allocation3 + $0x88] sm:$0xff] }
 0x34d   : > { %v7600_v26 = vpop.f32.mrb[37].mxu0  ;;  %7695 = vst.msk [vmem:[#allocation3 + $0x80] sm:$0xff] %vm517_vm8, %v7663_v4  ;;  %v7664_v14 = vadd.f32 %v7587_v18, %v7448_v31  ;;  %7392 = vst.msk [vmem:[#allocation3 + $0xa8] sm:$0xff] %vm517_vm8, %v7360_v43  ;;  %v7740_v31 = vld [vmem:[#allocation3 + $0x8] sm:$0xff] }
 0x34e   : > { %v12267_v27 = vpop.f32.mrb[38].mxu0  ;;  %7698 = vst.msk [vmem:[#allocation3 + $0x98] sm:$0xff] %vm517_vm8, %v7666_v34 }
 0x34f   : > { %v7603_v38 = vpop.f32.mrb[39].mxu0  ;;  %7696 = vst.msk [vmem:[#allocation3 + $0x88] sm:$0xff] %vm517_vm8, %v7664_v14  ;;  %v12234_v35 = vpop.f32.mrb[40].mxu1 }
 0x350   : > { %v7365_v56 = vadd.f32 %v12234_v35, %v7149_v41  ;;  %v7308_v39 = vpop.f32.mrb[41].mxu1 }
 0x351   : > { %v7453_v44 = vld [vmem:[#allocation3 + $0xb0] sm:$0xff]  ;;  %v7363_v23 = vadd.f32 %v7308_v39, %v7147_v63  ;;  %v12235_v9 = vpop.f32.mrb[42].mxu1 }
 0x352   : > { %v7669_v13 = vadd.f32 %v12266_v51, %v7453_v44  ;;  %7397 = vst.msk [vmem:[#allocation3 + $0xd0] sm:$0xff] %vm517_vm8, %v7365_v56  ;;  %v7451_v16 = vld [vmem:[#allocation3 + $0xa0] sm:$0xff]  ;;  %v7366_v54 = vadd.f32 %v12235_v9, %v7150_v61  ;;  %v7311_v8 = vpop.f32.mrb[43].mxu1  ;;  %v7745_v9 = vld [vmem:[#allocation3 + $0x30] sm:$0xff] }
 0x353   : > { %v7667_v24 = vadd.f32 %v7600_v26, %v7451_v16  ;;  %7395 = vst.msk [vmem:[#allocation3 + $0xc0] sm:$0xff] %vm517_vm8, %v7363_v23  ;;  %v7454_v59 = vld [vmem:[#allocation3 + $0xb8] sm:$0xff]  ;;  %v7364_v42 = vadd.f32 %v7311_v8, %v7148_v36  ;;  %v7743_v16 = vld [vmem:[#allocation3 + $0x20] sm:$0xff] }
 0x354   : > { %v12270_v28 = vpop.f32.mrb[40].mxu0  ;;  %7701 = vst.msk [vmem:[#allocation3 + $0xb0] sm:$0xff] %vm517_vm8, %v7669_v13  ;;  %v7670_v25 = vadd.f32 %v12267_v27, %v7454_v59  ;;  %7398 = vst.msk [vmem:[#allocation3 + $0xd8] sm:$0xff] %vm517_vm8, %v7366_v54  ;;  %v7452_v57 = vld [vmem:[#allocation3 + $0xa8] sm:$0xff]  ;;  %v7742_v26 = vld [vmem:[#allocation3 + $0x18] sm:$0xff] }
 0x355   : > { %v7616_v29 = vpop.f32.mrb[41].mxu0  ;;  %7699 = vst.msk [vmem:[#allocation3 + $0xa0] sm:$0xff] %vm517_vm8, %v7667_v24  ;;  %v7668_v17 = vadd.f32 %v7603_v38, %v7452_v57  ;;  %7396 = vst.msk [vmem:[#allocation3 + $0xc8] sm:$0xff] %vm517_vm8, %v7364_v42  ;;  %v7744_v57 = vld [vmem:[#allocation3 + $0x28] sm:$0xff] }
 0x356   : > { %v12271_v50 = vpop.f32.mrb[42].mxu0  ;;  %7702 = vst.msk [vmem:[#allocation3 + $0xb8] sm:$0xff] %vm517_vm8, %v7670_v25 }
 0x357   : > { %v7619_v55 = vpop.f32.mrb[43].mxu0  ;;  %7700 = vst.msk [vmem:[#allocation3 + $0xa8] sm:$0xff] %vm517_vm8, %v7668_v17  ;;  %v12238_v33 = vpop.f32.mrb[44].mxu1 }
 0x358   : > { %v7369_v48 = vadd.f32 %v12238_v33, %v7153_v12  ;;  %v7324_v49 = vpop.f32.mrb[45].mxu1 }
 0x359   : > { %v7457_v1 = vld [vmem:[#allocation3 + $0xd0] sm:$0xff]  ;;  %v7367_v11 = vadd.f32 %v7324_v49, %v7151_v7  ;;  %v12239_v20 = vpop.f32.mrb[46].mxu1 }
 0x35a   : > { %v7673_v62 = vadd.f32 %v12270_v28, %v7457_v1  ;;  %7401 = vst.msk [vmem:[#allocation3 + $0xf0] sm:$0xff] %vm517_vm8, %v7369_v48  ;;  %v7455_v47 = vld [vmem:[#allocation3 + $0xc0] sm:$0xff]  ;;  %v7370_v22 = vadd.f32 %v12239_v20, %v7154_v5  ;;  %v7327_v18 = vpop.f32.mrb[47].mxu1  ;;  %v7749_v20 = vld [vmem:[#allocation3 + $0x50] sm:$0xff] }
 0x35b   : > { %v7671_v45 = vadd.f32 %v7616_v29, %v7455_v47  ;;  %7399 = vst.msk [vmem:[#allocation3 + $0xe0] sm:$0xff] %vm517_vm8, %v7367_v11  ;;  %v7458_v21 = vld [vmem:[#allocation3 + $0xd8] sm:$0xff]  ;;  %v7368_v15 = vadd.f32 %v7327_v18, %v7152_v30  ;;  %v7747_v47 = vld [vmem:[#allocation3 + $0x40] sm:$0xff] }
 0x35c   : > { %v12274_v19 = vpop.f32.mrb[44].mxu0  ;;  %7705 = vst.msk [vmem:[#allocation3 + $0xd0] sm:$0xff] %vm517_vm8, %v7673_v62  ;;  %v7674_v58 = vadd.f32 %v12271_v50, %v7458_v21  ;;  %7402 = vst.msk [vmem:[#allocation3 + $0xf8] sm:$0xff] %vm517_vm8, %v7370_v22  ;;  %v7456_v3 = vld [vmem:[#allocation3 + $0xc8] sm:$0xff]  ;;  %v7746_v29 = vld [vmem:[#allocation3 + $0x38] sm:$0xff] }
 0x35d   : > { %v7632_v10 = vpop.f32.mrb[45].mxu0  ;;  %7703 = vst.msk [vmem:[#allocation3 + $0xc0] sm:$0xff] %vm517_vm8, %v7671_v45  ;;  %v7672_v6 = vadd.f32 %v7619_v55, %v7456_v3  ;;  %7400 = vst.msk [vmem:[#allocation3 + $0xe8] sm:$0xff] %vm517_vm8, %v7368_v15  ;;  %v7748_v3 = vld [vmem:[#allocation3 + $0x48] sm:$0xff] }
 0x35e   : > { %v12275_v37 = vpop.f32.mrb[46].mxu0  ;;  %7706 = vst.msk [vmem:[#allocation3 + $0xd8] sm:$0xff] %vm517_vm8, %v7674_v58 }
 0x35f   : > { %v7635_v53 = vpop.f32.mrb[47].mxu0  ;;  %7704 = vst.msk [vmem:[#allocation3 + $0xc8] sm:$0xff] %vm517_vm8, %v7672_v6  ;;  %v12282_v51 = vpop.f32.mrb[48].mxu1 }
 0x360   : > { %v7957_v2 = vadd.f32 %v12282_v51, %v7741_v40  ;;  %v7828_v52 = vpop.f32.mrb[49].mxu1 }
 0x361   : > { %v7461_v60 = vld [vmem:[#allocation3 + $0xf0] sm:$0xff]  ;;  %v7955_v0 = vadd.f32 %v7828_v52, %v7739_v32  ;;  %v12283_v4 = vpop.f32.mrb[50].mxu1 }
 0x362   : > { %v7677_v43 = vadd.f32 %v12274_v19, %v7461_v60  ;;  %v7459_v27 = vld [vmem:[#allocation3 + $0xe0] sm:$0xff]  ;;  %7989 = vst.msk [vmem:[#allocation3 + $0x10] sm:$0xff] %vm517_vm8, %v7957_v2  ;;  %v7958_v34 = vadd.f32 %v12283_v4, %v7742_v26  ;;  %v7831_v38 = vpop.f32.mrb[51].mxu1  ;;  %v7753_v4 = vld [vmem:[#allocation3 + $0x70] sm:$0xff] }
 0x363   : > { %v7675_v41 = vadd.f32 %v7632_v10, %v7459_v27  ;;  %v7462_v35 = vld [vmem:[#allocation3 + $0xf8] sm:$0xff]  ;;  %7987 = vst.msk [vmem:[#allocation3] sm:$0xff] %vm517_vm8, %v7955_v0  ;;  %v7956_v56 = vadd.f32 %v7831_v38, %v7740_v31  ;;  %v7751_v27 = vld [vmem:[#allocation3 + $0x60] sm:$0xff] }
 0x364   : > { %v12318_v46 = vpop.f32.mrb[48].mxu0  ;;  %7709 = vst.msk [vmem:[#allocation3 + $0xf0] sm:$0xff] %vm517_vm8, %v7677_v43  ;;  %v7678_v39 = vadd.f32 %v12275_v37, %v7462_v35  ;;  %v7460_v44 = vld [vmem:[#allocation3 + $0xe8] sm:$0xff]  ;;  %7990 = vst.msk [vmem:[#allocation3 + $0x18] sm:$0xff] %vm517_vm8, %v7958_v34  ;;  %v7750_v10 = vld [vmem:[#allocation3 + $0x58] sm:$0xff] }
 0x365   : > { %v8421_v14 = vpop.f32.mrb[49].mxu0  ;;  %7707 = vst.msk [vmem:[#allocation3 + $0xe0] sm:$0xff] %vm517_vm8, %v7675_v41  ;;  %v7676_v61 = vadd.f32 %v7635_v53, %v7460_v44  ;;  %7988 = vst.msk [vmem:[#allocation3 + $0x8] sm:$0xff] %vm517_vm8, %v7956_v56  ;;  %v7752_v44 = vld [vmem:[#allocation3 + $0x68] sm:$0xff] }
 0x366   : > { %v12319_v63 = vpop.f32.mrb[50].mxu0  ;;  %7710 = vst.msk [vmem:[#allocation3 + $0xf8] sm:$0xff] %vm517_vm8, %v7678_v39 }
 0x367   : > { %v8424_v23 = vpop.f32.mrb[51].mxu0  ;;  %7708 = vst.msk [vmem:[#allocation3 + $0xe8] sm:$0xff] %vm517_vm8, %v7676_v61  ;;  %v12286_v28 = vpop.f32.mrb[52].mxu1 }
 0x368   : > { %v7961_v13 = vadd.f32 %v12286_v28, %v7745_v9  ;;  %v7844_v54 = vpop.f32.mrb[53].mxu1 }
 0x369   : > { %v8244_v36 = vld [vmem:[#allocation3 + $0x10] sm:$0xff]  ;;  %v7959_v8 = vadd.f32 %v7844_v54, %v7743_v16  ;;  %v12287_v24 = vpop.f32.mrb[54].mxu1 }
 0x36a   : > { %v8550_v42 = vadd.f32 %v12318_v46, %v8244_v36  ;;  %7993 = vst.msk [vmem:[#allocation3 + $0x30] sm:$0xff] %vm517_vm8, %v7961_v13  ;;  %v8242_v50 = vld [vmem:[#allocation3] sm:$0xff]  ;;  %v7962_v25 = vadd.f32 %v12287_v24, %v7746_v29  ;;  %v7847_v55 = vpop.f32.mrb[55].mxu1  ;;  %v7757_v24 = vld [vmem:[#allocation3 + $0x90] sm:$0xff] }
 0x36b   : > { %v8548_v12 = vadd.f32 %v8421_v14, %v8242_v50  ;;  %7991 = vst.msk [vmem:[#allocation3 + $0x20] sm:$0xff] %vm517_vm8, %v7959_v8  ;;  %v8245_v33 = vld [vmem:[#allocation3 + $0x18] sm:$0xff]  ;;  %v7960_v48 = vadd.f32 %v7847_v55, %v7744_v57  ;;  %v7755_v50 = vld [vmem:[#allocation3 + $0x80] sm:$0xff] }
 0x36c   : > { %v12322_v59 = vpop.f32.mrb[52].mxu0  ;;  %8582 = vst.msk [vmem:[#allocation3 + $0x10] sm:$0xff] %vm517_vm8, %v8550_v42  ;;  %v8551_v49 = vadd.f32 %v12319_v63, %v8245_v33  ;;  %7994 = vst.msk [vmem:[#allocation3 + $0x38] sm:$0xff] %vm517_vm8, %v7962_v25  ;;  %v8243_v1 = vld [vmem:[#allocation3 + $0x8] sm:$0xff]  ;;  %v7754_v14 = vld [vmem:[#allocation3 + $0x78] sm:$0xff] }
 0x36d   : > { %v8437_v17 = vpop.f32.mrb[53].mxu0  ;;  %8580 = vst.msk [vmem:[#allocation3] sm:$0xff] %vm517_vm8, %v8548_v12  ;;  %v8549_v5 = vadd.f32 %v8424_v23, %v8243_v1  ;;  %7992 = vst.msk [vmem:[#allocation3 + $0x28] sm:$0xff] %vm517_vm8, %v7960_v48  ;;  %v7756_v1 = vld [vmem:[#allocation3 + $0x88] sm:$0xff] }
 0x36e   : > { %v12323_v7 = vpop.f32.mrb[54].mxu0  ;;  %8583 = vst.msk [vmem:[#allocation3 + $0x18] sm:$0xff] %vm517_vm8, %v8551_v49 }
 0x36f   : > { %v8440_v11 = vpop.f32.mrb[55].mxu0  ;;  %8581 = vst.msk [vmem:[#allocation3 + $0x8] sm:$0xff] %vm517_vm8, %v8549_v5  ;;  %v12290_v19 = vpop.f32.mrb[56].mxu1 }
 0x370   : > { %v7965_v62 = vadd.f32 %v12290_v19, %v7749_v20  ;;  %v7860_v22 = vpop.f32.mrb[57].mxu1 }
 0x371   : > { %v8248_v30 = vld [vmem:[#allocation3 + $0x30] sm:$0xff]  ;;  %v7963_v18 = vadd.f32 %v7860_v22, %v7747_v47  ;;  %v12291_v45 = vpop.f32.mrb[58].mxu1 }
 0x372   : > { %v8554_v15 = vadd.f32 %v12322_v59, %v8248_v30  ;;  %7997 = vst.msk [vmem:[#allocation3 + $0x50] sm:$0xff] %vm517_vm8, %v7965_v62  ;;  %v8246_v37 = vld [vmem:[#allocation3 + $0x20] sm:$0xff]  ;;  %v7966_v58 = vadd.f32 %v12291_v45, %v7750_v10  ;;  %v7863_v53 = vpop.f32.mrb[59].mxu1  ;;  %v7761_v45 = vld [vmem:[#allocation3 + $0xb0] sm:$0xff] }
 0x373   : > { %v8552_v40 = vadd.f32 %v8437_v17, %v8246_v37  ;;  %7995 = vst.msk [vmem:[#allocation3 + $0x40] sm:$0xff] %vm517_vm8, %v7963_v18  ;;  %v8249_v51 = vld [vmem:[#allocation3 + $0x38] sm:$0xff]  ;;  %v7964_v2 = vadd.f32 %v7863_v53, %v7748_v3  ;;  %v7759_v37 = vld [vmem:[#allocation3 + $0xa0] sm:$0xff] }
 0x374   : > { %v12326_v21 = vpop.f32.mrb[56].mxu0  ;;  %8586 = vst.msk [vmem:[#allocation3 + $0x30] sm:$0xff] %vm517_vm8, %v8554_v15  ;;  %v8555_v52 = vadd.f32 %v12323_v7, %v8249_v51  ;;  %7998 = vst.msk [vmem:[#allocation3 + $0x58] sm:$0xff] %vm517_vm8, %v7966_v58  ;;  %v8247_v60 = vld [vmem:[#allocation3 + $0x28] sm:$0xff]  ;;  %v7758_v17 = vld [vmem:[#allocation3 + $0x98] sm:$0xff] }
 0x375   : > { %v8453_v6 = vpop.f32.mrb[57].mxu0  ;;  %8584 = vst.msk [vmem:[#allocation3 + $0x20] sm:$0xff] %vm517_vm8, %v8552_v40  ;;  %v8553_v26 = vadd.f32 %v8440_v11, %v8247_v60  ;;  %7996 = vst.msk [vmem:[#allocation3 + $0x48] sm:$0xff] %vm517_vm8, %v7964_v2  ;;  %v7760_v60 = vld [vmem:[#allocation3 + $0xa8] sm:$0xff] }
 0x376   : > { %v12327_v32 = vpop.f32.mrb[58].mxu0  ;;  %8587 = vst.msk [vmem:[#allocation3 + $0x38] sm:$0xff] %vm517_vm8, %v8555_v52 }
 0x377   : > { %v8456_v0 = vpop.f32.mrb[59].mxu0  ;;  %8585 = vst.msk [vmem:[#allocation3 + $0x28] sm:$0xff] %vm517_vm8, %v8553_v26  ;;  %v12294_v46 = vpop.f32.mrb[60].mxu1 }
 0x378   : > { %v7969_v43 = vadd.f32 %v12294_v46, %v7753_v4  ;;  %v7876_v34 = vpop.f32.mrb[61].mxu1 }
 0x379   : > { %v8252_v31 = vld [vmem:[#allocation3 + $0x50] sm:$0xff]  ;;  %v7967_v38 = vadd.f32 %v7876_v34, %v7751_v27  ;;  %v12295_v41 = vpop.f32.mrb[62].mxu1 }
 0x37a   : > { %v8558_v56 = vadd.f32 %v12326_v21, %v8252_v31  ;;  %8001 = vst.msk [vmem:[#allocation3 + $0x70] sm:$0xff] %vm517_vm8, %v7969_v43  ;;  %v8250_v63 = vld [vmem:[#allocation3 + $0x40] sm:$0xff]  ;;  %v7970_v39 = vadd.f32 %v12295_v41, %v7754_v14  ;;  %v7879_v23 = vpop.f32.mrb[63].mxu1  ;;  %v7765_v41 = vld [vmem:[#allocation3 + $0xd0] sm:$0xff] }
 0x37b   : > { %v8556_v9 = vadd.f32 %v8453_v6, %v8250_v63  ;;  %7999 = vst.msk [vmem:[#allocation3 + $0x60] sm:$0xff] %vm517_vm8, %v7967_v38  ;;  %v8253_v28 = vld [vmem:[#allocation3 + $0x58] sm:$0xff]  ;;  %v7968_v13 = vadd.f32 %v7879_v23, %v7752_v44  ;;  %v7763_v63 = vld [vmem:[#allocation3 + $0xc0] sm:$0xff] }
 0x37c   : > { %v12330_v35 = vpop.f32.mrb[60].mxu0  ;;  %8590 = vst.msk [vmem:[#allocation3 + $0x50] sm:$0xff] %vm517_vm8, %v8558_v56  ;;  %v8559_v54 = vadd.f32 %v12327_v32, %v8253_v28  ;;  %8002 = vst.msk [vmem:[#allocation3 + $0x78] sm:$0xff] %vm517_vm8, %v7970_v39  ;;  %v8251_v36 = vld [vmem:[#allocation3 + $0x48] sm:$0xff]  ;;  %v7762_v6 = vld [vmem:[#allocation3 + $0xb8] sm:$0xff] }
 0x37d   : > { %v8469_v61 = vpop.f32.mrb[61].mxu0  ;;  %8588 = vst.msk [vmem:[#allocation3 + $0x40] sm:$0xff] %vm517_vm8, %v8556_v9  ;;  %v8557_v29 = vadd.f32 %v8456_v0, %v8251_v36  ;;  %8000 = vst.msk [vmem:[#allocation3 + $0x68] sm:$0xff] %vm517_vm8, %v7968_v13  ;;  %v7764_v36 = vld [vmem:[#allocation3 + $0xc8] sm:$0xff] }
 0x37e   : > { %v12331_v16 = vpop.f32.mrb[62].mxu0  ;;  %8591 = vst.msk [vmem:[#allocation3 + $0x58] sm:$0xff] %vm517_vm8, %v8559_v54 }
 0x37f   : > { %v8472_v8 = vpop.f32.mrb[63].mxu0  ;;  %8589 = vst.msk [vmem:[#allocation3 + $0x48] sm:$0xff] %vm517_vm8, %v8557_v29  ;;  %v12298_v59 = vpop.f32.mrb[64].mxu1 }
 0x380   : > { %v7973_v42 = vadd.f32 %v12298_v59, %v7757_v24  ;;  %v7892_v25 = vpop.f32.mrb[65].mxu1 }
 0x381   : > { %v8256_v57 = vld [vmem:[#allocation3 + $0x70] sm:$0xff]  ;;  %v7971_v55 = vadd.f32 %v7892_v25, %v7755_v50  ;;  %v12299_v12 = vpop.f32.mrb[66].mxu1 }
 0x382   : > { %v8562_v48 = vadd.f32 %v12330_v35, %v8256_v57  ;;  %8005 = vst.msk [vmem:[#allocation3 + $0x90] sm:$0xff] %vm517_vm8, %v7973_v42  ;;  %v8254_v7 = vld [vmem:[#allocation3 + $0x60] sm:$0xff]  ;;  %v7974_v49 = vadd.f32 %v12299_v12, %v7758_v17  ;;  %v7895_v11 = vpop.f32.mrb[67].mxu1  ;;  %v7769_v12 = vld [vmem:[#allocation3 + $0xf0] sm:$0xff] }
 0x383   : > { %v8560_v20 = vadd.f32 %v8469_v61, %v8254_v7  ;;  %8003 = vst.msk [vmem:[#allocation3 + $0x80] sm:$0xff] %vm517_vm8, %v7971_v55  ;;  %v8257_v19 = vld [vmem:[#allocation3 + $0x78] sm:$0xff]  ;;  %v7972_v62 = vadd.f32 %v7895_v11, %v7756_v1  ;;  %v7767_v7 = vld [vmem:[#allocation3 + $0xe0] sm:$0xff] }
 0x384   : > { %v12334_v33 = vpop.f32.mrb[64].mxu0  ;;  %8594 = vst.msk [vmem:[#allocation3 + $0x70] sm:$0xff] %vm517_vm8, %v8562_v48  ;;  %v8563_v22 = vadd.f32 %v12331_v16, %v8257_v19  ;;  %8006 = vst.msk [vmem:[#allocation3 + $0x98] sm:$0xff] %vm517_vm8, %v7974_v49  ;;  %v8255_v30 = vld [vmem:[#allocation3 + $0x68] sm:$0xff]  ;;  %v7766_v61 = vld [vmem:[#allocation3 + $0xd8] sm:$0xff] }
 0x385   : > { %v8485_v5 = vpop.f32.mrb[65].mxu0  ;;  %8592 = vst.msk [vmem:[#allocation3 + $0x60] sm:$0xff] %vm517_vm8, %v8560_v20  ;;  %v8561_v10 = vadd.f32 %v8472_v8, %v8255_v30  ;;  %8004 = vst.msk [vmem:[#allocation3 + $0x88] sm:$0xff] %vm517_vm8, %v7972_v62  ;;  %v7768_v30 = vld [vmem:[#allocation3 + $0xe8] sm:$0xff] }
 0x386   : > { %v12335_v47 = vpop.f32.mrb[66].mxu0  ;;  %8595 = vst.msk [vmem:[#allocation3 + $0x78] sm:$0xff] %vm517_vm8, %v8563_v22 }
 0x387   : > { %v8488_v18 = vpop.f32.mrb[67].mxu0  ;;  %8593 = vst.msk [vmem:[#allocation3 + $0x68] sm:$0xff] %vm517_vm8, %v8561_v10  ;;  %v12302_v21 = vpop.f32.mrb[68].mxu1 }
 0x388   : > { %v7977_v15 = vadd.f32 %v12302_v21, %v7761_v45  ;;  %v7908_v58 = vpop.f32.mrb[69].mxu1 }
 0x389   : > { %v8260_v3 = vld [vmem:[#allocation3 + $0x90] sm:$0xff]  ;;  %v7975_v53 = vadd.f32 %v7908_v58, %v7759_v37  ;;  %v12303_v40 = vpop.f32.mrb[70].mxu1 }
 0x38a   : > { %v8566_v2 = vadd.f32 %v12334_v33, %v8260_v3  ;;  %8009 = vst.msk [vmem:[#allocation3 + $0xb0] sm:$0xff] %vm517_vm8, %v7977_v15  ;;  %v8258_v32 = vld [vmem:[#allocation3 + $0x80] sm:$0xff]  ;;  %v7978_v52 = vadd.f32 %v12303_v40, %v7762_v6  ;;  %v7911_v0 = vpop.f32.mrb[71].mxu1  ;;  %v8624_v40 = vld [vmem:[#allocation3 + $0x10] sm:$0xff] }
 0x38b   : > { %v8564_v4 = vadd.f32 %v8485_v5, %v8258_v32  ;;  %8007 = vst.msk [vmem:[#allocation3 + $0xa0] sm:$0xff] %vm517_vm8, %v7975_v53  ;;  %v8261_v46 = vld [vmem:[#allocation3 + $0x98] sm:$0xff]  ;;  %v7976_v43 = vadd.f32 %v7911_v0, %v7760_v60  ;;  %v8622_v32 = vld [vmem:[#allocation3] sm:$0xff] }
 0x38c   : > { %v12338_v51 = vpop.f32.mrb[68].mxu0  ;;  %8598 = vst.msk [vmem:[#allocation3 + $0x90] sm:$0xff] %vm517_vm8, %v8566_v2  ;;  %v8567_v34 = vadd.f32 %v12335_v47, %v8261_v46  ;;  %8010 = vst.msk [vmem:[#allocation3 + $0xb8] sm:$0xff] %vm517_vm8, %v7978_v52  ;;  %v8259_v31 = vld [vmem:[#allocation3 + $0x88] sm:$0xff]  ;;  %v7770_v5 = vld [vmem:[#allocation3 + $0xf8] sm:$0xff] }
 0x38d   : > { %v8501_v26 = vpop.f32.mrb[69].mxu0  ;;  %8596 = vst.msk [vmem:[#allocation3 + $0x80] sm:$0xff] %vm517_vm8, %v8564_v4  ;;  %v8565_v14 = vadd.f32 %v8488_v18, %v8259_v31  ;;  %8008 = vst.msk [vmem:[#allocation3 + $0xa8] sm:$0xff] %vm517_vm8, %v7976_v43  ;;  %v8623_v31 = vld [vmem:[#allocation3 + $0x8] sm:$0xff] }
 0x38e   : > { %v12339_v27 = vpop.f32.mrb[70].mxu0  ;;  %8599 = vst.msk [vmem:[#allocation3 + $0x98] sm:$0xff] %vm517_vm8, %v8567_v34 }
 0x38f   : > { %v8504_v38 = vpop.f32.mrb[71].mxu0  ;;  %8597 = vst.msk [vmem:[#allocation3 + $0x88] sm:$0xff] %vm517_vm8, %v8565_v14  ;;  %v12306_v35 = vpop.f32.mrb[72].mxu1 }
 0x390   : > { %v7981_v56 = vadd.f32 %v12306_v35, %v7765_v41  ;;  %v7924_v39 = vpop.f32.mrb[73].mxu1 }
 0x391   : > { %v8264_v44 = vld [vmem:[#allocation3 + $0xb0] sm:$0xff]  ;;  %v7979_v23 = vadd.f32 %v7924_v39, %v7763_v63  ;;  %v12307_v9 = vpop.f32.mrb[74].mxu1 }
 0x392   : > { %v8570_v13 = vadd.f32 %v12338_v51, %v8264_v44  ;;  %8013 = vst.msk [vmem:[#allocation3 + $0xd0] sm:$0xff] %vm517_vm8, %v7981_v56  ;;  %v8262_v16 = vld [vmem:[#allocation3 + $0xa0] sm:$0xff]  ;;  %v7982_v54 = vadd.f32 %v12307_v9, %v7766_v61  ;;  %v7927_v8 = vpop.f32.mrb[75].mxu1  ;;  %v8628_v9 = vld [vmem:[#allocation3 + $0x30] sm:$0xff] }
 0x393   : > { %v8568_v24 = vadd.f32 %v8501_v26, %v8262_v16  ;;  %8011 = vst.msk [vmem:[#allocation3 + $0xc0] sm:$0xff] %vm517_vm8, %v7979_v23  ;;  %v8265_v59 = vld [vmem:[#allocation3 + $0xb8] sm:$0xff]  ;;  %v7980_v42 = vadd.f32 %v7927_v8, %v7764_v36  ;;  %v8626_v16 = vld [vmem:[#allocation3 + $0x20] sm:$0xff] }
 0x394   : > { %v12342_v28 = vpop.f32.mrb[72].mxu0  ;;  %8602 = vst.msk [vmem:[#allocation3 + $0xb0] sm:$0xff] %vm517_vm8, %v8570_v13  ;;  %v8571_v25 = vadd.f32 %v12339_v27, %v8265_v59  ;;  %8014 = vst.msk [vmem:[#allocation3 + $0xd8] sm:$0xff] %vm517_vm8, %v7982_v54  ;;  %v8263_v57 = vld [vmem:[#allocation3 + $0xa8] sm:$0xff]  ;;  %v8625_v26 = vld [vmem:[#allocation3 + $0x18] sm:$0xff] }
 0x395   : > { %v8517_v29 = vpop.f32.mrb[73].mxu0  ;;  %8600 = vst.msk [vmem:[#allocation3 + $0xa0] sm:$0xff] %vm517_vm8, %v8568_v24  ;;  %v8569_v17 = vadd.f32 %v8504_v38, %v8263_v57  ;;  %8012 = vst.msk [vmem:[#allocation3 + $0xc8] sm:$0xff] %vm517_vm8, %v7980_v42  ;;  %v8627_v57 = vld [vmem:[#allocation3 + $0x28] sm:$0xff] }
 0x396   : > { %v12343_v50 = vpop.f32.mrb[74].mxu0  ;;  %8603 = vst.msk [vmem:[#allocation3 + $0xb8] sm:$0xff] %vm517_vm8, %v8571_v25 }
 0x397   : > { %v8520_v55 = vpop.f32.mrb[75].mxu0  ;;  %8601 = vst.msk [vmem:[#allocation3 + $0xa8] sm:$0xff] %vm517_vm8, %v8569_v17  ;;  %v12310_v33 = vpop.f32.mrb[76].mxu1 }
 0x398   : > { %v7985_v48 = vadd.f32 %v12310_v33, %v7769_v12  ;;  %v7940_v49 = vpop.f32.mrb[77].mxu1 }
 0x399   : > { %v8268_v1 = vld [vmem:[#allocation3 + $0xd0] sm:$0xff]  ;;  %v7983_v11 = vadd.f32 %v7940_v49, %v7767_v7  ;;  %v12311_v20 = vpop.f32.mrb[78].mxu1 }
 0x39a   : > { %v8574_v62 = vadd.f32 %v12342_v28, %v8268_v1  ;;  %8017 = vst.msk [vmem:[#allocation3 + $0xf0] sm:$0xff] %vm517_vm8, %v7985_v48  ;;  %v8266_v47 = vld [vmem:[#allocation3 + $0xc0] sm:$0xff]  ;;  %v7986_v22 = vadd.f32 %v12311_v20, %v7770_v5  ;;  %v7943_v18 = vpop.f32.mrb[79].mxu1  ;;  %v8632_v20 = vld [vmem:[#allocation3 + $0x50] sm:$0xff] }
 0x39b   : > { %v8572_v45 = vadd.f32 %v8517_v29, %v8266_v47  ;;  %8015 = vst.msk [vmem:[#allocation3 + $0xe0] sm:$0xff] %vm517_vm8, %v7983_v11  ;;  %v8269_v21 = vld [vmem:[#allocation3 + $0xd8] sm:$0xff]  ;;  %v7984_v15 = vadd.f32 %v7943_v18, %v7768_v30  ;;  %v8630_v47 = vld [vmem:[#allocation3 + $0x40] sm:$0xff] }
 0x39c   : > { %v12346_v19 = vpop.f32.mrb[76].mxu0  ;;  %8606 = vst.msk [vmem:[#allocation3 + $0xd0] sm:$0xff] %vm517_vm8, %v8574_v62  ;;  %v8575_v58 = vadd.f32 %v12343_v50, %v8269_v21  ;;  %8018 = vst.msk [vmem:[#allocation3 + $0xf8] sm:$0xff] %vm517_vm8, %v7986_v22  ;;  %v8267_v3 = vld [vmem:[#allocation3 + $0xc8] sm:$0xff]  ;;  %v8629_v29 = vld [vmem:[#allocation3 + $0x38] sm:$0xff] }
 0x39d   : > { %v8533_v10 = vpop.f32.mrb[77].mxu0  ;;  %8604 = vst.msk [vmem:[#allocation3 + $0xc0] sm:$0xff] %vm517_vm8, %v8572_v45  ;;  %v8573_v6 = vadd.f32 %v8520_v55, %v8267_v3  ;;  %8016 = vst.msk [vmem:[#allocation3 + $0xe8] sm:$0xff] %vm517_vm8, %v7984_v15  ;;  %v8631_v3 = vld [vmem:[#allocation3 + $0x48] sm:$0xff] }
 0x39e   : > { %v12347_v37 = vpop.f32.mrb[78].mxu0  ;;  %8607 = vst.msk [vmem:[#allocation3 + $0xd8] sm:$0xff] %vm517_vm8, %v8575_v58 }
 0x39f   : > { %v8536_v53 = vpop.f32.mrb[79].mxu0  ;;  %8605 = vst.msk [vmem:[#allocation3 + $0xc8] sm:$0xff] %vm517_vm8, %v8573_v6  ;;  %v12354_v51 = vpop.f32.mrb[80].mxu1 }
 0x3a0   : > { %v8840_v2 = vadd.f32 %v12354_v51, %v8624_v40  ;;  %v8711_v52 = vpop.f32.mrb[81].mxu1 }
 0x3a1   : > { %v8272_v60 = vld [vmem:[#allocation3 + $0xf0] sm:$0xff]  ;;  %v8838_v0 = vadd.f32 %v8711_v52, %v8622_v32  ;;  %v12355_v4 = vpop.f32.mrb[82].mxu1 }
 0x3a2   : > { %v8578_v43 = vadd.f32 %v12346_v19, %v8272_v60  ;;  %v8270_v27 = vld [vmem:[#allocation3 + $0xe0] sm:$0xff]  ;;  %8872 = vst.msk [vmem:[#allocation3 + $0x10] sm:$0xff] %vm517_vm8, %v8840_v2  ;;  %v8841_v34 = vadd.f32 %v12355_v4, %v8625_v26  ;;  %v8714_v38 = vpop.f32.mrb[83].mxu1  ;;  %v8636_v4 = vld [vmem:[#allocation3 + $0x70] sm:$0xff] }
 0x3a3   : > { %v8576_v41 = vadd.f32 %v8533_v10, %v8270_v27  ;;  %v8273_v35 = vld [vmem:[#allocation3 + $0xf8] sm:$0xff]  ;;  %8870 = vst.msk [vmem:[#allocation3] sm:$0xff] %vm517_vm8, %v8838_v0  ;;  %v8839_v56 = vadd.f32 %v8714_v38, %v8623_v31  ;;  %v8634_v27 = vld [vmem:[#allocation3 + $0x60] sm:$0xff] }
 0x3a4   : > { %v12390_v46 = vpop.f32.mrb[80].mxu0  ;;  %8610 = vst.msk [vmem:[#allocation3 + $0xf0] sm:$0xff] %vm517_vm8, %v8578_v43  ;;  %v8579_v39 = vadd.f32 %v12347_v37, %v8273_v35  ;;  %v8271_v44 = vld [vmem:[#allocation3 + $0xe8] sm:$0xff]  ;;  %8873 = vst.msk [vmem:[#allocation3 + $0x18] sm:$0xff] %vm517_vm8, %v8841_v34  ;;  %v8633_v10 = vld [vmem:[#allocation3 + $0x58] sm:$0xff] }
 0x3a5   : > { %v9001_v14 = vpop.f32.mrb[81].mxu0  ;;  %8608 = vst.msk [vmem:[#allocation3 + $0xe0] sm:$0xff] %vm517_vm8, %v8576_v41  ;;  %v8577_v61 = vadd.f32 %v8536_v53, %v8271_v44  ;;  %8871 = vst.msk [vmem:[#allocation3 + $0x8] sm:$0xff] %vm517_vm8, %v8839_v56  ;;  %v8635_v44 = vld [vmem:[#allocation3 + $0x68] sm:$0xff] }
 0x3a6   : > { %v12391_v63 = vpop.f32.mrb[82].mxu0  ;;  %8611 = vst.msk [vmem:[#allocation3 + $0xf8] sm:$0xff] %vm517_vm8, %v8579_v39 }
 0x3a7   : > { %v9004_v23 = vpop.f32.mrb[83].mxu0  ;;  %8609 = vst.msk [vmem:[#allocation3 + $0xe8] sm:$0xff] %vm517_vm8, %v8577_v61  ;;  %v12358_v28 = vpop.f32.mrb[84].mxu1 }
 0x3a8   : > { %v8844_v13 = vadd.f32 %v12358_v28, %v8628_v9  ;;  %v8727_v54 = vpop.f32.mrb[85].mxu1 }
 0x3a9   : > { %v8914_v36 = vld [vmem:[#allocation3 + $0x10] sm:$0xff]  ;;  %v8842_v8 = vadd.f32 %v8727_v54, %v8626_v16  ;;  %v12359_v24 = vpop.f32.mrb[86].mxu1 }
 0x3aa   : > { %v9130_v42 = vadd.f32 %v12390_v46, %v8914_v36  ;;  %8876 = vst.msk [vmem:[#allocation3 + $0x30] sm:$0xff] %vm517_vm8, %v8844_v13  ;;  %v8912_v50 = vld [vmem:[#allocation3] sm:$0xff]  ;;  %v8845_v25 = vadd.f32 %v12359_v24, %v8629_v29  ;;  %v8730_v55 = vpop.f32.mrb[87].mxu1  ;;  %v8640_v24 = vld [vmem:[#allocation3 + $0x90] sm:$0xff] }
 0x3ab   : > { %v9128_v12 = vadd.f32 %v9001_v14, %v8912_v50  ;;  %8874 = vst.msk [vmem:[#allocation3 + $0x20] sm:$0xff] %vm517_vm8, %v8842_v8  ;;  %v8915_v33 = vld [vmem:[#allocation3 + $0x18] sm:$0xff]  ;;  %v8843_v48 = vadd.f32 %v8730_v55, %v8627_v57  ;;  %v8638_v50 = vld [vmem:[#allocation3 + $0x80] sm:$0xff] }
 0x3ac   : > { %v12394_v59 = vpop.f32.mrb[84].mxu0  ;;  %9162 = vst.msk [vmem:[#allocation3 + $0x10] sm:$0xff] %vm517_vm8, %v9130_v42  ;;  %v9131_v49 = vadd.f32 %v12391_v63, %v8915_v33  ;;  %8877 = vst.msk [vmem:[#allocation3 + $0x38] sm:$0xff] %vm517_vm8, %v8845_v25  ;;  %v8913_v1 = vld [vmem:[#allocation3 + $0x8] sm:$0xff]  ;;  %v8637_v14 = vld [vmem:[#allocation3 + $0x78] sm:$0xff] }
 0x3ad   : > { %v9017_v17 = vpop.f32.mrb[85].mxu0  ;;  %9160 = vst.msk [vmem:[#allocation3] sm:$0xff] %vm517_vm8, %v9128_v12  ;;  %v9129_v5 = vadd.f32 %v9004_v23, %v8913_v1  ;;  %8875 = vst.msk [vmem:[#allocation3 + $0x28] sm:$0xff] %vm517_vm8, %v8843_v48  ;;  %v8639_v1 = vld [vmem:[#allocation3 + $0x88] sm:$0xff] }
 0x3ae   : > { %v12395_v7 = vpop.f32.mrb[86].mxu0  ;;  %9163 = vst.msk [vmem:[#allocation3 + $0x18] sm:$0xff] %vm517_vm8, %v9131_v49 }
 0x3af   : > { %v9020_v11 = vpop.f32.mrb[87].mxu0  ;;  %9161 = vst.msk [vmem:[#allocation3 + $0x8] sm:$0xff] %vm517_vm8, %v9129_v5  ;;  %v12362_v19 = vpop.f32.mrb[88].mxu1 }
 0x3b0   : > { %v8848_v62 = vadd.f32 %v12362_v19, %v8632_v20  ;;  %v8743_v22 = vpop.f32.mrb[89].mxu1 }
 0x3b1   : > { %v8918_v30 = vld [vmem:[#allocation3 + $0x30] sm:$0xff]  ;;  %v8846_v18 = vadd.f32 %v8743_v22, %v8630_v47  ;;  %v12363_v45 = vpop.f32.mrb[90].mxu1 }
 0x3b2   : > { %v9134_v15 = vadd.f32 %v12394_v59, %v8918_v30  ;;  %8880 = vst.msk [vmem:[#allocation3 + $0x50] sm:$0xff] %vm517_vm8, %v8848_v62  ;;  %v8916_v37 = vld [vmem:[#allocation3 + $0x20] sm:$0xff]  ;;  %v8849_v58 = vadd.f32 %v12363_v45, %v8633_v10  ;;  %v8746_v53 = vpop.f32.mrb[91].mxu1  ;;  %v8644_v45 = vld [vmem:[#allocation3 + $0xb0] sm:$0xff] }
 0x3b3   : > { %v9132_v40 = vadd.f32 %v9017_v17, %v8916_v37  ;;  %8878 = vst.msk [vmem:[#allocation3 + $0x40] sm:$0xff] %vm517_vm8, %v8846_v18  ;;  %v8919_v51 = vld [vmem:[#allocation3 + $0x38] sm:$0xff]  ;;  %v8847_v2 = vadd.f32 %v8746_v53, %v8631_v3  ;;  %v8642_v37 = vld [vmem:[#allocation3 + $0xa0] sm:$0xff] }
 0x3b4   : > { %v12398_v21 = vpop.f32.mrb[88].mxu0  ;;  %9166 = vst.msk [vmem:[#allocation3 + $0x30] sm:$0xff] %vm517_vm8, %v9134_v15  ;;  %v9135_v52 = vadd.f32 %v12395_v7, %v8919_v51  ;;  %8881 = vst.msk [vmem:[#allocation3 + $0x58] sm:$0xff] %vm517_vm8, %v8849_v58  ;;  %v8917_v60 = vld [vmem:[#allocation3 + $0x28] sm:$0xff]  ;;  %v8641_v17 = vld [vmem:[#allocation3 + $0x98] sm:$0xff] }
 0x3b5   : > { %v9033_v6 = vpop.f32.mrb[89].mxu0  ;;  %9164 = vst.msk [vmem:[#allocation3 + $0x20] sm:$0xff] %vm517_vm8, %v9132_v40  ;;  %v9133_v26 = vadd.f32 %v9020_v11, %v8917_v60  ;;  %8879 = vst.msk [vmem:[#allocation3 + $0x48] sm:$0xff] %vm517_vm8, %v8847_v2  ;;  %v8643_v60 = vld [vmem:[#allocation3 + $0xa8] sm:$0xff] }
 0x3b6   : > { %v12399_v32 = vpop.f32.mrb[90].mxu0  ;;  %9167 = vst.msk [vmem:[#allocation3 + $0x38] sm:$0xff] %vm517_vm8, %v9135_v52 }
 0x3b7   : > { %v9036_v0 = vpop.f32.mrb[91].mxu0  ;;  %9165 = vst.msk [vmem:[#allocation3 + $0x28] sm:$0xff] %vm517_vm8, %v9133_v26  ;;  %v12366_v46 = vpop.f32.mrb[92].mxu1 }
 0x3b8   : > { %v8852_v43 = vadd.f32 %v12366_v46, %v8636_v4  ;;  %v8759_v34 = vpop.f32.mrb[93].mxu1 }
 0x3b9   : > { %v8922_v31 = vld [vmem:[#allocation3 + $0x50] sm:$0xff]  ;;  %v8850_v38 = vadd.f32 %v8759_v34, %v8634_v27  ;;  %v12367_v41 = vpop.f32.mrb[94].mxu1 }
 0x3ba   : > { %v9138_v56 = vadd.f32 %v12398_v21, %v8922_v31  ;;  %8884 = vst.msk [vmem:[#allocation3 + $0x70] sm:$0xff] %vm517_vm8, %v8852_v43  ;;  %v8920_v63 = vld [vmem:[#allocation3 + $0x40] sm:$0xff]  ;;  %v8853_v39 = vadd.f32 %v12367_v41, %v8637_v14  ;;  %v8762_v23 = vpop.f32.mrb[95].mxu1  ;;  %v8648_v41 = vld [vmem:[#allocation3 + $0xd0] sm:$0xff] }
 0x3bb   : > { %v9136_v9 = vadd.f32 %v9033_v6, %v8920_v63  ;;  %8882 = vst.msk [vmem:[#allocation3 + $0x60] sm:$0xff] %vm517_vm8, %v8850_v38  ;;  %v8923_v28 = vld [vmem:[#allocation3 + $0x58] sm:$0xff]  ;;  %v8851_v13 = vadd.f32 %v8762_v23, %v8635_v44  ;;  %v8646_v63 = vld [vmem:[#allocation3 + $0xc0] sm:$0xff] }
 0x3bc   : > { %v12402_v35 = vpop.f32.mrb[92].mxu0  ;;  %9170 = vst.msk [vmem:[#allocation3 + $0x50] sm:$0xff] %vm517_vm8, %v9138_v56  ;;  %v9139_v54 = vadd.f32 %v12399_v32, %v8923_v28  ;;  %8885 = vst.msk [vmem:[#allocation3 + $0x78] sm:$0xff] %vm517_vm8, %v8853_v39  ;;  %v8921_v36 = vld [vmem:[#allocation3 + $0x48] sm:$0xff]  ;;  %v8645_v6 = vld [vmem:[#allocation3 + $0xb8] sm:$0xff] }
 0x3bd   : > { %v9049_v61 = vpop.f32.mrb[93].mxu0  ;;  %9168 = vst.msk [vmem:[#allocation3 + $0x40] sm:$0xff] %vm517_vm8, %v9136_v9  ;;  %v9137_v29 = vadd.f32 %v9036_v0, %v8921_v36  ;;  %8883 = vst.msk [vmem:[#allocation3 + $0x68] sm:$0xff] %vm517_vm8, %v8851_v13  ;;  %v8647_v36 = vld [vmem:[#allocation3 + $0xc8] sm:$0xff] }
 0x3be   : > { %v12403_v16 = vpop.f32.mrb[94].mxu0  ;;  %9171 = vst.msk [vmem:[#allocation3 + $0x58] sm:$0xff] %vm517_vm8, %v9139_v54 }
 0x3bf   : > { %v9052_v8 = vpop.f32.mrb[95].mxu0  ;;  %9169 = vst.msk [vmem:[#allocation3 + $0x48] sm:$0xff] %vm517_vm8, %v9137_v29  ;;  %v12370_v59 = vpop.f32.mrb[96].mxu1 }
 0x3c0   : > { %v8856_v42 = vadd.f32 %v12370_v59, %v8640_v24  ;;  %v8775_v25 = vpop.f32.mrb[97].mxu1 }
 0x3c1   : > { %v8926_v57 = vld [vmem:[#allocation3 + $0x70] sm:$0xff]  ;;  %v8854_v55 = vadd.f32 %v8775_v25, %v8638_v50  ;;  %v12371_v12 = vpop.f32.mrb[98].mxu1 }
 0x3c2   : > { %v9142_v48 = vadd.f32 %v12402_v35, %v8926_v57  ;;  %8888 = vst.msk [vmem:[#allocation3 + $0x90] sm:$0xff] %vm517_vm8, %v8856_v42  ;;  %v8924_v7 = vld [vmem:[#allocation3 + $0x60] sm:$0xff]  ;;  %v8857_v49 = vadd.f32 %v12371_v12, %v8641_v17  ;;  %v8778_v11 = vpop.f32.mrb[99].mxu1  ;;  %v8652_v12 = vld [vmem:[#allocation3 + $0xf0] sm:$0xff] }
 0x3c3   : > { %v9140_v20 = vadd.f32 %v9049_v61, %v8924_v7  ;;  %8886 = vst.msk [vmem:[#allocation3 + $0x80] sm:$0xff] %vm517_vm8, %v8854_v55  ;;  %v8927_v19 = vld [vmem:[#allocation3 + $0x78] sm:$0xff]  ;;  %v8855_v62 = vadd.f32 %v8778_v11, %v8639_v1  ;;  %v8650_v7 = vld [vmem:[#allocation3 + $0xe0] sm:$0xff] }
 0x3c4   : > { %v12406_v33 = vpop.f32.mrb[96].mxu0  ;;  %9174 = vst.msk [vmem:[#allocation3 + $0x70] sm:$0xff] %vm517_vm8, %v9142_v48  ;;  %v9143_v22 = vadd.f32 %v12403_v16, %v8927_v19  ;;  %8889 = vst.msk [vmem:[#allocation3 + $0x98] sm:$0xff] %vm517_vm8, %v8857_v49  ;;  %v8925_v30 = vld [vmem:[#allocation3 + $0x68] sm:$0xff]  ;;  %v8649_v61 = vld [vmem:[#allocation3 + $0xd8] sm:$0xff] }
 0x3c5   : > { %v9065_v5 = vpop.f32.mrb[97].mxu0  ;;  %9172 = vst.msk [vmem:[#allocation3 + $0x60] sm:$0xff] %vm517_vm8, %v9140_v20  ;;  %v9141_v10 = vadd.f32 %v9052_v8, %v8925_v30  ;;  %8887 = vst.msk [vmem:[#allocation3 + $0x88] sm:$0xff] %vm517_vm8, %v8855_v62  ;;  %v8651_v30 = vld [vmem:[#allocation3 + $0xe8] sm:$0xff] }
 0x3c6   : > { %v12407_v47 = vpop.f32.mrb[98].mxu0  ;;  %9175 = vst.msk [vmem:[#allocation3 + $0x78] sm:$0xff] %vm517_vm8, %v9143_v22 }
 0x3c7   : > { %v9068_v18 = vpop.f32.mrb[99].mxu0  ;;  %9173 = vst.msk [vmem:[#allocation3 + $0x68] sm:$0xff] %vm517_vm8, %v9141_v10  ;;  %v12374_v21 = vpop.f32.mrb[100].mxu1 }
 0x3c8   : > { %v8860_v15 = vadd.f32 %v12374_v21, %v8644_v45  ;;  %v8791_v58 = vpop.f32.mrb[101].mxu1 }
 0x3c9   : > { %v8930_v3 = vld [vmem:[#allocation3 + $0x90] sm:$0xff]  ;;  %v8858_v53 = vadd.f32 %v8791_v58, %v8642_v37  ;;  %v12375_v40 = vpop.f32.mrb[102].mxu1 }
 0x3ca   : > { %v9146_v2 = vadd.f32 %v12406_v33, %v8930_v3  ;;  %8892 = vst.msk [vmem:[#allocation3 + $0xb0] sm:$0xff] %vm517_vm8, %v8860_v15  ;;  %v8928_v32 = vld [vmem:[#allocation3 + $0x80] sm:$0xff]  ;;  %v8861_v52 = vadd.f32 %v12375_v40, %v8645_v6  ;;  %v8794_v0 = vpop.f32.mrb[103].mxu1  ;;  %v9204_v40 = vld [vmem:[#allocation3 + $0x10] sm:$0xff] }
 0x3cb   : > { %v9144_v4 = vadd.f32 %v9065_v5, %v8928_v32  ;;  %8890 = vst.msk [vmem:[#allocation3 + $0xa0] sm:$0xff] %vm517_vm8, %v8858_v53  ;;  %v8931_v46 = vld [vmem:[#allocation3 + $0x98] sm:$0xff]  ;;  %v8859_v43 = vadd.f32 %v8794_v0, %v8643_v60  ;;  %v9202_v32 = vld [vmem:[#allocation3] sm:$0xff] }
 0x3cc   : > { %v12410_v51 = vpop.f32.mrb[100].mxu0  ;;  %9178 = vst.msk [vmem:[#allocation3 + $0x90] sm:$0xff] %vm517_vm8, %v9146_v2  ;;  %v9147_v34 = vadd.f32 %v12407_v47, %v8931_v46  ;;  %8893 = vst.msk [vmem:[#allocation3 + $0xb8] sm:$0xff] %vm517_vm8, %v8861_v52  ;;  %v8929_v31 = vld [vmem:[#allocation3 + $0x88] sm:$0xff]  ;;  %v8653_v5 = vld [vmem:[#allocation3 + $0xf8] sm:$0xff] }
 0x3cd   : > { %v9081_v26 = vpop.f32.mrb[101].mxu0  ;;  %9176 = vst.msk [vmem:[#allocation3 + $0x80] sm:$0xff] %vm517_vm8, %v9144_v4  ;;  %v9145_v14 = vadd.f32 %v9068_v18, %v8929_v31  ;;  %8891 = vst.msk [vmem:[#allocation3 + $0xa8] sm:$0xff] %vm517_vm8, %v8859_v43  ;;  %v9203_v31 = vld [vmem:[#allocation3 + $0x8] sm:$0xff] }
 0x3ce   : > { %v12411_v27 = vpop.f32.mrb[102].mxu0  ;;  %9179 = vst.msk [vmem:[#allocation3 + $0x98] sm:$0xff] %vm517_vm8, %v9147_v34 }
 0x3cf   : > { %v9084_v38 = vpop.f32.mrb[103].mxu0  ;;  %9177 = vst.msk [vmem:[#allocation3 + $0x88] sm:$0xff] %vm517_vm8, %v9145_v14  ;;  %v12378_v35 = vpop.f32.mrb[104].mxu1 }
 0x3d0   : > { %v8864_v56 = vadd.f32 %v12378_v35, %v8648_v41  ;;  %v8807_v39 = vpop.f32.mrb[105].mxu1 }
 0x3d1   : > { %v8934_v44 = vld [vmem:[#allocation3 + $0xb0] sm:$0xff]  ;;  %v8862_v23 = vadd.f32 %v8807_v39, %v8646_v63  ;;  %v12379_v9 = vpop.f32.mrb[106].mxu1 }
 0x3d2   : > { %v9150_v13 = vadd.f32 %v12410_v51, %v8934_v44  ;;  %8896 = vst.msk [vmem:[#allocation3 + $0xd0] sm:$0xff] %vm517_vm8, %v8864_v56  ;;  %v8932_v16 = vld [vmem:[#allocation3 + $0xa0] sm:$0xff]  ;;  %v8865_v54 = vadd.f32 %v12379_v9, %v8649_v61  ;;  %v8810_v8 = vpop.f32.mrb[107].mxu1  ;;  %v9208_v9 = vld [vmem:[#allocation3 + $0x30] sm:$0xff] }
 0x3d3   : > { %v9148_v24 = vadd.f32 %v9081_v26, %v8932_v16  ;;  %8894 = vst.msk [vmem:[#allocation3 + $0xc0] sm:$0xff] %vm517_vm8, %v8862_v23  ;;  %v8935_v59 = vld [vmem:[#allocation3 + $0xb8] sm:$0xff]  ;;  %v8863_v42 = vadd.f32 %v8810_v8, %v8647_v36  ;;  %v9206_v16 = vld [vmem:[#allocation3 + $0x20] sm:$0xff] }
 0x3d4   : > { %v12414_v28 = vpop.f32.mrb[104].mxu0  ;;  %9182 = vst.msk [vmem:[#allocation3 + $0xb0] sm:$0xff] %vm517_vm8, %v9150_v13  ;;  %v9151_v25 = vadd.f32 %v12411_v27, %v8935_v59  ;;  %8897 = vst.msk [vmem:[#allocation3 + $0xd8] sm:$0xff] %vm517_vm8, %v8865_v54  ;;  %v8933_v57 = vld [vmem:[#allocation3 + $0xa8] sm:$0xff]  ;;  %v9205_v26 = vld [vmem:[#allocation3 + $0x18] sm:$0xff] }
 0x3d5   : > { %v9097_v29 = vpop.f32.mrb[105].mxu0  ;;  %9180 = vst.msk [vmem:[#allocation3 + $0xa0] sm:$0xff] %vm517_vm8, %v9148_v24  ;;  %v9149_v17 = vadd.f32 %v9084_v38, %v8933_v57  ;;  %8895 = vst.msk [vmem:[#allocation3 + $0xc8] sm:$0xff] %vm517_vm8, %v8863_v42  ;;  %v9207_v57 = vld [vmem:[#allocation3 + $0x28] sm:$0xff] }
 0x3d6   : > { %v12415_v50 = vpop.f32.mrb[106].mxu0  ;;  %9183 = vst.msk [vmem:[#allocation3 + $0xb8] sm:$0xff] %vm517_vm8, %v9151_v25 }
 0x3d7   : > { %v9100_v55 = vpop.f32.mrb[107].mxu0  ;;  %9181 = vst.msk [vmem:[#allocation3 + $0xa8] sm:$0xff] %vm517_vm8, %v9149_v17  ;;  %v12382_v33 = vpop.f32.mrb[108].mxu1 }
 0x3d8   : > { %v8868_v48 = vadd.f32 %v12382_v33, %v8652_v12  ;;  %v8823_v49 = vpop.f32.mrb[109].mxu1 }
 0x3d9   : > { %v8938_v1 = vld [vmem:[#allocation3 + $0xd0] sm:$0xff]  ;;  %v8866_v11 = vadd.f32 %v8823_v49, %v8650_v7  ;;  %v12383_v20 = vpop.f32.mrb[110].mxu1 }
 0x3da   : > { %v9154_v62 = vadd.f32 %v12414_v28, %v8938_v1  ;;  %8900 = vst.msk [vmem:[#allocation3 + $0xf0] sm:$0xff] %vm517_vm8, %v8868_v48  ;;  %v8936_v47 = vld [vmem:[#allocation3 + $0xc0] sm:$0xff]  ;;  %v8869_v22 = vadd.f32 %v12383_v20, %v8653_v5  ;;  %v8826_v18 = vpop.f32.mrb[111].mxu1  ;;  %v9212_v20 = vld [vmem:[#allocation3 + $0x50] sm:$0xff] }
 0x3db   : > { %v9152_v45 = vadd.f32 %v9097_v29, %v8936_v47  ;;  %8898 = vst.msk [vmem:[#allocation3 + $0xe0] sm:$0xff] %vm517_vm8, %v8866_v11  ;;  %v8939_v21 = vld [vmem:[#allocation3 + $0xd8] sm:$0xff]  ;;  %v8867_v15 = vadd.f32 %v8826_v18, %v8651_v30  ;;  %v9210_v47 = vld [vmem:[#allocation3 + $0x40] sm:$0xff]  ;;  %v16827_v30 = vld [vmem:[%s17220_s2] ss:$0 sm:$0xff] }
 0x3dc   : > { %v12418_v19 = vpop.f32.mrb[108].mxu0  ;;  %9186 = vst.msk [vmem:[#allocation3 + $0xd0] sm:$0xff] %vm517_vm8, %v9154_v62  ;;  %v9155_v58 = vadd.f32 %v12415_v50, %v8939_v21  ;;  %8901 = vst.msk [vmem:[#allocation3 + $0xf8] sm:$0xff] %vm517_vm8, %v8869_v22  ;;  %v8937_v3 = vld [vmem:[#allocation3 + $0xc8] sm:$0xff]  ;;  %v9209_v29 = vld [vmem:[#allocation3 + $0x38] sm:$0xff] }
 0x3dd   : > { %v9113_v10 = vpop.f32.mrb[109].mxu0  ;;  %9184 = vst.msk [vmem:[#allocation3 + $0xc0] sm:$0xff] %vm517_vm8, %v9152_v45  ;;  %v9153_v6 = vadd.f32 %v9100_v55, %v8937_v3  ;;  %8899 = vst.msk [vmem:[#allocation3 + $0xe8] sm:$0xff] %vm517_vm8, %v8867_v15  ;;  %v9213_v45 = vld [vmem:[#allocation3 + $0x58] sm:$0xff] }
 0x3de   : > { %v12419_v37 = vpop.f32.mrb[110].mxu0  ;;  %9187 = vst.msk [vmem:[#allocation3 + $0xd8] sm:$0xff] %vm517_vm8, %v9155_v58 }
 0x3df   : > { %v9116_v53 = vpop.f32.mrb[111].mxu0  ;;  %9185 = vst.msk [vmem:[#allocation3 + $0xc8] sm:$0xff] %vm517_vm8, %v9153_v6  ;;  %v12426_v51 = vpop.f32.mrb[112].mxu1 }
 0x3e0   : > { %v9420_v2 = vadd.f32 %v12426_v51, %v9204_v40  ;;  %v9291_v52 = vpop.f32.mrb[113].mxu1 }
 0x3e1   : > { %v8942_v60 = vld [vmem:[#allocation3 + $0xf0] sm:$0xff]  ;;  %v9418_v0 = vadd.f32 %v9291_v52, %v9202_v32  ;;  %v12427_v4 = vpop.f32.mrb[114].mxu1 }
 0x3e2   : > { %v9158_v43 = vadd.f32 %v12418_v19, %v8942_v60  ;;  %v8940_v27 = vld [vmem:[#allocation3 + $0xe0] sm:$0xff]  ;;  %9452 = vst.msk [vmem:[#allocation3 + $0x10] sm:$0xff] %vm517_vm8, %v9420_v2  ;;  %v9421_v34 = vadd.f32 %v12427_v4, %v9205_v26  ;;  %v9294_v38 = vpop.f32.mrb[115].mxu1 }
 0x3e3   : > { %v9156_v41 = vadd.f32 %v9113_v10, %v8940_v27  ;;  %v8943_v35 = vld [vmem:[#allocation3 + $0xf8] sm:$0xff]  ;;  %9450 = vst.msk [vmem:[#allocation3] sm:$0xff] %vm517_vm8, %v9418_v0  ;;  %v9419_v56 = vadd.f32 %v9294_v38, %v9203_v31 }
 0x3e4   : > { %v12462_v46 = vpop.f32.mrb[112].mxu0  ;;  %9190 = vst.msk [vmem:[#allocation3 + $0xf0] sm:$0xff] %vm517_vm8, %v9158_v43  ;;  %v9159_v39 = vadd.f32 %v12419_v37, %v8943_v35  ;;  %v8941_v44 = vld [vmem:[#allocation3 + $0xe8] sm:$0xff]  ;;  %9453 = vst.msk [vmem:[#allocation3 + $0x18] sm:$0xff] %vm517_vm8, %v9421_v34 }
 0x3e5   : > { %v9581_v14 = vpop.f32.mrb[113].mxu0  ;;  %9188 = vst.msk [vmem:[#allocation3 + $0xe0] sm:$0xff] %vm517_vm8, %v9156_v41  ;;  %v9157_v61 = vadd.f32 %v9116_v53, %v8941_v44  ;;  %9451 = vst.msk [vmem:[#allocation3 + $0x8] sm:$0xff] %vm517_vm8, %v9419_v56  ;;  %v9211_v53 = vld [vmem:[#allocation3 + $0x48] sm:$0xff] }
 0x3e6   : > { %v12463_v63 = vpop.f32.mrb[114].mxu0  ;;  %9191 = vst.msk [vmem:[#allocation3 + $0xf8] sm:$0xff] %vm517_vm8, %v9159_v39 }
 0x3e7   : > { %v9584_v23 = vpop.f32.mrb[115].mxu0  ;;  %9189 = vst.msk [vmem:[#allocation3 + $0xe8] sm:$0xff] %vm517_vm8, %v9157_v61  ;;  %v12430_v28 = vpop.f32.mrb[116].mxu1  ;;  %v9214_v61 = vld [vmem:[#allocation3 + $0x60] sm:$0xff] }
 0x3e8   : > { %v9424_v13 = vadd.f32 %v12430_v28, %v9208_v9  ;;  %v9307_v54 = vpop.f32.mrb[117].mxu1 }
 0x3e9   : > { %v9494_v36 = vld [vmem:[#allocation3 + $0x10] sm:$0xff]  ;;  %v9422_v8 = vadd.f32 %v9307_v54, %v9206_v16  ;;  %v12431_v24 = vpop.f32.mrb[118].mxu1  ;;  %v9217_v54 = vld [vmem:[#allocation3 + $0x78] sm:$0xff] }
 0x3ea   : > { %v9710_v42 = vadd.f32 %v12462_v46, %v9494_v36  ;;  %9456 = vst.msk [vmem:[#allocation3 + $0x30] sm:$0xff] %vm517_vm8, %v9424_v13  ;;  %v9492_v50 = vld [vmem:[#allocation3] sm:$0xff]  ;;  %v9425_v25 = vadd.f32 %v12431_v24, %v9209_v29  ;;  %v9310_v55 = vpop.f32.mrb[119].mxu1 }
 0x3eb   : > { %v9708_v12 = vadd.f32 %v9581_v14, %v9492_v50  ;;  %9454 = vst.msk [vmem:[#allocation3 + $0x20] sm:$0xff] %vm517_vm8, %v9422_v8  ;;  %v9495_v33 = vld [vmem:[#allocation3 + $0x18] sm:$0xff]  ;;  %v9423_v48 = vadd.f32 %v9310_v55, %v9207_v57 }
 0x3ec   : > { %v12466_v59 = vpop.f32.mrb[116].mxu0  ;;  %9742 = vst.msk [vmem:[#allocation3 + $0x10] sm:$0xff] %vm517_vm8, %v9710_v42  ;;  %v9711_v49 = vadd.f32 %v12463_v63, %v9495_v33  ;;  %9457 = vst.msk [vmem:[#allocation3 + $0x38] sm:$0xff] %vm517_vm8, %v9425_v25  ;;  %v9493_v1 = vld [vmem:[#allocation3 + $0x8] sm:$0xff]  ;;  %v9216_v63 = vld [vmem:[#allocation3 + $0x70] sm:$0xff] }
 0x3ed   : > { %v9597_v17 = vpop.f32.mrb[117].mxu0  ;;  %9740 = vst.msk [vmem:[#allocation3] sm:$0xff] %vm517_vm8, %v9708_v12  ;;  %v9709_v5 = vadd.f32 %v9584_v23, %v9493_v1  ;;  %9455 = vst.msk [vmem:[#allocation3 + $0x28] sm:$0xff] %vm517_vm8, %v9423_v48  ;;  %v9215_v42 = vld [vmem:[#allocation3 + $0x68] sm:$0xff] }
 0x3ee   : > { %v12467_v7 = vpop.f32.mrb[118].mxu0  ;;  %9743 = vst.msk [vmem:[#allocation3 + $0x18] sm:$0xff] %vm517_vm8, %v9711_v49 }
 0x3ef   : > { %v9600_v11 = vpop.f32.mrb[119].mxu0  ;;  %9741 = vst.msk [vmem:[#allocation3 + $0x8] sm:$0xff] %vm517_vm8, %v9709_v5  ;;  %v12434_v19 = vpop.f32.mrb[120].mxu1 }
 0x3f0   : > { %v9428_v62 = vadd.f32 %v12434_v19, %v9212_v20  ;;  %v9323_v22 = vpop.f32.mrb[121].mxu1 }
 0x3f1   : > { %v9498_v18 = vld [vmem:[#allocation3 + $0x30] sm:$0xff]  ;;  %v9426_v10 = vadd.f32 %v9323_v22, %v9210_v47  ;;  %v12435_v21 = vpop.f32.mrb[122].mxu1 }
 0x3f2   : > { %v9714_v37 = vadd.f32 %v12466_v59, %v9498_v18  ;;  %9460 = vst.msk [vmem:[#allocation3 + $0x50] sm:$0xff] %vm517_vm8, %v9428_v62  ;;  %v9496_v58 = vld [vmem:[#allocation3 + $0x20] sm:$0xff]  ;;  %v9429_v3 = vadd.f32 %v12435_v21, %v9213_v45  ;;  %v9326_v6 = vpop.f32.mrb[123].mxu1  ;;  %v9220_v45 = vld [vmem:[#allocation3 + $0x90] sm:$0xff] }
 0x3f3   : > { %v9774_v51 = vld [vmem:[#allocation3 + $0x10] sm:$0xff]  ;;  %v9712_v2 = vadd.f32 %v9597_v17, %v9496_v58  ;;  %9458 = vst.msk [vmem:[#allocation3 + $0x40] sm:$0xff] %vm517_vm8, %v9426_v10  ;;  %v9499_v32 = vld [vmem:[#allocation3 + $0x38] sm:$0xff]  ;;  %v9427_v52 = vadd.f32 %v9326_v6, %v9211_v53  ;;  %v9218_v58 = vld [vmem:[#allocation3 + $0x80] sm:$0xff] }
 0x3f4   : > { %v12470_v15 = vpop.f32.mrb[120].mxu0  ;;  %v16832_v0 = vadd.f32 %v16827_v30, %v9774_v51  ;;  %v9772_v26 = vld [vmem:[#allocation3] sm:$0xff]  ;;  %9746 = vst.msk [vmem:[#allocation3 + $0x30] sm:$0xff] %vm517_vm8, %v9714_v37  ;;  %v9715_v4 = vadd.f32 %v12467_v7, %v9499_v32  ;;  %9461 = vst.msk [vmem:[#allocation3 + $0x58] sm:$0xff] %vm517_vm8, %v9429_v3  ;;  %v9497_v46 = vld [vmem:[#allocation3 + $0x28] sm:$0xff] }
 0x3f5   : > { %v9613_v40 = vpop.f32.mrb[121].mxu0  ;;  %v16837_v27 = vadd.f32 %v16827_v30, %v9772_v26  ;;  %v9775_v34 = vld [vmem:[#allocation3 + $0x18] sm:$0xff]  ;;  %9744 = vst.msk [vmem:[#allocation3 + $0x20] sm:$0xff] %vm517_vm8, %v9712_v2  ;;  %v9713_v31 = vadd.f32 %v9600_v11, %v9497_v46  ;;  %9459 = vst.msk [vmem:[#allocation3 + $0x48] sm:$0xff] %vm517_vm8, %v9427_v52  ;;  %v9219_v46 = vld [vmem:[#allocation3 + $0x88] sm:$0xff] }
 0x3f6   : > { %v12471_v60 = vpop.f32.mrb[122].mxu0  ;;  %v11041_v38 = vmul.f32 -1.442695, %v16832_v0  ;;  %v16843_v14 = vadd.f32 %v16827_v30, %v9775_v34  ;;  %v9773_v41 = vld [vmem:[#allocation3 + $0x8] sm:$0xff]  ;;  %9747 = vst.msk [vmem:[#allocation3 + $0x38] sm:$0xff] %vm517_vm8, %v9715_v4  ;;  %v9221_v51 = vld [vmem:[#allocation3 + $0x98] sm:$0xff] }
 0x3f7   : > { %v9616_v43 = vpop.f32.mrb[123].mxu0  ;;  %v11039_v35 = vmul.f32 -1.442695, %v16837_v27  ;;  %v16848_v56 = vadd.f32 %v16827_v30, %v9773_v41  ;;  %9745 = vst.msk [vmem:[#allocation3 + $0x28] sm:$0xff] %vm517_vm8, %v9713_v31  ;;  %v12438_v39 = vpop.f32.mrb[124].mxu1 }
 0x3f8   : > { %12625 = vpow2.f32 %v11041_v38  ;;  %v11042_v44 = vmul.f32 -1.442695, %v16843_v14  ;;  %v9432_v23 = vadd.f32 %v12438_v39, %v9216_v63  ;;  %v9339_v9 = vpop.f32.mrb[125].mxu1 }
 0x3f9   : > { %12627 = vpow2.f32 %v11039_v35  ;;  %v11040_v28 = vmul.f32 -1.442695, %v16848_v56  ;;  %v9502_v13 = vld [vmem:[#allocation3 + $0x50] sm:$0xff]  ;;  %v9430_v16 = vadd.f32 %v9339_v9, %v9214_v61  ;;  %v12439_v36 = vpop.f32.mrb[126].mxu1 }
 0x3fa   : > { %12629 = vpow2.f32 %v11042_v44  ;;  %v9718_v29 = vadd.f32 %v12470_v15, %v9502_v13  ;;  %9464 = vst.msk [vmem:[#allocation3 + $0x70] sm:$0xff] %vm517_vm8, %v9432_v23  ;;  %v9500_v24 = vld [vmem:[#allocation3 + $0x40] sm:$0xff]  ;;  %v9433_v59 = vadd.f32 %v12439_v36, %v9217_v54  ;;  %v9342_v50 = vpop.f32.mrb[127].mxu1 }
 0x3fb   : > { %12631 = vpow2.f32 %v11040_v28  ;;  %v9778_v57 = vld [vmem:[#allocation3 + $0x30] sm:$0xff]  ;;  %v9716_v55 = vadd.f32 %v9613_v40, %v9500_v24  ;;  %9462 = vst.msk [vmem:[#allocation3 + $0x60] sm:$0xff] %vm517_vm8, %v9430_v16  ;;  %v9503_v17 = vld [vmem:[#allocation3 + $0x58] sm:$0xff]  ;;  %v9431_v12 = vadd.f32 %v9342_v50, %v9215_v42 }
 0x3fc   : > { %v12474_v8 = vpop.f32.mrb[124].mxu0  ;;  %v16856_v48 = vadd.f32 %v16827_v30, %v9778_v57  ;;  %v9776_v7 = vld [vmem:[#allocation3 + $0x20] sm:$0xff]  ;;  %9750 = vst.msk [vmem:[#allocation3 + $0x50] sm:$0xff] %vm517_vm8, %v9718_v29  ;;  %v9719_v49 = vadd.f32 %v12471_v60, %v9503_v17  ;;  %9465 = vst.msk [vmem:[#allocation3 + $0x78] sm:$0xff] %vm517_vm8, %v9433_v59  ;;  %v9501_v1 = vld [vmem:[#allocation3 + $0x48] sm:$0xff] }
 0x3fd   : > { %v9629_v25 = vpop.f32.mrb[125].mxu0  ;;  %v16861_v5 = vadd.f32 %v16827_v30, %v9776_v7  ;;  %v9779_v20 = vld [vmem:[#allocation3 + $0x38] sm:$0xff]  ;;  %9748 = vst.msk [vmem:[#allocation3 + $0x40] sm:$0xff] %vm517_vm8, %v9716_v55  ;;  %v9717_v19 = vadd.f32 %v9616_v43, %v9501_v1  ;;  %9463 = vst.msk [vmem:[#allocation3 + $0x68] sm:$0xff] %vm517_vm8, %v9431_v12  ;;  %v9224_v12 = vld [vmem:[#allocation3 + $0xb0] sm:$0xff] }
 0x3fe   : > { %v12475_v33 = vpop.f32.mrb[126].mxu0  ;;  %v11045_v62 = vmul.f32 -1.442695, %v16856_v48  ;;  %v16867_v47 = vadd.f32 %v16827_v30, %v9779_v20  ;;  %v9777_v22 = vld [vmem:[#allocation3 + $0x28] sm:$0xff]  ;;  %9751 = vst.msk [vmem:[#allocation3 + $0x58] sm:$0xff] %vm517_vm8, %v9719_v49  ;;  %v9222_v1 = vld [vmem:[#allocation3 + $0xa0] sm:$0xff] }
 0x3ff   : > { %v9632_v11 = vpop.f32.mrb[127].mxu0  ;;  %v11043_v18 = vmul.f32 -1.442695, %v16861_v5  ;;  %v16872_v10 = vadd.f32 %v16827_v30, %v9777_v22  ;;  %9749 = vst.msk [vmem:[#allocation3 + $0x48] sm:$0xff] %vm517_vm8, %v9717_v19  ;;  %v12442_v21 = vpop.f32.mrb[128].mxu1  ;;  %v9225_v22 = vld [vmem:[#allocation3 + $0xb8] sm:$0xff] }
 0x400   : > { %12633 = vpow2.f32 %v11045_v62  ;;  %v11046_v15 = vmul.f32 -1.442695, %v16867_v47  ;;  %v9436_v37 = vadd.f32 %v12442_v21, %v9220_v45  ;;  %v9355_v3 = vpop.f32.mrb[129].mxu1 }
 0x401   : > { %12635 = vpow2.f32 %v11043_v18  ;;  %v11044_v53 = vmul.f32 -1.442695, %v16872_v10  ;;  %v9506_v6 = vld [vmem:[#allocation3 + $0x70] sm:$0xff]  ;;  %v9434_v40 = vadd.f32 %v9355_v3, %v9218_v58  ;;  %v12443_v2 = vpop.f32.mrb[130].mxu1  ;;  %v9223_v3 = vld [vmem:[#allocation3 + $0xa8] sm:$0xff] }
 0x402   : > { %v12626_v52 = vpop.eup %12625  ;;  %12637 = vpow2.f32 %v11046_v15  ;;  %v9722_v60 = vadd.f32 %v12474_v8, %v9506_v6  ;;  %9468 = vst.msk [vmem:[#allocation3 + $0x90] sm:$0xff] %vm517_vm8, %v9436_v37  ;;  %v9504_v26 = vld [vmem:[#allocation3 + $0x60] sm:$0xff]  ;;  %v9437_v4 = vadd.f32 %v12443_v2, %v9221_v51  ;;  %v9358_v43 = vpop.f32.mrb[131].mxu1 }
 0x403   : > { %v12628_v31 = vpop.eup %12627  ;;  %v9941_v38 = vadd.f32 1.0, %v12626_v52  ;;  %12639 = vpow2.f32 %v11044_v53  ;;  %v9782_v41 = vld [vmem:[#allocation3 + $0x50] sm:$0xff]  ;;  %v9720_v35 = vadd.f32 %v9629_v25, %v9504_v26  ;;  %9466 = vst.msk [vmem:[#allocation3 + $0x80] sm:$0xff] %vm517_vm8, %v9434_v40  ;;  %v9507_v63 = vld [vmem:[#allocation3 + $0x78] sm:$0xff]  ;;  %v9435_v39 = vadd.f32 %v9358_v43, %v9219_v46 }
 0x404   : > { %v12478_v32 = vpop.f32.mrb[128].mxu0  ;;  %v12630_v23 = vpop.eup %12629  ;;  %v9939_v61 = vadd.f32 1.0, %v12628_v31  ;;  %v16884_v9 = vadd.f32 %v16827_v30, %v9782_v41  ;;  %v9780_v28 = vld [vmem:[#allocation3 + $0x40] sm:$0xff]  ;;  %9754 = vst.msk [vmem:[#allocation3 + $0x70] sm:$0xff] %vm517_vm8, %v9722_v60  ;;  %v9723_v13 = vadd.f32 %v12475_v33, %v9507_v63  ;;  %9469 = vst.msk [vmem:[#allocation3 + $0x98] sm:$0xff] %vm517_vm8, %v9437_v4  ;;  %v9505_v16 = vld [vmem:[#allocation3 + $0x68] sm:$0xff] }
 0x405   : > { %v16878_v34 = vpop.f32.mrb[129].mxu0  ;;  %v12632_v36 = vpop.eup %12631  ;;  %12641 = vrcp.f32 %v9941_v38  ;;  %v9942_v8 = vadd.f32 1.0, %v12630_v23  ;;  %v16891_v29 = vadd.f32 %v16827_v30, %v9780_v28  ;;  %v9783_v24 = vld [vmem:[#allocation3 + $0x58] sm:$0xff]  ;;  %9752 = vst.msk [vmem:[#allocation3 + $0x60] sm:$0xff] %vm517_vm8, %v9720_v35  ;;  %v9721_v59 = vadd.f32 %v9632_v11, %v9505_v16  ;;  %9467 = vst.msk [vmem:[#allocation3 + $0x88] sm:$0xff] %vm517_vm8, %v9435_v39 }
 0x406   : > { %v16881_v44 = vpop.f32.mrb[130].mxu0  ;;  %12643 = vrcp.f32 %v9939_v61  ;;  %v9940_v42 = vadd.f32 1.0, %v12632_v36  ;;  %v11049_v50 = vmul.f32 -1.442695, %v16884_v9  ;;  %v16897_v25 = vadd.f32 %v16827_v30, %v9783_v24  ;;  %v9781_v57 = vld [vmem:[#allocation3 + $0x48] sm:$0xff]  ;;  %9755 = vst.msk [vmem:[#allocation3 + $0x78] sm:$0xff] %vm517_vm8, %v9723_v13 }
 0x407   : > { %v16888_v54 = vpop.f32.mrb[131].mxu0  ;;  %12645 = vrcp.f32 %v9942_v8  ;;  %v11047_v55 = vmul.f32 -1.442695, %v16891_v29  ;;  %v16902_v17 = vadd.f32 %v16827_v30, %v9781_v57  ;;  %9753 = vst.msk [vmem:[#allocation3 + $0x68] sm:$0xff] %vm517_vm8, %v9721_v59  ;;  %v12446_v33 = vpop.f32.mrb[132].mxu1  ;;  %v9228_v24 = vld [vmem:[#allocation3 + $0xd0] sm:$0xff] }
 0x408   : > { %12647 = vrcp.f32 %v9940_v42  ;;  %v11050_v7 = vmul.f32 -1.442695, %v16897_v25  ;;  %v9440_v49 = vadd.f32 %v12446_v33, %v9224_v12  ;;  %v9371_v11 = vpop.f32.mrb[133].mxu1  ;;  %v9226_v12 = vld [vmem:[#allocation3 + $0xc0] sm:$0xff] }
 0x409   : > { %12649 = vpow2.f32 %v11049_v50  ;;  %v11048_v20 = vmul.f32 -1.442695, %v16902_v17  ;;  %v9510_v19 = vld [vmem:[#allocation3 + $0x90] sm:$0xff]  ;;  %v9438_v62 = vadd.f32 %v9371_v11, %v9222_v1  ;;  %v12447_v18 = vpop.f32.mrb[134].mxu1 }
 0x40a   : > { %v12634_v21 = vpop.eup %12633  ;;  %12651 = vpow2.f32 %v11047_v55  ;;  %v9726_v15 = vadd.f32 %v12478_v32, %v9510_v19  ;;  %9472 = vst.msk [vmem:[#allocation3 + $0xb0] sm:$0xff] %vm517_vm8, %v9440_v49  ;;  %v9508_v37 = vld [vmem:[#allocation3 + $0x80] sm:$0xff]  ;;  %v9441_v58 = vadd.f32 %v12447_v18, %v9225_v22  ;;  %v9374_v53 = vpop.f32.mrb[135].mxu1 }
 0x40b   : > { %v12636_v40 = vpop.eup %12635  ;;  %v9945_v51 = vadd.f32 1.0, %v12634_v21  ;;  %12653 = vpow2.f32 %v11050_v7  ;;  %v9786_v2 = vld [vmem:[#allocation3 + $0x70] sm:$0xff]  ;;  %v9724_v52 = vadd.f32 %v16878_v34, %v9508_v37  ;;  %9470 = vst.msk [vmem:[#allocation3 + $0xa0] sm:$0xff] %vm517_vm8, %v9438_v62  ;;  %v9511_v60 = vld [vmem:[#allocation3 + $0x98] sm:$0xff]  ;;  %v9439_v26 = vadd.f32 %v9374_v53, %v9223_v3 }
 0x40c   : > { %v16907_v45 = vpop.f32.mrb[132].mxu0  ;;  %v12638_v4 = vpop.eup %12637  ;;  %v9943_v46 = vadd.f32 1.0, %v12636_v40  ;;  %12655 = vpow2.f32 %v11048_v20  ;;  %v16918_v43 = vadd.f32 %v16827_v30, %v9786_v2  ;;  %v9784_v31 = vld [vmem:[#allocation3 + $0x60] sm:$0xff]  ;;  %9758 = vst.msk [vmem:[#allocation3 + $0x90] sm:$0xff] %vm517_vm8, %v9726_v15  ;;  %v9727_v38 = vadd.f32 %v16881_v44, %v9511_v60  ;;  %9473 = vst.msk [vmem:[#allocation3 + $0xb8] sm:$0xff] %vm517_vm8, %v9441_v58  ;;  %v9509_v34 = vld [vmem:[#allocation3 + $0x88] sm:$0xff] }
 0x40d   : > { %v16910_v6 = vpop.f32.mrb[133].mxu0  ;;  %v12640_v35 = vpop.eup %12639  ;;  %12657 = vrcp.f32 %v9945_v51  ;;  %v9946_v63 = vadd.f32 1.0, %v12638_v4  ;;  %v16926_v39 = vadd.f32 %v16827_v30, %v9784_v31  ;;  %v9787_v23 = vld [vmem:[#allocation3 + $0x78] sm:$0xff]  ;;  %9756 = vst.msk [vmem:[#allocation3 + $0x80] sm:$0xff] %vm517_vm8, %v9724_v52  ;;  %v9725_v61 = vadd.f32 %v16888_v54, %v9509_v34  ;;  %9471 = vst.msk [vmem:[#allocation3 + $0xa8] sm:$0xff] %vm517_vm8, %v9439_v26 }
 0x40e   : > { %v16915_v32 = vpop.f32.mrb[134].mxu0  ;;  %12659 = vrcp.f32 %v9943_v46  ;;  %v9944_v44 = vadd.f32 1.0, %v12640_v35  ;;  %v11053_v28 = vmul.f32 -1.442695, %v16918_v43  ;;  %v16937_v13 = vadd.f32 %v16827_v30, %v9787_v23  ;;  %v9785_v16 = vld [vmem:[#allocation3 + $0x68] sm:$0xff]  ;;  %9759 = vst.msk [vmem:[#allocation3 + $0x98] sm:$0xff] %vm517_vm8, %v9727_v38 }
 0x40f   : > { %v16923_v41 = vpop.f32.mrb[135].mxu0  ;;  %v12642_v36 = vpop.eup %12641  ;;  %12661 = vrcp.f32 %v9946_v63  ;;  %v11051_v54 = vmul.f32 -1.442695, %v16926_v39  ;;  %v16942_v8 = vadd.f32 %v16827_v30, %v9785_v16  ;;  %9757 = vst.msk [vmem:[#allocation3 + $0x88] sm:$0xff] %vm517_vm8, %v9725_v61 }
 0x410   : > { %v12450_v59 = vpop.f32.mrb[136].mxu1  ;;  %v12644_v42 = vpop.eup %12643  ;;  %v10037_v50 = vmul.f32 %v12642_v36, %v16832_v0  ;;  %12663 = vrcp.f32 %v9944_v44  ;;  %v11054_v57 = vmul.f32 -1.442695, %v16937_v13 }
 0x411   : > { %v9444_v55 = vadd.f32 %v12450_v59, %v9228_v24  ;;  %v9387_v33 = vpop.f32.mrb[137].mxu1  ;;  %v12646_v7 = vpop.eup %12645  ;;  %v10035_v49 = vmul.f32 %v12644_v42, %v16837_v27  ;;  %12665 = vpow2.f32 %v11053_v28  ;;  %v11052_v1 = vmul.f32 -1.442695, %v16942_v8  ;;  %v9514_v11 = vld [vmem:[#allocation3 + $0xb0] sm:$0xff]  ;;  %v9229_v59 = vld [vmem:[#allocation3 + $0xd8] sm:$0xff] }
 0x412   : > { %v9442_v20 = vadd.f32 %v9387_v33, %v9226_v12  ;;  %v12451_v19 = vpop.f32.mrb[138].mxu1  ;;  %v12648_v22 = vpop.eup %12647  ;;  %v11111_v18 = vpack.c.bf16 %v10037_v50, %v10037_v50  ;;  %v10038_v0 = vmul.f32 %v12646_v7, %v16843_v14  ;;  %12667 = vpow2.f32 %v11051_v54  ;;  %v9512_v15 = vld [vmem:[#allocation3 + $0xa0] sm:$0xff] }
 0x413   : > { %v9730_v21 = vadd.f32 %v16907_v45, %v9514_v11  ;;  %9476 = vst.msk [vmem:[#allocation3 + $0xd0] sm:$0xff] %vm517_vm8, %v9444_v55  ;;  %v16954_v27 = vpop.f32.mrb[139].mxu1  ;;  %v12650_v58 = vpop.eup %12649  ;;  %v11109_v3 = vpack.c.bf16 %v10035_v49, %v10035_v49  ;;  %v10036_v53 = vmul.f32 %v12648_v22, %v16848_v56  ;;  %12669 = vpow2.f32 %v11054_v57  ;;  %v9790_v40 = vld [vmem:[#allocation3 + $0x90] sm:$0xff]  ;;  %v9515_v14 = vld [vmem:[#allocation3 + $0xb8] sm:$0xff] }
 0x414   : > { %v16949_v62 = vpop.f32.mrb[136].mxu0  ;;  %v9728_v51 = vadd.f32 %v16910_v6, %v9512_v15  ;;  %9474 = vst.msk [vmem:[#allocation3 + $0xc0] sm:$0xff] %vm517_vm8, %v9442_v20  ;;  %v12652_v45 = vpop.eup %12651  ;;  %v11112_v52 = vpack.c.bf16 %v10038_v0, %v10038_v0  ;;  %v9949_v60 = vadd.f32 1.0, %v12650_v58  ;;  %12671 = vpow2.f32 %v11052_v1  ;;  %v9788_v6 = vld [vmem:[#allocation3 + $0x80] sm:$0xff]  ;;  %v9513_v16 = vld [vmem:[#allocation3 + $0xa8] sm:$0xff] }
 0x415   : > { %v16956_v37 = vpop.f32.mrb[137].mxu0  ;;  %10198 = vst.msk [vmem:[%s16964_s8 + $0x8] sm:$0xf] %vm10195_vm6, %v11111_v18  ;;  %v16969_v56 = vadd.f32 %v16827_v30, %v9790_v40  ;;  %v12654_v4 = vpop.eup %12653  ;;  %10196 = vst.msk [vmem:[%s16964_s8] sm:$0xf] %vm10195_vm6, %v11109_v3  ;;  %v11110_v46 = vpack.c.bf16 %v10036_v53, %v10036_v53  ;;  %v9947_v31 = vadd.f32 1.0, %v12652_v45  ;;  %v16977_v38 = vadd.f32 %v16827_v30, %v9788_v6 }
 0x416   : > { %v16961_v2 = vpop.f32.mrb[138].mxu0  ;;  %9762 = vst.msk [vmem:[#allocation3 + $0xb0] sm:$0xff] %vm517_vm8, %v9730_v21  ;;  %v9791_v34 = vld [vmem:[#allocation3 + $0x98] sm:$0xff]  ;;  %9760 = vst.msk [vmem:[#allocation3 + $0xa0] sm:$0xff] %vm517_vm8, %v9728_v51  ;;  %v9731_v35 = vadd.f32 %v16915_v32, %v9515_v14  ;;  %v12656_v63 = vpop.eup %12655  ;;  %12673 = vrcp.f32 %v9949_v60  ;;  %v9950_v23 = vadd.f32 1.0, %v12654_v4  ;;  %v9789_v28 = vld [vmem:[#allocation3 + $0x88] sm:$0xff]  ;;  %v9445_v12 = vadd.f32 %v12451_v19, %v9229_v59 }
 0x417   : > { %v16972_v26 = vpop.f32.mrb[139].mxu0  ;;  %10199 = vst.msk [vmem:[%s16964_s8 + $0xc] sm:$0xf] %vm10195_vm6, %v11112_v52  ;;  %v11057_v61 = vmul.f32 -1.442695, %v16969_v56  ;;  %v16985_v44 = vadd.f32 %v16827_v30, %v9791_v34  ;;  %v12658_v36 = vpop.eup %12657  ;;  %12675 = vrcp.f32 %v9947_v31  ;;  %v9948_v54 = vadd.f32 1.0, %v12656_v63 }
 0x418   : > { %10197 = vst.msk [vmem:[%s16964_s8 + $0x4] sm:$0xf] %vm10195_vm6, %v11110_v46  ;;  %v11055_v24 = vmul.f32 -1.442695, %v16977_v38  ;;  %v16991_v32 = vadd.f32 %v16827_v30, %v9789_v28  ;;  %v12454_v42 = vpop.f32.mrb[140].mxu1  ;;  %v12660_v50 = vpop.eup %12659  ;;  %v10041_v57 = vmul.f32 %v12658_v36, %v16856_v48  ;;  %12677 = vrcp.f32 %v9950_v23  ;;  %v9227_v20 = vld [vmem:[#allocation3 + $0xc8] sm:$0xff] }
 0x419   : > { %9763 = vst.msk [vmem:[#allocation3 + $0xb8] sm:$0xff] %vm517_vm8, %v9731_v35  ;;  %v11058_v55 = vmul.f32 -1.442695, %v16985_v44  ;;  %v9403_v33 = vpop.f32.mrb[141].mxu1  ;;  %v12662_v7 = vpop.eup %12661  ;;  %v10039_v49 = vmul.f32 %v12660_v50, %v16861_v5  ;;  %12679 = vrcp.f32 %v9948_v54  ;;  %v9729_v11 = vadd.f32 %v16923_v41, %v9513_v16  ;;  %9477 = vst.msk [vmem:[#allocation3 + $0xd8] sm:$0xff] %vm517_vm8, %v9445_v12  ;;  %v9232_v31 = vld [vmem:[#allocation3 + $0xf0] sm:$0xff] }
 0x41a   : > { %v11056_v1 = vmul.f32 -1.442695, %v16991_v32  ;;  %v9518_v22 = vld [vmem:[#allocation3 + $0xd0] sm:$0xff]  ;;  %v12455_v18 = vpop.f32.mrb[142].mxu1  ;;  %v12664_v21 = vpop.eup %12663  ;;  %v11115_v48 = vpack.c.bf16 %v10041_v57, %v10041_v57  ;;  %v10042_v15 = vmul.f32 %v12662_v7, %v16867_v47  ;;  %12681 = vpow2.f32 %v11057_v61  ;;  %v9233_v59 = vld [vmem:[#allocation3 + $0xf8] sm:$0xff] }
 0x41b   : > { %v9443_v5 = vadd.f32 %v16954_v27, %v9227_v20  ;;  %v9406_v19 = vpop.f32.mrb[143].mxu1  ;;  %v12666_v3 = vpop.eup %12665  ;;  %v11113_v41 = vpack.c.bf16 %v10039_v49, %v10039_v49  ;;  %v10040_v53 = vmul.f32 %v12664_v21, %v16872_v10  ;;  %12683 = vpow2.f32 %v11055_v24  ;;  %9761 = vst.msk [vmem:[#allocation3 + $0xa8] sm:$0xff] %vm517_vm8, %v9729_v11  ;;  %v9516_v34 = vld [vmem:[#allocation3 + $0xc0] sm:$0xff] }
 0x41c   : > { %v16999_v0 = vpop.f32.mrb[140].mxu0  ;;  %v9734_v51 = vadd.f32 %v16949_v62, %v9518_v22  ;;  %v12668_v14 = vpop.eup %12667  ;;  %10202 = vst.msk [vmem:[%s16964_s8 + $0x18] sm:$0xf] %vm10195_vm6, %v11115_v48  ;;  %v11116_v27 = vpack.c.bf16 %v10042_v15, %v10042_v15  ;;  %v9953_v45 = vadd.f32 1.0, %v12666_v3  ;;  %12685 = vpow2.f32 %v11058_v55  ;;  %v9230_v24 = vld [vmem:[#allocation3 + $0xe0] sm:$0xff] }
 0x41d   : > { %v17004_v58 = vpop.f32.mrb[141].mxu0  ;;  %v9794_v40 = vld [vmem:[#allocation3 + $0xb0] sm:$0xff]  ;;  %v9792_v10 = vld [vmem:[#allocation3 + $0xa0] sm:$0xff]  ;;  %9475 = vst.msk [vmem:[#allocation3 + $0xc8] sm:$0xff] %vm517_vm8, %v9443_v5  ;;  %v12670_v6 = vpop.eup %12669  ;;  %v11114_v62 = vpack.c.bf16 %v10040_v53, %v10040_v53  ;;  %v9951_v4 = vadd.f32 1.0, %v12668_v14  ;;  %12687 = vpow2.f32 %v11056_v1  ;;  %v9448_v28 = vadd.f32 %v12454_v42, %v9232_v31  ;;  %v9231_v42 = vld [vmem:[#allocation3 + $0xe8] sm:$0xff] }
 0x41e   : > { %v17009_v47 = vpop.f32.mrb[142].mxu0  ;;  %v17014_v52 = vadd.f32 %v16827_v30, %v9794_v40  ;;  %10200 = vst.msk [vmem:[%s16964_s8 + $0x10] sm:$0xf] %vm10195_vm6, %v11113_v41  ;;  %v17022_v46 = vadd.f32 %v16827_v30, %v9792_v10  ;;  %v12672_v35 = vpop.eup %12671  ;;  %10203 = vst.msk [vmem:[%s16964_s8 + $0x1c] sm:$0xf] %vm10195_vm6, %v11116_v27  ;;  %12689 = vrcp.f32 %v9953_v45  ;;  %v9954_v63 = vadd.f32 1.0, %v12670_v6 }
 0x41f   : > { %v17017_v60 = vpop.f32.mrb[143].mxu0  ;;  %9766 = vst.msk [vmem:[#allocation3 + $0xd0] sm:$0xff] %vm517_vm8, %v9734_v51  ;;  %12691 = vrcp.f32 %v9951_v4  ;;  %v9952_v16 = vadd.f32 1.0, %v12672_v35  ;;  %9480 = vst.msk [vmem:[#allocation3 + $0xf0] sm:$0xff] %vm517_vm8, %v9448_v28  ;;  %v9732_v57 = vadd.f32 %v16956_v37, %v9516_v34  ;;  %v9446_v55 = vadd.f32 %v9403_v33, %v9230_v24 }
 0x420   : > { %v11061_v23 = vmul.f32 -1.442695, %v17014_v52  ;;  %v9795_v61 = vld [vmem:[#allocation3 + $0xb8] sm:$0xff]  ;;  %10201 = vst.msk [vmem:[%s16964_s8 + $0x14] sm:$0xf] %vm10195_vm6, %v11114_v62  ;;  %v12674_v50 = vpop.eup %12673  ;;  %12693 = vrcp.f32 %v9954_v63  ;;  %v9449_v12 = vadd.f32 %v12455_v18, %v9233_v59  ;;  %v9447_v20 = vadd.f32 %v9406_v19, %v9231_v42 }
 0x421   : > { %v11059_v36 = vmul.f32 -1.442695, %v17022_v46  ;;  %v17032_v54 = vadd.f32 %v16827_v30, %v9795_v61  ;;  %v12676_v7 = vpop.eup %12675  ;;  %v10045_v49 = vmul.f32 %v12674_v50, %v16884_v9  ;;  %12695 = vrcp.f32 %v9952_v16  ;;  %v9519_v11 = vld [vmem:[#allocation3 + $0xd8] sm:$0xff]  ;;  %9764 = vst.msk [vmem:[#allocation3 + $0xc0] sm:$0xff] %vm517_vm8, %v9732_v57  ;;  %9478 = vst.msk [vmem:[#allocation3 + $0xe0] sm:$0xff] %vm517_vm8, %v9446_v55 }
 0x422   : > { %v12678_v22 = vpop.eup %12677  ;;  %v10043_v21 = vmul.f32 %v12676_v7, %v16891_v29  ;;  %12697 = vpow2.f32 %v11061_v23  ;;  %v9793_v48 = vld [vmem:[#allocation3 + $0xa8] sm:$0xff]  ;;  %v9735_v37 = vadd.f32 %v16961_v2, %v9519_v11  ;;  %9481 = vst.msk [vmem:[#allocation3 + $0xf8] sm:$0xff] %vm517_vm8, %v9449_v12  ;;  %9479 = vst.msk [vmem:[#allocation3 + $0xe8] sm:$0xff] %vm517_vm8, %v9447_v20 }
 0x423   : > { %v11062_v1 = vmul.f32 -1.442695, %v17032_v54  ;;  %v12680_v9 = vpop.eup %12679  ;;  %v11119_v33 = vpack.c.bf16 %v10045_v49, %v10045_v49  ;;  %v10046_v18 = vmul.f32 %v12678_v22, %v16897_v25  ;;  %12699 = vpow2.f32 %v11059_v36 }
 0x424   : > { %v17045_v15 = vadd.f32 %v16827_v30, %v9793_v48  ;;  %v9517_v29 = vld [vmem:[#allocation3 + $0xc8] sm:$0xff]  ;;  %v12682_v5 = vpop.eup %12681  ;;  %v11117_v19 = vpack.c.bf16 %v10043_v21, %v10043_v21  ;;  %v10044_v3 = vmul.f32 %v12680_v9, %v16902_v17  ;;  %9767 = vst.msk [vmem:[#allocation3 + $0xd8] sm:$0xff] %vm517_vm8, %v9735_v37 }
 0x425   : > { %12701 = vpow2.f32 %v11062_v1  ;;  %v9733_v41 = vadd.f32 %v16972_v26, %v9517_v29  ;;  %v12684_v25 = vpop.eup %12683  ;;  %10206 = vst.msk [vmem:[%s16964_s8 + $0x28] sm:$0xf] %vm10195_vm6, %v11119_v33  ;;  %v11120_v53 = vpack.c.bf16 %v10046_v18, %v10046_v18  ;;  %v9957_v40 = vadd.f32 1.0, %v12682_v5 }
 0x426   : > { %v9798_v2 = vld [vmem:[#allocation3 + $0xd0] sm:$0xff]  ;;  %v12686_v14 = vpop.eup %12685  ;;  %10204 = vst.msk [vmem:[%s16964_s8 + $0x20] sm:$0xf] %vm10195_vm6, %v11117_v19  ;;  %v11118_v17 = vpack.c.bf16 %v10044_v3, %v10044_v3  ;;  %v9955_v27 = vadd.f32 1.0, %v12684_v25  ;;  %v11060_v10 = vmul.f32 -1.442695, %v17045_v15 }
 0x427   : > { %v17054_v51 = vadd.f32 %v16827_v30, %v9798_v2  ;;  %9765 = vst.msk [vmem:[#allocation3 + $0xc8] sm:$0xff] %vm517_vm8, %v9733_v41  ;;  %v12688_v45 = vpop.eup %12687  ;;  %12703 = vrcp.f32 %v9957_v40  ;;  %v9958_v26 = vadd.f32 1.0, %v12686_v14  ;;  %v9522_v6 = vld [vmem:[#allocation3 + $0xf0] sm:$0xff] }
 0x428   : > { %10207 = vst.msk [vmem:[%s16964_s8 + $0x2c] sm:$0xf] %vm10195_vm6, %v11120_v53  ;;  %v12690_v62 = vpop.eup %12689  ;;  %10205 = vst.msk [vmem:[%s16964_s8 + $0x24] sm:$0xf] %vm10195_vm6, %v11118_v17  ;;  %12705 = vrcp.f32 %v9955_v27  ;;  %v9956_v4 = vadd.f32 1.0, %v12688_v45  ;;  %v9738_v34 = vadd.f32 %v16999_v0, %v9522_v6  ;;  %v9796_v23 = vld [vmem:[#allocation3 + $0xc0] sm:$0xff] }
 0x429   : > { %v11065_v31 = vmul.f32 -1.442695, %v17054_v51  ;;  %v12692_v35 = vpop.eup %12691  ;;  %v10049_v63 = vmul.f32 %v12690_v62, %v16918_v43  ;;  %12707 = vrcp.f32 %v9958_v26  ;;  %v9520_v61 = vld [vmem:[#allocation3 + $0xe0] sm:$0xff]  ;;  %v9523_v28 = vld [vmem:[#allocation3 + $0xf8] sm:$0xff]  ;;  %v17069_v24 = vadd.f32 %v16827_v30, %v9796_v23  ;;  %v9521_v0 = vld [vmem:[#allocation3 + $0xe8] sm:$0xff] }
 0x42a   : > { %v12694_v16 = vpop.eup %12693  ;;  %v10047_v36 = vmul.f32 %v12692_v35, %v16926_v39  ;;  %12709 = vrcp.f32 %v9956_v4  ;;  %9770 = vst.msk [vmem:[#allocation3 + $0xf0] sm:$0xff] %vm517_vm8, %v9738_v34  ;;  %v9736_v59 = vadd.f32 %v17004_v58, %v9520_v61  ;;  %v9739_v12 = vadd.f32 %v17009_v47, %v9523_v28 }
 0x42b   : > { %v12696_v50 = vpop.eup %12695  ;;  %v11123_v57 = vpack.c.bf16 %v10049_v63, %v10049_v63  ;;  %v10050_v43 = vmul.f32 %v12694_v16, %v16937_v13  ;;  %12711 = vpow2.f32 %v11060_v10  ;;  %v9799_v55 = vld [vmem:[#allocation3 + $0xd8] sm:$0xff]  ;;  %v11063_v49 = vmul.f32 -1.442695, %v17069_v24 }
 0x42c   : > { %v12698_v39 = vpop.eup %12697  ;;  %v11121_v42 = vpack.c.bf16 %v10047_v36, %v10047_v36  ;;  %v10048_v7 = vmul.f32 %v12696_v50, %v16942_v8  ;;  %12713 = vpow2.f32 %v11065_v31  ;;  %9768 = vst.msk [vmem:[#allocation3 + $0xe0] sm:$0xff] %vm517_vm8, %v9736_v59  ;;  %v17081_v11 = vadd.f32 %v16827_v30, %v9799_v55  ;;  %9771 = vst.msk [vmem:[#allocation3 + $0xf8] sm:$0xff] %vm517_vm8, %v9739_v12 }
 0x42d   : > { %v12700_v58 = vpop.eup %12699  ;;  %10210 = vst.msk [vmem:[%s16964_s8 + $0x38] sm:$0xf] %vm10195_vm6, %v11123_v57  ;;  %v11124_v1 = vpack.c.bf16 %v10050_v43, %v10050_v43  ;;  %v9961_v13 = vadd.f32 1.0, %v12698_v39  ;;  %v9737_v8 = vadd.f32 %v17017_v60, %v9521_v0  ;;  %12715 = vpow2.f32 %v11063_v49 }
 0x42e   : > { %v9797_v47 = vld [vmem:[#allocation3 + $0xc8] sm:$0xff]  ;;  %10208 = vst.msk [vmem:[%s16964_s8 + $0x30] sm:$0xf] %vm10195_vm6, %v11121_v42  ;;  %v11122_v22 = vpack.c.bf16 %v10048_v7, %v10048_v7  ;;  %v9959_v21 = vadd.f32 1.0, %v12700_v58  ;;  %v11066_v9 = vmul.f32 -1.442695, %v17081_v11 }
 0x42f   : > { %v12702_v20 = vpop.eup %12701  ;;  %v17088_v48 = vadd.f32 %v16827_v30, %v9797_v47  ;;  %10211 = vst.msk [vmem:[%s16964_s8 + $0x3c] sm:$0xf] %vm10195_vm6, %v11124_v1  ;;  %12717 = vrcp.f32 %v9961_v13 }
 0x430   : > { %v9962_v37 = vadd.f32 1.0, %v12702_v20  ;;  %9769 = vst.msk [vmem:[#allocation3 + $0xe8] sm:$0xff] %vm517_vm8, %v9737_v8  ;;  %12719 = vrcp.f32 %v9959_v21 }
 0x431   : > { %10209 = vst.msk [vmem:[%s16964_s8 + $0x34] sm:$0xf] %vm10195_vm6, %v11122_v22  ;;  %v11064_v60 = vmul.f32 -1.442695, %v17088_v48  ;;  %v12704_v33 = vpop.eup %12703  ;;  %v9802_v18 = vld [vmem:[#allocation3 + $0xf0] sm:$0xff] }
 0x432   : > { %12721 = vrcp.f32 %v9962_v37  ;;  %v12706_v29 = vpop.eup %12705  ;;  %v10053_v5 = vmul.f32 %v12704_v33, %v16969_v56  ;;  %v17099_v19 = vadd.f32 %v16827_v30, %v9802_v18 }
 0x433   : > { %12723 = vpow2.f32 %v11066_v9  ;;  %v12708_v3 = vpop.eup %12707  ;;  %v10051_v2 = vmul.f32 %v12706_v29, %v16977_v38  ;;  %v9800_v41 = vld [vmem:[#allocation3 + $0xe0] sm:$0xff]  ;;  %v9803_v56 = vld [vmem:[#allocation3 + $0xf8] sm:$0xff] }
 0x434   : > { %12725 = vpow2.f32 %v11064_v60  ;;  %v12710_v25 = vpop.eup %12709  ;;  %v11127_v53 = vpack.c.bf16 %v10053_v5, %v10053_v5  ;;  %v10054_v40 = vmul.f32 %v12708_v3, %v16985_v44  ;;  %v11069_v14 = vmul.f32 -1.442695, %v17099_v19 }
 0x435   : > { %v17105_v17 = vadd.f32 %v16827_v30, %v9800_v41  ;;  %v12712_v27 = vpop.eup %12711  ;;  %v11125_v45 = vpack.c.bf16 %v10051_v2, %v10051_v2  ;;  %v10052_v26 = vmul.f32 %v12710_v25, %v16991_v32  ;;  %v17109_v38 = vadd.f32 %v16827_v30, %v9803_v56 }
 0x436   : > { %v12714_v10 = vpop.eup %12713  ;;  %10214 = vst.msk [vmem:[%s16964_s8 + $0x48] sm:$0xf] %vm10195_vm6, %v11127_v53  ;;  %v11128_v6 = vpack.c.bf16 %v10054_v40, %v10054_v40  ;;  %v9960_v44 = vadd.f32 1.0, %v12712_v27  ;;  %12727 = vpow2.f32 %v11069_v14 }
 0x437   : > { %v11067_v62 = vmul.f32 -1.442695, %v17105_v17  ;;  %v9801_v4 = vld [vmem:[#allocation3 + $0xe8] sm:$0xff]  ;;  %10212 = vst.msk [vmem:[%s16964_s8 + $0x40] sm:$0xf] %vm10195_vm6, %v11125_v45  ;;  %v11126_v31 = vpack.c.bf16 %v10052_v26, %v10052_v26  ;;  %v9965_v34 = vadd.f32 1.0, %v12714_v10  ;;  %v12716_v32 = vpop.eup %12715 }
 0x438   : > { %v17117_v35 = vadd.f32 %v16827_v30, %v9801_v4  ;;  %10215 = vst.msk [vmem:[%s16964_s8 + $0x4c] sm:$0xf] %vm10195_vm6, %v11128_v6  ;;  %12729 = vrcp.f32 %v9960_v44  ;;  %v11070_v63 = vmul.f32 -1.442695, %v17109_v38  ;;  %v9963_v61 = vadd.f32 1.0, %v12716_v32 }
 0x439   : > { %v12718_v23 = vpop.eup %12717  ;;  %10213 = vst.msk [vmem:[%s16964_s8 + $0x44] sm:$0xf] %vm10195_vm6, %v11126_v31  ;;  %12731 = vrcp.f32 %v9965_v34 }
 0x43a   : > { %v11068_v28 = vmul.f32 -1.442695, %v17117_v35  ;;  %v12720_v16 = vpop.eup %12719  ;;  %v10057_v36 = vmul.f32 %v12718_v23, %v17014_v52  ;;  %12733 = vpow2.f32 %v11067_v62 }
 0x43b   : > { %v10055_v59 = vmul.f32 %v12720_v16, %v17022_v46  ;;  %12735 = vrcp.f32 %v9963_v61 }
 0x43c   : > { %v12722_v30 = vpop.eup %12721  ;;  %v11131_v50 = vpack.c.bf16 %v10057_v36, %v10057_v36  ;;  %12737 = vpow2.f32 %v11070_v63 }
 0x43d   : > { %v12724_v0 = vpop.eup %12723  ;;  %v10058_v57 = vmul.f32 %v12722_v30, %v17032_v54  ;;  %v11129_v55 = vpack.c.bf16 %v10055_v59, %v10055_v59  ;;  %12739 = vpow2.f32 %v11068_v28 }
 0x43e   : > { %v12726_v43 = vpop.eup %12725  ;;  %v9966_v12 = vadd.f32 1.0, %v12724_v0  ;;  %10218 = vst.msk [vmem:[%s16964_s8 + $0x58] sm:$0xf] %vm10195_vm6, %v11131_v50 }
 0x43f   : > { %v11132_v39 = vpack.c.bf16 %v10058_v57, %v10058_v57  ;;  %v9964_v52 = vadd.f32 1.0, %v12726_v43  ;;  %10216 = vst.msk [vmem:[%s16964_s8 + $0x50] sm:$0xf] %vm10195_vm6, %v11129_v55 }
 0x440   : > { %12741 = vrcp.f32 %v9966_v12  ;;  %v12728_v42 = vpop.eup %12727 }
 0x441   : > { %10219 = vst.msk [vmem:[%s16964_s8 + $0x5c] sm:$0xf] %vm10195_vm6, %v11132_v39  ;;  %12743 = vrcp.f32 %v9964_v52  ;;  %v9969_v46 = vadd.f32 1.0, %v12728_v42 }
 0x442   : > { %v12730_v7 = vpop.eup %12729 }
 0x443   : > { %v12732_v54 = vpop.eup %12731  ;;  %v10056_v49 = vmul.f32 %v12730_v7, %v17045_v15  ;;  %12745 = vrcp.f32 %v9969_v46 }
 0x444   : > { %v12734_v58 = vpop.eup %12733  ;;  %v10061_v1 = vmul.f32 %v12732_v54, %v17054_v51 }
 0x445   : > { %v12736_v13 = vpop.eup %12735  ;;  %v11130_v47 = vpack.c.bf16 %v10056_v49, %v10056_v49  ;;  %v9967_v8 = vadd.f32 1.0, %v12734_v58 }
 0x446   : > { %v12738_v20 = vpop.eup %12737  ;;  %v11135_v22 = vpack.c.bf16 %v10061_v1, %v10061_v1  ;;  %v10059_v21 = vmul.f32 %v12736_v13, %v17069_v24 }
 0x447   : > { %v12740_v37 = vpop.eup %12739  ;;  %10217 = vst.msk [vmem:[%s16964_s8 + $0x54] sm:$0xf] %vm10195_vm6, %v11130_v47  ;;  %12747 = vrcp.f32 %v9967_v8  ;;  %v9970_v9 = vadd.f32 1.0, %v12738_v20 }
 0x448   : > { %10222 = vst.msk [vmem:[%s16964_s8 + $0x68] sm:$0xf] %vm10195_vm6, %v11135_v22  ;;  %v11133_v15 = vpack.c.bf16 %v10059_v21, %v10059_v21  ;;  %v9968_v60 = vadd.f32 1.0, %v12740_v37 }
 0x449   : > { %12749 = vrcp.f32 %v9970_v9 }
 0x44a   : > { %v12742_v51 = vpop.eup %12741  ;;  %10220 = vst.msk [vmem:[%s16964_s8 + $0x60] sm:$0xf] %vm10195_vm6, %v11133_v15  ;;  %12751 = vrcp.f32 %v9968_v60 }
 0x44b   : > { %v12744_v33 = vpop.eup %12743  ;;  %v10062_v24 = vmul.f32 %v12742_v51, %v17081_v11 }
 0x44c   : > { %v10060_v18 = vmul.f32 %v12744_v33, %v17088_v48 }
 0x44d   : > { %v11136_v29 = vpack.c.bf16 %v10062_v24, %v10062_v24  ;;  %v12746_v5 = vpop.eup %12745 }
 0x44e   : > { %v11134_v3 = vpack.c.bf16 %v10060_v18, %v10060_v18  ;;  %v10065_v2 = vmul.f32 %v12746_v5, %v17099_v19 }
 0x44f   : > { %10223 = vst.msk [vmem:[%s16964_s8 + $0x6c] sm:$0xf] %vm10195_vm6, %v11136_v29 }
 0x450   : > { %10221 = vst.msk [vmem:[%s16964_s8 + $0x64] sm:$0xf] %vm10195_vm6, %v11134_v3  ;;  %v11139_v41 = vpack.c.bf16 %v10065_v2, %v10065_v2 }
 0x451   : > { %v12748_v25 = vpop.eup %12747 }
 0x452   : > { %10226 = vst.msk [vmem:[%s16964_s8 + $0x78] sm:$0xf] %vm10195_vm6, %v11139_v41  ;;  %v10063_v11 = vmul.f32 %v12748_v25, %v17105_v17 }
 0x453   : > { %v12750_v48 = vpop.eup %12749 }
 0x454   : > { %v12752_v53 = vpop.eup %12751  ;;  %v11137_v40 = vpack.c.bf16 %v10063_v11, %v10063_v11  ;;  %v10066_v14 = vmul.f32 %v12750_v48, %v17109_v38 }
 0x455   : > { %v10064_v19 = vmul.f32 %v12752_v53, %v17117_v35 }
 0x456   : > { %10224 = vst.msk [vmem:[%s16964_s8 + $0x70] sm:$0xf] %vm10195_vm6, %v11137_v40  ;;  %v11140_v56 = vpack.c.bf16 %v10066_v14, %v10066_v14 }
 0x457   : > { %v11138_v17 = vpack.c.bf16 %v10064_v19, %v10064_v19 }
 0x458   : > { %10227 = vst.msk [vmem:[%s16964_s8 + $0x7c] sm:$0xf] %vm10195_vm6, %v11140_v56 }
 0x459   : > { %10225 = vst.msk [vmem:[%s16964_s8 + $0x74] sm:$0xf] %vm10195_vm6, %v11138_v17 }
 0x45a   : > { %12767 = shalt.err (!%p12764_p5)
}
 0x45b   : > { %s12768_s28 = scalar_lea.hbm %s17162_s19, 2048  ;;  %s12772_s4 = scalar_lea.hbm %s17221_s3, 4096 }
 0x45c   : > { %p12769_p6 = scmp.ne.s32.totalorder %s17162_s19, %s12768_s28  ;;  %p12773_p10 = scmp.lt.u32.totalorder %s17162_s19, %s17221_s3 }
 0x45d   : > { %p12774_p11 = scmp.lt.u32.totalorder %s12772_s4, %s12768_s28  ;;  %p12776_p13 = scmp.lt.u32.totalorder %s12768_s28, %s17162_s19 }
 0x45e   : > { %p12770_p7 = pnand %p12769_p6, %p12899_p4 }
 0x45f   : > { %p12775_p12 = por %p12774_p11, %p12773_p10 }
 0x460   : > { %p12771_p9 = pneg %p12770_p7 }
 0x461   : > { %p12777_p0 = por %p12776_p13, %p12775_p12 }
 0x463   : > { %p12778_p1 = pnand %p12777_p0, %p12771_p9 }
 0x465   : > { %12781 = shalt.err (!%p12778_p1)
}
 0x466   : > { %s12837_s7 = smov 64   ;;  %s12838_s8 = smov 4  }
 0x467   : > { %12496 = dma.vmem_to_hbm [thread:$0]  (%p12899_p4), %s17164_s10, 2048, %s17162_s19, %s17172_s15, %s12837_s7, %s12837_s7, %s12838_s8  }
 0x468 PF: > { %p12502_p2 = scmp.ge.s32.totalorder %s12832_s17, 2  ;;  %s10258_s9 = sand.u32 1, %s12812_s12  }
 0x469   : > { %s10259_s11 = scalar_lea.sflag [#allocation5], %s10258_s9 }
 0x46a   : > { %p12499_p3 = pnand %p12502_p2, %p12906_p8 }
 0x46c   : > { %12807 = dma.done.wait (!%p12499_p3), %s10259_s11, 2048  }
 0x46d   : > { %12809 = vsyncadd (!%p12499_p3), %s10259_s11, 4294965248  ;;  %s16_s17 = sadd.s32 1, %s12832_s17   ;;  %s17237_s12 = smov %s12816_s13 }
 0x46e   : > { %p13_p5 = scmp.ge.s32.totalorder %s16_s17, 4   ;;  %s17238_s13 = smov %s12820_s14 }
 0x46f   : > { %s17239_s14 = smov %s12912_s25  ;;  %s17240_s15 = smov %s12828_s16 }
 0x470   : > { %s17241_s16 = smov %s17243_s20  ;;  %15 = sbr.rel (!%p13_p5) target bundleno = 4 (0x4), region = 99 }
 0x477   :  { %10264 = vsyncpa [#allocation5], 1 }
 0x478   :  { %10266 = vsyncpa [#allocation5 + $0x1], 1 }

</bundles_post_ra>
